<compile_context>
chip_gen: v6e
topology: v6e:2x2x1
jax: 0.10.0
libtpu: 0.0.40
codegen_flags: <defaults>
</compile_context>

<pallas_src>
import functools

import numpy as np
import jax
import jax.numpy as jnp
from jax.experimental import pallas as pl
from jax.experimental.pallas import tpu as pltpu


# ----------------------------------------------------------------------------
# scaled-down SENet154 config
# ----------------------------------------------------------------------------
IMG = 32            # input spatial size (NCHW: B,3,32,32)
IN_CHANS = 3
CIN_PAD = 4         # input channels zero-padded 3 -> 4 (32*4 = 128 lanes)
NUM_CLASSES = 10
HEAD_PAD = 128      # classifier lanes padded to 128; sliced outside
GROUPS = 4          # real senet154: 64
SE_REDUCTION = 8    # real senet154: 16
STEM_CHS = (8, 8, 16)   # real: (64, 64, 128)

# per-block config (real: planes [64,128,256,512], blocks [3,8,36,3])
BLOCK_CFGS = (
    dict(cin=16,  planes=8,  stride=1, shortcut="conv1x1"),   # layer1.0
    dict(cin=32,  planes=8,  stride=1, shortcut="identity"),  # layer1.1
    dict(cin=32,  planes=16, stride=2, shortcut="conv3x3"),   # layer2.0
    dict(cin=64,  planes=32, stride=2, shortcut="conv3x3"),   # layer3.0
    dict(cin=128, planes=64, stride=2, shortcut="conv3x3"),   # layer4.0
)

# static spatial metadata per block (spatial: 8 -> 8 -> 8 -> 4 -> 2 -> 1)
BLOCK_META = (
    dict(p_idx=0, w_in=8, ow=8, shortcut="conv1x1"),
    dict(p_idx=0, w_in=8, ow=8, shortcut="identity"),
    dict(p_idx=1, w_in=8, ow=4, shortcut="conv3x3"),
    dict(p_idx=2, w_in=4, ow=2, shortcut="conv3x3"),
    dict(p_idx=3, w_in=2, ow=1, shortcut="conv3x3"),
)


# ----------------------------------------------------------------------------
# host-side constant / weight-matrix builders (lane layout: rows=H, lanes=W*C)
# ----------------------------------------------------------------------------
def _build_P(h, oh, stride, pad):
    """0/1 row-tap selection: P[i] @ X picks input row stride*oh + i - pad."""
    p = np.zeros((3, oh, h), np.float32)
    for i in range(3):
        for o in range(oh):
            r = stride * o + i - pad
            if 0 <= r < h:
                p[i, o, r] = 1.0
    return p


def _build_conv_A(w, w_in, ow, stride, pad=1):
    """w: (3,3,cin,cout) conv weights -> (3*w_in*cin, ow*cout) lane-layout matrix.

    Folds the 3 column taps, stride and zero-padding of a 3x3 conv; to be used
    against jnp.concatenate([P0@X, P1@X, P2@X], axis=1)."""
    _, _, cin, cout = w.shape
    a = np.zeros((3, w_in * cin, ow * cout), np.float32)
    for i in range(3):
        for j in range(3):
            for o in range(ow):
                c = stride * o + j - pad
                if 0 <= c < w_in:
                    a[i, c * cin:(c + 1) * cin, o * cout:(o + 1) * cout] += w[i, j]
    return a.reshape(3 * w_in * cin, ow * cout)


def _build_kron_A(w, w_spatial):
    """1x1 conv weights (cin,cout) -> kron(I_W, w) for the (rows, W*C) layout."""
    cin, cout = w.shape
    a = np.zeros((w_spatial * cin, w_spatial * cout), np.float32)
    for s in range(w_spatial):
        a[s * cin:(s + 1) * cin, s * cout:(s + 1) * cout] = w
    return a


def _build_pool_cols(w_in, ow, c, stride):
    """0/1 column-tap selection for the 3x3/2 ceil-mode maxpool (no padding)."""
    sel = np.zeros((3, w_in * c, ow * c), np.float32)
    eye = np.eye(c, dtype=np.float32)
    for j in range(3):
        for o in range(ow):
            col = stride * o + j
            if col < w_in:
                sel[j, col * c:(col + 1) * c, o * c:(o + 1) * c] = eye
    return sel


def _build_mean_cols(w_spatial, c):
    """(W*C, C) matrix averaging over the W positions of each channel."""
    m = np.zeros((w_spatial * c, c), np.float32)
    for s in range(w_spatial):
        m[s * c:(s + 1) * c, :] = np.eye(c, dtype=np.float32) / w_spatial
    return m


def _build_tile_cols(c, ow):
    """(C, OW*C) matrix broadcasting a per-channel gate across the W positions."""
    t = np.zeros((c, ow * c), np.float32)
    for s in range(ow):
        t[:, s * c:(s + 1) * c] = np.eye(c, dtype=np.float32)
    return t


def _tile_bias(b, ow):
    return np.tile(b, ow).reshape(1, -1)


# ----------------------------------------------------------------------------
# deterministic parameter init (BatchNorm folded; flat operand list in the
# exact positional order the kernel consumes them)
# ----------------------------------------------------------------------------
def init_params(seed=0):
    rng = np.random.default_rng(seed)

    def nrm(shape, std=0.05):
        return rng.normal(0.0, std, size=shape).astype(np.float32)

    def bn_fold(c):
        scale = (1.0 + 0.1 * rng.normal(size=c)).astype(np.float32)
        shift = (0.05 * rng.normal(size=c)).astype(np.float32)
        return scale, shift

    flat = []

    def add(a, dtype):
        flat.append(jnp.asarray(np.asarray(a, np.float32), dtype))

    def conv3x3_folded(cin, cout, w_in, ow, stride, groups=1):
        if groups == 1:
            w = nrm((3, 3, cin, cout))
        else:
            w = np.zeros((3, 3, cin, cout), np.float32)
            gi, go = cin // groups, cout // groups
            for g in range(groups):
                w[:, :, g * gi:(g + 1) * gi, g * go:(g + 1) * go] = nrm((3, 3, gi, go))
        scale, shift = bn_fold(cout)
        a = _build_conv_A(w * scale[None, None, None, :], w_in, ow, stride)
        return a, _tile_bias(shift, ow)

    # --- row-tap / maxpool selection constants (exact 0/1, kept f32) ---
    add(_build_P(32, 16, 2, 1), jnp.float32)                     # stem conv1 rows
    add(_build_P(16, 16, 1, 1), jnp.float32)                     # stem conv2/3 rows
    add(_build_P(16, 8, 2, 0), jnp.float32)                      # maxpool rows
    add(_build_pool_cols(16, 8, STEM_CHS[2], 2), jnp.float32)    # maxpool cols
    add(_build_P(8, 8, 1, 1), jnp.float32)                       # blocks 1,2
    add(_build_P(8, 4, 2, 1), jnp.float32)                       # block 3
    add(_build_P(4, 2, 2, 1), jnp.float32)                       # block 4
    add(_build_P(2, 1, 2, 1), jnp.float32)                       # block 5

    # --- stem: three 3x3 convs (+BN folded), strides (2,1,1) ---
    w = np.zeros((3, 3, CIN_PAD, STEM_CHS[0]), np.float32)       # padded in-channels
    w[:, :, :IN_CHANS, :] = nrm((3, 3, IN_CHANS, STEM_CHS[0]))
    scale, shift = bn_fold(STEM_CHS[0])
    add(_build_conv_A(w * scale[None, None, None, :], 32, 16, 2), jnp.bfloat16)
    add(_tile_bias(shift, 16), jnp.float32)
    a, b = conv3x3_folded(STEM_CHS[0], STEM_CHS[1], 16, 16, 1)
    add(a, jnp.bfloat16); add(b, jnp.float32)
    a, b = conv3x3_folded(STEM_CHS[1], STEM_CHS[2], 16, 16, 1)
    add(a, jnp.bfloat16); add(b, jnp.float32)

    # --- SE-Bottleneck blocks ---
    for cfg, meta in zip(BLOCK_CFGS, BLOCK_META):
        cin, planes, stride = cfg["cin"], cfg["planes"], cfg["stride"]
        c1, c2 = 2 * planes, 4 * planes
        w_in, ow = meta["w_in"], meta["ow"]

        s, sh = bn_fold(c1)                                       # conv1 1x1 (+bn1)
        add(_build_kron_A(nrm((cin, c1)) * s[None, :], w_in), jnp.bfloat16)
        add(_tile_bias(sh, w_in), jnp.float32)

        a, b = conv3x3_folded(c1, c2, w_in, ow, stride, groups=GROUPS)  # conv2 (+bn2)
        add(a, jnp.bfloat16); add(b, jnp.float32)

        s, sh = bn_fold(c2)                                       # conv3 1x1 (+bn3)
        add(_build_kron_A(nrm((c2, c2)) * s[None, :], ow), jnp.bfloat16)
        add(_tile_bias(sh, ow), jnp.float32)

        cr = max(c2 // SE_REDUCTION, 1)                           # SE module
        add(_build_mean_cols(ow, c2), jnp.bfloat16)               # W-mean (exact pow2)
        add(nrm((c2, cr)), jnp.bfloat16)
        add(np.zeros((1, cr), np.float32), jnp.float32)
        add(nrm((cr, c2)), jnp.bfloat16)
        add(np.zeros((1, c2), np.float32), jnp.float32)
        if ow > 1:
            add(_build_tile_cols(c2, ow), jnp.float32)            # gate lane-broadcast

        if cfg["shortcut"] == "conv1x1":                          # shortcut (+bn)
            s, sh = bn_fold(c2)
            add(_build_kron_A(nrm((cin, c2)) * s[None, :], w_in), jnp.bfloat16)
            add(_tile_bias(sh, w_in), jnp.float32)
        elif cfg["shortcut"] == "conv3x3":
            s, sh = bn_fold(c2)
            wd = nrm((3, 3, cin, c2)) * s[None, None, None, :]
            add(_build_conv_A(wd, w_in, ow, stride), jnp.bfloat16)
            add(_tile_bias(sh, ow), jnp.float32)

    # --- classifier head (lanes padded to 128; sliced to NUM_CLASSES outside) ---
    c_final = 4 * BLOCK_CFGS[-1]["planes"]
    wh = np.zeros((c_final, HEAD_PAD), np.float32)
    wh[:, :NUM_CLASSES] = nrm((c_final, NUM_CLASSES))
    add(wh, jnp.bfloat16)
    add(np.zeros((1, HEAD_PAD), np.float32), jnp.float32)
    return tuple(flat)


# ----------------------------------------------------------------------------
# the single fused kernel (one grid step == one image)
# ----------------------------------------------------------------------------
def _senet154_kernel(*refs, block_meta):
    it = iter(refs)
    x_ref = next(it)
    p32, p16, pmp, csel = next(it), next(it), next(it), next(it)
    pblk = tuple(next(it) for _ in range(4))

    f32 = jnp.float32

    def mm(a, b):                       # exact f32 matmul (0/1 selections etc.)
        return jnp.dot(a, b, preferred_element_type=f32)

    def mm16(x, w_ref):                 # bf16 operands, f32 accumulate
        return jnp.dot(x.astype(jnp.bfloat16), w_ref[...],
                       preferred_element_type=f32)

    def conv3x3(x, p_ref, a_ref, b_ref):
        # 3 tiny 0/1 row-tap matmuls, then ONE K = 3*W*Cin matmul (column taps,
        # stride, zero-pad, grouping and BN all folded into a_ref on the host).
        xcat = jnp.concatenate(
            [mm(p_ref[0], x), mm(p_ref[1], x), mm(p_ref[2], x)], axis=1)
        return mm16(xcat, a_ref) + b_ref[...]

    # ---- stem: 3x (3x3 conv + BN + ReLU), strides (2,1,1) ----
    x = x_ref[...]                                          # (32, 32*4)
    a, b = next(it), next(it)
    x = jnp.maximum(conv3x3(x, p32, a, b), 0.0)             # (16, 16*8)
    a, b = next(it), next(it)
    x = jnp.maximum(conv3x3(x, p16, a, b), 0.0)             # (16, 16*8)
    a, b = next(it), next(it)
    x = jnp.maximum(conv3x3(x, p16, a, b), 0.0)             # (16, 16*16)

    # ---- 3x3 / stride-2 ceil-mode maxpool (post-ReLU input >= 0, so the
    #      zero-filled clipped window positions are exact) ----
    xr = jnp.maximum(jnp.maximum(mm(pmp[0], x), mm(pmp[1], x)), mm(pmp[2], x))
    x = jnp.maximum(jnp.maximum(mm(xr, csel[0]), mm(xr, csel[1])),
                    mm(xr, csel[2]))                        # (8, 8*16)

    # ---- SE-Bottleneck blocks ----
    for meta in block_meta:
        a1, b1 = next(it), next(it)
        a2, b2 = next(it), next(it)
        a3, b3 = next(it), next(it)
        mw = next(it)
        wse1, bse1 = next(it), next(it)
        wse2, bse2 = next(it), next(it)
        tg = next(it) if meta["ow"] > 1 else None
        if meta["shortcut"] != "identity":
            ad, bd = next(it), next(it)
        p = pblk[meta["p_idx"]]
        ohw = meta["ow"]

        y1 = jnp.maximum(mm16(x, a1) + b1[...], 0.0)        # conv1 1x1 + bn + relu
        y2 = jnp.maximum(conv3x3(y1, p, a2, b2), 0.0)       # grouped 3x3 + bn + relu
        y3 = mm16(y2, a3) + b3[...]                         # conv3 1x1 + bn

        # squeeze-excitation: per-image global average pool + fc/relu/fc/sigmoid
        if ohw > 1:
            row_mean = jnp.full((1, ohw), 1.0 / ohw, dtype=f32)
            pooled_sp = mm(row_mean, y3)                    # mean over image rows
        else:
            pooled_sp = y3
        pooled = mm16(pooled_sp, mw)                        # mean over cols -> (1, c2)
        z = jnp.maximum(mm16(pooled, wse1) + bse1[...], 0.0)
        g = mm16(z, wse2) + bse2[...]
        gate = 1.0 / (1.0 + jnp.exp(-g))                    # (1, c2)
        gate_row = mm(gate, tg[...]) if tg is not None else gate
        y_se = y3 * gate_row

        if meta["shortcut"] == "identity":
            res = x
        elif meta["shortcut"] == "conv1x1":
            res = mm16(x, ad) + bd[...]
        else:                                               # 3x3 stride-2 downsample
            res = conv3x3(x, p, ad, bd)
        x = jnp.maximum(y_se + res, 0.0)

    # ---- head: global avg pool (spatial is 1x1 here) + linear ----
    # TODO(synk): Dropout(p=0.2) before the classifier is identity in eval mode.
    wh, bh = next(it), next(it)
    o_ref = next(it)
    logits = mm16(x, wh) + bh[...]                          # (1, 128)
    o_ref[0] = jnp.broadcast_to(logits, (8, HEAD_PAD))      # lane/sublane-dense store


# ----------------------------------------------------------------------------
# wrapper: whole forward = ONE pallas_call, grid over batch ("parallel")
# ----------------------------------------------------------------------------
def senet154_forward(x_nchw, flat_params):
    bsz = x_nchw.shape[0]
    x = jnp.transpose(x_nchw, (0, 2, 3, 1))                 # NHWC (layout plumbing)
    x = jnp.pad(x, ((0, 0), (0, 0), (0, 0), (0, CIN_PAD - IN_CHANS)))
    x2d = x.reshape(bsz * IMG, IMG * CIN_PAD)               # (B*H, W*C) = (B*32, 128)

    in_specs = [pl.BlockSpec((IMG, IMG * CIN_PAD), lambda i: (i, 0))]
    for arr in flat_params:
        nd = arr.ndim
        in_specs.append(pl.BlockSpec(tuple(arr.shape), lambda i, nd=nd: (0,) * nd))

    out = pl.pallas_call(
        functools.partial(_senet154_kernel, block_meta=BLOCK_META),
        out_shape=jax.ShapeDtypeStruct((bsz, 8, HEAD_PAD), jnp.float32),
        grid=(bsz,),
        in_specs=in_specs,
        out_specs=pl.BlockSpec((1, 8, HEAD_PAD), lambda i: (i, 0, 0)),
        compiler_params=pltpu.CompilerParams(
            dimension_semantics=("parallel",),
            vmem_limit_bytes=48 * 1024 * 1024),
    )(x2d, *flat_params)

    return out[:, 0, :NUM_CLASSES]


if __name__ == "__main__":
    flat_params = init_params(seed=0)

    batch = 2
    key = jax.random.PRNGKey(0)
    x = jax.random.normal(key, (batch, IN_CHANS, IMG, IMG), jnp.float32)  # NCHW

    logits = jax.jit(senet154_forward)(x, flat_params)
    logits = jax.block_until_ready(logits)
    assert logits.shape == (batch, NUM_CLASSES)
    assert bool(jnp.all(jnp.isfinite(logits)))
    print("KERNEL_OK")
</pallas_src>

<mosaic_0001>
module attributes {stable_mosaic.version = 11 : i64} {
  func.func @_senet154_kernel(%arg0: i32, %arg1: memref<32x128xf32, #tpu.memory_space<vmem>>, %arg2: memref<3x16x32xf32, #tpu.memory_space<vmem>>, %arg3: memref<3x16x16xf32, #tpu.memory_space<vmem>>, %arg4: memref<3x8x16xf32, #tpu.memory_space<vmem>>, %arg5: memref<3x256x128xf32, #tpu.memory_space<vmem>>, %arg6: memref<3x8x8xf32, #tpu.memory_space<vmem>>, %arg7: memref<3x4x8xf32, #tpu.memory_space<vmem>>, %arg8: memref<3x2x4xf32, #tpu.memory_space<vmem>>, %arg9: memref<3x1x2xf32, #tpu.memory_space<vmem>>, %arg10: memref<384x128xbf16, #tpu.memory_space<vmem>>, %arg11: memref<1x128xf32, #tpu.memory_space<vmem>>, %arg12: memref<384x128xbf16, #tpu.memory_space<vmem>>, %arg13: memref<1x128xf32, #tpu.memory_space<vmem>>, %arg14: memref<384x256xbf16, #tpu.memory_space<vmem>>, %arg15: memref<1x256xf32, #tpu.memory_space<vmem>>, %arg16: memref<128x128xbf16, #tpu.memory_space<vmem>>, %arg17: memref<1x128xf32, #tpu.memory_space<vmem>>, %arg18: memref<384x256xbf16, #tpu.memory_space<vmem>>, %arg19: memref<1x256xf32, #tpu.memory_space<vmem>>, %arg20: memref<256x256xbf16, #tpu.memory_space<vmem>>, %arg21: memref<1x256xf32, #tpu.memory_space<vmem>>, %arg22: memref<256x32xbf16, #tpu.memory_space<vmem>>, %arg23: memref<32x4xbf16, #tpu.memory_space<vmem>>, %arg24: memref<1x4xf32, #tpu.memory_space<vmem>>, %arg25: memref<4x32xbf16, #tpu.memory_space<vmem>>, %arg26: memref<1x32xf32, #tpu.memory_space<vmem>>, %arg27: memref<32x256xf32, #tpu.memory_space<vmem>>, %arg28: memref<128x256xbf16, #tpu.memory_space<vmem>>, %arg29: memref<1x256xf32, #tpu.memory_space<vmem>>, %arg30: memref<256x128xbf16, #tpu.memory_space<vmem>>, %arg31: memref<1x128xf32, #tpu.memory_space<vmem>>, %arg32: memref<384x256xbf16, #tpu.memory_space<vmem>>, %arg33: memref<1x256xf32, #tpu.memory_space<vmem>>, %arg34: memref<256x256xbf16, #tpu.memory_space<vmem>>, %arg35: memref<1x256xf32, #tpu.memory_space<vmem>>, %arg36: memref<256x32xbf16, #tpu.memory_space<vmem>>, %arg37: memref<32x4xbf16, #tpu.memory_space<vmem>>, %arg38: memref<1x4xf32, #tpu.memory_space<vmem>>, %arg39: memref<4x32xbf16, #tpu.memory_space<vmem>>, %arg40: memref<1x32xf32, #tpu.memory_space<vmem>>, %arg41: memref<32x256xf32, #tpu.memory_space<vmem>>, %arg42: memref<256x256xbf16, #tpu.memory_space<vmem>>, %arg43: memref<1x256xf32, #tpu.memory_space<vmem>>, %arg44: memref<768x256xbf16, #tpu.memory_space<vmem>>, %arg45: memref<1x256xf32, #tpu.memory_space<vmem>>, %arg46: memref<256x256xbf16, #tpu.memory_space<vmem>>, %arg47: memref<1x256xf32, #tpu.memory_space<vmem>>, %arg48: memref<256x64xbf16, #tpu.memory_space<vmem>>, %arg49: memref<64x8xbf16, #tpu.memory_space<vmem>>, %arg50: memref<1x8xf32, #tpu.memory_space<vmem>>, %arg51: memref<8x64xbf16, #tpu.memory_space<vmem>>, %arg52: memref<1x64xf32, #tpu.memory_space<vmem>>, %arg53: memref<64x256xf32, #tpu.memory_space<vmem>>, %arg54: memref<768x256xbf16, #tpu.memory_space<vmem>>, %arg55: memref<1x256xf32, #tpu.memory_space<vmem>>, %arg56: memref<256x256xbf16, #tpu.memory_space<vmem>>, %arg57: memref<1x256xf32, #tpu.memory_space<vmem>>, %arg58: memref<768x256xbf16, #tpu.memory_space<vmem>>, %arg59: memref<1x256xf32, #tpu.memory_space<vmem>>, %arg60: memref<256x256xbf16, #tpu.memory_space<vmem>>, %arg61: memref<1x256xf32, #tpu.memory_space<vmem>>, %arg62: memref<256x128xbf16, #tpu.memory_space<vmem>>, %arg63: memref<128x16xbf16, #tpu.memory_space<vmem>>, %arg64: memref<1x16xf32, #tpu.memory_space<vmem>>, %arg65: memref<16x128xbf16, #tpu.memory_space<vmem>>, %arg66: memref<1x128xf32, #tpu.memory_space<vmem>>, %arg67: memref<128x256xf32, #tpu.memory_space<vmem>>, %arg68: memref<768x256xbf16, #tpu.memory_space<vmem>>, %arg69: memref<1x256xf32, #tpu.memory_space<vmem>>, %arg70: memref<256x256xbf16, #tpu.memory_space<vmem>>, %arg71: memref<1x256xf32, #tpu.memory_space<vmem>>, %arg72: memref<768x256xbf16, #tpu.memory_space<vmem>>, %arg73: memref<1x256xf32, #tpu.memory_space<vmem>>, %arg74: memref<256x256xbf16, #tpu.memory_space<vmem>>, %arg75: memref<1x256xf32, #tpu.memory_space<vmem>>, %arg76: memref<256x256xbf16, #tpu.memory_space<vmem>>, %arg77: memref<256x32xbf16, #tpu.memory_space<vmem>>, %arg78: memref<1x32xf32, #tpu.memory_space<vmem>>, %arg79: memref<32x256xbf16, #tpu.memory_space<vmem>>, %arg80: memref<1x256xf32, #tpu.memory_space<vmem>>, %arg81: memref<768x256xbf16, #tpu.memory_space<vmem>>, %arg82: memref<1x256xf32, #tpu.memory_space<vmem>>, %arg83: memref<256x128xbf16, #tpu.memory_space<vmem>>, %arg84: memref<1x128xf32, #tpu.memory_space<vmem>>, %arg85: memref<1x8x128xf32, #tpu.memory_space<vmem>>) attributes {dimension_semantics = [#tpu.dimension_semantics<parallel>], iteration_bounds = array<i64: 2>, scalar_prefetch = 0 : i64, scratch_operands = 0 : i64, tpu.core_type = #tpu.core_type<tc>, window_params = [{transform_indices = @transform_0, window_bounds = array<i64: 32, 128>}, {pipeline_mode = #tpu.pipeline_mode<synchronous>, transform_indices = @transform_1, window_bounds = array<i64: 3, 16, 32>}, {pipeline_mode = #tpu.pipeline_mode<synchronous>, transform_indices = @transform_2, window_bounds = array<i64: 3, 16, 16>}, {pipeline_mode = #tpu.pipeline_mode<synchronous>, transform_indices = @transform_3, window_bounds = array<i64: 3, 8, 16>}, {pipeline_mode = #tpu.pipeline_mode<synchronous>, transform_indices = @transform_4, window_bounds = array<i64: 3, 256, 128>}, {pipeline_mode = #tpu.pipeline_mode<synchronous>, transform_indices = @transform_5, window_bounds = array<i64: 3, 8, 8>}, {pipeline_mode = #tpu.pipeline_mode<synchronous>, transform_indices = @transform_6, window_bounds = array<i64: 3, 4, 8>}, {pipeline_mode = #tpu.pipeline_mode<synchronous>, transform_indices = @transform_7, window_bounds = array<i64: 3, 2, 4>}, {pipeline_mode = #tpu.pipeline_mode<synchronous>, transform_indices = @transform_8, window_bounds = array<i64: 3, 1, 2>}, {pipeline_mode = #tpu.pipeline_mode<synchronous>, transform_indices = @transform_9, window_bounds = array<i64: 384, 128>}, {pipeline_mode = #tpu.pipeline_mode<synchronous>, transform_indices = @transform_10, window_bounds = array<i64: 1, 128>}, {pipeline_mode = #tpu.pipeline_mode<synchronous>, transform_indices = @transform_11, window_bounds = array<i64: 384, 128>}, {pipeline_mode = #tpu.pipeline_mode<synchronous>, transform_indices = @transform_12, window_bounds = array<i64: 1, 128>}, {pipeline_mode = #tpu.pipeline_mode<synchronous>, transform_indices = @transform_13, window_bounds = array<i64: 384, 256>}, {pipeline_mode = #tpu.pipeline_mode<synchronous>, transform_indices = @transform_14, window_bounds = array<i64: 1, 256>}, {pipeline_mode = #tpu.pipeline_mode<synchronous>, transform_indices = @transform_15, window_bounds = array<i64: 128, 128>}, {pipeline_mode = #tpu.pipeline_mode<synchronous>, transform_indices = @transform_16, window_bounds = array<i64: 1, 128>}, {pipeline_mode = #tpu.pipeline_mode<synchronous>, transform_indices = @transform_17, window_bounds = array<i64: 384, 256>}, {pipeline_mode = #tpu.pipeline_mode<synchronous>, transform_indices = @transform_18, window_bounds = array<i64: 1, 256>}, {pipeline_mode = #tpu.pipeline_mode<synchronous>, transform_indices = @transform_19, window_bounds = array<i64: 256, 256>}, {pipeline_mode = #tpu.pipeline_mode<synchronous>, transform_indices = @transform_20, window_bounds = array<i64: 1, 256>}, {pipeline_mode = #tpu.pipeline_mode<synchronous>, transform_indices = @transform_21, window_bounds = array<i64: 256, 32>}, {pipeline_mode = #tpu.pipeline_mode<synchronous>, transform_indices = @transform_22, window_bounds = array<i64: 32, 4>}, {pipeline_mode = #tpu.pipeline_mode<synchronous>, transform_indices = @transform_23, window_bounds = array<i64: 1, 4>}, {pipeline_mode = #tpu.pipeline_mode<synchronous>, transform_indices = @transform_24, window_bounds = array<i64: 4, 32>}, {pipeline_mode = #tpu.pipeline_mode<synchronous>, transform_indices = @transform_25, window_bounds = array<i64: 1, 32>}, {pipeline_mode = #tpu.pipeline_mode<synchronous>, transform_indices = @transform_26, window_bounds = array<i64: 32, 256>}, {pipeline_mode = #tpu.pipeline_mode<synchronous>, transform_indices = @transform_27, window_bounds = array<i64: 128, 256>}, {pipeline_mode = #tpu.pipeline_mode<synchronous>, transform_indices = @transform_28, window_bounds = array<i64: 1, 256>}, {pipeline_mode = #tpu.pipeline_mode<synchronous>, transform_indices = @transform_29, window_bounds = array<i64: 256, 128>}, {pipeline_mode = #tpu.pipeline_mode<synchronous>, transform_indices = @transform_30, window_bounds = array<i64: 1, 128>}, {pipeline_mode = #tpu.pipeline_mode<synchronous>, transform_indices = @transform_31, window_bounds = array<i64: 384, 256>}, {pipeline_mode = #tpu.pipeline_mode<synchronous>, transform_indices = @transform_32, window_bounds = array<i64: 1, 256>}, {pipeline_mode = #tpu.pipeline_mode<synchronous>, transform_indices = @transform_33, window_bounds = array<i64: 256, 256>}, {pipeline_mode = #tpu.pipeline_mode<synchronous>, transform_indices = @transform_34, window_bounds = array<i64: 1, 256>}, {pipeline_mode = #tpu.pipeline_mode<synchronous>, transform_indices = @transform_35, window_bounds = array<i64: 256, 32>}, {pipeline_mode = #tpu.pipeline_mode<synchronous>, transform_indices = @transform_36, window_bounds = array<i64: 32, 4>}, {pipeline_mode = #tpu.pipeline_mode<synchronous>, transform_indices = @transform_37, window_bounds = array<i64: 1, 4>}, {pipeline_mode = #tpu.pipeline_mode<synchronous>, transform_indices = @transform_38, window_bounds = array<i64: 4, 32>}, {pipeline_mode = #tpu.pipeline_mode<synchronous>, transform_indices = @transform_39, window_bounds = array<i64: 1, 32>}, {pipeline_mode = #tpu.pipeline_mode<synchronous>, transform_indices = @transform_40, window_bounds = array<i64: 32, 256>}, {pipeline_mode = #tpu.pipeline_mode<synchronous>, transform_indices = @transform_41, window_bounds = array<i64: 256, 256>}, {pipeline_mode = #tpu.pipeline_mode<synchronous>, transform_indices = @transform_42, window_bounds = array<i64: 1, 256>}, {pipeline_mode = #tpu.pipeline_mode<synchronous>, transform_indices = @transform_43, window_bounds = array<i64: 768, 256>}, {pipeline_mode = #tpu.pipeline_mode<synchronous>, transform_indices = @transform_44, window_bounds = array<i64: 1, 256>}, {pipeline_mode = #tpu.pipeline_mode<synchronous>, transform_indices = @transform_45, window_bounds = array<i64: 256, 256>}, {pipeline_mode = #tpu.pipeline_mode<synchronous>, transform_indices = @transform_46, window_bounds = array<i64: 1, 256>}, {pipeline_mode = #tpu.pipeline_mode<synchronous>, transform_indices = @transform_47, window_bounds = array<i64: 256, 64>}, {pipeline_mode = #tpu.pipeline_mode<synchronous>, transform_indices = @transform_48, window_bounds = array<i64: 64, 8>}, {pipeline_mode = #tpu.pipeline_mode<synchronous>, transform_indices = @transform_49, window_bounds = array<i64: 1, 8>}, {pipeline_mode = #tpu.pipeline_mode<synchronous>, transform_indices = @transform_50, window_bounds = array<i64: 8, 64>}, {pipeline_mode = #tpu.pipeline_mode<synchronous>, transform_indices = @transform_51, window_bounds = array<i64: 1, 64>}, {pipeline_mode = #tpu.pipeline_mode<synchronous>, transform_indices = @transform_52, window_bounds = array<i64: 64, 256>}, {pipeline_mode = #tpu.pipeline_mode<synchronous>, transform_indices = @transform_53, window_bounds = array<i64: 768, 256>}, {pipeline_mode = #tpu.pipeline_mode<synchronous>, transform_indices = @transform_54, window_bounds = array<i64: 1, 256>}, {pipeline_mode = #tpu.pipeline_mode<synchronous>, transform_indices = @transform_55, window_bounds = array<i64: 256, 256>}, {pipeline_mode = #tpu.pipeline_mode<synchronous>, transform_indices = @transform_56, window_bounds = array<i64: 1, 256>}, {pipeline_mode = #tpu.pipeline_mode<synchronous>, transform_indices = @transform_57, window_bounds = array<i64: 768, 256>}, {pipeline_mode = #tpu.pipeline_mode<synchronous>, transform_indices = @transform_58, window_bounds = array<i64: 1, 256>}, {pipeline_mode = #tpu.pipeline_mode<synchronous>, transform_indices = @transform_59, window_bounds = array<i64: 256, 256>}, {pipeline_mode = #tpu.pipeline_mode<synchronous>, transform_indices = @transform_60, window_bounds = array<i64: 1, 256>}, {pipeline_mode = #tpu.pipeline_mode<synchronous>, transform_indices = @transform_61, window_bounds = array<i64: 256, 128>}, {pipeline_mode = #tpu.pipeline_mode<synchronous>, transform_indices = @transform_62, window_bounds = array<i64: 128, 16>}, {pipeline_mode = #tpu.pipeline_mode<synchronous>, transform_indices = @transform_63, window_bounds = array<i64: 1, 16>}, {pipeline_mode = #tpu.pipeline_mode<synchronous>, transform_indices = @transform_64, window_bounds = array<i64: 16, 128>}, {pipeline_mode = #tpu.pipeline_mode<synchronous>, transform_indices = @transform_65, window_bounds = array<i64: 1, 128>}, {pipeline_mode = #tpu.pipeline_mode<synchronous>, transform_indices = @transform_66, window_bounds = array<i64: 128, 256>}, {pipeline_mode = #tpu.pipeline_mode<synchronous>, transform_indices = @transform_67, window_bounds = array<i64: 768, 256>}, {pipeline_mode = #tpu.pipeline_mode<synchronous>, transform_indices = @transform_68, window_bounds = array<i64: 1, 256>}, {pipeline_mode = #tpu.pipeline_mode<synchronous>, transform_indices = @transform_69, window_bounds = array<i64: 256, 256>}, {pipeline_mode = #tpu.pipeline_mode<synchronous>, transform_indices = @transform_70, window_bounds = array<i64: 1, 256>}, {pipeline_mode = #tpu.pipeline_mode<synchronous>, transform_indices = @transform_71, window_bounds = array<i64: 768, 256>}, {pipeline_mode = #tpu.pipeline_mode<synchronous>, transform_indices = @transform_72, window_bounds = array<i64: 1, 256>}, {pipeline_mode = #tpu.pipeline_mode<synchronous>, transform_indices = @transform_73, window_bounds = array<i64: 256, 256>}, {pipeline_mode = #tpu.pipeline_mode<synchronous>, transform_indices = @transform_74, window_bounds = array<i64: 1, 256>}, {pipeline_mode = #tpu.pipeline_mode<synchronous>, transform_indices = @transform_75, window_bounds = array<i64: 256, 256>}, {pipeline_mode = #tpu.pipeline_mode<synchronous>, transform_indices = @transform_76, window_bounds = array<i64: 256, 32>}, {pipeline_mode = #tpu.pipeline_mode<synchronous>, transform_indices = @transform_77, window_bounds = array<i64: 1, 32>}, {pipeline_mode = #tpu.pipeline_mode<synchronous>, transform_indices = @transform_78, window_bounds = array<i64: 32, 256>}, {pipeline_mode = #tpu.pipeline_mode<synchronous>, transform_indices = @transform_79, window_bounds = array<i64: 1, 256>}, {pipeline_mode = #tpu.pipeline_mode<synchronous>, transform_indices = @transform_80, window_bounds = array<i64: 768, 256>}, {pipeline_mode = #tpu.pipeline_mode<synchronous>, transform_indices = @transform_81, window_bounds = array<i64: 1, 256>}, {pipeline_mode = #tpu.pipeline_mode<synchronous>, transform_indices = @transform_82, window_bounds = array<i64: 256, 128>}, {pipeline_mode = #tpu.pipeline_mode<synchronous>, transform_indices = @transform_83, window_bounds = array<i64: 1, 128>}, {transform_indices = @transform_84, window_bounds = array<i64: 1, 8, 128>}]} {
    %c0 = arith.constant 0 : index
    %c0_0 = arith.constant 0 : index
    %0 = vector.load %arg1[%c0, %c0_0] : memref<32x128xf32, #tpu.memory_space<vmem>>, vector<32x128xf32>
    %c0_1 = arith.constant 0 : index
    %c0_2 = arith.constant 0 : index
    %c0_3 = arith.constant 0 : index
    %1 = vector.load %arg2[%c0_1, %c0_2, %c0_3] : memref<3x16x32xf32, #tpu.memory_space<vmem>>, vector<1x16x32xf32>
    %2 = vector.shape_cast %1 : vector<1x16x32xf32> to vector<16x32xf32>
    %cst = arith.constant dense<0.000000e+00> : vector<16x128xf32>
    %3 = tpu.matmul %2, %0, %cst {dimension_numbers = #tpu.dot_dimension_numbers<[1], [0], [0], [1], [0, 0, 1, 1], [], []>} : vector<16x32xf32>, vector<32x128xf32>, vector<16x128xf32> -> vector<16x128xf32>
    %c1 = arith.constant 1 : index
    %c0_4 = arith.constant 0 : index
    %c0_5 = arith.constant 0 : index
    %4 = vector.load %arg2[%c1, %c0_4, %c0_5] : memref<3x16x32xf32, #tpu.memory_space<vmem>>, vector<1x16x32xf32>
    %5 = vector.shape_cast %4 : vector<1x16x32xf32> to vector<16x32xf32>
    %cst_6 = arith.constant dense<0.000000e+00> : vector<16x128xf32>
    %6 = tpu.matmul %5, %0, %cst_6 {dimension_numbers = #tpu.dot_dimension_numbers<[1], [0], [0], [1], [0, 0, 1, 1], [], []>} : vector<16x32xf32>, vector<32x128xf32>, vector<16x128xf32> -> vector<16x128xf32>
    %c2 = arith.constant 2 : index
    %c0_7 = arith.constant 0 : index
    %c0_8 = arith.constant 0 : index
    %7 = vector.load %arg2[%c2, %c0_7, %c0_8] : memref<3x16x32xf32, #tpu.memory_space<vmem>>, vector<1x16x32xf32>
    %8 = vector.shape_cast %7 : vector<1x16x32xf32> to vector<16x32xf32>
    %cst_9 = arith.constant dense<0.000000e+00> : vector<16x128xf32>
    %9 = tpu.matmul %8, %0, %cst_9 {dimension_numbers = #tpu.dot_dimension_numbers<[1], [0], [0], [1], [0, 0, 1, 1], [], []>} : vector<16x32xf32>, vector<32x128xf32>, vector<16x128xf32> -> vector<16x128xf32>
    %10 = tpu.concatenate %3, %6, %9 in 1 : vector<16x128xf32>, vector<16x128xf32>, vector<16x128xf32> -> vector<16x384xf32>
    %11 = arith.truncf %10 : vector<16x384xf32> to vector<16x384xbf16>
    %c0_10 = arith.constant 0 : index
    %c0_11 = arith.constant 0 : index
    %12 = vector.load %arg10[%c0_10, %c0_11] : memref<384x128xbf16, #tpu.memory_space<vmem>>, vector<384x128xbf16>
    %cst_12 = arith.constant dense<0.000000e+00> : vector<16x128xf32>
    %13 = tpu.matmul %11, %12, %cst_12 {dimension_numbers = #tpu.dot_dimension_numbers<[1], [0], [0], [1], [0, 0, 1, 1], [], []>} : vector<16x384xbf16>, vector<384x128xbf16>, vector<16x128xf32> -> vector<16x128xf32>
    %c0_13 = arith.constant 0 : index
    %c0_14 = arith.constant 0 : index
    %14 = vector.load %arg11[%c0_13, %c0_14] : memref<1x128xf32, #tpu.memory_space<vmem>>, vector<1x128xf32>
    %15 = vector.broadcast %14 : vector<1x128xf32> to vector<16x128xf32>
    %16 = arith.addf %13, %15 : vector<16x128xf32>
    %cst_15 = arith.constant 0.000000e+00 : f32
    %17 = vector.broadcast %cst_15 : f32 to vector<16x128xf32>
    %18 = arith.maximumf %16, %17 : vector<16x128xf32>
    %c0_16 = arith.constant 0 : index
    %c0_17 = arith.constant 0 : index
    %c0_18 = arith.constant 0 : index
    %19 = vector.load %arg3[%c0_16, %c0_17, %c0_18] : memref<3x16x16xf32, #tpu.memory_space<vmem>>, vector<1x16x16xf32>
    %20 = vector.shape_cast %19 : vector<1x16x16xf32> to vector<16x16xf32>
    %cst_19 = arith.constant dense<0.000000e+00> : vector<16x128xf32>
    %21 = tpu.matmul %20, %18, %cst_19 {dimension_numbers = #tpu.dot_dimension_numbers<[1], [0], [0], [1], [0, 0, 1, 1], [], []>} : vector<16x16xf32>, vector<16x128xf32>, vector<16x128xf32> -> vector<16x128xf32>
    %c1_20 = arith.constant 1 : index
    %c0_21 = arith.constant 0 : index
    %c0_22 = arith.constant 0 : index
    %22 = vector.load %arg3[%c1_20, %c0_21, %c0_22] : memref<3x16x16xf32, #tpu.memory_space<vmem>>, vector<1x16x16xf32>
    %23 = vector.shape_cast %22 : vector<1x16x16xf32> to vector<16x16xf32>
    %cst_23 = arith.constant dense<0.000000e+00> : vector<16x128xf32>
    %24 = tpu.matmul %23, %18, %cst_23 {dimension_numbers = #tpu.dot_dimension_numbers<[1], [0], [0], [1], [0, 0, 1, 1], [], []>} : vector<16x16xf32>, vector<16x128xf32>, vector<16x128xf32> -> vector<16x128xf32>
    %c2_24 = arith.constant 2 : index
    %c0_25 = arith.constant 0 : index
    %c0_26 = arith.constant 0 : index
    %25 = vector.load %arg3[%c2_24, %c0_25, %c0_26] : memref<3x16x16xf32, #tpu.memory_space<vmem>>, vector<1x16x16xf32>
    %26 = vector.shape_cast %25 : vector<1x16x16xf32> to vector<16x16xf32>
    %cst_27 = arith.constant dense<0.000000e+00> : vector<16x128xf32>
    %27 = tpu.matmul %26, %18, %cst_27 {dimension_numbers = #tpu.dot_dimension_numbers<[1], [0], [0], [1], [0, 0, 1, 1], [], []>} : vector<16x16xf32>, vector<16x128xf32>, vector<16x128xf32> -> vector<16x128xf32>
    %28 = tpu.concatenate %21, %24, %27 in 1 : vector<16x128xf32>, vector<16x128xf32>, vector<16x128xf32> -> vector<16x384xf32>
    %29 = arith.truncf %28 : vector<16x384xf32> to vector<16x384xbf16>
    %c0_28 = arith.constant 0 : index
    %c0_29 = arith.constant 0 : index
    %30 = vector.load %arg12[%c0_28, %c0_29] : memref<384x128xbf16, #tpu.memory_space<vmem>>, vector<384x128xbf16>
    %cst_30 = arith.constant dense<0.000000e+00> : vector<16x128xf32>
    %31 = tpu.matmul %29, %30, %cst_30 {dimension_numbers = #tpu.dot_dimension_numbers<[1], [0], [0], [1], [0, 0, 1, 1], [], []>} : vector<16x384xbf16>, vector<384x128xbf16>, vector<16x128xf32> -> vector<16x128xf32>
    %c0_31 = arith.constant 0 : index
    %c0_32 = arith.constant 0 : index
    %32 = vector.load %arg13[%c0_31, %c0_32] : memref<1x128xf32, #tpu.memory_space<vmem>>, vector<1x128xf32>
    %33 = vector.broadcast %32 : vector<1x128xf32> to vector<16x128xf32>
    %34 = arith.addf %31, %33 : vector<16x128xf32>
    %cst_33 = arith.constant 0.000000e+00 : f32
    %35 = vector.broadcast %cst_33 : f32 to vector<16x128xf32>
    %36 = arith.maximumf %34, %35 : vector<16x128xf32>
    %c0_34 = arith.constant 0 : index
    %c0_35 = arith.constant 0 : index
    %c0_36 = arith.constant 0 : index
    %37 = vector.load %arg3[%c0_34, %c0_35, %c0_36] : memref<3x16x16xf32, #tpu.memory_space<vmem>>, vector<1x16x16xf32>
    %38 = vector.shape_cast %37 : vector<1x16x16xf32> to vector<16x16xf32>
    %cst_37 = arith.constant dense<0.000000e+00> : vector<16x128xf32>
    %39 = tpu.matmul %38, %36, %cst_37 {dimension_numbers = #tpu.dot_dimension_numbers<[1], [0], [0], [1], [0, 0, 1, 1], [], []>} : vector<16x16xf32>, vector<16x128xf32>, vector<16x128xf32> -> vector<16x128xf32>
    %c1_38 = arith.constant 1 : index
    %c0_39 = arith.constant 0 : index
    %c0_40 = arith.constant 0 : index
    %40 = vector.load %arg3[%c1_38, %c0_39, %c0_40] : memref<3x16x16xf32, #tpu.memory_space<vmem>>, vector<1x16x16xf32>
    %41 = vector.shape_cast %40 : vector<1x16x16xf32> to vector<16x16xf32>
    %cst_41 = arith.constant dense<0.000000e+00> : vector<16x128xf32>
    %42 = tpu.matmul %41, %36, %cst_41 {dimension_numbers = #tpu.dot_dimension_numbers<[1], [0], [0], [1], [0, 0, 1, 1], [], []>} : vector<16x16xf32>, vector<16x128xf32>, vector<16x128xf32> -> vector<16x128xf32>
    %c2_42 = arith.constant 2 : index
    %c0_43 = arith.constant 0 : index
    %c0_44 = arith.constant 0 : index
    %43 = vector.load %arg3[%c2_42, %c0_43, %c0_44] : memref<3x16x16xf32, #tpu.memory_space<vmem>>, vector<1x16x16xf32>
    %44 = vector.shape_cast %43 : vector<1x16x16xf32> to vector<16x16xf32>
    %cst_45 = arith.constant dense<0.000000e+00> : vector<16x128xf32>
    %45 = tpu.matmul %44, %36, %cst_45 {dimension_numbers = #tpu.dot_dimension_numbers<[1], [0], [0], [1], [0, 0, 1, 1], [], []>} : vector<16x16xf32>, vector<16x128xf32>, vector<16x128xf32> -> vector<16x128xf32>
    %46 = tpu.concatenate %39, %42, %45 in 1 : vector<16x128xf32>, vector<16x128xf32>, vector<16x128xf32> -> vector<16x384xf32>
    %47 = arith.truncf %46 : vector<16x384xf32> to vector<16x384xbf16>
    %c0_46 = arith.constant 0 : index
    %c0_47 = arith.constant 0 : index
    %48 = vector.load %arg14[%c0_46, %c0_47] : memref<384x256xbf16, #tpu.memory_space<vmem>>, vector<384x256xbf16>
    %cst_48 = arith.constant dense<0.000000e+00> : vector<16x256xf32>
    %49 = tpu.matmul %47, %48, %cst_48 {dimension_numbers = #tpu.dot_dimension_numbers<[1], [0], [0], [1], [0, 0, 1, 1], [], []>} : vector<16x384xbf16>, vector<384x256xbf16>, vector<16x256xf32> -> vector<16x256xf32>
    %c0_49 = arith.constant 0 : index
    %c0_50 = arith.constant 0 : index
    %50 = vector.load %arg15[%c0_49, %c0_50] : memref<1x256xf32, #tpu.memory_space<vmem>>, vector<1x256xf32>
    %51 = vector.broadcast %50 : vector<1x256xf32> to vector<16x256xf32>
    %52 = arith.addf %49, %51 : vector<16x256xf32>
    %cst_51 = arith.constant 0.000000e+00 : f32
    %53 = vector.broadcast %cst_51 : f32 to vector<16x256xf32>
    %54 = arith.maximumf %52, %53 : vector<16x256xf32>
    %c0_52 = arith.constant 0 : index
    %c0_53 = arith.constant 0 : index
    %c0_54 = arith.constant 0 : index
    %55 = vector.load %arg4[%c0_52, %c0_53, %c0_54] : memref<3x8x16xf32, #tpu.memory_space<vmem>>, vector<1x8x16xf32>
    %56 = vector.shape_cast %55 : vector<1x8x16xf32> to vector<8x16xf32>
    %cst_55 = arith.constant dense<0.000000e+00> : vector<8x256xf32>
    %57 = tpu.matmul %56, %54, %cst_55 {dimension_numbers = #tpu.dot_dimension_numbers<[1], [0], [0], [1], [0, 0, 1, 1], [], []>} : vector<8x16xf32>, vector<16x256xf32>, vector<8x256xf32> -> vector<8x256xf32>
    %c1_56 = arith.constant 1 : index
    %c0_57 = arith.constant 0 : index
    %c0_58 = arith.constant 0 : index
    %58 = vector.load %arg4[%c1_56, %c0_57, %c0_58] : memref<3x8x16xf32, #tpu.memory_space<vmem>>, vector<1x8x16xf32>
    %59 = vector.shape_cast %58 : vector<1x8x16xf32> to vector<8x16xf32>
    %cst_59 = arith.constant dense<0.000000e+00> : vector<8x256xf32>
    %60 = tpu.matmul %59, %54, %cst_59 {dimension_numbers = #tpu.dot_dimension_numbers<[1], [0], [0], [1], [0, 0, 1, 1], [], []>} : vector<8x16xf32>, vector<16x256xf32>, vector<8x256xf32> -> vector<8x256xf32>
    %61 = arith.maximumf %57, %60 : vector<8x256xf32>
    %c2_60 = arith.constant 2 : index
    %c0_61 = arith.constant 0 : index
    %c0_62 = arith.constant 0 : index
    %62 = vector.load %arg4[%c2_60, %c0_61, %c0_62] : memref<3x8x16xf32, #tpu.memory_space<vmem>>, vector<1x8x16xf32>
    %63 = vector.shape_cast %62 : vector<1x8x16xf32> to vector<8x16xf32>
    %cst_63 = arith.constant dense<0.000000e+00> : vector<8x256xf32>
    %64 = tpu.matmul %63, %54, %cst_63 {dimension_numbers = #tpu.dot_dimension_numbers<[1], [0], [0], [1], [0, 0, 1, 1], [], []>} : vector<8x16xf32>, vector<16x256xf32>, vector<8x256xf32> -> vector<8x256xf32>
    %65 = arith.maximumf %61, %64 : vector<8x256xf32>
    %c0_64 = arith.constant 0 : index
    %c0_65 = arith.constant 0 : index
    %c0_66 = arith.constant 0 : index
    %66 = vector.load %arg5[%c0_64, %c0_65, %c0_66] : memref<3x256x128xf32, #tpu.memory_space<vmem>>, vector<1x256x128xf32>
    %67 = vector.shape_cast %66 : vector<1x256x128xf32> to vector<256x128xf32>
    %cst_67 = arith.constant dense<0.000000e+00> : vector<8x128xf32>
    %68 = tpu.matmul %65, %67, %cst_67 {dimension_numbers = #tpu.dot_dimension_numbers<[1], [0], [0], [1], [0, 0, 1, 1], [], []>} : vector<8x256xf32>, vector<256x128xf32>, vector<8x128xf32> -> vector<8x128xf32>
    %c1_68 = arith.constant 1 : index
    %c0_69 = arith.constant 0 : index
    %c0_70 = arith.constant 0 : index
    %69 = vector.load %arg5[%c1_68, %c0_69, %c0_70] : memref<3x256x128xf32, #tpu.memory_space<vmem>>, vector<1x256x128xf32>
    %70 = vector.shape_cast %69 : vector<1x256x128xf32> to vector<256x128xf32>
    %cst_71 = arith.constant dense<0.000000e+00> : vector<8x128xf32>
    %71 = tpu.matmul %65, %70, %cst_71 {dimension_numbers = #tpu.dot_dimension_numbers<[1], [0], [0], [1], [0, 0, 1, 1], [], []>} : vector<8x256xf32>, vector<256x128xf32>, vector<8x128xf32> -> vector<8x128xf32>
    %72 = arith.maximumf %68, %71 : vector<8x128xf32>
    %c2_72 = arith.constant 2 : index
    %c0_73 = arith.constant 0 : index
    %c0_74 = arith.constant 0 : index
    %73 = vector.load %arg5[%c2_72, %c0_73, %c0_74] : memref<3x256x128xf32, #tpu.memory_space<vmem>>, vector<1x256x128xf32>
    %74 = vector.shape_cast %73 : vector<1x256x128xf32> to vector<256x128xf32>
    %cst_75 = arith.constant dense<0.000000e+00> : vector<8x128xf32>
    %75 = tpu.matmul %65, %74, %cst_75 {dimension_numbers = #tpu.dot_dimension_numbers<[1], [0], [0], [1], [0, 0, 1, 1], [], []>} : vector<8x256xf32>, vector<256x128xf32>, vector<8x128xf32> -> vector<8x128xf32>
    %76 = arith.maximumf %72, %75 : vector<8x128xf32>
    %77 = arith.truncf %76 : vector<8x128xf32> to vector<8x128xbf16>
    %c0_76 = arith.constant 0 : index
    %c0_77 = arith.constant 0 : index
    %78 = vector.load %arg16[%c0_76, %c0_77] : memref<128x128xbf16, #tpu.memory_space<vmem>>, vector<128x128xbf16>
    %cst_78 = arith.constant dense<0.000000e+00> : vector<8x128xf32>
    %79 = tpu.matmul %77, %78, %cst_78 {dimension_numbers = #tpu.dot_dimension_numbers<[1], [0], [0], [1], [0, 0, 1, 1], [], []>} : vector<8x128xbf16>, vector<128x128xbf16>, vector<8x128xf32> -> vector<8x128xf32>
    %c0_79 = arith.constant 0 : index
    %c0_80 = arith.constant 0 : index
    %80 = vector.load %arg17[%c0_79, %c0_80] : memref<1x128xf32, #tpu.memory_space<vmem>>, vector<1x128xf32>
    %81 = vector.broadcast %80 : vector<1x128xf32> to vector<8x128xf32>
    %82 = arith.addf %79, %81 : vector<8x128xf32>
    %cst_81 = arith.constant 0.000000e+00 : f32
    %83 = vector.broadcast %cst_81 : f32 to vector<8x128xf32>
    %84 = arith.maximumf %82, %83 : vector<8x128xf32>
    %c0_82 = arith.constant 0 : index
    %c0_83 = arith.constant 0 : index
    %c0_84 = arith.constant 0 : index
    %85 = vector.load %arg6[%c0_82, %c0_83, %c0_84] : memref<3x8x8xf32, #tpu.memory_space<vmem>>, vector<1x8x8xf32>
    %86 = vector.shape_cast %85 : vector<1x8x8xf32> to vector<8x8xf32>
    %cst_85 = arith.constant dense<0.000000e+00> : vector<8x128xf32>
    %87 = tpu.matmul %86, %84, %cst_85 {dimension_numbers = #tpu.dot_dimension_numbers<[1], [0], [0], [1], [0, 0, 1, 1], [], []>} : vector<8x8xf32>, vector<8x128xf32>, vector<8x128xf32> -> vector<8x128xf32>
    %c1_86 = arith.constant 1 : index
    %c0_87 = arith.constant 0 : index
    %c0_88 = arith.constant 0 : index
    %88 = vector.load %arg6[%c1_86, %c0_87, %c0_88] : memref<3x8x8xf32, #tpu.memory_space<vmem>>, vector<1x8x8xf32>
    %89 = vector.shape_cast %88 : vector<1x8x8xf32> to vector<8x8xf32>
    %cst_89 = arith.constant dense<0.000000e+00> : vector<8x128xf32>
    %90 = tpu.matmul %89, %84, %cst_89 {dimension_numbers = #tpu.dot_dimension_numbers<[1], [0], [0], [1], [0, 0, 1, 1], [], []>} : vector<8x8xf32>, vector<8x128xf32>, vector<8x128xf32> -> vector<8x128xf32>
    %c2_90 = arith.constant 2 : index
    %c0_91 = arith.constant 0 : index
    %c0_92 = arith.constant 0 : index
    %91 = vector.load %arg6[%c2_90, %c0_91, %c0_92] : memref<3x8x8xf32, #tpu.memory_space<vmem>>, vector<1x8x8xf32>
    %92 = vector.shape_cast %91 : vector<1x8x8xf32> to vector<8x8xf32>
    %cst_93 = arith.constant dense<0.000000e+00> : vector<8x128xf32>
    %93 = tpu.matmul %92, %84, %cst_93 {dimension_numbers = #tpu.dot_dimension_numbers<[1], [0], [0], [1], [0, 0, 1, 1], [], []>} : vector<8x8xf32>, vector<8x128xf32>, vector<8x128xf32> -> vector<8x128xf32>
    %94 = tpu.concatenate %87, %90, %93 in 1 : vector<8x128xf32>, vector<8x128xf32>, vector<8x128xf32> -> vector<8x384xf32>
    %95 = arith.truncf %94 : vector<8x384xf32> to vector<8x384xbf16>
    %c0_94 = arith.constant 0 : index
    %c0_95 = arith.constant 0 : index
    %96 = vector.load %arg18[%c0_94, %c0_95] : memref<384x256xbf16, #tpu.memory_space<vmem>>, vector<384x256xbf16>
    %cst_96 = arith.constant dense<0.000000e+00> : vector<8x256xf32>
    %97 = tpu.matmul %95, %96, %cst_96 {dimension_numbers = #tpu.dot_dimension_numbers<[1], [0], [0], [1], [0, 0, 1, 1], [], []>} : vector<8x384xbf16>, vector<384x256xbf16>, vector<8x256xf32> -> vector<8x256xf32>
    %c0_97 = arith.constant 0 : index
    %c0_98 = arith.constant 0 : index
    %98 = vector.load %arg19[%c0_97, %c0_98] : memref<1x256xf32, #tpu.memory_space<vmem>>, vector<1x256xf32>
    %99 = vector.broadcast %98 : vector<1x256xf32> to vector<8x256xf32>
    %100 = arith.addf %97, %99 : vector<8x256xf32>
    %cst_99 = arith.constant 0.000000e+00 : f32
    %101 = vector.broadcast %cst_99 : f32 to vector<8x256xf32>
    %102 = arith.maximumf %100, %101 : vector<8x256xf32>
    %103 = arith.truncf %102 : vector<8x256xf32> to vector<8x256xbf16>
    %c0_100 = arith.constant 0 : index
    %c0_101 = arith.constant 0 : index
    %104 = vector.load %arg20[%c0_100, %c0_101] : memref<256x256xbf16, #tpu.memory_space<vmem>>, vector<256x256xbf16>
    %cst_102 = arith.constant dense<0.000000e+00> : vector<8x256xf32>
    %105 = tpu.matmul %103, %104, %cst_102 {dimension_numbers = #tpu.dot_dimension_numbers<[1], [0], [0], [1], [0, 0, 1, 1], [], []>} : vector<8x256xbf16>, vector<256x256xbf16>, vector<8x256xf32> -> vector<8x256xf32>
    %c0_103 = arith.constant 0 : index
    %c0_104 = arith.constant 0 : index
    %106 = vector.load %arg21[%c0_103, %c0_104] : memref<1x256xf32, #tpu.memory_space<vmem>>, vector<1x256xf32>
    %107 = vector.broadcast %106 : vector<1x256xf32> to vector<8x256xf32>
    %108 = arith.addf %105, %107 : vector<8x256xf32>
    %cst_105 = arith.constant 1.250000e-01 : f32
    %109 = vector.broadcast %cst_105 : f32 to vector<1x8xf32>
    %cst_106 = arith.constant dense<0.000000e+00> : vector<1x256xf32>
    %110 = tpu.matmul %109, %108, %cst_106 {dimension_numbers = #tpu.dot_dimension_numbers<[1], [0], [0], [1], [0, 0, 1, 1], [], []>} : vector<1x8xf32>, vector<8x256xf32>, vector<1x256xf32> -> vector<1x256xf32>
    %111 = arith.truncf %110 : vector<1x256xf32> to vector<1x256xbf16>
    %c0_107 = arith.constant 0 : index
    %c0_108 = arith.constant 0 : index
    %112 = vector.load %arg22[%c0_107, %c0_108] : memref<256x32xbf16, #tpu.memory_space<vmem>>, vector<256x32xbf16>
    %cst_109 = arith.constant dense<0.000000e+00> : vector<1x32xf32>
    %113 = tpu.matmul %111, %112, %cst_109 {dimension_numbers = #tpu.dot_dimension_numbers<[1], [0], [0], [1], [0, 0, 1, 1], [], []>} : vector<1x256xbf16>, vector<256x32xbf16>, vector<1x32xf32> -> vector<1x32xf32>
    %114 = arith.truncf %113 : vector<1x32xf32> to vector<1x32xbf16>
    %c0_110 = arith.constant 0 : index
    %c0_111 = arith.constant 0 : index
    %115 = vector.load %arg23[%c0_110, %c0_111] : memref<32x4xbf16, #tpu.memory_space<vmem>>, vector<32x4xbf16>
    %cst_112 = arith.constant dense<0.000000e+00> : vector<1x4xf32>
    %116 = tpu.matmul %114, %115, %cst_112 {dimension_numbers = #tpu.dot_dimension_numbers<[1], [0], [0], [1], [0, 0, 1, 1], [], []>} : vector<1x32xbf16>, vector<32x4xbf16>, vector<1x4xf32> -> vector<1x4xf32>
    %c0_113 = arith.constant 0 : index
    %c0_114 = arith.constant 0 : index
    %117 = vector.load %arg24[%c0_113, %c0_114] : memref<1x4xf32, #tpu.memory_space<vmem>>, vector<1x4xf32>
    %118 = arith.addf %116, %117 : vector<1x4xf32>
    %cst_115 = arith.constant 0.000000e+00 : f32
    %119 = vector.broadcast %cst_115 : f32 to vector<1x4xf32>
    %120 = arith.maximumf %118, %119 : vector<1x4xf32>
    %121 = arith.truncf %120 : vector<1x4xf32> to vector<1x4xbf16>
    %c0_116 = arith.constant 0 : index
    %c0_117 = arith.constant 0 : index
    %122 = vector.load %arg25[%c0_116, %c0_117] : memref<4x32xbf16, #tpu.memory_space<vmem>>, vector<4x32xbf16>
    %cst_118 = arith.constant dense<0.000000e+00> : vector<1x32xf32>
    %123 = tpu.matmul %121, %122, %cst_118 {dimension_numbers = #tpu.dot_dimension_numbers<[1], [0], [0], [1], [0, 0, 1, 1], [], []>} : vector<1x4xbf16>, vector<4x32xbf16>, vector<1x32xf32> -> vector<1x32xf32>
    %c0_119 = arith.constant 0 : index
    %c0_120 = arith.constant 0 : index
    %124 = vector.load %arg26[%c0_119, %c0_120] : memref<1x32xf32, #tpu.memory_space<vmem>>, vector<1x32xf32>
    %125 = arith.addf %123, %124 : vector<1x32xf32>
    %cst_121 = arith.constant 0.000000e+00 : f32
    %126 = vector.broadcast %cst_121 : f32 to vector<1x32xf32>
    %127 = arith.subf %126, %125 : vector<1x32xf32>
    %128 = math.exp %127 : vector<1x32xf32>
    %cst_122 = arith.constant 1.000000e+00 : f32
    %129 = vector.broadcast %cst_122 : f32 to vector<1x32xf32>
    %130 = arith.addf %129, %128 : vector<1x32xf32>
    %cst_123 = arith.constant 1.000000e+00 : f32
    %131 = vector.broadcast %cst_123 : f32 to vector<1x32xf32>
    %132 = arith.divf %131, %130 : vector<1x32xf32>
    %c0_124 = arith.constant 0 : index
    %c0_125 = arith.constant 0 : index
    %133 = vector.load %arg27[%c0_124, %c0_125] : memref<32x256xf32, #tpu.memory_space<vmem>>, vector<32x256xf32>
    %cst_126 = arith.constant dense<0.000000e+00> : vector<1x256xf32>
    %134 = tpu.matmul %132, %133, %cst_126 {dimension_numbers = #tpu.dot_dimension_numbers<[1], [0], [0], [1], [0, 0, 1, 1], [], []>} : vector<1x32xf32>, vector<32x256xf32>, vector<1x256xf32> -> vector<1x256xf32>
    %135 = vector.broadcast %134 : vector<1x256xf32> to vector<8x256xf32>
    %136 = arith.mulf %108, %135 : vector<8x256xf32>
    %137 = arith.truncf %76 : vector<8x128xf32> to vector<8x128xbf16>
    %c0_127 = arith.constant 0 : index
    %c0_128 = arith.constant 0 : index
    %138 = vector.load %arg28[%c0_127, %c0_128] : memref<128x256xbf16, #tpu.memory_space<vmem>>, vector<128x256xbf16>
    %cst_129 = arith.constant dense<0.000000e+00> : vector<8x256xf32>
    %139 = tpu.matmul %137, %138, %cst_129 {dimension_numbers = #tpu.dot_dimension_numbers<[1], [0], [0], [1], [0, 0, 1, 1], [], []>} : vector<8x128xbf16>, vector<128x256xbf16>, vector<8x256xf32> -> vector<8x256xf32>
    %c0_130 = arith.constant 0 : index
    %c0_131 = arith.constant 0 : index
    %140 = vector.load %arg29[%c0_130, %c0_131] : memref<1x256xf32, #tpu.memory_space<vmem>>, vector<1x256xf32>
    %141 = vector.broadcast %140 : vector<1x256xf32> to vector<8x256xf32>
    %142 = arith.addf %139, %141 : vector<8x256xf32>
    %143 = arith.addf %136, %142 : vector<8x256xf32>
    %cst_132 = arith.constant 0.000000e+00 : f32
    %144 = vector.broadcast %cst_132 : f32 to vector<8x256xf32>
    %145 = arith.maximumf %143, %144 : vector<8x256xf32>
    %146 = arith.truncf %145 : vector<8x256xf32> to vector<8x256xbf16>
    %c0_133 = arith.constant 0 : index
    %c0_134 = arith.constant 0 : index
    %147 = vector.load %arg30[%c0_133, %c0_134] : memref<256x128xbf16, #tpu.memory_space<vmem>>, vector<256x128xbf16>
    %cst_135 = arith.constant dense<0.000000e+00> : vector<8x128xf32>
    %148 = tpu.matmul %146, %147, %cst_135 {dimension_numbers = #tpu.dot_dimension_numbers<[1], [0], [0], [1], [0, 0, 1, 1], [], []>} : vector<8x256xbf16>, vector<256x128xbf16>, vector<8x128xf32> -> vector<8x128xf32>
    %c0_136 = arith.constant 0 : index
    %c0_137 = arith.constant 0 : index
    %149 = vector.load %arg31[%c0_136, %c0_137] : memref<1x128xf32, #tpu.memory_space<vmem>>, vector<1x128xf32>
    %150 = vector.broadcast %149 : vector<1x128xf32> to vector<8x128xf32>
    %151 = arith.addf %148, %150 : vector<8x128xf32>
    %cst_138 = arith.constant 0.000000e+00 : f32
    %152 = vector.broadcast %cst_138 : f32 to vector<8x128xf32>
    %153 = arith.maximumf %151, %152 : vector<8x128xf32>
    %c0_139 = arith.constant 0 : index
    %c0_140 = arith.constant 0 : index
    %c0_141 = arith.constant 0 : index
    %154 = vector.load %arg6[%c0_139, %c0_140, %c0_141] : memref<3x8x8xf32, #tpu.memory_space<vmem>>, vector<1x8x8xf32>
    %155 = vector.shape_cast %154 : vector<1x8x8xf32> to vector<8x8xf32>
    %cst_142 = arith.constant dense<0.000000e+00> : vector<8x128xf32>
    %156 = tpu.matmul %155, %153, %cst_142 {dimension_numbers = #tpu.dot_dimension_numbers<[1], [0], [0], [1], [0, 0, 1, 1], [], []>} : vector<8x8xf32>, vector<8x128xf32>, vector<8x128xf32> -> vector<8x128xf32>
    %c1_143 = arith.constant 1 : index
    %c0_144 = arith.constant 0 : index
    %c0_145 = arith.constant 0 : index
    %157 = vector.load %arg6[%c1_143, %c0_144, %c0_145] : memref<3x8x8xf32, #tpu.memory_space<vmem>>, vector<1x8x8xf32>
    %158 = vector.shape_cast %157 : vector<1x8x8xf32> to vector<8x8xf32>
    %cst_146 = arith.constant dense<0.000000e+00> : vector<8x128xf32>
    %159 = tpu.matmul %158, %153, %cst_146 {dimension_numbers = #tpu.dot_dimension_numbers<[1], [0], [0], [1], [0, 0, 1, 1], [], []>} : vector<8x8xf32>, vector<8x128xf32>, vector<8x128xf32> -> vector<8x128xf32>
    %c2_147 = arith.constant 2 : index
    %c0_148 = arith.constant 0 : index
    %c0_149 = arith.constant 0 : index
    %160 = vector.load %arg6[%c2_147, %c0_148, %c0_149] : memref<3x8x8xf32, #tpu.memory_space<vmem>>, vector<1x8x8xf32>
    %161 = vector.shape_cast %160 : vector<1x8x8xf32> to vector<8x8xf32>
    %cst_150 = arith.constant dense<0.000000e+00> : vector<8x128xf32>
    %162 = tpu.matmul %161, %153, %cst_150 {dimension_numbers = #tpu.dot_dimension_numbers<[1], [0], [0], [1], [0, 0, 1, 1], [], []>} : vector<8x8xf32>, vector<8x128xf32>, vector<8x128xf32> -> vector<8x128xf32>
    %163 = tpu.concatenate %156, %159, %162 in 1 : vector<8x128xf32>, vector<8x128xf32>, vector<8x128xf32> -> vector<8x384xf32>
    %164 = arith.truncf %163 : vector<8x384xf32> to vector<8x384xbf16>
    %c0_151 = arith.constant 0 : index
    %c0_152 = arith.constant 0 : index
    %165 = vector.load %arg32[%c0_151, %c0_152] : memref<384x256xbf16, #tpu.memory_space<vmem>>, vector<384x256xbf16>
    %cst_153 = arith.constant dense<0.000000e+00> : vector<8x256xf32>
    %166 = tpu.matmul %164, %165, %cst_153 {dimension_numbers = #tpu.dot_dimension_numbers<[1], [0], [0], [1], [0, 0, 1, 1], [], []>} : vector<8x384xbf16>, vector<384x256xbf16>, vector<8x256xf32> -> vector<8x256xf32>
    %c0_154 = arith.constant 0 : index
    %c0_155 = arith.constant 0 : index
    %167 = vector.load %arg33[%c0_154, %c0_155] : memref<1x256xf32, #tpu.memory_space<vmem>>, vector<1x256xf32>
    %168 = vector.broadcast %167 : vector<1x256xf32> to vector<8x256xf32>
    %169 = arith.addf %166, %168 : vector<8x256xf32>
    %cst_156 = arith.constant 0.000000e+00 : f32
    %170 = vector.broadcast %cst_156 : f32 to vector<8x256xf32>
    %171 = arith.maximumf %169, %170 : vector<8x256xf32>
    %172 = arith.truncf %171 : vector<8x256xf32> to vector<8x256xbf16>
    %c0_157 = arith.constant 0 : index
    %c0_158 = arith.constant 0 : index
    %173 = vector.load %arg34[%c0_157, %c0_158] : memref<256x256xbf16, #tpu.memory_space<vmem>>, vector<256x256xbf16>
    %cst_159 = arith.constant dense<0.000000e+00> : vector<8x256xf32>
    %174 = tpu.matmul %172, %173, %cst_159 {dimension_numbers = #tpu.dot_dimension_numbers<[1], [0], [0], [1], [0, 0, 1, 1], [], []>} : vector<8x256xbf16>, vector<256x256xbf16>, vector<8x256xf32> -> vector<8x256xf32>
    %c0_160 = arith.constant 0 : index
    %c0_161 = arith.constant 0 : index
    %175 = vector.load %arg35[%c0_160, %c0_161] : memref<1x256xf32, #tpu.memory_space<vmem>>, vector<1x256xf32>
    %176 = vector.broadcast %175 : vector<1x256xf32> to vector<8x256xf32>
    %177 = arith.addf %174, %176 : vector<8x256xf32>
    %cst_162 = arith.constant 1.250000e-01 : f32
    %178 = vector.broadcast %cst_162 : f32 to vector<1x8xf32>
    %cst_163 = arith.constant dense<0.000000e+00> : vector<1x256xf32>
    %179 = tpu.matmul %178, %177, %cst_163 {dimension_numbers = #tpu.dot_dimension_numbers<[1], [0], [0], [1], [0, 0, 1, 1], [], []>} : vector<1x8xf32>, vector<8x256xf32>, vector<1x256xf32> -> vector<1x256xf32>
    %180 = arith.truncf %179 : vector<1x256xf32> to vector<1x256xbf16>
    %c0_164 = arith.constant 0 : index
    %c0_165 = arith.constant 0 : index
    %181 = vector.load %arg36[%c0_164, %c0_165] : memref<256x32xbf16, #tpu.memory_space<vmem>>, vector<256x32xbf16>
    %cst_166 = arith.constant dense<0.000000e+00> : vector<1x32xf32>
    %182 = tpu.matmul %180, %181, %cst_166 {dimension_numbers = #tpu.dot_dimension_numbers<[1], [0], [0], [1], [0, 0, 1, 1], [], []>} : vector<1x256xbf16>, vector<256x32xbf16>, vector<1x32xf32> -> vector<1x32xf32>
    %183 = arith.truncf %182 : vector<1x32xf32> to vector<1x32xbf16>
    %c0_167 = arith.constant 0 : index
    %c0_168 = arith.constant 0 : index
    %184 = vector.load %arg37[%c0_167, %c0_168] : memref<32x4xbf16, #tpu.memory_space<vmem>>, vector<32x4xbf16>
    %cst_169 = arith.constant dense<0.000000e+00> : vector<1x4xf32>
    %185 = tpu.matmul %183, %184, %cst_169 {dimension_numbers = #tpu.dot_dimension_numbers<[1], [0], [0], [1], [0, 0, 1, 1], [], []>} : vector<1x32xbf16>, vector<32x4xbf16>, vector<1x4xf32> -> vector<1x4xf32>
    %c0_170 = arith.constant 0 : index
    %c0_171 = arith.constant 0 : index
    %186 = vector.load %arg38[%c0_170, %c0_171] : memref<1x4xf32, #tpu.memory_space<vmem>>, vector<1x4xf32>
    %187 = arith.addf %185, %186 : vector<1x4xf32>
    %cst_172 = arith.constant 0.000000e+00 : f32
    %188 = vector.broadcast %cst_172 : f32 to vector<1x4xf32>
    %189 = arith.maximumf %187, %188 : vector<1x4xf32>
    %190 = arith.truncf %189 : vector<1x4xf32> to vector<1x4xbf16>
    %c0_173 = arith.constant 0 : index
    %c0_174 = arith.constant 0 : index
    %191 = vector.load %arg39[%c0_173, %c0_174] : memref<4x32xbf16, #tpu.memory_space<vmem>>, vector<4x32xbf16>
    %cst_175 = arith.constant dense<0.000000e+00> : vector<1x32xf32>
    %192 = tpu.matmul %190, %191, %cst_175 {dimension_numbers = #tpu.dot_dimension_numbers<[1], [0], [0], [1], [0, 0, 1, 1], [], []>} : vector<1x4xbf16>, vector<4x32xbf16>, vector<1x32xf32> -> vector<1x32xf32>
    %c0_176 = arith.constant 0 : index
    %c0_177 = arith.constant 0 : index
    %193 = vector.load %arg40[%c0_176, %c0_177] : memref<1x32xf32, #tpu.memory_space<vmem>>, vector<1x32xf32>
    %194 = arith.addf %192, %193 : vector<1x32xf32>
    %cst_178 = arith.constant 0.000000e+00 : f32
    %195 = vector.broadcast %cst_178 : f32 to vector<1x32xf32>
    %196 = arith.subf %195, %194 : vector<1x32xf32>
    %197 = math.exp %196 : vector<1x32xf32>
    %cst_179 = arith.constant 1.000000e+00 : f32
    %198 = vector.broadcast %cst_179 : f32 to vector<1x32xf32>
    %199 = arith.addf %198, %197 : vector<1x32xf32>
    %cst_180 = arith.constant 1.000000e+00 : f32
    %200 = vector.broadcast %cst_180 : f32 to vector<1x32xf32>
    %201 = arith.divf %200, %199 : vector<1x32xf32>
    %c0_181 = arith.constant 0 : index
    %c0_182 = arith.constant 0 : index
    %202 = vector.load %arg41[%c0_181, %c0_182] : memref<32x256xf32, #tpu.memory_space<vmem>>, vector<32x256xf32>
    %cst_183 = arith.constant dense<0.000000e+00> : vector<1x256xf32>
    %203 = tpu.matmul %201, %202, %cst_183 {dimension_numbers = #tpu.dot_dimension_numbers<[1], [0], [0], [1], [0, 0, 1, 1], [], []>} : vector<1x32xf32>, vector<32x256xf32>, vector<1x256xf32> -> vector<1x256xf32>
    %204 = vector.broadcast %203 : vector<1x256xf32> to vector<8x256xf32>
    %205 = arith.mulf %177, %204 : vector<8x256xf32>
    %206 = arith.addf %205, %145 : vector<8x256xf32>
    %cst_184 = arith.constant 0.000000e+00 : f32
    %207 = vector.broadcast %cst_184 : f32 to vector<8x256xf32>
    %208 = arith.maximumf %206, %207 : vector<8x256xf32>
    %209 = arith.truncf %208 : vector<8x256xf32> to vector<8x256xbf16>
    %c0_185 = arith.constant 0 : index
    %c0_186 = arith.constant 0 : index
    %210 = vector.load %arg42[%c0_185, %c0_186] : memref<256x256xbf16, #tpu.memory_space<vmem>>, vector<256x256xbf16>
    %cst_187 = arith.constant dense<0.000000e+00> : vector<8x256xf32>
    %211 = tpu.matmul %209, %210, %cst_187 {dimension_numbers = #tpu.dot_dimension_numbers<[1], [0], [0], [1], [0, 0, 1, 1], [], []>} : vector<8x256xbf16>, vector<256x256xbf16>, vector<8x256xf32> -> vector<8x256xf32>
    %c0_188 = arith.constant 0 : index
    %c0_189 = arith.constant 0 : index
    %212 = vector.load %arg43[%c0_188, %c0_189] : memref<1x256xf32, #tpu.memory_space<vmem>>, vector<1x256xf32>
    %213 = vector.broadcast %212 : vector<1x256xf32> to vector<8x256xf32>
    %214 = arith.addf %211, %213 : vector<8x256xf32>
    %cst_190 = arith.constant 0.000000e+00 : f32
    %215 = vector.broadcast %cst_190 : f32 to vector<8x256xf32>
    %216 = arith.maximumf %214, %215 : vector<8x256xf32>
    %c0_191 = arith.constant 0 : index
    %c0_192 = arith.constant 0 : index
    %c0_193 = arith.constant 0 : index
    %217 = vector.load %arg7[%c0_191, %c0_192, %c0_193] : memref<3x4x8xf32, #tpu.memory_space<vmem>>, vector<1x4x8xf32>
    %218 = vector.shape_cast %217 : vector<1x4x8xf32> to vector<4x8xf32>
    %cst_194 = arith.constant dense<0.000000e+00> : vector<4x256xf32>
    %219 = tpu.matmul %218, %216, %cst_194 {dimension_numbers = #tpu.dot_dimension_numbers<[1], [0], [0], [1], [0, 0, 1, 1], [], []>} : vector<4x8xf32>, vector<8x256xf32>, vector<4x256xf32> -> vector<4x256xf32>
    %c1_195 = arith.constant 1 : index
    %c0_196 = arith.constant 0 : index
    %c0_197 = arith.constant 0 : index
    %220 = vector.load %arg7[%c1_195, %c0_196, %c0_197] : memref<3x4x8xf32, #tpu.memory_space<vmem>>, vector<1x4x8xf32>
    %221 = vector.shape_cast %220 : vector<1x4x8xf32> to vector<4x8xf32>
    %cst_198 = arith.constant dense<0.000000e+00> : vector<4x256xf32>
    %222 = tpu.matmul %221, %216, %cst_198 {dimension_numbers = #tpu.dot_dimension_numbers<[1], [0], [0], [1], [0, 0, 1, 1], [], []>} : vector<4x8xf32>, vector<8x256xf32>, vector<4x256xf32> -> vector<4x256xf32>
    %c2_199 = arith.constant 2 : index
    %c0_200 = arith.constant 0 : index
    %c0_201 = arith.constant 0 : index
    %223 = vector.load %arg7[%c2_199, %c0_200, %c0_201] : memref<3x4x8xf32, #tpu.memory_space<vmem>>, vector<1x4x8xf32>
    %224 = vector.shape_cast %223 : vector<1x4x8xf32> to vector<4x8xf32>
    %cst_202 = arith.constant dense<0.000000e+00> : vector<4x256xf32>
    %225 = tpu.matmul %224, %216, %cst_202 {dimension_numbers = #tpu.dot_dimension_numbers<[1], [0], [0], [1], [0, 0, 1, 1], [], []>} : vector<4x8xf32>, vector<8x256xf32>, vector<4x256xf32> -> vector<4x256xf32>
    %226 = tpu.concatenate %219, %222, %225 in 1 : vector<4x256xf32>, vector<4x256xf32>, vector<4x256xf32> -> vector<4x768xf32>
    %227 = arith.truncf %226 : vector<4x768xf32> to vector<4x768xbf16>
    %c0_203 = arith.constant 0 : index
    %c0_204 = arith.constant 0 : index
    %228 = vector.load %arg44[%c0_203, %c0_204] : memref<768x256xbf16, #tpu.memory_space<vmem>>, vector<768x256xbf16>
    %cst_205 = arith.constant dense<0.000000e+00> : vector<4x256xf32>
    %229 = tpu.matmul %227, %228, %cst_205 {dimension_numbers = #tpu.dot_dimension_numbers<[1], [0], [0], [1], [0, 0, 1, 1], [], []>} : vector<4x768xbf16>, vector<768x256xbf16>, vector<4x256xf32> -> vector<4x256xf32>
    %c0_206 = arith.constant 0 : index
    %c0_207 = arith.constant 0 : index
    %230 = vector.load %arg45[%c0_206, %c0_207] : memref<1x256xf32, #tpu.memory_space<vmem>>, vector<1x256xf32>
    %231 = vector.broadcast %230 : vector<1x256xf32> to vector<4x256xf32>
    %232 = arith.addf %229, %231 : vector<4x256xf32>
    %cst_208 = arith.constant 0.000000e+00 : f32
    %233 = vector.broadcast %cst_208 : f32 to vector<4x256xf32>
    %234 = arith.maximumf %232, %233 : vector<4x256xf32>
    %235 = arith.truncf %234 : vector<4x256xf32> to vector<4x256xbf16>
    %c0_209 = arith.constant 0 : index
    %c0_210 = arith.constant 0 : index
    %236 = vector.load %arg46[%c0_209, %c0_210] : memref<256x256xbf16, #tpu.memory_space<vmem>>, vector<256x256xbf16>
    %cst_211 = arith.constant dense<0.000000e+00> : vector<4x256xf32>
    %237 = tpu.matmul %235, %236, %cst_211 {dimension_numbers = #tpu.dot_dimension_numbers<[1], [0], [0], [1], [0, 0, 1, 1], [], []>} : vector<4x256xbf16>, vector<256x256xbf16>, vector<4x256xf32> -> vector<4x256xf32>
    %c0_212 = arith.constant 0 : index
    %c0_213 = arith.constant 0 : index
    %238 = vector.load %arg47[%c0_212, %c0_213] : memref<1x256xf32, #tpu.memory_space<vmem>>, vector<1x256xf32>
    %239 = vector.broadcast %238 : vector<1x256xf32> to vector<4x256xf32>
    %240 = arith.addf %237, %239 : vector<4x256xf32>
    %cst_214 = arith.constant 2.500000e-01 : f32
    %241 = vector.broadcast %cst_214 : f32 to vector<1x4xf32>
    %cst_215 = arith.constant dense<0.000000e+00> : vector<1x256xf32>
    %242 = tpu.matmul %241, %240, %cst_215 {dimension_numbers = #tpu.dot_dimension_numbers<[1], [0], [0], [1], [0, 0, 1, 1], [], []>} : vector<1x4xf32>, vector<4x256xf32>, vector<1x256xf32> -> vector<1x256xf32>
    %243 = arith.truncf %242 : vector<1x256xf32> to vector<1x256xbf16>
    %c0_216 = arith.constant 0 : index
    %c0_217 = arith.constant 0 : index
    %244 = vector.load %arg48[%c0_216, %c0_217] : memref<256x64xbf16, #tpu.memory_space<vmem>>, vector<256x64xbf16>
    %cst_218 = arith.constant dense<0.000000e+00> : vector<1x64xf32>
    %245 = tpu.matmul %243, %244, %cst_218 {dimension_numbers = #tpu.dot_dimension_numbers<[1], [0], [0], [1], [0, 0, 1, 1], [], []>} : vector<1x256xbf16>, vector<256x64xbf16>, vector<1x64xf32> -> vector<1x64xf32>
    %246 = arith.truncf %245 : vector<1x64xf32> to vector<1x64xbf16>
    %c0_219 = arith.constant 0 : index
    %c0_220 = arith.constant 0 : index
    %247 = vector.load %arg49[%c0_219, %c0_220] : memref<64x8xbf16, #tpu.memory_space<vmem>>, vector<64x8xbf16>
    %cst_221 = arith.constant dense<0.000000e+00> : vector<1x8xf32>
    %248 = tpu.matmul %246, %247, %cst_221 {dimension_numbers = #tpu.dot_dimension_numbers<[1], [0], [0], [1], [0, 0, 1, 1], [], []>} : vector<1x64xbf16>, vector<64x8xbf16>, vector<1x8xf32> -> vector<1x8xf32>
    %c0_222 = arith.constant 0 : index
    %c0_223 = arith.constant 0 : index
    %249 = vector.load %arg50[%c0_222, %c0_223] : memref<1x8xf32, #tpu.memory_space<vmem>>, vector<1x8xf32>
    %250 = arith.addf %248, %249 : vector<1x8xf32>
    %cst_224 = arith.constant 0.000000e+00 : f32
    %251 = vector.broadcast %cst_224 : f32 to vector<1x8xf32>
    %252 = arith.maximumf %250, %251 : vector<1x8xf32>
    %253 = arith.truncf %252 : vector<1x8xf32> to vector<1x8xbf16>
    %c0_225 = arith.constant 0 : index
    %c0_226 = arith.constant 0 : index
    %254 = vector.load %arg51[%c0_225, %c0_226] : memref<8x64xbf16, #tpu.memory_space<vmem>>, vector<8x64xbf16>
    %cst_227 = arith.constant dense<0.000000e+00> : vector<1x64xf32>
    %255 = tpu.matmul %253, %254, %cst_227 {dimension_numbers = #tpu.dot_dimension_numbers<[1], [0], [0], [1], [0, 0, 1, 1], [], []>} : vector<1x8xbf16>, vector<8x64xbf16>, vector<1x64xf32> -> vector<1x64xf32>
    %c0_228 = arith.constant 0 : index
    %c0_229 = arith.constant 0 : index
    %256 = vector.load %arg52[%c0_228, %c0_229] : memref<1x64xf32, #tpu.memory_space<vmem>>, vector<1x64xf32>
    %257 = arith.addf %255, %256 : vector<1x64xf32>
    %cst_230 = arith.constant 0.000000e+00 : f32
    %258 = vector.broadcast %cst_230 : f32 to vector<1x64xf32>
    %259 = arith.subf %258, %257 : vector<1x64xf32>
    %260 = math.exp %259 : vector<1x64xf32>
    %cst_231 = arith.constant 1.000000e+00 : f32
    %261 = vector.broadcast %cst_231 : f32 to vector<1x64xf32>
    %262 = arith.addf %261, %260 : vector<1x64xf32>
    %cst_232 = arith.constant 1.000000e+00 : f32
    %263 = vector.broadcast %cst_232 : f32 to vector<1x64xf32>
    %264 = arith.divf %263, %262 : vector<1x64xf32>
    %c0_233 = arith.constant 0 : index
    %c0_234 = arith.constant 0 : index
    %265 = vector.load %arg53[%c0_233, %c0_234] : memref<64x256xf32, #tpu.memory_space<vmem>>, vector<64x256xf32>
    %cst_235 = arith.constant dense<0.000000e+00> : vector<1x256xf32>
    %266 = tpu.matmul %264, %265, %cst_235 {dimension_numbers = #tpu.dot_dimension_numbers<[1], [0], [0], [1], [0, 0, 1, 1], [], []>} : vector<1x64xf32>, vector<64x256xf32>, vector<1x256xf32> -> vector<1x256xf32>
    %267 = vector.broadcast %266 : vector<1x256xf32> to vector<4x256xf32>
    %268 = arith.mulf %240, %267 : vector<4x256xf32>
    %c0_236 = arith.constant 0 : index
    %c0_237 = arith.constant 0 : index
    %c0_238 = arith.constant 0 : index
    %269 = vector.load %arg7[%c0_236, %c0_237, %c0_238] : memref<3x4x8xf32, #tpu.memory_space<vmem>>, vector<1x4x8xf32>
    %270 = vector.shape_cast %269 : vector<1x4x8xf32> to vector<4x8xf32>
    %cst_239 = arith.constant dense<0.000000e+00> : vector<4x256xf32>
    %271 = tpu.matmul %270, %208, %cst_239 {dimension_numbers = #tpu.dot_dimension_numbers<[1], [0], [0], [1], [0, 0, 1, 1], [], []>} : vector<4x8xf32>, vector<8x256xf32>, vector<4x256xf32> -> vector<4x256xf32>
    %c1_240 = arith.constant 1 : index
    %c0_241 = arith.constant 0 : index
    %c0_242 = arith.constant 0 : index
    %272 = vector.load %arg7[%c1_240, %c0_241, %c0_242] : memref<3x4x8xf32, #tpu.memory_space<vmem>>, vector<1x4x8xf32>
    %273 = vector.shape_cast %272 : vector<1x4x8xf32> to vector<4x8xf32>
    %cst_243 = arith.constant dense<0.000000e+00> : vector<4x256xf32>
    %274 = tpu.matmul %273, %208, %cst_243 {dimension_numbers = #tpu.dot_dimension_numbers<[1], [0], [0], [1], [0, 0, 1, 1], [], []>} : vector<4x8xf32>, vector<8x256xf32>, vector<4x256xf32> -> vector<4x256xf32>
    %c2_244 = arith.constant 2 : index
    %c0_245 = arith.constant 0 : index
    %c0_246 = arith.constant 0 : index
    %275 = vector.load %arg7[%c2_244, %c0_245, %c0_246] : memref<3x4x8xf32, #tpu.memory_space<vmem>>, vector<1x4x8xf32>
    %276 = vector.shape_cast %275 : vector<1x4x8xf32> to vector<4x8xf32>
    %cst_247 = arith.constant dense<0.000000e+00> : vector<4x256xf32>
    %277 = tpu.matmul %276, %208, %cst_247 {dimension_numbers = #tpu.dot_dimension_numbers<[1], [0], [0], [1], [0, 0, 1, 1], [], []>} : vector<4x8xf32>, vector<8x256xf32>, vector<4x256xf32> -> vector<4x256xf32>
    %278 = tpu.concatenate %271, %274, %277 in 1 : vector<4x256xf32>, vector<4x256xf32>, vector<4x256xf32> -> vector<4x768xf32>
    %279 = arith.truncf %278 : vector<4x768xf32> to vector<4x768xbf16>
    %c0_248 = arith.constant 0 : index
    %c0_249 = arith.constant 0 : index
    %280 = vector.load %arg54[%c0_248, %c0_249] : memref<768x256xbf16, #tpu.memory_space<vmem>>, vector<768x256xbf16>
    %cst_250 = arith.constant dense<0.000000e+00> : vector<4x256xf32>
    %281 = tpu.matmul %279, %280, %cst_250 {dimension_numbers = #tpu.dot_dimension_numbers<[1], [0], [0], [1], [0, 0, 1, 1], [], []>} : vector<4x768xbf16>, vector<768x256xbf16>, vector<4x256xf32> -> vector<4x256xf32>
    %c0_251 = arith.constant 0 : index
    %c0_252 = arith.constant 0 : index
    %282 = vector.load %arg55[%c0_251, %c0_252] : memref<1x256xf32, #tpu.memory_space<vmem>>, vector<1x256xf32>
    %283 = vector.broadcast %282 : vector<1x256xf32> to vector<4x256xf32>
    %284 = arith.addf %281, %283 : vector<4x256xf32>
    %285 = arith.addf %268, %284 : vector<4x256xf32>
    %cst_253 = arith.constant 0.000000e+00 : f32
    %286 = vector.broadcast %cst_253 : f32 to vector<4x256xf32>
    %287 = arith.maximumf %285, %286 : vector<4x256xf32>
    %288 = arith.truncf %287 : vector<4x256xf32> to vector<4x256xbf16>
    %c0_254 = arith.constant 0 : index
    %c0_255 = arith.constant 0 : index
    %289 = vector.load %arg56[%c0_254, %c0_255] : memref<256x256xbf16, #tpu.memory_space<vmem>>, vector<256x256xbf16>
    %cst_256 = arith.constant dense<0.000000e+00> : vector<4x256xf32>
    %290 = tpu.matmul %288, %289, %cst_256 {dimension_numbers = #tpu.dot_dimension_numbers<[1], [0], [0], [1], [0, 0, 1, 1], [], []>} : vector<4x256xbf16>, vector<256x256xbf16>, vector<4x256xf32> -> vector<4x256xf32>
    %c0_257 = arith.constant 0 : index
    %c0_258 = arith.constant 0 : index
    %291 = vector.load %arg57[%c0_257, %c0_258] : memref<1x256xf32, #tpu.memory_space<vmem>>, vector<1x256xf32>
    %292 = vector.broadcast %291 : vector<1x256xf32> to vector<4x256xf32>
    %293 = arith.addf %290, %292 : vector<4x256xf32>
    %cst_259 = arith.constant 0.000000e+00 : f32
    %294 = vector.broadcast %cst_259 : f32 to vector<4x256xf32>
    %295 = arith.maximumf %293, %294 : vector<4x256xf32>
    %c0_260 = arith.constant 0 : index
    %c0_261 = arith.constant 0 : index
    %c0_262 = arith.constant 0 : index
    %296 = vector.load %arg8[%c0_260, %c0_261, %c0_262] : memref<3x2x4xf32, #tpu.memory_space<vmem>>, vector<1x2x4xf32>
    %297 = vector.shape_cast %296 : vector<1x2x4xf32> to vector<2x4xf32>
    %cst_263 = arith.constant dense<0.000000e+00> : vector<2x256xf32>
    %298 = tpu.matmul %297, %295, %cst_263 {dimension_numbers = #tpu.dot_dimension_numbers<[1], [0], [0], [1], [0, 0, 1, 1], [], []>} : vector<2x4xf32>, vector<4x256xf32>, vector<2x256xf32> -> vector<2x256xf32>
    %c1_264 = arith.constant 1 : index
    %c0_265 = arith.constant 0 : index
    %c0_266 = arith.constant 0 : index
    %299 = vector.load %arg8[%c1_264, %c0_265, %c0_266] : memref<3x2x4xf32, #tpu.memory_space<vmem>>, vector<1x2x4xf32>
    %300 = vector.shape_cast %299 : vector<1x2x4xf32> to vector<2x4xf32>
    %cst_267 = arith.constant dense<0.000000e+00> : vector<2x256xf32>
    %301 = tpu.matmul %300, %295, %cst_267 {dimension_numbers = #tpu.dot_dimension_numbers<[1], [0], [0], [1], [0, 0, 1, 1], [], []>} : vector<2x4xf32>, vector<4x256xf32>, vector<2x256xf32> -> vector<2x256xf32>
    %c2_268 = arith.constant 2 : index
    %c0_269 = arith.constant 0 : index
    %c0_270 = arith.constant 0 : index
    %302 = vector.load %arg8[%c2_268, %c0_269, %c0_270] : memref<3x2x4xf32, #tpu.memory_space<vmem>>, vector<1x2x4xf32>
    %303 = vector.shape_cast %302 : vector<1x2x4xf32> to vector<2x4xf32>
    %cst_271 = arith.constant dense<0.000000e+00> : vector<2x256xf32>
    %304 = tpu.matmul %303, %295, %cst_271 {dimension_numbers = #tpu.dot_dimension_numbers<[1], [0], [0], [1], [0, 0, 1, 1], [], []>} : vector<2x4xf32>, vector<4x256xf32>, vector<2x256xf32> -> vector<2x256xf32>
    %305 = tpu.concatenate %298, %301, %304 in 1 : vector<2x256xf32>, vector<2x256xf32>, vector<2x256xf32> -> vector<2x768xf32>
    %306 = arith.truncf %305 : vector<2x768xf32> to vector<2x768xbf16>
    %c0_272 = arith.constant 0 : index
    %c0_273 = arith.constant 0 : index
    %307 = vector.load %arg58[%c0_272, %c0_273] : memref<768x256xbf16, #tpu.memory_space<vmem>>, vector<768x256xbf16>
    %cst_274 = arith.constant dense<0.000000e+00> : vector<2x256xf32>
    %308 = tpu.matmul %306, %307, %cst_274 {dimension_numbers = #tpu.dot_dimension_numbers<[1], [0], [0], [1], [0, 0, 1, 1], [], []>} : vector<2x768xbf16>, vector<768x256xbf16>, vector<2x256xf32> -> vector<2x256xf32>
    %c0_275 = arith.constant 0 : index
    %c0_276 = arith.constant 0 : index
    %309 = vector.load %arg59[%c0_275, %c0_276] : memref<1x256xf32, #tpu.memory_space<vmem>>, vector<1x256xf32>
    %310 = vector.broadcast %309 : vector<1x256xf32> to vector<2x256xf32>
    %311 = arith.addf %308, %310 : vector<2x256xf32>
    %cst_277 = arith.constant 0.000000e+00 : f32
    %312 = vector.broadcast %cst_277 : f32 to vector<2x256xf32>
    %313 = arith.maximumf %311, %312 : vector<2x256xf32>
    %314 = arith.truncf %313 : vector<2x256xf32> to vector<2x256xbf16>
    %c0_278 = arith.constant 0 : index
    %c0_279 = arith.constant 0 : index
    %315 = vector.load %arg60[%c0_278, %c0_279] : memref<256x256xbf16, #tpu.memory_space<vmem>>, vector<256x256xbf16>
    %cst_280 = arith.constant dense<0.000000e+00> : vector<2x256xf32>
    %316 = tpu.matmul %314, %315, %cst_280 {dimension_numbers = #tpu.dot_dimension_numbers<[1], [0], [0], [1], [0, 0, 1, 1], [], []>} : vector<2x256xbf16>, vector<256x256xbf16>, vector<2x256xf32> -> vector<2x256xf32>
    %c0_281 = arith.constant 0 : index
    %c0_282 = arith.constant 0 : index
    %317 = vector.load %arg61[%c0_281, %c0_282] : memref<1x256xf32, #tpu.memory_space<vmem>>, vector<1x256xf32>
    %318 = vector.broadcast %317 : vector<1x256xf32> to vector<2x256xf32>
    %319 = arith.addf %316, %318 : vector<2x256xf32>
    %cst_283 = arith.constant 5.000000e-01 : f32
    %320 = vector.broadcast %cst_283 : f32 to vector<1x2xf32>
    %cst_284 = arith.constant dense<0.000000e+00> : vector<1x256xf32>
    %321 = tpu.matmul %320, %319, %cst_284 {dimension_numbers = #tpu.dot_dimension_numbers<[1], [0], [0], [1], [0, 0, 1, 1], [], []>} : vector<1x2xf32>, vector<2x256xf32>, vector<1x256xf32> -> vector<1x256xf32>
    %322 = arith.truncf %321 : vector<1x256xf32> to vector<1x256xbf16>
    %c0_285 = arith.constant 0 : index
    %c0_286 = arith.constant 0 : index
    %323 = vector.load %arg62[%c0_285, %c0_286] : memref<256x128xbf16, #tpu.memory_space<vmem>>, vector<256x128xbf16>
    %cst_287 = arith.constant dense<0.000000e+00> : vector<1x128xf32>
    %324 = tpu.matmul %322, %323, %cst_287 {dimension_numbers = #tpu.dot_dimension_numbers<[1], [0], [0], [1], [0, 0, 1, 1], [], []>} : vector<1x256xbf16>, vector<256x128xbf16>, vector<1x128xf32> -> vector<1x128xf32>
    %325 = arith.truncf %324 : vector<1x128xf32> to vector<1x128xbf16>
    %c0_288 = arith.constant 0 : index
    %c0_289 = arith.constant 0 : index
    %326 = vector.load %arg63[%c0_288, %c0_289] : memref<128x16xbf16, #tpu.memory_space<vmem>>, vector<128x16xbf16>
    %cst_290 = arith.constant dense<0.000000e+00> : vector<1x16xf32>
    %327 = tpu.matmul %325, %326, %cst_290 {dimension_numbers = #tpu.dot_dimension_numbers<[1], [0], [0], [1], [0, 0, 1, 1], [], []>} : vector<1x128xbf16>, vector<128x16xbf16>, vector<1x16xf32> -> vector<1x16xf32>
    %c0_291 = arith.constant 0 : index
    %c0_292 = arith.constant 0 : index
    %328 = vector.load %arg64[%c0_291, %c0_292] : memref<1x16xf32, #tpu.memory_space<vmem>>, vector<1x16xf32>
    %329 = arith.addf %327, %328 : vector<1x16xf32>
    %cst_293 = arith.constant 0.000000e+00 : f32
    %330 = vector.broadcast %cst_293 : f32 to vector<1x16xf32>
    %331 = arith.maximumf %329, %330 : vector<1x16xf32>
    %332 = arith.truncf %331 : vector<1x16xf32> to vector<1x16xbf16>
    %c0_294 = arith.constant 0 : index
    %c0_295 = arith.constant 0 : index
    %333 = vector.load %arg65[%c0_294, %c0_295] : memref<16x128xbf16, #tpu.memory_space<vmem>>, vector<16x128xbf16>
    %cst_296 = arith.constant dense<0.000000e+00> : vector<1x128xf32>
    %334 = tpu.matmul %332, %333, %cst_296 {dimension_numbers = #tpu.dot_dimension_numbers<[1], [0], [0], [1], [0, 0, 1, 1], [], []>} : vector<1x16xbf16>, vector<16x128xbf16>, vector<1x128xf32> -> vector<1x128xf32>
    %c0_297 = arith.constant 0 : index
    %c0_298 = arith.constant 0 : index
    %335 = vector.load %arg66[%c0_297, %c0_298] : memref<1x128xf32, #tpu.memory_space<vmem>>, vector<1x128xf32>
    %336 = arith.addf %334, %335 : vector<1x128xf32>
    %cst_299 = arith.constant 0.000000e+00 : f32
    %337 = vector.broadcast %cst_299 : f32 to vector<1x128xf32>
    %338 = arith.subf %337, %336 : vector<1x128xf32>
    %339 = math.exp %338 : vector<1x128xf32>
    %cst_300 = arith.constant 1.000000e+00 : f32
    %340 = vector.broadcast %cst_300 : f32 to vector<1x128xf32>
    %341 = arith.addf %340, %339 : vector<1x128xf32>
    %cst_301 = arith.constant 1.000000e+00 : f32
    %342 = vector.broadcast %cst_301 : f32 to vector<1x128xf32>
    %343 = arith.divf %342, %341 : vector<1x128xf32>
    %c0_302 = arith.constant 0 : index
    %c0_303 = arith.constant 0 : index
    %344 = vector.load %arg67[%c0_302, %c0_303] : memref<128x256xf32, #tpu.memory_space<vmem>>, vector<128x256xf32>
    %cst_304 = arith.constant dense<0.000000e+00> : vector<1x256xf32>
    %345 = tpu.matmul %343, %344, %cst_304 {dimension_numbers = #tpu.dot_dimension_numbers<[1], [0], [0], [1], [0, 0, 1, 1], [], []>} : vector<1x128xf32>, vector<128x256xf32>, vector<1x256xf32> -> vector<1x256xf32>
    %346 = vector.broadcast %345 : vector<1x256xf32> to vector<2x256xf32>
    %347 = arith.mulf %319, %346 : vector<2x256xf32>
    %c0_305 = arith.constant 0 : index
    %c0_306 = arith.constant 0 : index
    %c0_307 = arith.constant 0 : index
    %348 = vector.load %arg8[%c0_305, %c0_306, %c0_307] : memref<3x2x4xf32, #tpu.memory_space<vmem>>, vector<1x2x4xf32>
    %349 = vector.shape_cast %348 : vector<1x2x4xf32> to vector<2x4xf32>
    %cst_308 = arith.constant dense<0.000000e+00> : vector<2x256xf32>
    %350 = tpu.matmul %349, %287, %cst_308 {dimension_numbers = #tpu.dot_dimension_numbers<[1], [0], [0], [1], [0, 0, 1, 1], [], []>} : vector<2x4xf32>, vector<4x256xf32>, vector<2x256xf32> -> vector<2x256xf32>
    %c1_309 = arith.constant 1 : index
    %c0_310 = arith.constant 0 : index
    %c0_311 = arith.constant 0 : index
    %351 = vector.load %arg8[%c1_309, %c0_310, %c0_311] : memref<3x2x4xf32, #tpu.memory_space<vmem>>, vector<1x2x4xf32>
    %352 = vector.shape_cast %351 : vector<1x2x4xf32> to vector<2x4xf32>
    %cst_312 = arith.constant dense<0.000000e+00> : vector<2x256xf32>
    %353 = tpu.matmul %352, %287, %cst_312 {dimension_numbers = #tpu.dot_dimension_numbers<[1], [0], [0], [1], [0, 0, 1, 1], [], []>} : vector<2x4xf32>, vector<4x256xf32>, vector<2x256xf32> -> vector<2x256xf32>
    %c2_313 = arith.constant 2 : index
    %c0_314 = arith.constant 0 : index
    %c0_315 = arith.constant 0 : index
    %354 = vector.load %arg8[%c2_313, %c0_314, %c0_315] : memref<3x2x4xf32, #tpu.memory_space<vmem>>, vector<1x2x4xf32>
    %355 = vector.shape_cast %354 : vector<1x2x4xf32> to vector<2x4xf32>
    %cst_316 = arith.constant dense<0.000000e+00> : vector<2x256xf32>
    %356 = tpu.matmul %355, %287, %cst_316 {dimension_numbers = #tpu.dot_dimension_numbers<[1], [0], [0], [1], [0, 0, 1, 1], [], []>} : vector<2x4xf32>, vector<4x256xf32>, vector<2x256xf32> -> vector<2x256xf32>
    %357 = tpu.concatenate %350, %353, %356 in 1 : vector<2x256xf32>, vector<2x256xf32>, vector<2x256xf32> -> vector<2x768xf32>
    %358 = arith.truncf %357 : vector<2x768xf32> to vector<2x768xbf16>
    %c0_317 = arith.constant 0 : index
    %c0_318 = arith.constant 0 : index
    %359 = vector.load %arg68[%c0_317, %c0_318] : memref<768x256xbf16, #tpu.memory_space<vmem>>, vector<768x256xbf16>
    %cst_319 = arith.constant dense<0.000000e+00> : vector<2x256xf32>
    %360 = tpu.matmul %358, %359, %cst_319 {dimension_numbers = #tpu.dot_dimension_numbers<[1], [0], [0], [1], [0, 0, 1, 1], [], []>} : vector<2x768xbf16>, vector<768x256xbf16>, vector<2x256xf32> -> vector<2x256xf32>
    %c0_320 = arith.constant 0 : index
    %c0_321 = arith.constant 0 : index
    %361 = vector.load %arg69[%c0_320, %c0_321] : memref<1x256xf32, #tpu.memory_space<vmem>>, vector<1x256xf32>
    %362 = vector.broadcast %361 : vector<1x256xf32> to vector<2x256xf32>
    %363 = arith.addf %360, %362 : vector<2x256xf32>
    %364 = arith.addf %347, %363 : vector<2x256xf32>
    %cst_322 = arith.constant 0.000000e+00 : f32
    %365 = vector.broadcast %cst_322 : f32 to vector<2x256xf32>
    %366 = arith.maximumf %364, %365 : vector<2x256xf32>
    %367 = arith.truncf %366 : vector<2x256xf32> to vector<2x256xbf16>
    %c0_323 = arith.constant 0 : index
    %c0_324 = arith.constant 0 : index
    %368 = vector.load %arg70[%c0_323, %c0_324] : memref<256x256xbf16, #tpu.memory_space<vmem>>, vector<256x256xbf16>
    %cst_325 = arith.constant dense<0.000000e+00> : vector<2x256xf32>
    %369 = tpu.matmul %367, %368, %cst_325 {dimension_numbers = #tpu.dot_dimension_numbers<[1], [0], [0], [1], [0, 0, 1, 1], [], []>} : vector<2x256xbf16>, vector<256x256xbf16>, vector<2x256xf32> -> vector<2x256xf32>
    %c0_326 = arith.constant 0 : index
    %c0_327 = arith.constant 0 : index
    %370 = vector.load %arg71[%c0_326, %c0_327] : memref<1x256xf32, #tpu.memory_space<vmem>>, vector<1x256xf32>
    %371 = vector.broadcast %370 : vector<1x256xf32> to vector<2x256xf32>
    %372 = arith.addf %369, %371 : vector<2x256xf32>
    %cst_328 = arith.constant 0.000000e+00 : f32
    %373 = vector.broadcast %cst_328 : f32 to vector<2x256xf32>
    %374 = arith.maximumf %372, %373 : vector<2x256xf32>
    %c0_329 = arith.constant 0 : index
    %c0_330 = arith.constant 0 : index
    %c0_331 = arith.constant 0 : index
    %375 = vector.load %arg9[%c0_329, %c0_330, %c0_331] : memref<3x1x2xf32, #tpu.memory_space<vmem>>, vector<1x1x2xf32>
    %376 = vector.shape_cast %375 : vector<1x1x2xf32> to vector<1x2xf32>
    %cst_332 = arith.constant dense<0.000000e+00> : vector<1x256xf32>
    %377 = tpu.matmul %376, %374, %cst_332 {dimension_numbers = #tpu.dot_dimension_numbers<[1], [0], [0], [1], [0, 0, 1, 1], [], []>} : vector<1x2xf32>, vector<2x256xf32>, vector<1x256xf32> -> vector<1x256xf32>
    %c1_333 = arith.constant 1 : index
    %c0_334 = arith.constant 0 : index
    %c0_335 = arith.constant 0 : index
    %378 = vector.load %arg9[%c1_333, %c0_334, %c0_335] : memref<3x1x2xf32, #tpu.memory_space<vmem>>, vector<1x1x2xf32>
    %379 = vector.shape_cast %378 : vector<1x1x2xf32> to vector<1x2xf32>
    %cst_336 = arith.constant dense<0.000000e+00> : vector<1x256xf32>
    %380 = tpu.matmul %379, %374, %cst_336 {dimension_numbers = #tpu.dot_dimension_numbers<[1], [0], [0], [1], [0, 0, 1, 1], [], []>} : vector<1x2xf32>, vector<2x256xf32>, vector<1x256xf32> -> vector<1x256xf32>
    %c2_337 = arith.constant 2 : index
    %c0_338 = arith.constant 0 : index
    %c0_339 = arith.constant 0 : index
    %381 = vector.load %arg9[%c2_337, %c0_338, %c0_339] : memref<3x1x2xf32, #tpu.memory_space<vmem>>, vector<1x1x2xf32>
    %382 = vector.shape_cast %381 : vector<1x1x2xf32> to vector<1x2xf32>
    %cst_340 = arith.constant dense<0.000000e+00> : vector<1x256xf32>
    %383 = tpu.matmul %382, %374, %cst_340 {dimension_numbers = #tpu.dot_dimension_numbers<[1], [0], [0], [1], [0, 0, 1, 1], [], []>} : vector<1x2xf32>, vector<2x256xf32>, vector<1x256xf32> -> vector<1x256xf32>
    %384 = tpu.concatenate %377, %380, %383 in 1 : vector<1x256xf32>, vector<1x256xf32>, vector<1x256xf32> -> vector<1x768xf32>
    %385 = arith.truncf %384 : vector<1x768xf32> to vector<1x768xbf16>
    %c0_341 = arith.constant 0 : index
    %c0_342 = arith.constant 0 : index
    %386 = vector.load %arg72[%c0_341, %c0_342] : memref<768x256xbf16, #tpu.memory_space<vmem>>, vector<768x256xbf16>
    %cst_343 = arith.constant dense<0.000000e+00> : vector<1x256xf32>
    %387 = tpu.matmul %385, %386, %cst_343 {dimension_numbers = #tpu.dot_dimension_numbers<[1], [0], [0], [1], [0, 0, 1, 1], [], []>} : vector<1x768xbf16>, vector<768x256xbf16>, vector<1x256xf32> -> vector<1x256xf32>
    %c0_344 = arith.constant 0 : index
    %c0_345 = arith.constant 0 : index
    %388 = vector.load %arg73[%c0_344, %c0_345] : memref<1x256xf32, #tpu.memory_space<vmem>>, vector<1x256xf32>
    %389 = arith.addf %387, %388 : vector<1x256xf32>
    %cst_346 = arith.constant 0.000000e+00 : f32
    %390 = vector.broadcast %cst_346 : f32 to vector<1x256xf32>
    %391 = arith.maximumf %389, %390 : vector<1x256xf32>
    %392 = arith.truncf %391 : vector<1x256xf32> to vector<1x256xbf16>
    %c0_347 = arith.constant 0 : index
    %c0_348 = arith.constant 0 : index
    %393 = vector.load %arg74[%c0_347, %c0_348] : memref<256x256xbf16, #tpu.memory_space<vmem>>, vector<256x256xbf16>
    %cst_349 = arith.constant dense<0.000000e+00> : vector<1x256xf32>
    %394 = tpu.matmul %392, %393, %cst_349 {dimension_numbers = #tpu.dot_dimension_numbers<[1], [0], [0], [1], [0, 0, 1, 1], [], []>} : vector<1x256xbf16>, vector<256x256xbf16>, vector<1x256xf32> -> vector<1x256xf32>
    %c0_350 = arith.constant 0 : index
    %c0_351 = arith.constant 0 : index
    %395 = vector.load %arg75[%c0_350, %c0_351] : memref<1x256xf32, #tpu.memory_space<vmem>>, vector<1x256xf32>
    %396 = arith.addf %394, %395 : vector<1x256xf32>
    %397 = arith.truncf %396 : vector<1x256xf32> to vector<1x256xbf16>
    %c0_352 = arith.constant 0 : index
    %c0_353 = arith.constant 0 : index
    %398 = vector.load %arg76[%c0_352, %c0_353] : memref<256x256xbf16, #tpu.memory_space<vmem>>, vector<256x256xbf16>
    %cst_354 = arith.constant dense<0.000000e+00> : vector<1x256xf32>
    %399 = tpu.matmul %397, %398, %cst_354 {dimension_numbers = #tpu.dot_dimension_numbers<[1], [0], [0], [1], [0, 0, 1, 1], [], []>} : vector<1x256xbf16>, vector<256x256xbf16>, vector<1x256xf32> -> vector<1x256xf32>
    %400 = arith.truncf %399 : vector<1x256xf32> to vector<1x256xbf16>
    %c0_355 = arith.constant 0 : index
    %c0_356 = arith.constant 0 : index
    %401 = vector.load %arg77[%c0_355, %c0_356] : memref<256x32xbf16, #tpu.memory_space<vmem>>, vector<256x32xbf16>
    %cst_357 = arith.constant dense<0.000000e+00> : vector<1x32xf32>
    %402 = tpu.matmul %400, %401, %cst_357 {dimension_numbers = #tpu.dot_dimension_numbers<[1], [0], [0], [1], [0, 0, 1, 1], [], []>} : vector<1x256xbf16>, vector<256x32xbf16>, vector<1x32xf32> -> vector<1x32xf32>
    %c0_358 = arith.constant 0 : index
    %c0_359 = arith.constant 0 : index
    %403 = vector.load %arg78[%c0_358, %c0_359] : memref<1x32xf32, #tpu.memory_space<vmem>>, vector<1x32xf32>
    %404 = arith.addf %402, %403 : vector<1x32xf32>
    %cst_360 = arith.constant 0.000000e+00 : f32
    %405 = vector.broadcast %cst_360 : f32 to vector<1x32xf32>
    %406 = arith.maximumf %404, %405 : vector<1x32xf32>
    %407 = arith.truncf %406 : vector<1x32xf32> to vector<1x32xbf16>
    %c0_361 = arith.constant 0 : index
    %c0_362 = arith.constant 0 : index
    %408 = vector.load %arg79[%c0_361, %c0_362] : memref<32x256xbf16, #tpu.memory_space<vmem>>, vector<32x256xbf16>
    %cst_363 = arith.constant dense<0.000000e+00> : vector<1x256xf32>
    %409 = tpu.matmul %407, %408, %cst_363 {dimension_numbers = #tpu.dot_dimension_numbers<[1], [0], [0], [1], [0, 0, 1, 1], [], []>} : vector<1x32xbf16>, vector<32x256xbf16>, vector<1x256xf32> -> vector<1x256xf32>
    %c0_364 = arith.constant 0 : index
    %c0_365 = arith.constant 0 : index
    %410 = vector.load %arg80[%c0_364, %c0_365] : memref<1x256xf32, #tpu.memory_space<vmem>>, vector<1x256xf32>
    %411 = arith.addf %409, %410 : vector<1x256xf32>
    %cst_366 = arith.constant 0.000000e+00 : f32
    %412 = vector.broadcast %cst_366 : f32 to vector<1x256xf32>
    %413 = arith.subf %412, %411 : vector<1x256xf32>
    %414 = math.exp %413 : vector<1x256xf32>
    %cst_367 = arith.constant 1.000000e+00 : f32
    %415 = vector.broadcast %cst_367 : f32 to vector<1x256xf32>
    %416 = arith.addf %415, %414 : vector<1x256xf32>
    %cst_368 = arith.constant 1.000000e+00 : f32
    %417 = vector.broadcast %cst_368 : f32 to vector<1x256xf32>
    %418 = arith.divf %417, %416 : vector<1x256xf32>
    %419 = arith.mulf %396, %418 : vector<1x256xf32>
    %c0_369 = arith.constant 0 : index
    %c0_370 = arith.constant 0 : index
    %c0_371 = arith.constant 0 : index
    %420 = vector.load %arg9[%c0_369, %c0_370, %c0_371] : memref<3x1x2xf32, #tpu.memory_space<vmem>>, vector<1x1x2xf32>
    %421 = vector.shape_cast %420 : vector<1x1x2xf32> to vector<1x2xf32>
    %cst_372 = arith.constant dense<0.000000e+00> : vector<1x256xf32>
    %422 = tpu.matmul %421, %366, %cst_372 {dimension_numbers = #tpu.dot_dimension_numbers<[1], [0], [0], [1], [0, 0, 1, 1], [], []>} : vector<1x2xf32>, vector<2x256xf32>, vector<1x256xf32> -> vector<1x256xf32>
    %c1_373 = arith.constant 1 : index
    %c0_374 = arith.constant 0 : index
    %c0_375 = arith.constant 0 : index
    %423 = vector.load %arg9[%c1_373, %c0_374, %c0_375] : memref<3x1x2xf32, #tpu.memory_space<vmem>>, vector<1x1x2xf32>
    %424 = vector.shape_cast %423 : vector<1x1x2xf32> to vector<1x2xf32>
    %cst_376 = arith.constant dense<0.000000e+00> : vector<1x256xf32>
    %425 = tpu.matmul %424, %366, %cst_376 {dimension_numbers = #tpu.dot_dimension_numbers<[1], [0], [0], [1], [0, 0, 1, 1], [], []>} : vector<1x2xf32>, vector<2x256xf32>, vector<1x256xf32> -> vector<1x256xf32>
    %c2_377 = arith.constant 2 : index
    %c0_378 = arith.constant 0 : index
    %c0_379 = arith.constant 0 : index
    %426 = vector.load %arg9[%c2_377, %c0_378, %c0_379] : memref<3x1x2xf32, #tpu.memory_space<vmem>>, vector<1x1x2xf32>
    %427 = vector.shape_cast %426 : vector<1x1x2xf32> to vector<1x2xf32>
    %cst_380 = arith.constant dense<0.000000e+00> : vector<1x256xf32>
    %428 = tpu.matmul %427, %366, %cst_380 {dimension_numbers = #tpu.dot_dimension_numbers<[1], [0], [0], [1], [0, 0, 1, 1], [], []>} : vector<1x2xf32>, vector<2x256xf32>, vector<1x256xf32> -> vector<1x256xf32>
    %429 = tpu.concatenate %422, %425, %428 in 1 : vector<1x256xf32>, vector<1x256xf32>, vector<1x256xf32> -> vector<1x768xf32>
    %430 = arith.truncf %429 : vector<1x768xf32> to vector<1x768xbf16>
    %c0_381 = arith.constant 0 : index
    %c0_382 = arith.constant 0 : index
    %431 = vector.load %arg81[%c0_381, %c0_382] : memref<768x256xbf16, #tpu.memory_space<vmem>>, vector<768x256xbf16>
    %cst_383 = arith.constant dense<0.000000e+00> : vector<1x256xf32>
    %432 = tpu.matmul %430, %431, %cst_383 {dimension_numbers = #tpu.dot_dimension_numbers<[1], [0], [0], [1], [0, 0, 1, 1], [], []>} : vector<1x768xbf16>, vector<768x256xbf16>, vector<1x256xf32> -> vector<1x256xf32>
    %c0_384 = arith.constant 0 : index
    %c0_385 = arith.constant 0 : index
    %433 = vector.load %arg82[%c0_384, %c0_385] : memref<1x256xf32, #tpu.memory_space<vmem>>, vector<1x256xf32>
    %434 = arith.addf %432, %433 : vector<1x256xf32>
    %435 = arith.addf %419, %434 : vector<1x256xf32>
    %cst_386 = arith.constant 0.000000e+00 : f32
    %436 = vector.broadcast %cst_386 : f32 to vector<1x256xf32>
    %437 = arith.maximumf %435, %436 : vector<1x256xf32>
    %438 = arith.truncf %437 : vector<1x256xf32> to vector<1x256xbf16>
    %c0_387 = arith.constant 0 : index
    %c0_388 = arith.constant 0 : index
    %439 = vector.load %arg83[%c0_387, %c0_388] : memref<256x128xbf16, #tpu.memory_space<vmem>>, vector<256x128xbf16>
    %cst_389 = arith.constant dense<0.000000e+00> : vector<1x128xf32>
    %440 = tpu.matmul %438, %439, %cst_389 {dimension_numbers = #tpu.dot_dimension_numbers<[1], [0], [0], [1], [0, 0, 1, 1], [], []>} : vector<1x256xbf16>, vector<256x128xbf16>, vector<1x128xf32> -> vector<1x128xf32>
    %c0_390 = arith.constant 0 : index
    %c0_391 = arith.constant 0 : index
    %441 = vector.load %arg84[%c0_390, %c0_391] : memref<1x128xf32, #tpu.memory_space<vmem>>, vector<1x128xf32>
    %442 = arith.addf %440, %441 : vector<1x128xf32>
    %443 = vector.shape_cast %442 : vector<1x128xf32> to vector<1x128xf32>
    %444 = vector.broadcast %443 : vector<1x128xf32> to vector<8x128xf32>
    %c0_392 = arith.constant 0 : index
    %c0_393 = arith.constant 0 : index
    %c0_394 = arith.constant 0 : index
    %445 = vector.load %arg85[%c0_392, %c0_393, %c0_394] : memref<1x8x128xf32, #tpu.memory_space<vmem>>, vector<1x8x128xf32>
    %446 = vector.shape_cast %445 : vector<1x8x128xf32> to vector<8x128xf32>
    %447 = vector.shape_cast %444 : vector<8x128xf32> to vector<1x8x128xf32>
    tpu.vector_store %arg85[%c0_392, %c0_393, %c0_394], %447 {strides = array<i32>} : memref<1x8x128xf32, #tpu.memory_space<vmem>>, vector<1x8x128xf32>,
    return
  }
  func.func @transform_0(%arg0: i32) -> (i32, i32) {
    %c0_i32 = arith.constant 0 : i32
    %c0_i32_0 = arith.constant 0 : i32
    return %arg0, %c0_i32 : i32, i32
  }
  func.func @transform_1(%arg0: i32) -> (i32, i32, i32) {
    %c0_i32 = arith.constant 0 : i32
    %c0_i32_0 = arith.constant 0 : i32
    %c0_i32_1 = arith.constant 0 : i32
    %c0_i32_2 = arith.constant 0 : i32
    return %c0_i32, %c0_i32_0, %c0_i32_1 : i32, i32, i32
  }
  func.func @transform_2(%arg0: i32) -> (i32, i32, i32) {
    %c0_i32 = arith.constant 0 : i32
    %c0_i32_0 = arith.constant 0 : i32
    %c0_i32_1 = arith.constant 0 : i32
    %c0_i32_2 = arith.constant 0 : i32
    return %c0_i32, %c0_i32_0, %c0_i32_1 : i32, i32, i32
  }
  func.func @transform_3(%arg0: i32) -> (i32, i32, i32) {
    %c0_i32 = arith.constant 0 : i32
    %c0_i32_0 = arith.constant 0 : i32
    %c0_i32_1 = arith.constant 0 : i32
    %c0_i32_2 = arith.constant 0 : i32
    return %c0_i32, %c0_i32_0, %c0_i32_1 : i32, i32, i32
  }
  func.func @transform_4(%arg0: i32) -> (i32, i32, i32) {
    %c0_i32 = arith.constant 0 : i32
    %c0_i32_0 = arith.constant 0 : i32
    %c0_i32_1 = arith.constant 0 : i32
    %c0_i32_2 = arith.constant 0 : i32
    return %c0_i32, %c0_i32_0, %c0_i32_1 : i32, i32, i32
  }
  func.func @transform_5(%arg0: i32) -> (i32, i32, i32) {
    %c0_i32 = arith.constant 0 : i32
    %c0_i32_0 = arith.constant 0 : i32
    %c0_i32_1 = arith.constant 0 : i32
    %c0_i32_2 = arith.constant 0 : i32
    return %c0_i32, %c0_i32_0, %c0_i32_1 : i32, i32, i32
  }
  func.func @transform_6(%arg0: i32) -> (i32, i32, i32) {
    %c0_i32 = arith.constant 0 : i32
    %c0_i32_0 = arith.constant 0 : i32
    %c0_i32_1 = arith.constant 0 : i32
    %c0_i32_2 = arith.constant 0 : i32
    return %c0_i32, %c0_i32_0, %c0_i32_1 : i32, i32, i32
  }
  func.func @transform_7(%arg0: i32) -> (i32, i32, i32) {
    %c0_i32 = arith.constant 0 : i32
    %c0_i32_0 = arith.constant 0 : i32
    %c0_i32_1 = arith.constant 0 : i32
    %c0_i32_2 = arith.constant 0 : i32
    return %c0_i32, %c0_i32_0, %c0_i32_1 : i32, i32, i32
  }
  func.func @transform_8(%arg0: i32) -> (i32, i32, i32) {
    %c0_i32 = arith.constant 0 : i32
    %c0_i32_0 = arith.constant 0 : i32
    %c0_i32_1 = arith.constant 0 : i32
    %c0_i32_2 = arith.constant 0 : i32
    return %c0_i32, %c0_i32_0, %c0_i32_1 : i32, i32, i32
  }
  func.func @transform_9(%arg0: i32) -> (i32, i32) {
    %c0_i32 = arith.constant 0 : i32
    %c0_i32_0 = arith.constant 0 : i32
    %c0_i32_1 = arith.constant 0 : i32
    return %c0_i32, %c0_i32_0 : i32, i32
  }
  func.func @transform_10(%arg0: i32) -> (i32, i32) {
    %c0_i32 = arith.constant 0 : i32
    %c0_i32_0 = arith.constant 0 : i32
    %c0_i32_1 = arith.constant 0 : i32
    return %c0_i32, %c0_i32_0 : i32, i32
  }
  func.func @transform_11(%arg0: i32) -> (i32, i32) {
    %c0_i32 = arith.constant 0 : i32
    %c0_i32_0 = arith.constant 0 : i32
    %c0_i32_1 = arith.constant 0 : i32
    return %c0_i32, %c0_i32_0 : i32, i32
  }
  func.func @transform_12(%arg0: i32) -> (i32, i32) {
    %c0_i32 = arith.constant 0 : i32
    %c0_i32_0 = arith.constant 0 : i32
    %c0_i32_1 = arith.constant 0 : i32
    return %c0_i32, %c0_i32_0 : i32, i32
  }
  func.func @transform_13(%arg0: i32) -> (i32, i32) {
    %c0_i32 = arith.constant 0 : i32
    %c0_i32_0 = arith.constant 0 : i32
    %c0_i32_1 = arith.constant 0 : i32
    return %c0_i32, %c0_i32_0 : i32, i32
  }
  func.func @transform_14(%arg0: i32) -> (i32, i32) {
    %c0_i32 = arith.constant 0 : i32
    %c0_i32_0 = arith.constant 0 : i32
    %c0_i32_1 = arith.constant 0 : i32
    return %c0_i32, %c0_i32_0 : i32, i32
  }
  func.func @transform_15(%arg0: i32) -> (i32, i32) {
    %c0_i32 = arith.constant 0 : i32
    %c0_i32_0 = arith.constant 0 : i32
    %c0_i32_1 = arith.constant 0 : i32
    return %c0_i32, %c0_i32_0 : i32, i32
  }
  func.func @transform_16(%arg0: i32) -> (i32, i32) {
    %c0_i32 = arith.constant 0 : i32
    %c0_i32_0 = arith.constant 0 : i32
    %c0_i32_1 = arith.constant 0 : i32
    return %c0_i32, %c0_i32_0 : i32, i32
  }
  func.func @transform_17(%arg0: i32) -> (i32, i32) {
    %c0_i32 = arith.constant 0 : i32
    %c0_i32_0 = arith.constant 0 : i32
    %c0_i32_1 = arith.constant 0 : i32
    return %c0_i32, %c0_i32_0 : i32, i32
  }
  func.func @transform_18(%arg0: i32) -> (i32, i32) {
    %c0_i32 = arith.constant 0 : i32
    %c0_i32_0 = arith.constant 0 : i32
    %c0_i32_1 = arith.constant 0 : i32
    return %c0_i32, %c0_i32_0 : i32, i32
  }
  func.func @transform_19(%arg0: i32) -> (i32, i32) {
    %c0_i32 = arith.constant 0 : i32
    %c0_i32_0 = arith.constant 0 : i32
    %c0_i32_1 = arith.constant 0 : i32
    return %c0_i32, %c0_i32_0 : i32, i32
  }
  func.func @transform_20(%arg0: i32) -> (i32, i32) {
    %c0_i32 = arith.constant 0 : i32
    %c0_i32_0 = arith.constant 0 : i32
    %c0_i32_1 = arith.constant 0 : i32
    return %c0_i32, %c0_i32_0 : i32, i32
  }
  func.func @transform_21(%arg0: i32) -> (i32, i32) {
    %c0_i32 = arith.constant 0 : i32
    %c0_i32_0 = arith.constant 0 : i32
    %c0_i32_1 = arith.constant 0 : i32
    return %c0_i32, %c0_i32_0 : i32, i32
  }
  func.func @transform_22(%arg0: i32) -> (i32, i32) {
    %c0_i32 = arith.constant 0 : i32
    %c0_i32_0 = arith.constant 0 : i32
    %c0_i32_1 = arith.constant 0 : i32
    return %c0_i32, %c0_i32_0 : i32, i32
  }
  func.func @transform_23(%arg0: i32) -> (i32, i32) {
    %c0_i32 = arith.constant 0 : i32
    %c0_i32_0 = arith.constant 0 : i32
    %c0_i32_1 = arith.constant 0 : i32
    return %c0_i32, %c0_i32_0 : i32, i32
  }
  func.func @transform_24(%arg0: i32) -> (i32, i32) {
    %c0_i32 = arith.constant 0 : i32
    %c0_i32_0 = arith.constant 0 : i32
    %c0_i32_1 = arith.constant 0 : i32
    return %c0_i32, %c0_i32_0 : i32, i32
  }
  func.func @transform_25(%arg0: i32) -> (i32, i32) {
    %c0_i32 = arith.constant 0 : i32
    %c0_i32_0 = arith.constant 0 : i32
    %c0_i32_1 = arith.constant 0 : i32
    return %c0_i32, %c0_i32_0 : i32, i32
  }
  func.func @transform_26(%arg0: i32) -> (i32, i32) {
    %c0_i32 = arith.constant 0 : i32
    %c0_i32_0 = arith.constant 0 : i32
    %c0_i32_1 = arith.constant 0 : i32
    return %c0_i32, %c0_i32_0 : i32, i32
  }
  func.func @transform_27(%arg0: i32) -> (i32, i32) {
    %c0_i32 = arith.constant 0 : i32
    %c0_i32_0 = arith.constant 0 : i32
    %c0_i32_1 = arith.constant 0 : i32
    return %c0_i32, %c0_i32_0 : i32, i32
  }
  func.func @transform_28(%arg0: i32) -> (i32, i32) {
    %c0_i32 = arith.constant 0 : i32
    %c0_i32_0 = arith.constant 0 : i32
    %c0_i32_1 = arith.constant 0 : i32
    return %c0_i32, %c0_i32_0 : i32, i32
  }
  func.func @transform_29(%arg0: i32) -> (i32, i32) {
    %c0_i32 = arith.constant 0 : i32
    %c0_i32_0 = arith.constant 0 : i32
    %c0_i32_1 = arith.constant 0 : i32
    return %c0_i32, %c0_i32_0 : i32, i32
  }
  func.func @transform_30(%arg0: i32) -> (i32, i32) {
    %c0_i32 = arith.constant 0 : i32
    %c0_i32_0 = arith.constant 0 : i32
    %c0_i32_1 = arith.constant 0 : i32
    return %c0_i32, %c0_i32_0 : i32, i32
  }
  func.func @transform_31(%arg0: i32) -> (i32, i32) {
    %c0_i32 = arith.constant 0 : i32
    %c0_i32_0 = arith.constant 0 : i32
    %c0_i32_1 = arith.constant 0 : i32
    return %c0_i32, %c0_i32_0 : i32, i32
  }
  func.func @transform_32(%arg0: i32) -> (i32, i32) {
    %c0_i32 = arith.constant 0 : i32
    %c0_i32_0 = arith.constant 0 : i32
    %c0_i32_1 = arith.constant 0 : i32
    return %c0_i32, %c0_i32_0 : i32, i32
  }
  func.func @transform_33(%arg0: i32) -> (i32, i32) {
    %c0_i32 = arith.constant 0 : i32
    %c0_i32_0 = arith.constant 0 : i32
    %c0_i32_1 = arith.constant 0 : i32
    return %c0_i32, %c0_i32_0 : i32, i32
  }
  func.func @transform_34(%arg0: i32) -> (i32, i32) {
    %c0_i32 = arith.constant 0 : i32
    %c0_i32_0 = arith.constant 0 : i32
    %c0_i32_1 = arith.constant 0 : i32
    return %c0_i32, %c0_i32_0 : i32, i32
  }
  func.func @transform_35(%arg0: i32) -> (i32, i32) {
    %c0_i32 = arith.constant 0 : i32
    %c0_i32_0 = arith.constant 0 : i32
    %c0_i32_1 = arith.constant 0 : i32
    return %c0_i32, %c0_i32_0 : i32, i32
  }
  func.func @transform_36(%arg0: i32) -> (i32, i32) {
    %c0_i32 = arith.constant 0 : i32
    %c0_i32_0 = arith.constant 0 : i32
    %c0_i32_1 = arith.constant 0 : i32
    return %c0_i32, %c0_i32_0 : i32, i32
  }
  func.func @transform_37(%arg0: i32) -> (i32, i32) {
    %c0_i32 = arith.constant 0 : i32
    %c0_i32_0 = arith.constant 0 : i32
    %c0_i32_1 = arith.constant 0 : i32
    return %c0_i32, %c0_i32_0 : i32, i32
  }
  func.func @transform_38(%arg0: i32) -> (i32, i32) {
    %c0_i32 = arith.constant 0 : i32
    %c0_i32_0 = arith.constant 0 : i32
    %c0_i32_1 = arith.constant 0 : i32
    return %c0_i32, %c0_i32_0 : i32, i32
  }
  func.func @transform_39(%arg0: i32) -> (i32, i32) {
    %c0_i32 = arith.constant 0 : i32
    %c0_i32_0 = arith.constant 0 : i32
    %c0_i32_1 = arith.constant 0 : i32
    return %c0_i32, %c0_i32_0 : i32, i32
  }
  func.func @transform_40(%arg0: i32) -> (i32, i32) {
    %c0_i32 = arith.constant 0 : i32
    %c0_i32_0 = arith.constant 0 : i32
    %c0_i32_1 = arith.constant 0 : i32
    return %c0_i32, %c0_i32_0 : i32, i32
  }
  func.func @transform_41(%arg0: i32) -> (i32, i32) {
    %c0_i32 = arith.constant 0 : i32
    %c0_i32_0 = arith.constant 0 : i32
    %c0_i32_1 = arith.constant 0 : i32
    return %c0_i32, %c0_i32_0 : i32, i32
  }
  func.func @transform_42(%arg0: i32) -> (i32, i32) {
    %c0_i32 = arith.constant 0 : i32
    %c0_i32_0 = arith.constant 0 : i32
    %c0_i32_1 = arith.constant 0 : i32
    return %c0_i32, %c0_i32_0 : i32, i32
  }
  func.func @transform_43(%arg0: i32) -> (i32, i32) {
    %c0_i32 = arith.constant 0 : i32
    %c0_i32_0 = arith.constant 0 : i32
    %c0_i32_1 = arith.constant 0 : i32
    return %c0_i32, %c0_i32_0 : i32, i32
  }
  func.func @transform_44(%arg0: i32) -> (i32, i32) {
    %c0_i32 = arith.constant 0 : i32
    %c0_i32_0 = arith.constant 0 : i32
    %c0_i32_1 = arith.constant 0 : i32
    return %c0_i32, %c0_i32_0 : i32, i32
  }
  func.func @transform_45(%arg0: i32) -> (i32, i32) {
    %c0_i32 = arith.constant 0 : i32
    %c0_i32_0 = arith.constant 0 : i32
    %c0_i32_1 = arith.constant 0 : i32
    return %c0_i32, %c0_i32_0 : i32, i32
  }
  func.func @transform_46(%arg0: i32) -> (i32, i32) {
    %c0_i32 = arith.constant 0 : i32
    %c0_i32_0 = arith.constant 0 : i32
    %c0_i32_1 = arith.constant 0 : i32
    return %c0_i32, %c0_i32_0 : i32, i32
  }
  func.func @transform_47(%arg0: i32) -> (i32, i32) {
    %c0_i32 = arith.constant 0 : i32
    %c0_i32_0 = arith.constant 0 : i32
    %c0_i32_1 = arith.constant 0 : i32
    return %c0_i32, %c0_i32_0 : i32, i32
  }
  func.func @transform_48(%arg0: i32) -> (i32, i32) {
    %c0_i32 = arith.constant 0 : i32
    %c0_i32_0 = arith.constant 0 : i32
    %c0_i32_1 = arith.constant 0 : i32
    return %c0_i32, %c0_i32_0 : i32, i32
  }
  func.func @transform_49(%arg0: i32) -> (i32, i32) {
    %c0_i32 = arith.constant 0 : i32
    %c0_i32_0 = arith.constant 0 : i32
    %c0_i32_1 = arith.constant 0 : i32
    return %c0_i32, %c0_i32_0 : i32, i32
  }
  func.func @transform_50(%arg0: i32) -> (i32, i32) {
    %c0_i32 = arith.constant 0 : i32
    %c0_i32_0 = arith.constant 0 : i32
    %c0_i32_1 = arith.constant 0 : i32
    return %c0_i32, %c0_i32_0 : i32, i32
  }
  func.func @transform_51(%arg0: i32) -> (i32, i32) {
    %c0_i32 = arith.constant 0 : i32
    %c0_i32_0 = arith.constant 0 : i32
    %c0_i32_1 = arith.constant 0 : i32
    return %c0_i32, %c0_i32_0 : i32, i32
  }
  func.func @transform_52(%arg0: i32) -> (i32, i32) {
    %c0_i32 = arith.constant 0 : i32
    %c0_i32_0 = arith.constant 0 : i32
    %c0_i32_1 = arith.constant 0 : i32
    return %c0_i32, %c0_i32_0 : i32, i32
  }
  func.func @transform_53(%arg0: i32) -> (i32, i32) {
    %c0_i32 = arith.constant 0 : i32
    %c0_i32_0 = arith.constant 0 : i32
    %c0_i32_1 = arith.constant 0 : i32
    return %c0_i32, %c0_i32_0 : i32, i32
  }
  func.func @transform_54(%arg0: i32) -> (i32, i32) {
    %c0_i32 = arith.constant 0 : i32
    %c0_i32_0 = arith.constant 0 : i32
    %c0_i32_1 = arith.constant 0 : i32
    return %c0_i32, %c0_i32_0 : i32, i32
  }
  func.func @transform_55(%arg0: i32) -> (i32, i32) {
    %c0_i32 = arith.constant 0 : i32
    %c0_i32_0 = arith.constant 0 : i32
    %c0_i32_1 = arith.constant 0 : i32
    return %c0_i32, %c0_i32_0 : i32, i32
  }
  func.func @transform_56(%arg0: i32) -> (i32, i32) {
    %c0_i32 = arith.constant 0 : i32
    %c0_i32_0 = arith.constant 0 : i32
    %c0_i32_1 = arith.constant 0 : i32
    return %c0_i32, %c0_i32_0 : i32, i32
  }
  func.func @transform_57(%arg0: i32) -> (i32, i32) {
    %c0_i32 = arith.constant 0 : i32
    %c0_i32_0 = arith.constant 0 : i32
    %c0_i32_1 = arith.constant 0 : i32
    return %c0_i32, %c0_i32_0 : i32, i32
  }
  func.func @transform_58(%arg0: i32) -> (i32, i32) {
    %c0_i32 = arith.constant 0 : i32
    %c0_i32_0 = arith.constant 0 : i32
    %c0_i32_1 = arith.constant 0 : i32
    return %c0_i32, %c0_i32_0 : i32, i32
  }
  func.func @transform_59(%arg0: i32) -> (i32, i32) {
    %c0_i32 = arith.constant 0 : i32
    %c0_i32_0 = arith.constant 0 : i32
    %c0_i32_1 = arith.constant 0 : i32
    return %c0_i32, %c0_i32_0 : i32, i32
  }
  func.func @transform_60(%arg0: i32) -> (i32, i32) {
    %c0_i32 = arith.constant 0 : i32
    %c0_i32_0 = arith.constant 0 : i32
    %c0_i32_1 = arith.constant 0 : i32
    return %c0_i32, %c0_i32_0 : i32, i32
  }
  func.func @transform_61(%arg0: i32) -> (i32, i32) {
    %c0_i32 = arith.constant 0 : i32
    %c0_i32_0 = arith.constant 0 : i32
    %c0_i32_1 = arith.constant 0 : i32
    return %c0_i32, %c0_i32_0 : i32, i32
  }
  func.func @transform_62(%arg0: i32) -> (i32, i32) {
    %c0_i32 = arith.constant 0 : i32
    %c0_i32_0 = arith.constant 0 : i32
    %c0_i32_1 = arith.constant 0 : i32
    return %c0_i32, %c0_i32_0 : i32, i32
  }
  func.func @transform_63(%arg0: i32) -> (i32, i32) {
    %c0_i32 = arith.constant 0 : i32
    %c0_i32_0 = arith.constant 0 : i32
    %c0_i32_1 = arith.constant 0 : i32
    return %c0_i32, %c0_i32_0 : i32, i32
  }
  func.func @transform_64(%arg0: i32) -> (i32, i32) {
    %c0_i32 = arith.constant 0 : i32
    %c0_i32_0 = arith.constant 0 : i32
    %c0_i32_1 = arith.constant 0 : i32
    return %c0_i32, %c0_i32_0 : i32, i32
  }
  func.func @transform_65(%arg0: i32) -> (i32, i32) {
    %c0_i32 = arith.constant 0 : i32
    %c0_i32_0 = arith.constant 0 : i32
    %c0_i32_1 = arith.constant 0 : i32
    return %c0_i32, %c0_i32_0 : i32, i32
  }
  func.func @transform_66(%arg0: i32) -> (i32, i32) {
    %c0_i32 = arith.constant 0 : i32
    %c0_i32_0 = arith.constant 0 : i32
    %c0_i32_1 = arith.constant 0 : i32
    return %c0_i32, %c0_i32_0 : i32, i32
  }
  func.func @transform_67(%arg0: i32) -> (i32, i32) {
    %c0_i32 = arith.constant 0 : i32
    %c0_i32_0 = arith.constant 0 : i32
    %c0_i32_1 = arith.constant 0 : i32
    return %c0_i32, %c0_i32_0 : i32, i32
  }
  func.func @transform_68(%arg0: i32) -> (i32, i32) {
    %c0_i32 = arith.constant 0 : i32
    %c0_i32_0 = arith.constant 0 : i32
    %c0_i32_1 = arith.constant 0 : i32
    return %c0_i32, %c0_i32_0 : i32, i32
  }
  func.func @transform_69(%arg0: i32) -> (i32, i32) {
    %c0_i32 = arith.constant 0 : i32
    %c0_i32_0 = arith.constant 0 : i32
    %c0_i32_1 = arith.constant 0 : i32
    return %c0_i32, %c0_i32_0 : i32, i32
  }
  func.func @transform_70(%arg0: i32) -> (i32, i32) {
    %c0_i32 = arith.constant 0 : i32
    %c0_i32_0 = arith.constant 0 : i32
    %c0_i32_1 = arith.constant 0 : i32
    return %c0_i32, %c0_i32_0 : i32, i32
  }
  func.func @transform_71(%arg0: i32) -> (i32, i32) {
    %c0_i32 = arith.constant 0 : i32
    %c0_i32_0 = arith.constant 0 : i32
    %c0_i32_1 = arith.constant 0 : i32
    return %c0_i32, %c0_i32_0 : i32, i32
  }
  func.func @transform_72(%arg0: i32) -> (i32, i32) {
    %c0_i32 = arith.constant 0 : i32
    %c0_i32_0 = arith.constant 0 : i32
    %c0_i32_1 = arith.constant 0 : i32
    return %c0_i32, %c0_i32_0 : i32, i32
  }
  func.func @transform_73(%arg0: i32) -> (i32, i32) {
    %c0_i32 = arith.constant 0 : i32
    %c0_i32_0 = arith.constant 0 : i32
    %c0_i32_1 = arith.constant 0 : i32
    return %c0_i32, %c0_i32_0 : i32, i32
  }
  func.func @transform_74(%arg0: i32) -> (i32, i32) {
    %c0_i32 = arith.constant 0 : i32
    %c0_i32_0 = arith.constant 0 : i32
    %c0_i32_1 = arith.constant 0 : i32
    return %c0_i32, %c0_i32_0 : i32, i32
  }
  func.func @transform_75(%arg0: i32) -> (i32, i32) {
    %c0_i32 = arith.constant 0 : i32
    %c0_i32_0 = arith.constant 0 : i32
    %c0_i32_1 = arith.constant 0 : i32
    return %c0_i32, %c0_i32_0 : i32, i32
  }
  func.func @transform_76(%arg0: i32) -> (i32, i32) {
    %c0_i32 = arith.constant 0 : i32
    %c0_i32_0 = arith.constant 0 : i32
    %c0_i32_1 = arith.constant 0 : i32
    return %c0_i32, %c0_i32_0 : i32, i32
  }
  func.func @transform_77(%arg0: i32) -> (i32, i32) {
    %c0_i32 = arith.constant 0 : i32
    %c0_i32_0 = arith.constant 0 : i32
    %c0_i32_1 = arith.constant 0 : i32
    return %c0_i32, %c0_i32_0 : i32, i32
  }
  func.func @transform_78(%arg0: i32) -> (i32, i32) {
    %c0_i32 = arith.constant 0 : i32
    %c0_i32_0 = arith.constant 0 : i32
    %c0_i32_1 = arith.constant 0 : i32
    return %c0_i32, %c0_i32_0 : i32, i32
  }
  func.func @transform_79(%arg0: i32) -> (i32, i32) {
    %c0_i32 = arith.constant 0 : i32
    %c0_i32_0 = arith.constant 0 : i32
    %c0_i32_1 = arith.constant 0 : i32
    return %c0_i32, %c0_i32_0 : i32, i32
  }
  func.func @transform_80(%arg0: i32) -> (i32, i32) {
    %c0_i32 = arith.constant 0 : i32
    %c0_i32_0 = arith.constant 0 : i32
    %c0_i32_1 = arith.constant 0 : i32
    return %c0_i32, %c0_i32_0 : i32, i32
  }
  func.func @transform_81(%arg0: i32) -> (i32, i32) {
    %c0_i32 = arith.constant 0 : i32
    %c0_i32_0 = arith.constant 0 : i32
    %c0_i32_1 = arith.constant 0 : i32
    return %c0_i32, %c0_i32_0 : i32, i32
  }
  func.func @transform_82(%arg0: i32) -> (i32, i32) {
    %c0_i32 = arith.constant 0 : i32
    %c0_i32_0 = arith.constant 0 : i32
    %c0_i32_1 = arith.constant 0 : i32
    return %c0_i32, %c0_i32_0 : i32, i32
  }
  func.func @transform_83(%arg0: i32) -> (i32, i32) {
    %c0_i32 = arith.constant 0 : i32
    %c0_i32_0 = arith.constant 0 : i32
    %c0_i32_1 = arith.constant 0 : i32
    return %c0_i32, %c0_i32_0 : i32, i32
  }
  func.func @transform_84(%arg0: i32) -> (i32, i32, i32) {
    %c0_i32 = arith.constant 0 : i32
    %c0_i32_0 = arith.constant 0 : i32
    %c0_i32_1 = arith.constant 0 : i32
    return %arg0, %c0_i32, %c0_i32_0 : i32, i32, i32
  }
}

</mosaic_0001>

<bundles_post_ra>
// kernel: senet154_forward.1
= control target key start
LH: loop header
LB: loop body
LE: loop exit
PB: predicated region body
PF: predicated region fallthrough
CT: control target
= control target key end

     0   :  { %s24684_s6 = smov 1   ;;  %s24685_s10 = smov 2   ;;  %s26743_s0 = inlined_call_operand.smem [shape: u32[85], index: -1, kind: input, shape index: {}] }
   0x1   :  { %s24860_s5 = sld [smem:[%s26743_s0]]   ;;  %s24686_s14 = smov 3  }
   0x2   :  { %s24865_s9 = sld [smem:[%s26743_s0 + %s24684_s6]]   ;;  %s24687_s18 = smov 4  }
   0x3   :  { %s24870_s13 = sld [smem:[%s26743_s0 + %s24685_s10]]   ;;  %s24688_s22 = smov 5  }
   0x4   :  { %s24875_s17 = sld [smem:[%s26743_s0 + %s24686_s14]]   ;;  %s24689_s26 = smov 6  }
   0x5   :  { %s24880_s21 = sld [smem:[%s26743_s0 + %s24687_s18]]   ;;  %s24690_s30 = smov 7  }
   0x6   :  { %s24885_s25 = sld [smem:[%s26743_s0 + %s24688_s22]]   ;;  %s24691_s4 = smov 8  }
   0x7   :  { %26770 = sst [smem:[#allocation144_spill]] %s24860_s5  ;;  %s24692_s10 = smov 9  }
   0x8   :  { %26771 = sst [smem:[#allocation145_spill]] %s24865_s9  ;;  %s24693_s15 = smov 10  }
   0x9   :  { %s24890_s29 = sld [smem:[%s26743_s0 + %s24689_s26]]   ;;  %s24694_s20 = smov 11  }
   0xa   :  { %26772 = sst [smem:[#allocation146_spill]] %s24875_s17  ;;  %s24695_s26 = smov 12  }
   0xb   :  { %26773 = sst [smem:[#allocation147_spill]] %s24880_s21  ;;  %s24696_s1 = smov 13  }
   0xc   :  { %s24895_s3 = sld [smem:[%s26743_s0 + %s24690_s30]]   ;;  %s24697_s7 = smov 14  }
   0xd   :  { %s24900_s8 = sld [smem:[%s26743_s0 + %s24691_s4]]   ;;  %s24699_s22 = smov 16  }
   0xe   :  { %s24905_s14 = sld [smem:[%s26743_s0 + %s24692_s10]]   ;;  %s24700_s28 = smov 17  }
   0xf   :  { %26774 = sst [smem:[#allocation148_spill]] %s24890_s29 }
  0x10   :  { %s24910_s19 = sld [smem:[%s26743_s0 + %s24693_s15]]   ;;  %s24698_s15 = smov 15  }
  0x11   :  { %s24915_s24 = sld [smem:[%s26743_s0 + %s24694_s20]]  }
  0x12   :  { %26775 = sst [smem:[#allocation149_spill]] %s24895_s3 }
  0x13   :  { %26776 = sst [smem:[#allocation150_spill]] %s24900_s8 }
  0x14   :  { %26777 = sst [smem:[#allocation151_spill]] %s24905_s14 }
  0x15   :  { %s24920_s30 = sld [smem:[%s26743_s0 + %s24695_s26]]  }
  0x16   :  { %s24925_s6 = sld [smem:[%s26743_s0 + %s24696_s1]]  }
  0x17   :  { %26778 = sst [smem:[#allocation152_spill]] %s24915_s24 }
  0x18   :  { %s24930_s12 = sld [smem:[%s26743_s0 + %s24697_s7]]   ;;  %s24701_s7 = smov 18  }
  0x19   :  { %s24935_s20 = sld [smem:[%s26743_s0 + %s24698_s15]]   ;;  %s24702_s15 = smov 19  }
  0x1a   :  { %s24940_s27 = sld [smem:[%s26743_s0 + %s24699_s22]]   ;;  %s24703_s22 = smov 20  }
  0x1b   :  { %s24945_s4 = sld [smem:[%s26743_s0 + %s24700_s28]]   ;;  %s24704_s28 = smov 21  }
  0x1c   :  { %26779 = sst [smem:[#allocation153_spill]] %s24925_s6 }
  0x1d   :  { %s24950_s8 = sld [smem:[%s26743_s0 + %s24701_s7]]   ;;  %s24705_s7 = smov 22  }
  0x1e   :  { %26780 = sst [smem:[#allocation154_spill]] %s24930_s12 }
  0x1f   :  { %s24955_s21 = sld [smem:[%s26743_s0 + %s24702_s15]]   ;;  %s24706_s15 = smov 23  }
  0x20   :  { %26781 = sst [smem:[#allocation155_spill]] %s24940_s27 }
  0x21   :  { %26782 = sst [smem:[#allocation156_spill]] %s24945_s4 }
  0x22   :  { %s24960_s6 = sld [smem:[%s26743_s0 + %s24703_s22]]   ;;  %s24707_s22 = smov 24  }
  0x23   :  { %26783 = sst [smem:[#allocation157_spill]] %s24950_s8 }
  0x24   :  { %s24965_s4 = sld [smem:[%s26743_s0 + %s24704_s28]]   ;;  %s24708_s28 = smov 25  }
  0x25   :  { %26784 = sst [smem:[#allocation158_spill]] %s24955_s21 }
  0x26   :  { %s24970_s5 = sld [smem:[%s26743_s0 + %s24705_s7]]   ;;  %s24709_s7 = smov 26  }
  0x27   :  { %s24975_s21 = sld [smem:[%s26743_s0 + %s24706_s15]]   ;;  %s24710_s15 = smov 27  }
  0x28   :  { %26785 = sst [smem:[#allocation159_spill]] %s24960_s6 }
  0x29   :  { %s24980_s27 = sld [smem:[%s26743_s0 + %s24707_s22]]   ;;  %s24711_s22 = smov 28  }
  0x2a   :  { %26786 = sst [smem:[#allocation160_spill]] %s24965_s4 }
  0x2b   :  { %s24985_s4 = sld [smem:[%s26743_s0 + %s24708_s28]]   ;;  %s24712_s28 = smov 29  }
  0x2c   :  { %26787 = sst [smem:[#allocation161_spill]] %s24970_s5 }
  0x2d   :  { %26788 = sst [smem:[#allocation162_spill]] %s24975_s21 }
  0x2e   :  { %s24990_s5 = sld [smem:[%s26743_s0 + %s24709_s7]]   ;;  %s24713_s7 = smov 30  }
  0x2f   :  { %s24995_s21 = sld [smem:[%s26743_s0 + %s24710_s15]]   ;;  %s24714_s15 = smov 31  }
  0x30   :  { %s25000_s12 = sld [smem:[%s26743_s0 + %s24711_s22]]   ;;  %s24715_s22 = smov 32  }
  0x31   :  { %26789 = sst [smem:[#allocation163_spill]] %s24985_s4 }
  0x32   :  { %s25005_s4 = sld [smem:[%s26743_s0 + %s24712_s28]]   ;;  %s24716_s28 = smov 33  }
  0x33   :  { %s25010_s24 = sld [smem:[%s26743_s0 + %s24713_s7]]   ;;  %s24717_s7 = smov 34  }
  0x34   :  { %26790 = sst [smem:[#allocation164_spill]] %s24990_s5 }
  0x35   :  { %26791 = sst [smem:[#allocation165_spill]] %s24995_s21 }
  0x36   :  { %26792 = sst [smem:[#allocation166_spill]] %s25000_s12 }
  0x37   :  { %s25015_s21 = sld [smem:[%s26743_s0 + %s24714_s15]]   ;;  %s24718_s15 = smov 35  }
  0x38   :  { %26793 = sst [smem:[#allocation167_spill]] %s25005_s4 }
  0x39   :  { %s25020_s14 = sld [smem:[%s26743_s0 + %s24715_s22]]   ;;  %s24719_s22 = smov 36  }
  0x3a   :  { %s25025_s4 = sld [smem:[%s26743_s0 + %s24716_s28]]   ;;  %s24720_s28 = smov 37  }
  0x3b   :  { %s25030_s29 = sld [smem:[%s26743_s0 + %s24717_s7]]   ;;  %s24721_s7 = smov 38  }
  0x3c   :  { %s25040_s17 = sld [smem:[%s26743_s0 + %s24719_s22]]   ;;  %s24723_s22 = smov 40  }
  0x3d   :  { %26794 = sst [smem:[#allocation168_spill]] %s25015_s21 }
  0x3e   :  { %s25035_s21 = sld [smem:[%s26743_s0 + %s24718_s15]]   ;;  %s24722_s15 = smov 39  }
  0x3f   :  { %s25050_s9 = sld [smem:[%s26743_s0 + %s24721_s7]]   ;;  %s24725_s7 = smov 42  }
  0x40   :  { %26795 = sst [smem:[#allocation169_spill]] %s25025_s4 }
  0x41   :  { %s25045_s4 = sld [smem:[%s26743_s0 + %s24720_s28]]   ;;  %s24724_s28 = smov 41  }
  0x42   :  { %26797 = sst [smem:[#allocation171_spill]] %s25040_s17 }
  0x43   :  { %s25060_s17 = sld [smem:[%s26743_s0 + %s24723_s22]]   ;;  %s24727_s22 = smov 44  }
  0x44   :  { %26796 = sst [smem:[#allocation170_spill]] %s25035_s21 }
  0x45   :  { %26799 = sst [smem:[#allocation173_spill]] %s25050_s9 }
  0x46   :  { %s25055_s21 = sld [smem:[%s26743_s0 + %s24722_s15]]   ;;  %s24726_s15 = smov 43  }
  0x47   :  { %26798 = sst [smem:[#allocation172_spill]] %s25045_s4 }
  0x48   :  { %s25065_s4 = sld [smem:[%s26743_s0 + %s24724_s28]]   ;;  %s24728_s28 = smov 45  }
  0x49   :  { %26801 = sst [smem:[#allocation175_spill]] %s25060_s17 }
  0x4a   :  { %s25070_s9 = sld [smem:[%s26743_s0 + %s24725_s7]]   ;;  %s24729_s7 = smov 46  }
  0x4b   :  { %s25080_s17 = sld [smem:[%s26743_s0 + %s24727_s22]]   ;;  %s24731_s22 = smov 48  }
  0x4c   :  { %26800 = sst [smem:[#allocation174_spill]] %s25055_s21 }
  0x4d   :  { %s25075_s21 = sld [smem:[%s26743_s0 + %s24726_s15]]   ;;  %s24730_s15 = smov 47  }
  0x4e   :  { %26802 = sst [smem:[#allocation176_spill]] %s25065_s4 }
  0x4f   :  { %s25085_s4 = sld [smem:[%s26743_s0 + %s24728_s28]]   ;;  %s24732_s28 = smov 49  }
  0x50   :  { %26803 = sst [smem:[#allocation177_spill]] %s25070_s9 }
  0x51   :  { %26805 = sst [smem:[#allocation179_spill]] %s25080_s17 }
  0x52   :  { %s25090_s9 = sld [smem:[%s26743_s0 + %s24729_s7]]   ;;  %s24733_s7 = smov 50  }
  0x53   :  { %26804 = sst [smem:[#allocation178_spill]] %s25075_s21 }
  0x54   :  { %s25095_s21 = sld [smem:[%s26743_s0 + %s24730_s15]]   ;;  %s24734_s15 = smov 51  }
  0x55   :  { %26806 = sst [smem:[#allocation180_spill]] %s25085_s4 }
  0x56   :  { %s25100_s17 = sld [smem:[%s26743_s0 + %s24731_s22]]   ;;  %s24735_s22 = smov 52  }
  0x57   :  { %s25105_s4 = sld [smem:[%s26743_s0 + %s24732_s28]]   ;;  %s24736_s28 = smov 53  }
  0x58   :  { %26807 = sst [smem:[#allocation181_spill]] %s25090_s9 }
  0x59   :  { %s25110_s9 = sld [smem:[%s26743_s0 + %s24733_s7]]   ;;  %s24737_s7 = smov 54  }
  0x5a   :  { %26808 = sst [smem:[#allocation182_spill]] %s25095_s21 }
  0x5b   :  { %s25115_s21 = sld [smem:[%s26743_s0 + %s24734_s15]]   ;;  %s24738_s15 = smov 55  }
  0x5c   :  { %26809 = sst [smem:[#allocation183_spill]] %s25100_s17 }
  0x5d   :  { %26810 = sst [smem:[#allocation184_spill]] %s25105_s4 }
  0x5e   :  { %s25120_s17 = sld [smem:[%s26743_s0 + %s24735_s22]]   ;;  %s24739_s22 = smov 56  }
  0x5f   :  { %26811 = sst [smem:[#allocation185_spill]] %s25110_s9 }
  0x60   :  { %s25125_s4 = sld [smem:[%s26743_s0 + %s24736_s28]]   ;;  %s24740_s28 = smov 57  }
  0x61   :  { %26812 = sst [smem:[#allocation186_spill]] %s25115_s21 }
  0x62   :  { %s25130_s9 = sld [smem:[%s26743_s0 + %s24737_s7]]   ;;  %s24741_s7 = smov 58  }
  0x63   :  { %s25135_s21 = sld [smem:[%s26743_s0 + %s24738_s15]]   ;;  %s24742_s15 = smov 59  }
  0x64   :  { %26813 = sst [smem:[#allocation187_spill]] %s25120_s17 }
  0x65   :  { %s25140_s17 = sld [smem:[%s26743_s0 + %s24739_s22]]   ;;  %s24743_s22 = smov 60  }
  0x66   :  { %26814 = sst [smem:[#allocation188_spill]] %s25125_s4 }
  0x67   :  { %s25145_s4 = sld [smem:[%s26743_s0 + %s24740_s28]]   ;;  %s24744_s28 = smov 61  }
  0x68   :  { %26815 = sst [smem:[#allocation189_spill]] %s25130_s9 }
  0x69   :  { %26816 = sst [smem:[#allocation190_spill]] %s25135_s21 }
  0x6a   :  { %s25150_s9 = sld [smem:[%s26743_s0 + %s24741_s7]]   ;;  %s24745_s7 = smov 62  }
  0x6b   :  { %26817 = sst [smem:[#allocation191_spill]] %s25140_s17 }
  0x6c   :  { %s25155_s21 = sld [smem:[%s26743_s0 + %s24742_s15]]   ;;  %s24746_s15 = smov 63  }
  0x6d   :  { %26818 = sst [smem:[#allocation192_spill]] %s25145_s4 }
  0x6e   :  { %s25160_s17 = sld [smem:[%s26743_s0 + %s24743_s22]]   ;;  %s24747_s22 = smov 64  }
  0x6f   :  { %s25165_s4 = sld [smem:[%s26743_s0 + %s24744_s28]]   ;;  %s24748_s28 = smov 65  }
  0x70   :  { %26819 = sst [smem:[#allocation193_spill]] %s25150_s9 }
  0x71   :  { %s25170_s9 = sld [smem:[%s26743_s0 + %s24745_s7]]   ;;  %s24749_s7 = smov 66  }
  0x72   :  { %26820 = sst [smem:[#allocation194_spill]] %s25155_s21 }
  0x73   :  { %s25175_s21 = sld [smem:[%s26743_s0 + %s24746_s15]]   ;;  %s24750_s15 = smov 67  }
  0x74   :  { %26821 = sst [smem:[#allocation195_spill]] %s25160_s17 }
  0x75   :  { %26822 = sst [smem:[#allocation196_spill]] %s25165_s4 }
  0x76   :  { %s25180_s17 = sld [smem:[%s26743_s0 + %s24747_s22]]   ;;  %s24751_s22 = smov 68  }
  0x77   :  { %26823 = sst [smem:[#allocation197_spill]] %s25170_s9 }
  0x78   :  { %s25185_s4 = sld [smem:[%s26743_s0 + %s24748_s28]]   ;;  %s24752_s28 = smov 69  }
  0x79   :  { %26824 = sst [smem:[#allocation198_spill]] %s25175_s21 }
  0x7a   :  { %s25190_s9 = sld [smem:[%s26743_s0 + %s24749_s7]]   ;;  %s24753_s7 = smov 70  }
  0x7b   :  { %s25195_s21 = sld [smem:[%s26743_s0 + %s24750_s15]]   ;;  %s24754_s15 = smov 71  }
  0x7c   :  { %26825 = sst [smem:[#allocation199_spill]] %s25180_s17 }
  0x7d   :  { %s25200_s17 = sld [smem:[%s26743_s0 + %s24751_s22]]   ;;  %s24755_s22 = smov 72  }
  0x7e   :  { %26826 = sst [smem:[#allocation200_spill]] %s25185_s4 }
  0x7f   :  { %s25205_s4 = sld [smem:[%s26743_s0 + %s24752_s28]]   ;;  %s24756_s28 = smov 73  }
  0x80   :  { %26827 = sst [smem:[#allocation201_spill]] %s25190_s9 }
  0x81   :  { %26828 = sst [smem:[#allocation202_spill]] %s25195_s21 }
  0x82   :  { %s25210_s9 = sld [smem:[%s26743_s0 + %s24753_s7]]   ;;  %s24757_s7 = smov 74  }
  0x83   :  { %26829 = sst [smem:[#allocation203_spill]] %s25200_s17 }
  0x84   :  { %s25215_s21 = sld [smem:[%s26743_s0 + %s24754_s15]]   ;;  %s24758_s15 = smov 75  }
  0x85   :  { %26830 = sst [smem:[#allocation204_spill]] %s25205_s4 }
  0x86   :  { %s25220_s17 = sld [smem:[%s26743_s0 + %s24755_s22]]   ;;  %s24759_s22 = smov 76  }
  0x87   :  { %s25225_s4 = sld [smem:[%s26743_s0 + %s24756_s28]]   ;;  %s24760_s28 = smov 77  }
  0x88   :  { %26831 = sst [smem:[#allocation205_spill]] %s25210_s9 }
  0x89   :  { %s25230_s9 = sld [smem:[%s26743_s0 + %s24757_s7]]   ;;  %s24761_s7 = smov 78  }
  0x8a   :  { %26832 = sst [smem:[#allocation206_spill]] %s25215_s21 }
  0x8b   :  { %s25235_s21 = sld [smem:[%s26743_s0 + %s24758_s15]]   ;;  %s24762_s15 = smov 79  }
  0x8c   :  { %26833 = sst [smem:[#allocation207_spill]] %s25220_s17 }
  0x8d   :  { %26834 = sst [smem:[#allocation208_spill]] %s25225_s4 }
  0x8e   :  { %s25240_s17 = sld [smem:[%s26743_s0 + %s24759_s22]]   ;;  %s24763_s22 = smov 80  }
  0x8f   :  { %26835 = sst [smem:[#allocation209_spill]] %s25230_s9 }
  0x90   :  { %s25245_s4 = sld [smem:[%s26743_s0 + %s24760_s28]]   ;;  %s24764_s28 = smov 81  }
  0x91   :  { %26836 = sst [smem:[#allocation210_spill]] %s25235_s21 }
  0x92   :  { %s25250_s9 = sld [smem:[%s26743_s0 + %s24761_s7]]   ;;  %s24765_s7 = smov 82  }
  0x93   :  { %s25255_s21 = sld [smem:[%s26743_s0 + %s24762_s15]]   ;;  %s24766_s15 = smov 83  }
  0x94   :  { %26837 = sst [smem:[#allocation211_spill]] %s25240_s17 }
  0x95   :  { %s25260_s17 = sld [smem:[%s26743_s0 + %s24763_s22]]   ;;  %s24767_s22 = smov 84  }
  0x96   :  { %26838 = sst [smem:[#allocation212_spill]] %s25245_s4 }
  0x97   :  { %s25265_s4 = sld [smem:[%s26743_s0 + %s24764_s28]]  }
  0x98   :  { %26839 = sst [smem:[#allocation213_spill]] %s25250_s9 }
  0x99   :  { %26840 = sst [smem:[#allocation214_spill]] %s25255_s21 }
  0x9a   :  { %s25270_s9 = sld [smem:[%s26743_s0 + %s24765_s7]]  }
  0x9b   :  { %26841 = sst [smem:[#allocation215_spill]] %s25260_s17 }
  0x9c   :  { %s25275_s21 = sld [smem:[%s26743_s0 + %s24766_s15]]  }
  0x9d   :  { %s25280_s17 = sld [smem:[%s26743_s0 + %s24767_s22]]  }
  0x9e   :  { %174 = vsyncpa [#allocation3], 0 }
  0x9f   :  { %175 = vsyncpa [#allocation5], 0 }
  0xa0   :  { %176 = vsyncpa [#allocation8], 0 }
  0xa1   :  { %177 = vsyncpa [#allocation11], 0 }
  0xa2   :  { %178 = vsyncpa [#allocation14], 0 }
  0xa3   :  { %179 = vsyncpa [#allocation17], 0 }
  0xa4   :  { %180 = vsyncpa [#allocation20], 0 }
  0xa5   :  { %181 = vsyncpa [#allocation23], 0 }
  0xa6   :  { %182 = vsyncpa [#allocation26], 0 }
  0xa7   :  { %183 = vsyncpa [#allocation29], 0 }
  0xa8   :  { %184 = vsyncpa [#allocation32], 0 }
  0xa9   :  { %185 = vsyncpa [#allocation35], 0 }
  0xaa   :  { %186 = vsyncpa [#allocation38], 0 }
  0xab   :  { %187 = vsyncpa [#allocation41], 0 }
  0xac   :  { %188 = vsyncpa [#allocation44], 0 }
  0xad   :  { %189 = vsyncpa [#allocation47], 0 }
  0xae   :  { %190 = vsyncpa [#allocation50], 0 }
  0xaf   :  { %191 = vsyncpa [#allocation53], 0 }
  0xb0   :  { %192 = vsyncpa [#allocation56], 0 }
  0xb1   :  { %193 = vsyncpa [#allocation59], 0 }
  0xb2   :  { %194 = vsyncpa [#allocation62], 0 }
  0xb3   :  { %195 = vsyncpa [#allocation65], 0 }
  0xb4   :  { %196 = vsyncpa [#allocation68], 0 }
  0xb5   :  { %197 = vsyncpa [#allocation71], 0 }
  0xb6   :  { %198 = vsyncpa [#allocation74], 0 }
  0xb7   :  { %199 = vsyncpa [#allocation77], 0 }
  0xb8   :  { %200 = vsyncpa [#allocation80], 0 }
  0xb9   :  { %201 = vsyncpa [#allocation83], 0 }
  0xba   :  { %202 = vsyncpa [#allocation86], 0 }
  0xbb   :  { %203 = vsyncpa [#allocation89], 0 }
  0xbc   :  { %204 = vsyncpa [#allocation92], 0 }
  0xbd   :  { %205 = vsyncpa [#allocation95], 0 }
  0xbe   :  { %206 = vsyncpa [#allocation98], 0 }
  0xbf   :  { %207 = vsyncpa [#allocation101], 0 }
  0xc0   :  { %208 = vsyncpa [#allocation104], 0 }
  0xc1   :  { %209 = vsyncpa [#allocation107], 0  ;;  %s25282_s0 = smov 0  }
  0xc2 LB: > { %s25288_s28 = sadd.s32 4294967295, %s24682_s0   ;;  %p18335_p0 = scmp.ge.s32.totalorder %s24682_s0, 1  ;;  %s24682_s0 = sphi %s25282_s0, %s215_s0  }
  0xc3   : > { %p2015_p1 = scmp.lt.s32.totalorder %s24682_s0, 3 }
  0xc5   : > { %p25292_p2 = pnand %p18335_p0, %p2015_p1 }
  0xc6   : > { %p20783_p3 = scmp.eq.s32.totalorder (!%p25292_p2), %s25288_s28, 0  ;;  %s24768_s2 = smov (!%p25292_p2), [#allocation4]  }
  0xc7   : > { %s26842_s1 = scalar_select %p25292_p2, 1, 0 }
  0xc8   : > { %2019 = sbr.rel (%p25292_p2) target bundleno = 992 (0x3e0), region = 12  ;;  %s2040_s7 = sshll.u32 (!%p25292_p2), %s24768_s2, 4  ;;  %s2041_s7 = int_to_ptr.vmem [resolvable:$true] %s2040_s7 }
  0xc9   : > { %s24769_s10 = smov (!%p25292_p2), [#allocation7]   ;;  %s22862_s15 = scalar_lea.vmem (!%p25292_p2), %s2041_s7, 768 }
  0xca   : > { %s2069_s11 = sshll.u32 (!%p25292_p2), %s24769_s10, 4  ;;  %p22863_p4 = scmp.ne.s32.totalorder (!%p25292_p2), %s2041_s7, %s22862_s15  ;;  %s2070_s11 = int_to_ptr.vmem [resolvable:$true] %s2069_s11 }
  0xcb   : > { %p22869_p7 = scmp.lt.s32.totalorder (!%p25292_p2), %s2041_s7, %s2041_s7  ;;  %p22870_p8 = scmp.lt.s32.totalorder (!%p25292_p2), %s22862_s15, %s22862_s15 }
  0xcc   : > { %p22864_p5 = pnand (!%p25292_p2), %p22863_p4, %p20783_p3 }
  0xcd   : > { %p22871_p9 = por %p22870_p8, %p22869_p7 }
  0xce   : > { %p22865_p6 = pneg %p22864_p5 }
  0xd0   : > { %p22872_p10 = pnand %p22871_p9, %p22865_p6 }
  0xd2   : > { %22875 = shalt.err (!%p22872_p10)
}
  0xd3   : > { %s26757_s16 = smov 128   ;;  %s26764_s18 = smov 8  }
  0xd4   : > { %20506 = dma.hbm_to_vmem [thread:$0]  (%p20783_p3), %s24870_s13, 768, %s2041_s7, [#allocation5], %s26757_s16, %s26757_s16, %s26764_s18  }
  0xd5   : > { %s22886_s22 = scalar_lea.vmem %s2070_s11, 384  ;;  %p22893_p0 = scmp.lt.s32.totalorder %s2070_s11, %s2070_s11 }
  0xd6   : > { %p22887_p11 = scmp.ne.s32.totalorder %s2070_s11, %s22886_s22  ;;  %p22894_p1 = scmp.lt.s32.totalorder %s22886_s22, %s22886_s22 }
  0xd8   : > { %p22888_p12 = pnand %p22887_p11, %p20783_p3  ;;  %p22895_p4 = por %p22894_p1, %p22893_p0 }
  0xda   : > { %p22889_p13 = pneg %p22888_p12 }
  0xdc   : > { %p22896_p5 = pnand %p22895_p4, %p22889_p13 }
  0xde   : > { %22899 = shalt.err (!%p22896_p5)
}
  0xdf   : > { %20510 = dma.hbm_to_vmem [thread:$0]  (%p20783_p3), %s24885_s25, 384, %s2070_s11, [#allocation8], %s26757_s16, %s26757_s16, %s26764_s18  }
  0xe0   : > { %s24772_s23 = smov [#allocation10]  }
  0xe1   : > { %s2095_s26 = sshll.u32 %s24772_s23, 4  ;;  %s2096_s26 = int_to_ptr.vmem [resolvable:$true] %s2095_s26 }
  0xe2   : > { %s22910_s2 = scalar_lea.vmem %s2096_s26, 96  ;;  %p22917_p9 = scmp.lt.s32.totalorder %s2096_s26, %s2096_s26 }
  0xe3   : > { %p22911_p6 = scmp.ne.s32.totalorder %s2096_s26, %s22910_s2  ;;  %p22918_p10 = scmp.lt.s32.totalorder %s22910_s2, %s22910_s2 }
  0xe5   : > { %p22912_p7 = pnand %p22911_p6, %p20783_p3  ;;  %p22919_p11 = por %p22918_p10, %p22917_p9 }
  0xe7   : > { %p22913_p8 = pneg %p22912_p7 }
  0xe9   : > { %p22920_p12 = pnand %p22919_p11, %p22913_p8 }
  0xeb   : > { %22923 = shalt.err (!%p22920_p12)
}
  0xec   : > { %s24773_s7 = smov 32   ;;  %s26843_s3 = sld [smem:[#allocation149_spill]] }
  0xed   : > { %s24774_s10 = smov 2   ;;  %s24775_s11 = smov [#allocation13]  }
  0xee   : > { %s2125_s15 = sshll.u32 %s24775_s11, 4  ;;  %s24776_s22 = smov [#allocation16]   ;;  %s2126_s15 = int_to_ptr.vmem [resolvable:$true] %s2125_s15 }
  0xef   : > { %s2149_s23 = sshll.u32 %s24776_s22, 4  ;;  %s22934_s16 = scalar_lea.vmem %s2126_s15, 16  ;;  %s2150_s23 = int_to_ptr.vmem [resolvable:$true] %s2149_s23 }
  0xf0   : > { %p22935_p13 = scmp.ne.s32.totalorder %s2126_s15, %s22934_s16  ;;  %s22940_s2 = scalar_lea.vmem %s2126_s15, 32 }
  0xf1   : > { %p22941_p4 = scmp.lt.s32.totalorder %s2126_s15, %s2126_s15  ;;  %p22942_p5 = scmp.lt.s32.totalorder %s22940_s2, %s22934_s16 }
  0xf2   : > { %20514 = dma.hbm_to_vmem [thread:$0]  (%p20783_p3), %s26843_s3, 96, %s2096_s26, [#allocation11], %s24773_s7, %s24773_s7, %s24774_s10  }
  0xf3   : > { %p22936_p0 = pnand %p22935_p13, %p20783_p3  ;;  %p22943_p6 = por %p22942_p5, %p22941_p4 }
  0xf5   : > { %p22937_p1 = pneg %p22936_p0 }
  0xf7   : > { %p22944_p7 = pnand %p22943_p6, %p22937_p1 }
  0xf9   : > { %22947 = shalt.err (!%p22944_p7)
}
  0xfa   : > { %20518 = dma.hbm_to_vmem [thread:$0]  (%p20783_p3), %s24910_s19, 16, %s2126_s15, [#allocation14]  }
  0xfb   : > { %s22958_s26 = scalar_lea.vmem %s2150_s23, 16  ;;  %s22964_s7 = scalar_lea.vmem %s2150_s23, 32 }
  0xfc   : > { %p22959_p8 = scmp.ne.s32.totalorder %s2150_s23, %s22958_s26  ;;  %p22965_p11 = scmp.lt.s32.totalorder %s2150_s23, %s2150_s23 }
  0xfd   : > { %p22966_p12 = scmp.lt.s32.totalorder %s22964_s7, %s22958_s26 }
  0xfe   : > { %p22960_p9 = pnand %p22959_p8, %p20783_p3 }
  0xff   : > { %p22967_p13 = por %p22966_p12, %p22965_p11 }
 0x100   : > { %p22961_p10 = pneg %p22960_p9 }
 0x102   : > { %p22968_p0 = pnand %p22967_p13, %p22961_p10 }
 0x104   : > { %22971 = shalt.err (!%p22968_p0)
}
 0x105   : > { %20522 = dma.hbm_to_vmem [thread:$0]  (%p20783_p3), %s24920_s30, 16, %s2150_s23, [#allocation17]  }
 0x106   : > { %s24777_s16 = smov [#allocation19]   ;;  %s24778_s11 = smov [#allocation22]  }
 0x107   : > { %s2173_s10 = sshll.u32 %s24777_s16, 4  ;;  %s2201_s15 = sshll.u32 %s24778_s11, 4  ;;  %s2174_s10 = int_to_ptr.vmem [resolvable:$true] %s2173_s10  ;;  %s2202_s15 = int_to_ptr.vmem [resolvable:$true] %s2201_s15 }
 0x108   : > { %s22982_s22 = scalar_lea.vmem %s2174_s10, 1024  ;;  %p22989_p6 = scmp.lt.s32.totalorder %s2174_s10, %s2174_s10 }
 0x109   : > { %p22983_p1 = scmp.ne.s32.totalorder %s2174_s10, %s22982_s22  ;;  %p22990_p7 = scmp.lt.s32.totalorder %s22982_s22, %s22982_s22 }
 0x10b   : > { %p22984_p4 = pnand %p22983_p1, %p20783_p3  ;;  %p22991_p8 = por %p22990_p7, %p22989_p6 }
 0x10d   : > { %p22985_p5 = pneg %p22984_p4 }
 0x10f   : > { %p22992_p9 = pnand %p22991_p8, %p22985_p5 }
 0x111   : > { %22995 = shalt.err (!%p22992_p9)
}
 0x112   : > { %s26760_s2 = smov 64   ;;  %s26762_s23 = smov 4  }
 0x113   : > { %20526 = dma.hbm_to_vmem [thread:$0]  (%p20783_p3), %s24935_s20, 1024, %s2174_s10, [#allocation20], %s26760_s2, %s26760_s2, %s26762_s23  }
 0x114   : > { %s23006_s26 = scalar_lea.vmem %s2202_s15, 32  ;;  %p23013_p13 = scmp.lt.s32.totalorder %s2202_s15, %s2202_s15 }
 0x115   : > { %p23007_p10 = scmp.ne.s32.totalorder %s2202_s15, %s23006_s26  ;;  %p23014_p0 = scmp.lt.s32.totalorder %s23006_s26, %s23006_s26 }
 0x117   : > { %p23008_p11 = pnand %p23007_p10, %p20783_p3  ;;  %p23015_p1 = por %p23014_p0, %p23013_p13 }
 0x119   : > { %p23009_p12 = pneg %p23008_p11 }
 0x11b   : > { %p23016_p4 = pnand %p23015_p1, %p23009_p12 }
 0x11d   : > { %23019 = shalt.err (!%p23016_p4)
}
 0x11e   : > { %s26844_s8 = sld [smem:[#allocation157_spill]]  ;;  %s24781_s7 = smov [#allocation25]  }
 0x11f   : > { %s2225_s16 = sshll.u32 %s24781_s7, 4  ;;  %s24782_s11 = smov [#allocation28]   ;;  %s2226_s16 = int_to_ptr.vmem [resolvable:$true] %s2225_s16 }
 0x120   : > { %s2253_s22 = sshll.u32 %s24782_s11, 4  ;;  %s23030_s10 = scalar_lea.vmem %s2226_s16, 32  ;;  %s2254_s22 = int_to_ptr.vmem [resolvable:$true] %s2253_s22 }
 0x121   : > { %p23031_p5 = scmp.ne.s32.totalorder %s2226_s16, %s23030_s10  ;;  %p23037_p8 = scmp.lt.s32.totalorder %s2226_s16, %s2226_s16 }
 0x122   : > { %p23038_p9 = scmp.lt.s32.totalorder %s23030_s10, %s23030_s10 }
 0x123   : > { %p23032_p6 = pnand %p23031_p5, %p20783_p3 }
 0x124   : > { %20530 = dma.hbm_to_vmem [thread:$0]  (%p20783_p3), %s26844_s8, 32, %s2202_s15, [#allocation23]  }
 0x125   : > { %p23033_p7 = pneg %p23032_p6  ;;  %p23039_p10 = por %p23038_p9, %p23037_p8 }
 0x127   : > { %p23040_p11 = pnand %p23039_p10, %p23033_p7 }
 0x129   : > { %23043 = shalt.err (!%p23040_p11)
}
 0x12a   : > { %s26845_s6 = sld [smem:[#allocation159_spill]]  ;;  %s23054_s15 = scalar_lea.vmem %s2254_s22, 32 }
 0x12b   : > { %p23055_p12 = scmp.ne.s32.totalorder %s2254_s22, %s23054_s15  ;;  %p23061_p1 = scmp.lt.s32.totalorder %s2254_s22, %s2254_s22 }
 0x12c   : > { %p23062_p4 = scmp.lt.s32.totalorder %s23054_s15, %s23054_s15 }
 0x12d   : > { %p23056_p13 = pnand %p23055_p12, %p20783_p3 }
 0x12e   : > { %p23063_p2 = por %p23062_p4, %p23061_p1 }
 0x12f   : > { %p23057_p0 = pneg %p23056_p13 }
 0x130   : > { %20534 = dma.hbm_to_vmem [thread:$0]  (%p20783_p3), %s26845_s6, 32, %s2226_s16, [#allocation26]  }
 0x131   : > { %p23064_p5 = pnand %p23063_p2, %p23057_p0 }
 0x133   : > { %23067 = shalt.err (!%p23064_p5)
}
 0x134   : > { %20538 = dma.hbm_to_vmem [thread:$0]  (%p20783_p3), %s24980_s27, 32, %s2254_s22, [#allocation29]  }
 0x135   : > { %s24783_s26 = smov [#allocation31]  }
 0x136   : > { %s2274_s7 = sshll.u32 %s24783_s26, 4  ;;  %s2275_s7 = int_to_ptr.vmem [resolvable:$true] %s2274_s7 }
 0x137   : > { %s23078_s11 = scalar_lea.vmem %s2275_s7, 1024  ;;  %p23085_p9 = scmp.lt.s32.totalorder %s2275_s7, %s2275_s7 }
 0x138   : > { %p23079_p6 = scmp.ne.s32.totalorder %s2275_s7, %s23078_s11  ;;  %p23086_p10 = scmp.lt.s32.totalorder %s23078_s11, %s23078_s11 }
 0x13a   : > { %p23080_p7 = pnand %p23079_p6, %p20783_p3  ;;  %p23087_p11 = por %p23086_p10, %p23085_p9 }
 0x13c   : > { %p23081_p8 = pneg %p23080_p7 }
 0x13e   : > { %p23088_p12 = pnand %p23087_p11, %p23081_p8 }
 0x140   : > { %23091 = shalt.err (!%p23088_p12)
}
 0x141   : > { %s26766_s16 = smov 256   ;;  %s26846_s5 = sld [smem:[#allocation164_spill]] }
 0x142   : > { %s26768_s10 = smov 16   ;;  %s24786_s22 = smov [#allocation34]  }
 0x143   : > { %s2301_s15 = sshll.u32 %s24786_s22, 4  ;;  %s24787_s26 = smov [#allocation37]   ;;  %s2302_s15 = int_to_ptr.vmem [resolvable:$true] %s2301_s15 }
 0x144   : > { %s2325_s2 = sshll.u32 %s24787_s26, 4  ;;  %s23102_s23 = scalar_lea.vmem %s2302_s15, 32  ;;  %s2326_s2 = int_to_ptr.vmem [resolvable:$true] %s2325_s2 }
 0x145   : > { %p23103_p2 = scmp.ne.s32.totalorder %s2302_s15, %s23102_s23  ;;  %p23109_p1 = scmp.lt.s32.totalorder %s2302_s15, %s2302_s15 }
 0x146   : > { %p23110_p4 = scmp.lt.s32.totalorder %s23102_s23, %s23102_s23 }
 0x147   : > { %20542 = dma.hbm_to_vmem [thread:$0]  (%p20783_p3), %s26846_s5, 1024, %s2275_s7, [#allocation32], %s26766_s16, %s26766_s16, %s26768_s10  }
 0x148   : > { %p23104_p13 = pnand %p23103_p2, %p20783_p3  ;;  %p23111_p5 = por %p23110_p4, %p23109_p1 }
 0x14a   : > { %p23105_p0 = pneg %p23104_p13 }
 0x14c   : > { %p23112_p6 = pnand %p23111_p5, %p23105_p0 }
 0x14e   : > { %23115 = shalt.err (!%p23112_p6)
}
 0x14f   : > { %s26847_s12 = sld [smem:[#allocation166_spill]]  ;;  %s23126_s7 = scalar_lea.vmem %s2326_s2, 16 }
 0x150   : > { %p23127_p7 = scmp.ne.s32.totalorder %s2326_s2, %s23126_s7  ;;  %s23132_s11 = scalar_lea.vmem %s2326_s2, 32 }
 0x151   : > { %p23133_p10 = scmp.lt.s32.totalorder %s2326_s2, %s2326_s2  ;;  %p23134_p11 = scmp.lt.s32.totalorder %s23132_s11, %s23126_s7 }
 0x152   : > { %p23128_p8 = pnand %p23127_p7, %p20783_p3 }
 0x153   : > { %p23135_p12 = por %p23134_p11, %p23133_p10 }
 0x154   : > { %p23129_p9 = pneg %p23128_p8 }
 0x155   : > { %20546 = dma.hbm_to_vmem [thread:$0]  (%p20783_p3), %s26847_s12, 32, %s2302_s15, [#allocation35]  }
 0x156   : > { %p23136_p2 = pnand %p23135_p12, %p23129_p9 }
 0x158   : > { %23139 = shalt.err (!%p23136_p2)
}
 0x159   : > { %20550 = dma.hbm_to_vmem [thread:$0]  (%p20783_p3), %s25010_s24, 16, %s2326_s2, [#allocation38]  }
 0x15a   : > { %s24788_s23 = smov [#allocation40]   ;;  %s24789_s15 = smov [#allocation43]  }
 0x15b   : > { %s2349_s22 = sshll.u32 %s24788_s23, 4  ;;  %s2373_s26 = sshll.u32 %s24789_s15, 4  ;;  %s2350_s22 = int_to_ptr.vmem [resolvable:$true] %s2349_s22  ;;  %s2374_s26 = int_to_ptr.vmem [resolvable:$true] %s2373_s26 }
 0x15c   : > { %s23150_s18 = scalar_lea.vmem %s2350_s22, 32  ;;  %p23157_p4 = scmp.lt.s32.totalorder %s2350_s22, %s2350_s22 }
 0x15d   : > { %p23151_p13 = scmp.ne.s32.totalorder %s2350_s22, %s23150_s18  ;;  %p23158_p5 = scmp.lt.s32.totalorder %s23150_s18, %s23150_s18 }
 0x15f   : > { %p23152_p0 = pnand %p23151_p13, %p20783_p3  ;;  %p23159_p6 = por %p23158_p5, %p23157_p4 }
 0x161   : > { %p23153_p1 = pneg %p23152_p0 }
 0x163   : > { %p23160_p7 = pnand %p23159_p6, %p23153_p1 }
 0x165   : > { %23163 = shalt.err (!%p23160_p7)
}
 0x166   : > { %20554 = dma.hbm_to_vmem [thread:$0]  (%p20783_p3), %s25020_s14, 32, %s2350_s22, [#allocation41]  }
 0x167   : > { %s23174_s2 = scalar_lea.vmem %s2374_s26, 32  ;;  %p23181_p11 = scmp.lt.s32.totalorder %s2374_s26, %s2374_s26 }
 0x168   : > { %p23175_p8 = scmp.ne.s32.totalorder %s2374_s26, %s23174_s2  ;;  %p23182_p12 = scmp.lt.s32.totalorder %s23174_s2, %s23174_s2 }
 0x16a   : > { %p23176_p9 = pnand %p23175_p8, %p20783_p3  ;;  %p23183_p2 = por %p23182_p12, %p23181_p11 }
 0x16c   : > { %p23177_p10 = pneg %p23176_p9 }
 0x16e   : > { %p23184_p13 = pnand %p23183_p2, %p23177_p10 }
 0x170   : > { %23187 = shalt.err (!%p23184_p13)
}
 0x171   : > { %20558 = dma.hbm_to_vmem [thread:$0]  (%p20783_p3), %s25030_s29, 32, %s2374_s26, [#allocation44]  }
 0x172   : > { %s24790_s18 = smov [#allocation46]   ;;  %s24791_s11 = smov [#allocation49]  }
 0x173   : > { %s2401_s7 = sshll.u32 %s24790_s18, 4  ;;  %s2422_s23 = sshll.u32 %s24791_s11, 4  ;;  %s2402_s7 = int_to_ptr.vmem [resolvable:$true] %s2401_s7  ;;  %s2423_s23 = int_to_ptr.vmem [resolvable:$true] %s2422_s23 }
 0x174   : > { %s23198_s22 = scalar_lea.vmem %s2402_s7, 32  ;;  %p23205_p5 = scmp.lt.s32.totalorder %s2402_s7, %s2402_s7 }
 0x175   : > { %p23199_p0 = scmp.ne.s32.totalorder %s2402_s7, %s23198_s22  ;;  %p23206_p6 = scmp.lt.s32.totalorder %s23198_s22, %s23198_s22 }
 0x177   : > { %p23200_p1 = pnand %p23199_p0, %p20783_p3  ;;  %p23207_p7 = por %p23206_p6, %p23205_p5 }
 0x179   : > { %p23201_p4 = pneg %p23200_p1 }
 0x17b   : > { %p23208_p8 = pnand %p23207_p7, %p23201_p4 }
 0x17d   : > { %23211 = shalt.err (!%p23208_p8)
}
 0x17e   : > { %s26848_s15 = sld [smem:[#allocation173_spill]]  ;;  %s23222_s26 = scalar_lea.vmem %s2423_s23, 1024 }
 0x17f   : > { %p23223_p9 = scmp.ne.s32.totalorder %s2423_s23, %s23222_s26  ;;  %p23229_p12 = scmp.lt.s32.totalorder %s2423_s23, %s2423_s23 }
 0x180   : > { %p23230_p2 = scmp.lt.s32.totalorder %s23222_s26, %s23222_s26 }
 0x181   : > { %p23224_p10 = pnand %p23223_p9, %p20783_p3 }
 0x182   : > { %p23231_p13 = por %p23230_p2, %p23229_p12 }
 0x183   : > { %p23225_p11 = pneg %p23224_p10 }
 0x184   : > { %20562 = dma.hbm_to_vmem [thread:$0]  (%p20783_p3), %s26848_s15, 32, %s2402_s7, [#allocation47]  }
 0x185   : > { %p23232_p0 = pnand %p23231_p13, %p23225_p11 }
 0x187   : > { %23235 = shalt.err (!%p23232_p0)
}
 0x188   : > { %s26849_s2 = sld [smem:[#allocation175_spill]]  ;;  %s24792_s18 = smov [#allocation52]  }
 0x189   : > { %s2449_s7 = sshll.u32 %s24792_s18, 4  ;;  %s24793_s11 = smov [#allocation55]   ;;  %s2450_s7 = int_to_ptr.vmem [resolvable:$true] %s2449_s7 }
 0x18a   : > { %s2473_s22 = sshll.u32 %s24793_s11, 4  ;;  %s23246_s15 = scalar_lea.vmem %s2450_s7, 32  ;;  %s2474_s22 = int_to_ptr.vmem [resolvable:$true] %s2473_s22 }
 0x18b   : > { %p23247_p1 = scmp.ne.s32.totalorder %s2450_s7, %s23246_s15  ;;  %p23253_p6 = scmp.lt.s32.totalorder %s2450_s7, %s2450_s7 }
 0x18c   : > { %p23254_p7 = scmp.lt.s32.totalorder %s23246_s15, %s23246_s15 }
 0x18d   : > { %p23248_p4 = pnand %p23247_p1, %p20783_p3 }
 0x18e   : > { %20566 = dma.hbm_to_vmem [thread:$0]  (%p20783_p3), %s26849_s2, 1024, %s2423_s23, [#allocation50], %s26766_s16, %s26766_s16, %s26768_s10  }
 0x18f   : > { %p23249_p5 = pneg %p23248_p4  ;;  %p23255_p8 = por %p23254_p7, %p23253_p6 }
 0x191   : > { %p23256_p9 = pnand %p23255_p8, %p23249_p5 }
 0x193   : > { %23259 = shalt.err (!%p23256_p9)
}
 0x194   : > { %s26850_s26 = sld [smem:[#allocation177_spill]]  ;;  %s23270_s23 = scalar_lea.vmem %s2474_s22, 4096 }
 0x195   : > { %p23271_p10 = scmp.ne.s32.totalorder %s2474_s22, %s23270_s23  ;;  %p23277_p2 = scmp.lt.s32.totalorder %s2474_s22, %s2474_s22 }
 0x196   : > { %p23278_p13 = scmp.lt.s32.totalorder %s23270_s23, %s23270_s23 }
 0x197   : > { %p23272_p11 = pnand %p23271_p10, %p20783_p3 }
 0x198   : > { %p23279_p0 = por %p23278_p13, %p23277_p2 }
 0x199   : > { %p23273_p12 = pneg %p23272_p11 }
 0x19a   : > { %20570 = dma.hbm_to_vmem [thread:$0]  (%p20783_p3), %s26850_s26, 32, %s2450_s7, [#allocation53]  }
 0x19b   : > { %p23280_p1 = pnand %p23279_p0, %p23273_p12 }
 0x19d   : > { %23283 = shalt.err (!%p23280_p1)
}
 0x19e   : > { %s26851_s2 = smov 8   ;;  %s26852_s18 = smov 128  }
 0x19f   : > { %s26853_s11 = sld [smem:[#allocation180_spill]]  ;;  %s24794_s7 = smov [#allocation58]  }
 0x1a0   : > { %s2504_s15 = sshll.u32 %s24794_s7, 4  ;;  %s24795_s26 = smov [#allocation61]   ;;  %s2505_s15 = int_to_ptr.vmem [resolvable:$true] %s2504_s15 }
 0x1a1   : > { %s2526_s16 = sshll.u32 %s24795_s26, 4  ;;  %s23294_s10 = scalar_lea.vmem %s2505_s15, 16  ;;  %s2527_s16 = int_to_ptr.vmem [resolvable:$true] %s2526_s16 }
 0x1a2   : > { %p23295_p4 = scmp.ne.s32.totalorder %s2505_s15, %s23294_s10  ;;  %s23300_s23 = scalar_lea.vmem %s2505_s15, 32 }
 0x1a3   : > { %p23301_p7 = scmp.lt.s32.totalorder %s2505_s15, %s2505_s15  ;;  %p23302_p8 = scmp.lt.s32.totalorder %s23300_s23, %s23294_s10 }
 0x1a4   : > { %p23296_p5 = pnand %p23295_p4, %p20783_p3 }
 0x1a5   : > { %20574 = dma.hbm_to_vmem [thread:$0]  (%p20783_p3), %s26853_s11, 4096, %s2474_s22, [#allocation56], %s26852_s18, %s26852_s18, %s26851_s2  }
 0x1a6   : > { %p23297_p6 = pneg %p23296_p5  ;;  %p23303_p9 = por %p23302_p8, %p23301_p7 }
 0x1a8   : > { %p23304_p10 = pnand %p23303_p9, %p23297_p6 }
 0x1aa   : > { %23307 = shalt.err (!%p23304_p10)
}
 0x1ab   : > { %s26854_s3 = sld [smem:[#allocation184_spill]]  ;;  %s23318_s22 = scalar_lea.vmem %s2527_s16, 16 }
 0x1ac   : > { %p23319_p11 = scmp.ne.s32.totalorder %s2527_s16, %s23318_s22  ;;  %s23324_s11 = scalar_lea.vmem %s2527_s16, 32 }
 0x1ad   : > { %p23325_p13 = scmp.lt.s32.totalorder %s2527_s16, %s2527_s16  ;;  %p23326_p0 = scmp.lt.s32.totalorder %s23324_s11, %s23318_s22 }
 0x1ae   : > { %p23320_p12 = pnand %p23319_p11, %p20783_p3 }
 0x1af   : > { %p23327_p1 = por %p23326_p0, %p23325_p13 }
 0x1b0   : > { %p23321_p2 = pneg %p23320_p12 }
 0x1b1   : > { %20578 = dma.hbm_to_vmem [thread:$0]  (%p20783_p3), %s26854_s3, 16, %s2505_s15, [#allocation59]  }
 0x1b2   : > { %p23328_p4 = pnand %p23327_p1, %p23321_p2 }
 0x1b4   : > { %23331 = shalt.err (!%p23328_p4)
}
 0x1b5   : > { %s26855_s10 = sld [smem:[#allocation186_spill]]  ;;  %s24796_s7 = smov [#allocation64]  }
 0x1b6   : > { %s2549_s26 = sshll.u32 %s24796_s7, 4  ;;  %s24797_s3 = smov [#allocation67]   ;;  %s2550_s26 = int_to_ptr.vmem [resolvable:$true] %s2549_s26 }
 0x1b7   : > { %s2573_s15 = sshll.u32 %s24797_s3, 4  ;;  %s23342_s23 = scalar_lea.vmem %s2550_s26, 12288  ;;  %s2574_s15 = int_to_ptr.vmem [resolvable:$true] %s2573_s15 }
 0x1b8   : > { %p23343_p5 = scmp.ne.s32.totalorder %s2550_s26, %s23342_s23  ;;  %p23349_p8 = scmp.lt.s32.totalorder %s2550_s26, %s2550_s26 }
 0x1b9   : > { %p23350_p9 = scmp.lt.s32.totalorder %s23342_s23, %s23342_s23 }
 0x1ba   : > { %p23344_p6 = pnand %p23343_p5, %p20783_p3 }
 0x1bb   : > { %20582 = dma.hbm_to_vmem [thread:$0]  (%p20783_p3), %s26855_s10, 16, %s2527_s16, [#allocation62]  }
 0x1bc   : > { %p23345_p7 = pneg %p23344_p6  ;;  %p23351_p10 = por %p23350_p9, %p23349_p8 }
 0x1be   : > { %p23352_p11 = pnand %p23351_p10, %p23345_p7 }
 0x1c0   : > { %23355 = shalt.err (!%p23352_p11)
}
 0x1c1   : > { %s26856_s16 = sld [smem:[#allocation188_spill]]  ;;  %s23366_s22 = scalar_lea.vmem %s2574_s15, 4096 }
 0x1c2   : > { %p23367_p12 = scmp.ne.s32.totalorder %s2574_s15, %s23366_s22  ;;  %p23373_p0 = scmp.lt.s32.totalorder %s2574_s15, %s2574_s15 }
 0x1c3   : > { %p23374_p1 = scmp.lt.s32.totalorder %s23366_s22, %s23366_s22 }
 0x1c4   : > { %p23368_p2 = pnand %p23367_p12, %p20783_p3 }
 0x1c5   : > { %p23375_p4 = por %p23374_p1, %p23373_p0 }
 0x1c6   : > { %p23369_p13 = pneg %p23368_p2 }
 0x1c7   : > { %20586 = dma.hbm_to_vmem [thread:$0]  (%p20783_p3), %s26856_s16, 12288, %s2550_s26, [#allocation65], %s26852_s18, %s26852_s18, %s26851_s2  }
 0x1c8   : > { %p23376_p5 = pnand %p23375_p4, %p23369_p13 }
 0x1ca   : > { %23379 = shalt.err (!%p23376_p5)
}
 0x1cb   : > { %s26857_s11 = sld [smem:[#allocation190_spill]]  ;;  %s24798_s10 = smov [#allocation70]  }
 0x1cc   : > { %s2597_s7 = sshll.u32 %s24798_s10, 4  ;;  %s24799_s26 = smov [#allocation73]   ;;  %s2598_s7 = int_to_ptr.vmem [resolvable:$true] %s2597_s7 }
 0x1cd   : > { %s2621_s3 = sshll.u32 %s24799_s26, 4  ;;  %s23390_s23 = scalar_lea.vmem %s2598_s7, 12288  ;;  %s2622_s3 = int_to_ptr.vmem [resolvable:$true] %s2621_s3 }
 0x1ce   : > { %p23391_p6 = scmp.ne.s32.totalorder %s2598_s7, %s23390_s23  ;;  %p23397_p9 = scmp.lt.s32.totalorder %s2598_s7, %s2598_s7 }
 0x1cf   : > { %p23398_p10 = scmp.lt.s32.totalorder %s23390_s23, %s23390_s23 }
 0x1d0   : > { %p23392_p7 = pnand %p23391_p6, %p20783_p3 }
 0x1d1   : > { %20590 = dma.hbm_to_vmem [thread:$0]  (%p20783_p3), %s26857_s11, 4096, %s2574_s15, [#allocation68], %s26852_s18, %s26852_s18, %s26851_s2  }
 0x1d2   : > { %p23393_p8 = pneg %p23392_p7  ;;  %p23399_p11 = por %p23398_p10, %p23397_p9 }
 0x1d4   : > { %p23400_p12 = pnand %p23399_p11, %p23393_p8 }
 0x1d6   : > { %23403 = shalt.err (!%p23400_p12)
}
 0x1d7   : > { %s26858_s15 = sld [smem:[#allocation192_spill]]  ;;  %s23414_s16 = scalar_lea.vmem %s2622_s3, 4096 }
 0x1d8   : > { %p23415_p2 = scmp.ne.s32.totalorder %s2622_s3, %s23414_s16  ;;  %p23421_p1 = scmp.lt.s32.totalorder %s2622_s3, %s2622_s3 }
 0x1d9   : > { %p23422_p4 = scmp.lt.s32.totalorder %s23414_s16, %s23414_s16 }
 0x1da   : > { %p23416_p13 = pnand %p23415_p2, %p20783_p3 }
 0x1db   : > { %p23423_p5 = por %p23422_p4, %p23421_p1 }
 0x1dc   : > { %p23417_p0 = pneg %p23416_p13 }
 0x1dd   : > { %20594 = dma.hbm_to_vmem [thread:$0]  (%p20783_p3), %s26858_s15, 12288, %s2598_s7, [#allocation71], %s26852_s18, %s26852_s18, %s26851_s2  }
 0x1de   : > { %p23424_p6 = pnand %p23423_p5, %p23417_p0 }
 0x1e0   : > { %23427 = shalt.err (!%p23424_p6)
}
 0x1e1   : > { %s26859_s22 = sld [smem:[#allocation194_spill]]  ;;  %s24800_s11 = smov [#allocation76]  }
 0x1e2   : > { %s2645_s10 = sshll.u32 %s24800_s11, 4  ;;  %s24801_s7 = smov [#allocation79]   ;;  %s2646_s10 = int_to_ptr.vmem [resolvable:$true] %s2645_s10 }
 0x1e3   : > { %s2672_s26 = sshll.u32 %s24801_s7, 4  ;;  %s23438_s23 = scalar_lea.vmem %s2646_s10, 2048  ;;  %s2673_s26 = int_to_ptr.vmem [resolvable:$true] %s2672_s26 }
 0x1e4   : > { %p23439_p7 = scmp.ne.s32.totalorder %s2646_s10, %s23438_s23  ;;  %p23445_p10 = scmp.lt.s32.totalorder %s2646_s10, %s2646_s10 }
 0x1e5   : > { %p23446_p11 = scmp.lt.s32.totalorder %s23438_s23, %s23438_s23 }
 0x1e6   : > { %p23440_p8 = pnand %p23439_p7, %p20783_p3 }
 0x1e7   : > { %20598 = dma.hbm_to_vmem [thread:$0]  (%p20783_p3), %s26859_s22, 4096, %s2622_s3, [#allocation74], %s26852_s18, %s26852_s18, %s26851_s2  }
 0x1e8   : > { %p23441_p9 = pneg %p23440_p8  ;;  %p23447_p12 = por %p23446_p11, %p23445_p10 }
 0x1ea   : > { %p23448_p2 = pnand %p23447_p12, %p23441_p9 }
 0x1ec   : > { %23451 = shalt.err (!%p23448_p2)
}
 0x1ed   : > { %s26860_s15 = smov 4   ;;  %s26861_s16 = smov 64  }
 0x1ee   : > { %s26862_s3 = sld [smem:[#allocation196_spill]]  ;;  %s23462_s22 = scalar_lea.vmem %s2673_s26, 128 }
 0x1ef   : > { %p23463_p13 = scmp.ne.s32.totalorder %s2673_s26, %s23462_s22  ;;  %p23469_p4 = scmp.lt.s32.totalorder %s2673_s26, %s2673_s26 }
 0x1f0   : > { %p23470_p5 = scmp.lt.s32.totalorder %s23462_s22, %s23462_s22 }
 0x1f1   : > { %p23464_p0 = pnand %p23463_p13, %p20783_p3 }
 0x1f2   : > { %p23471_p6 = por %p23470_p5, %p23469_p4 }
 0x1f3   : > { %p23465_p1 = pneg %p23464_p0 }
 0x1f4   : > { %20602 = dma.hbm_to_vmem [thread:$0]  (%p20783_p3), %s26862_s3, 2048, %s2646_s10, [#allocation77], %s26861_s16, %s26861_s16, %s26860_s15  }
 0x1f5   : > { %p23472_p7 = pnand %p23471_p6, %p23465_p1 }
 0x1f7   : > { %23475 = shalt.err (!%p23472_p7)
}
 0x1f8   : > { %s26863_s11 = sld [smem:[#allocation199_spill]]  ;;  %s24802_s10 = smov [#allocation82]  }
 0x1f9   : > { %s2696_s7 = sshll.u32 %s24802_s10, 4  ;;  %s24803_s23 = smov [#allocation85]   ;;  %s2697_s7 = int_to_ptr.vmem [resolvable:$true] %s2696_s7 }
 0x1fa   : > { %s2723_s3 = sshll.u32 %s24803_s23, 4  ;;  %s23486_s5 = scalar_lea.vmem %s2697_s7, 4096  ;;  %s2724_s3 = int_to_ptr.vmem [resolvable:$true] %s2723_s3 }
 0x1fb   : > { %p23487_p8 = scmp.ne.s32.totalorder %s2697_s7, %s23486_s5  ;;  %p23493_p11 = scmp.lt.s32.totalorder %s2697_s7, %s2697_s7 }
 0x1fc   : > { %p23494_p12 = scmp.lt.s32.totalorder %s23486_s5, %s23486_s5 }
 0x1fd   : > { %p23488_p9 = pnand %p23487_p8, %p20783_p3 }
 0x1fe   : > { %20606 = dma.hbm_to_vmem [thread:$0]  (%p20783_p3), %s26863_s11, 128, %s2673_s26, [#allocation80], %s26861_s16, %s26861_s16, %s26860_s15  }
 0x1ff   : > { %p23489_p10 = pneg %p23488_p9  ;;  %p23495_p2 = por %p23494_p12, %p23493_p11 }
 0x201   : > { %p23496_p13 = pnand %p23495_p2, %p23489_p10 }
 0x203   : > { %23499 = shalt.err (!%p23496_p13)
}
 0x204   : > { %s26864_s22 = smov 16   ;;  %s26865_s6 = smov 256  }
 0x205   : > { %s26866_s26 = sld [smem:[#allocation201_spill]]  ;;  %s23510_s11 = scalar_lea.vmem %s2724_s3, 32 }
 0x206   : > { %p23511_p0 = scmp.ne.s32.totalorder %s2724_s3, %s23510_s11  ;;  %p23517_p5 = scmp.lt.s32.totalorder %s2724_s3, %s2724_s3 }
 0x207   : > { %p23518_p6 = scmp.lt.s32.totalorder %s23510_s11, %s23510_s11 }
 0x208   : > { %p23512_p1 = pnand %p23511_p0, %p20783_p3 }
 0x209   : > { %p23519_p7 = por %p23518_p6, %p23517_p5 }
 0x20a   : > { %p23513_p4 = pneg %p23512_p1 }
 0x20b   : > { %20610 = dma.hbm_to_vmem [thread:$0]  (%p20783_p3), %s26866_s26, 4096, %s2697_s7, [#allocation83], %s26865_s6, %s26865_s6, %s26864_s22  }
 0x20c   : > { %p23520_p8 = pnand %p23519_p7, %p23513_p4 }
 0x20e   : > { %23523 = shalt.err (!%p23520_p8)
}
 0x20f   : > { %s26867_s5 = sld [smem:[#allocation203_spill]]  ;;  %s24804_s10 = smov [#allocation88]  }
 0x210   : > { %s2747_s23 = sshll.u32 %s24804_s10, 4  ;;  %s24805_s7 = smov [#allocation91]   ;;  %s2748_s23 = int_to_ptr.vmem [resolvable:$true] %s2747_s23 }
 0x211   : > { %s2771_s26 = sshll.u32 %s24805_s7, 4  ;;  %s23534_s8 = scalar_lea.vmem %s2748_s23, 32  ;;  %s2772_s26 = int_to_ptr.vmem [resolvable:$true] %s2771_s26 }
 0x212   : > { %p23535_p9 = scmp.ne.s32.totalorder %s2748_s23, %s23534_s8  ;;  %p23541_p12 = scmp.lt.s32.totalorder %s2748_s23, %s2748_s23 }
 0x213   : > { %p23542_p2 = scmp.lt.s32.totalorder %s23534_s8, %s23534_s8 }
 0x214   : > { %p23536_p10 = pnand %p23535_p9, %p20783_p3 }
 0x215   : > { %20614 = dma.hbm_to_vmem [thread:$0]  (%p20783_p3), %s26867_s5, 32, %s2724_s3, [#allocation86]  }
 0x216   : > { %p23537_p11 = pneg %p23536_p10  ;;  %p23543_p13 = por %p23542_p2, %p23541_p12 }
 0x218   : > { %p23544_p0 = pnand %p23543_p13, %p23537_p11 }
 0x21a   : > { %23547 = shalt.err (!%p23544_p0)
}
 0x21b   : > { %s26868_s11 = sld [smem:[#allocation205_spill]]  ;;  %s23558_s3 = scalar_lea.vmem %s2772_s26, 32 }
 0x21c   : > { %p23559_p1 = scmp.ne.s32.totalorder %s2772_s26, %s23558_s3  ;;  %p23565_p6 = scmp.lt.s32.totalorder %s2772_s26, %s2772_s26 }
 0x21d   : > { %p23566_p7 = scmp.lt.s32.totalorder %s23558_s3, %s23558_s3 }
 0x21e   : > { %p23560_p4 = pnand %p23559_p1, %p20783_p3 }
 0x21f   : > { %p23567_p8 = por %p23566_p7, %p23565_p6 }
 0x220   : > { %p23561_p5 = pneg %p23560_p4 }
 0x221   : > { %20618 = dma.hbm_to_vmem [thread:$0]  (%p20783_p3), %s26868_s11, 32, %s2748_s23, [#allocation89]  }
 0x222   : > { %p23568_p9 = pnand %p23567_p8, %p23561_p5 }
 0x224   : > { %23571 = shalt.err (!%p23568_p9)
}
 0x225   : > { %s26869_s8 = sld [smem:[#allocation207_spill]]  ;;  %s24806_s5 = smov [#allocation94]  }
 0x226   : > { %s2795_s10 = sshll.u32 %s24806_s5, 4  ;;  %s24807_s23 = smov [#allocation97]   ;;  %s2796_s10 = int_to_ptr.vmem [resolvable:$true] %s2795_s10 }
 0x227   : > { %s2822_s7 = sshll.u32 %s24807_s23, 4  ;;  %s23582_s11 = scalar_lea.vmem %s2796_s10, 32  ;;  %s2823_s7 = int_to_ptr.vmem [resolvable:$true] %s2822_s7 }
 0x228   : > { %p23583_p10 = scmp.ne.s32.totalorder %s2796_s10, %s23582_s11  ;;  %p23589_p2 = scmp.lt.s32.totalorder %s2796_s10, %s2796_s10 }
 0x229   : > { %p23590_p13 = scmp.lt.s32.totalorder %s23582_s11, %s23582_s11 }
 0x22a   : > { %p23584_p11 = pnand %p23583_p10, %p20783_p3 }
 0x22b   : > { %20622 = dma.hbm_to_vmem [thread:$0]  (%p20783_p3), %s26869_s8, 32, %s2772_s26, [#allocation92]  }
 0x22c   : > { %p23585_p12 = pneg %p23584_p11  ;;  %p23591_p0 = por %p23590_p13, %p23589_p2 }
 0x22e   : > { %p23592_p1 = pnand %p23591_p0, %p23585_p12 }
 0x230   : > { %23595 = shalt.err (!%p23592_p1)
}
 0x231   : > { %s26870_s3 = sld [smem:[#allocation209_spill]]  ;;  %s23606_s26 = scalar_lea.vmem %s2823_s7, 16 }
 0x232   : > { %p23607_p4 = scmp.ne.s32.totalorder %s2823_s7, %s23606_s26  ;;  %s23612_s8 = scalar_lea.vmem %s2823_s7, 32 }
 0x233   : > { %p23613_p7 = scmp.lt.s32.totalorder %s2823_s7, %s2823_s7  ;;  %p23614_p8 = scmp.lt.s32.totalorder %s23612_s8, %s23606_s26 }
 0x234   : > { %p23608_p5 = pnand %p23607_p4, %p20783_p3 }
 0x235   : > { %p23615_p9 = por %p23614_p8, %p23613_p7 }
 0x236   : > { %p23609_p6 = pneg %p23608_p5 }
 0x237   : > { %20626 = dma.hbm_to_vmem [thread:$0]  (%p20783_p3), %s26870_s3, 32, %s2796_s10, [#allocation95]  }
 0x238   : > { %p23616_p10 = pnand %p23615_p9, %p23609_p6 }
 0x23a   : > { %23619 = shalt.err (!%p23616_p10)
}
 0x23b   : > { %s26871_s5 = sld [smem:[#allocation212_spill]]  ;;  %s24808_s23 = smov [#allocation100]  }
 0x23c   : > { %s2846_s11 = sshll.u32 %s24808_s23, 4  ;;  %s24809_s10 = smov [#allocation103]   ;;  %s2847_s11 = int_to_ptr.vmem [resolvable:$true] %s2846_s11 }
 0x23d   : > { %s2870_s3 = sshll.u32 %s24809_s10, 4  ;;  %s23630_s12 = scalar_lea.vmem %s2847_s11, 32  ;;  %s2871_s3 = int_to_ptr.vmem [resolvable:$true] %s2870_s3 }
 0x23e   : > { %p23631_p11 = scmp.ne.s32.totalorder %s2847_s11, %s23630_s12  ;;  %p23637_p13 = scmp.lt.s32.totalorder %s2847_s11, %s2847_s11 }
 0x23f   : > { %p23638_p0 = scmp.lt.s32.totalorder %s23630_s12, %s23630_s12 }
 0x240   : > { %p23632_p12 = pnand %p23631_p11, %p20783_p3 }
 0x241   : > { %20630 = dma.hbm_to_vmem [thread:$0]  (%p20783_p3), %s26871_s5, 16, %s2823_s7, [#allocation98]  }
 0x242   : > { %p23633_p2 = pneg %p23632_p12  ;;  %p23639_p1 = por %p23638_p0, %p23637_p13 }
 0x244   : > { %p23640_p4 = pnand %p23639_p1, %p23633_p2 }
 0x246   : > { %23643 = shalt.err (!%p23640_p4)
}
 0x247   : > { %s26872_s26 = sld [smem:[#allocation214_spill]]  ;;  %s23654_s7 = scalar_lea.vmem %s2871_s3, 32 }
 0x248   : > { %p23655_p5 = scmp.ne.s32.totalorder %s2871_s3, %s23654_s7  ;;  %p23661_p8 = scmp.lt.s32.totalorder %s2871_s3, %s2871_s3 }
 0x249   : > { %p23662_p9 = scmp.lt.s32.totalorder %s23654_s7, %s23654_s7 }
 0x24a   : > { %p23656_p6 = pnand %p23655_p5, %p20783_p3 }
 0x24b   : > { %p23663_p10 = por %p23662_p9, %p23661_p8 }
 0x24c   : > { %p23657_p7 = pneg %p23656_p6 }
 0x24d   : > { %20634 = dma.hbm_to_vmem [thread:$0]  (%p20783_p3), %s26872_s26, 32, %s2847_s11, [#allocation101]  }
 0x24e   : > { %p23664_p11 = pnand %p23663_p10, %p23657_p7 }
 0x250   : > { %23667 = shalt.err (!%p23664_p11)
}
 0x251   : > { %20638 = dma.hbm_to_vmem [thread:$0]  (%p20783_p3), %s25265_s4, 32, %s2871_s3, [#allocation104]  }
 0x252   : > { %s24810_s12 = smov [#allocation2]   ;;  %s24811_s5 = smov [#allocation6]  }
 0x253   : > { %s2027_s8 = sshll.u32 %s24810_s12, 4  ;;  %s2053_s23 = sshll.u32 %s24811_s5, 4  ;;  %s2028_s8 = int_to_ptr.vmem [resolvable:$true] %s2027_s8  ;;  %s2054_s23 = int_to_ptr.vmem [resolvable:$true] %s2053_s23 }
 0x254   : > { %s23678_s11 = scalar_lea.vmem %s2028_s8, 768  ;;  %p23685_p0 = scmp.lt.s32.totalorder %s2028_s8, %s2028_s8 }
 0x255   : > { %p23679_p12 = scmp.ne.s32.totalorder %s2028_s8, %s23678_s11  ;;  %p23686_p1 = scmp.lt.s32.totalorder %s23678_s11, %s23678_s11 }
 0x257   : > { %p23680_p2 = pnand %p23679_p12, %p20783_p3  ;;  %p23687_p4 = por %p23686_p1, %p23685_p0 }
 0x259   : > { %p23681_p13 = pneg %p23680_p2 }
 0x25b   : > { %p23688_p5 = pnand %p23687_p4, %p23681_p13 }
 0x25d   : > { %23691 = shalt.err (!%p23688_p5)
}
 0x25e   : > { %s26873_s10 = sld [smem:[#allocation145_spill]]  ;;  %s23702_s3 = scalar_lea.vmem %s2054_s23, 384 }
 0x25f   : > { %p23703_p6 = scmp.ne.s32.totalorder %s2054_s23, %s23702_s3  ;;  %p23709_p9 = scmp.lt.s32.totalorder %s2054_s23, %s2054_s23 }
 0x260   : > { %p23710_p10 = scmp.lt.s32.totalorder %s23702_s3, %s23702_s3 }
 0x261   : > { %p23704_p7 = pnand %p23703_p6, %p20783_p3 }
 0x262   : > { %p23711_p11 = por %p23710_p10, %p23709_p9 }
 0x263   : > { %p23705_p8 = pneg %p23704_p7 }
 0x264   : > { %20504 = dma.hbm_to_vmem [thread:$0]  (%p20783_p3), %s26873_s10, 768, %s2028_s8, [#allocation3], %s26852_s18, %s26852_s18, %s26851_s2  }
 0x265   : > { %p23712_p12 = pnand %p23711_p11, %p23705_p8 }
 0x267   : > { %23715 = shalt.err (!%p23712_p12)
}
 0x268   : > { %s26874_s26 = sld [smem:[#allocation146_spill]]  ;;  %s24812_s7 = smov [#allocation9]  }
 0x269   : > { %s2082_s12 = sshll.u32 %s24812_s7, 4  ;;  %s24813_s8 = smov [#allocation12]   ;;  %s2083_s12 = int_to_ptr.vmem [resolvable:$true] %s2082_s12 }
 0x26a   : > { %s2111_s5 = sshll.u32 %s24813_s8, 4  ;;  %s23726_s11 = scalar_lea.vmem %s2083_s12, 192  ;;  %s2112_s5 = int_to_ptr.vmem [resolvable:$true] %s2111_s5 }
 0x26b   : > { %p23727_p2 = scmp.ne.s32.totalorder %s2083_s12, %s23726_s11  ;;  %p23733_p1 = scmp.lt.s32.totalorder %s2083_s12, %s2083_s12 }
 0x26c   : > { %p23734_p4 = scmp.lt.s32.totalorder %s23726_s11, %s23726_s11 }
 0x26d   : > { %p23728_p13 = pnand %p23727_p2, %p20783_p3 }
 0x26e   : > { %20508 = dma.hbm_to_vmem [thread:$0]  (%p20783_p3), %s26874_s26, 384, %s2054_s23, [#allocation5], %s26852_s18, %s26852_s18, %s26851_s2  }
 0x26f   : > { %p23729_p0 = pneg %p23728_p13  ;;  %p23735_p5 = por %p23734_p4, %p23733_p1 }
 0x271   : > { %p23736_p6 = pnand %p23735_p5, %p23729_p0 }
 0x273   : > { %23739 = shalt.err (!%p23736_p6)
}
 0x274   : > { %s26875_s23 = sld [smem:[#allocation148_spill]]  ;;  %s23750_s10 = scalar_lea.vmem %s2112_s5, 3072 }
 0x275   : > { %p23751_p7 = scmp.ne.s32.totalorder %s2112_s5, %s23750_s10  ;;  %p23757_p10 = scmp.lt.s32.totalorder %s2112_s5, %s2112_s5 }
 0x276   : > { %p23758_p11 = scmp.lt.s32.totalorder %s23750_s10, %s23750_s10 }
 0x277   : > { %p23752_p8 = pnand %p23751_p7, %p20783_p3 }
 0x278   : > { %p23759_p12 = por %p23758_p11, %p23757_p10 }
 0x279   : > { %p23753_p9 = pneg %p23752_p8 }
 0x27a   : > { %20512 = dma.hbm_to_vmem [thread:$0]  (%p20783_p3), %s26875_s23, 192, %s2083_s12, [#allocation8], %s26861_s16, %s26861_s16, %s26860_s15  }
 0x27b   : > { %p23760_p2 = pnand %p23759_p12, %p23753_p9 }
 0x27d   : > { %23763 = shalt.err (!%p23760_p2)
}
 0x27e   : > { %s26876_s3 = sld [smem:[#allocation151_spill]]  ;;  %s24814_s26 = smov [#allocation15]  }
 0x27f   : > { %s2135_s7 = sshll.u32 %s24814_s26, 4  ;;  %s24815_s12 = smov [#allocation18]   ;;  %s2136_s7 = int_to_ptr.vmem [resolvable:$true] %s2135_s7 }
 0x280   : > { %s2163_s8 = sshll.u32 %s24815_s12, 4  ;;  %s23774_s11 = scalar_lea.vmem %s2136_s7, 3072  ;;  %s2164_s8 = int_to_ptr.vmem [resolvable:$true] %s2163_s8 }
 0x281   : > { %p23775_p13 = scmp.ne.s32.totalorder %s2136_s7, %s23774_s11  ;;  %p23781_p4 = scmp.lt.s32.totalorder %s2136_s7, %s2136_s7 }
 0x282   : > { %p23782_p5 = scmp.lt.s32.totalorder %s23774_s11, %s23774_s11 }
 0x283   : > { %p23776_p0 = pnand %p23775_p13, %p20783_p3 }
 0x284   : > { %20516 = dma.hbm_to_vmem [thread:$0]  (%p20783_p3), %s26876_s3, 3072, %s2112_s5, [#allocation11], %s26861_s16, %s26861_s16, %s26860_s15  }
 0x285   : > { %p23777_p1 = pneg %p23776_p0  ;;  %p23783_p6 = por %p23782_p5, %p23781_p4 }
 0x287   : > { %p23784_p7 = pnand %p23783_p6, %p23777_p1 }
 0x289   : > { %23787 = shalt.err (!%p23784_p7)
}
 0x28a   : > { %s26877_s5 = sld [smem:[#allocation152_spill]]  ;;  %s23798_s23 = scalar_lea.vmem %s2164_s8, 32 }
 0x28b   : > { %p23799_p8 = scmp.ne.s32.totalorder %s2164_s8, %s23798_s23  ;;  %p23805_p11 = scmp.lt.s32.totalorder %s2164_s8, %s2164_s8 }
 0x28c   : > { %p23806_p12 = scmp.lt.s32.totalorder %s23798_s23, %s23798_s23 }
 0x28d   : > { %p23800_p9 = pnand %p23799_p8, %p20783_p3 }
 0x28e   : > { %p23807_p2 = por %p23806_p12, %p23805_p11 }
 0x28f   : > { %p23801_p10 = pneg %p23800_p9 }
 0x290   : > { %20520 = dma.hbm_to_vmem [thread:$0]  (%p20783_p3), %s26877_s5, 3072, %s2136_s7, [#allocation14], %s26861_s16, %s26861_s16, %s26860_s15  }
 0x291   : > { %p23808_p13 = pnand %p23807_p2, %p23801_p10 }
 0x293   : > { %23811 = shalt.err (!%p23808_p13)
}
 0x294   : > { %s26878_s10 = sld [smem:[#allocation154_spill]]  ;;  %s24816_s3 = smov [#allocation21]  }
 0x295   : > { %s2187_s26 = sshll.u32 %s24816_s3, 4  ;;  %s24817_s12 = smov [#allocation24]   ;;  %s2188_s26 = int_to_ptr.vmem [resolvable:$true] %s2187_s26 }
 0x296   : > { %s2211_s11 = sshll.u32 %s24817_s12, 4  ;;  %s23822_s7 = scalar_lea.vmem %s2188_s26, 16  ;;  %s2212_s11 = int_to_ptr.vmem [resolvable:$true] %s2211_s11 }
 0x297   : > { %p23823_p0 = scmp.ne.s32.totalorder %s2188_s26, %s23822_s7  ;;  %s23828_s5 = scalar_lea.vmem %s2188_s26, 32 }
 0x298   : > { %p23829_p5 = scmp.lt.s32.totalorder %s2188_s26, %s2188_s26  ;;  %p23830_p6 = scmp.lt.s32.totalorder %s23828_s5, %s23822_s7 }
 0x299   : > { %p23824_p1 = pnand %p23823_p0, %p20783_p3 }
 0x29a   : > { %20524 = dma.hbm_to_vmem [thread:$0]  (%p20783_p3), %s26878_s10, 32, %s2164_s8, [#allocation17]  }
 0x29b   : > { %p23825_p4 = pneg %p23824_p1  ;;  %p23831_p7 = por %p23830_p6, %p23829_p5 }
 0x29d   : > { %p23832_p8 = pnand %p23831_p7, %p23825_p4 }
 0x29f   : > { %23835 = shalt.err (!%p23832_p8)
}
 0x2a0   : > { %s26879_s8 = sld [smem:[#allocation155_spill]]  ;;  %s23846_s23 = scalar_lea.vmem %s2212_s11, 4096 }
 0x2a1   : > { %p23847_p9 = scmp.ne.s32.totalorder %s2212_s11, %s23846_s23  ;;  %p23853_p12 = scmp.lt.s32.totalorder %s2212_s11, %s2212_s11 }
 0x2a2   : > { %p23854_p2 = scmp.lt.s32.totalorder %s23846_s23, %s23846_s23 }
 0x2a3   : > { %p23848_p10 = pnand %p23847_p9, %p20783_p3 }
 0x2a4   : > { %p23855_p13 = por %p23854_p2, %p23853_p12 }
 0x2a5   : > { %p23849_p11 = pneg %p23848_p10 }
 0x2a6   : > { %20528 = dma.hbm_to_vmem [thread:$0]  (%p20783_p3), %s26879_s8, 16, %s2188_s26, [#allocation20]  }
 0x2a7   : > { %p23856_p0 = pnand %p23855_p13, %p23849_p11 }
 0x2a9   : > { %23859 = shalt.err (!%p23856_p0)
}
 0x2aa   : > { %s26880_s10 = sld [smem:[#allocation158_spill]]  ;;  %s24818_s3 = smov [#allocation27]  }
 0x2ab   : > { %s2242_s26 = sshll.u32 %s24818_s3, 4  ;;  %s24819_s12 = smov [#allocation30]   ;;  %s2243_s26 = int_to_ptr.vmem [resolvable:$true] %s2242_s26 }
 0x2ac   : > { %s2264_s7 = sshll.u32 %s24819_s12, 4  ;;  %s23870_s5 = scalar_lea.vmem %s2243_s26, 16  ;;  %s2265_s7 = int_to_ptr.vmem [resolvable:$true] %s2264_s7 }
 0x2ad   : > { %p23871_p1 = scmp.ne.s32.totalorder %s2243_s26, %s23870_s5  ;;  %s23876_s8 = scalar_lea.vmem %s2243_s26, 32 }
 0x2ae   : > { %p23877_p6 = scmp.lt.s32.totalorder %s2243_s26, %s2243_s26  ;;  %p23878_p7 = scmp.lt.s32.totalorder %s23876_s8, %s23870_s5 }
 0x2af   : > { %p23872_p4 = pnand %p23871_p1, %p20783_p3 }
 0x2b0   : > { %20532 = dma.hbm_to_vmem [thread:$0]  (%p20783_p3), %s26880_s10, 4096, %s2212_s11, [#allocation23], %s26852_s18, %s26852_s18, %s26851_s2  }
 0x2b1   : > { %p23873_p5 = pneg %p23872_p4  ;;  %p23879_p8 = por %p23878_p7, %p23877_p6 }
 0x2b3   : > { %p23880_p9 = pnand %p23879_p8, %p23873_p5 }
 0x2b5   : > { %23883 = shalt.err (!%p23880_p9)
}
 0x2b6   : > { %s26881_s11 = sld [smem:[#allocation162_spill]]  ;;  %s23894_s23 = scalar_lea.vmem %s2265_s7, 16 }
 0x2b7   : > { %p23895_p10 = scmp.ne.s32.totalorder %s2265_s7, %s23894_s23  ;;  %s23900_s10 = scalar_lea.vmem %s2265_s7, 32 }
 0x2b8   : > { %p23901_p2 = scmp.lt.s32.totalorder %s2265_s7, %s2265_s7  ;;  %p23902_p13 = scmp.lt.s32.totalorder %s23900_s10, %s23894_s23 }
 0x2b9   : > { %p23896_p11 = pnand %p23895_p10, %p20783_p3 }
 0x2ba   : > { %p23903_p0 = por %p23902_p13, %p23901_p2 }
 0x2bb   : > { %p23897_p12 = pneg %p23896_p11 }
 0x2bc   : > { %20536 = dma.hbm_to_vmem [thread:$0]  (%p20783_p3), %s26881_s11, 16, %s2243_s26, [#allocation26]  }
 0x2bd   : > { %p23904_p1 = pnand %p23903_p0, %p23897_p12 }
 0x2bf   : > { %23907 = shalt.err (!%p23904_p1)
}
 0x2c0   : > { %s26882_s3 = sld [smem:[#allocation163_spill]]  ;;  %s24820_s12 = smov [#allocation33]  }
 0x2c1   : > { %s2287_s5 = sshll.u32 %s24820_s12, 4  ;;  %s24821_s8 = smov [#allocation36]   ;;  %s2288_s5 = int_to_ptr.vmem [resolvable:$true] %s2287_s5 }
 0x2c2   : > { %s2311_s26 = sshll.u32 %s24821_s8, 4  ;;  %s23918_s11 = scalar_lea.vmem %s2288_s5, 2048  ;;  %s2312_s26 = int_to_ptr.vmem [resolvable:$true] %s2311_s26 }
 0x2c3   : > { %p23919_p4 = scmp.ne.s32.totalorder %s2288_s5, %s23918_s11  ;;  %p23925_p7 = scmp.lt.s32.totalorder %s2288_s5, %s2288_s5 }
 0x2c4   : > { %p23926_p8 = scmp.lt.s32.totalorder %s23918_s11, %s23918_s11 }
 0x2c5   : > { %p23920_p5 = pnand %p23919_p4, %p20783_p3 }
 0x2c6   : > { %20540 = dma.hbm_to_vmem [thread:$0]  (%p20783_p3), %s26882_s3, 16, %s2265_s7, [#allocation29]  }
 0x2c7   : > { %p23921_p6 = pneg %p23920_p5  ;;  %p23927_p9 = por %p23926_p8, %p23925_p7 }
 0x2c9   : > { %p23928_p10 = pnand %p23927_p9, %p23921_p6 }
 0x2cb   : > { %23931 = shalt.err (!%p23928_p10)
}
 0x2cc   : > { %s26883_s7 = sld [smem:[#allocation165_spill]]  ;;  %s23942_s23 = scalar_lea.vmem %s2312_s26, 2048 }
 0x2cd   : > { %p23943_p11 = scmp.ne.s32.totalorder %s2312_s26, %s23942_s23  ;;  %p23949_p13 = scmp.lt.s32.totalorder %s2312_s26, %s2312_s26 }
 0x2ce   : > { %p23950_p0 = scmp.lt.s32.totalorder %s23942_s23, %s23942_s23 }
 0x2cf   : > { %p23944_p12 = pnand %p23943_p11, %p20783_p3 }
 0x2d0   : > { %p23951_p1 = por %p23950_p0, %p23949_p13 }
 0x2d1   : > { %p23945_p2 = pneg %p23944_p12 }
 0x2d2   : > { %20544 = dma.hbm_to_vmem [thread:$0]  (%p20783_p3), %s26883_s7, 2048, %s2288_s5, [#allocation32], %s26852_s18, %s26852_s18, %s26851_s2  }
 0x2d3   : > { %p23952_p4 = pnand %p23951_p1, %p23945_p2 }
 0x2d5   : > { %23955 = shalt.err (!%p23952_p4)
}
 0x2d6   : > { %s26884_s10 = sld [smem:[#allocation167_spill]]  ;;  %s24822_s3 = smov [#allocation39]  }
 0x2d7   : > { %s2335_s12 = sshll.u32 %s24822_s3, 4  ;;  %s24823_s5 = smov [#allocation42]   ;;  %s2336_s12 = int_to_ptr.vmem [resolvable:$true] %s2335_s12 }
 0x2d8   : > { %s2359_s8 = sshll.u32 %s24823_s5, 4  ;;  %s23966_s11 = scalar_lea.vmem %s2336_s12, 6144  ;;  %s2360_s8 = int_to_ptr.vmem [resolvable:$true] %s2359_s8 }
 0x2d9   : > { %p23967_p5 = scmp.ne.s32.totalorder %s2336_s12, %s23966_s11  ;;  %p23973_p8 = scmp.lt.s32.totalorder %s2336_s12, %s2336_s12 }
 0x2da   : > { %p23974_p9 = scmp.lt.s32.totalorder %s23966_s11, %s23966_s11 }
 0x2db   : > { %p23968_p6 = pnand %p23967_p5, %p20783_p3 }
 0x2dc   : > { %20548 = dma.hbm_to_vmem [thread:$0]  (%p20783_p3), %s26884_s10, 2048, %s2312_s26, [#allocation35], %s26861_s16, %s26861_s16, %s26860_s15  }
 0x2dd   : > { %p23969_p7 = pneg %p23968_p6  ;;  %p23975_p10 = por %p23974_p9, %p23973_p8 }
 0x2df   : > { %p23976_p11 = pnand %p23975_p10, %p23969_p7 }
 0x2e1   : > { %23979 = shalt.err (!%p23976_p11)
}
 0x2e2   : > { %s26885_s26 = sld [smem:[#allocation168_spill]]  ;;  %s23990_s7 = scalar_lea.vmem %s2360_s8, 4096 }
 0x2e3   : > { %p23991_p12 = scmp.ne.s32.totalorder %s2360_s8, %s23990_s7  ;;  %p23997_p0 = scmp.lt.s32.totalorder %s2360_s8, %s2360_s8 }
 0x2e4   : > { %p23998_p1 = scmp.lt.s32.totalorder %s23990_s7, %s23990_s7 }
 0x2e5   : > { %p23992_p2 = pnand %p23991_p12, %p20783_p3 }
 0x2e6   : > { %p23999_p4 = por %p23998_p1, %p23997_p0 }
 0x2e7   : > { %p23993_p13 = pneg %p23992_p2 }
 0x2e8   : > { %20552 = dma.hbm_to_vmem [thread:$0]  (%p20783_p3), %s26885_s26, 6144, %s2336_s12, [#allocation38], %s26852_s18, %s26852_s18, %s26851_s2  }
 0x2e9   : > { %p24000_p5 = pnand %p23999_p4, %p23993_p13 }
 0x2eb   : > { %24003 = shalt.err (!%p24000_p5)
}
 0x2ec   : > { %s26886_s23 = sld [smem:[#allocation169_spill]]  ;;  %s24824_s10 = smov [#allocation45]  }
 0x2ed   : > { %s2390_s3 = sshll.u32 %s24824_s10, 4  ;;  %s24825_s12 = smov [#allocation48]   ;;  %s2391_s3 = int_to_ptr.vmem [resolvable:$true] %s2390_s3 }
 0x2ee   : > { %s2412_s5 = sshll.u32 %s24825_s12, 4  ;;  %s24014_s11 = scalar_lea.vmem %s2391_s3, 16  ;;  %s2413_s5 = int_to_ptr.vmem [resolvable:$true] %s2412_s5 }
 0x2ef   : > { %p24015_p6 = scmp.ne.s32.totalorder %s2391_s3, %s24014_s11  ;;  %s24020_s26 = scalar_lea.vmem %s2391_s3, 32 }
 0x2f0   : > { %p24021_p9 = scmp.lt.s32.totalorder %s2391_s3, %s2391_s3  ;;  %p24022_p10 = scmp.lt.s32.totalorder %s24020_s26, %s24014_s11 }
 0x2f1   : > { %p24016_p7 = pnand %p24015_p6, %p20783_p3 }
 0x2f2   : > { %20556 = dma.hbm_to_vmem [thread:$0]  (%p20783_p3), %s26886_s23, 4096, %s2360_s8, [#allocation41], %s26852_s18, %s26852_s18, %s26851_s2  }
 0x2f3   : > { %p24017_p8 = pneg %p24016_p7  ;;  %p24023_p11 = por %p24022_p10, %p24021_p9 }
 0x2f5   : > { %p24024_p12 = pnand %p24023_p11, %p24017_p8 }
 0x2f7   : > { %24027 = shalt.err (!%p24024_p12)
}
 0x2f8   : > { %s26887_s8 = sld [smem:[#allocation172_spill]]  ;;  %s24038_s7 = scalar_lea.vmem %s2413_s5, 16 }
 0x2f9   : > { %p24039_p2 = scmp.ne.s32.totalorder %s2413_s5, %s24038_s7  ;;  %s24044_s23 = scalar_lea.vmem %s2413_s5, 32 }
 0x2fa   : > { %p24045_p1 = scmp.lt.s32.totalorder %s2413_s5, %s2413_s5  ;;  %p24046_p4 = scmp.lt.s32.totalorder %s24044_s23, %s24038_s7 }
 0x2fb   : > { %p24040_p13 = pnand %p24039_p2, %p20783_p3 }
 0x2fc   : > { %p24047_p5 = por %p24046_p4, %p24045_p1 }
 0x2fd   : > { %p24041_p0 = pneg %p24040_p13 }
 0x2fe   : > { %20560 = dma.hbm_to_vmem [thread:$0]  (%p20783_p3), %s26887_s8, 16, %s2391_s3, [#allocation44]  }
 0x2ff   : > { %p24048_p6 = pnand %p24047_p5, %p24041_p0 }
 0x301   : > { %24051 = shalt.err (!%p24048_p6)
}
 0x302   : > { %s26888_s10 = sld [smem:[#allocation174_spill]]  ;;  %s24826_s12 = smov [#allocation51]  }
 0x303   : > { %s2435_s11 = sshll.u32 %s24826_s12, 4  ;;  %s24827_s26 = smov [#allocation54]   ;;  %s2436_s11 = int_to_ptr.vmem [resolvable:$true] %s2435_s11 }
 0x304   : > { %s2463_s3 = sshll.u32 %s24827_s26, 4  ;;  %s24062_s8 = scalar_lea.vmem %s2436_s11, 4096  ;;  %s2464_s3 = int_to_ptr.vmem [resolvable:$true] %s2463_s3 }
 0x305   : > { %p24063_p7 = scmp.ne.s32.totalorder %s2436_s11, %s24062_s8  ;;  %p24069_p10 = scmp.lt.s32.totalorder %s2436_s11, %s2436_s11 }
 0x306   : > { %p24070_p11 = scmp.lt.s32.totalorder %s24062_s8, %s24062_s8 }
 0x307   : > { %p24064_p8 = pnand %p24063_p7, %p20783_p3 }
 0x308   : > { %20564 = dma.hbm_to_vmem [thread:$0]  (%p20783_p3), %s26888_s10, 16, %s2413_s5, [#allocation47]  }
 0x309   : > { %p24065_p9 = pneg %p24064_p8  ;;  %p24071_p12 = por %p24070_p11, %p24069_p10 }
 0x30b   : > { %p24072_p2 = pnand %p24071_p12, %p24065_p9 }
 0x30d   : > { %24075 = shalt.err (!%p24072_p2)
}
 0x30e   : > { %s26889_s5 = sld [smem:[#allocation176_spill]]  ;;  %s24086_s7 = scalar_lea.vmem %s2464_s3, 32 }
 0x30f   : > { %p24087_p13 = scmp.ne.s32.totalorder %s2464_s3, %s24086_s7  ;;  %p24093_p4 = scmp.lt.s32.totalorder %s2464_s3, %s2464_s3 }
 0x310   : > { %p24094_p5 = scmp.lt.s32.totalorder %s24086_s7, %s24086_s7 }
 0x311   : > { %p24088_p0 = pnand %p24087_p13, %p20783_p3 }
 0x312   : > { %p24095_p6 = por %p24094_p5, %p24093_p4 }
 0x313   : > { %p24089_p1 = pneg %p24088_p0 }
 0x314   : > { %20568 = dma.hbm_to_vmem [thread:$0]  (%p20783_p3), %s26889_s5, 4096, %s2436_s11, [#allocation50], %s26852_s18, %s26852_s18, %s26851_s2  }
 0x315   : > { %p24096_p7 = pnand %p24095_p6, %p24089_p1 }
 0x317   : > { %24099 = shalt.err (!%p24096_p7)
}
 0x318   : > { %s26890_s23 = sld [smem:[#allocation179_spill]]  ;;  %s24828_s10 = smov [#allocation57]  }
 0x319   : > { %s2487_s12 = sshll.u32 %s24828_s10, 4  ;;  %s24829_s26 = smov [#allocation60]   ;;  %s2488_s12 = int_to_ptr.vmem [resolvable:$true] %s2487_s12 }
 0x31a   : > { %s2515_s8 = sshll.u32 %s24829_s26, 4  ;;  %s24110_s11 = scalar_lea.vmem %s2488_s12, 32  ;;  %s2516_s8 = int_to_ptr.vmem [resolvable:$true] %s2515_s8 }
 0x31b   : > { %p24111_p8 = scmp.ne.s32.totalorder %s2488_s12, %s24110_s11  ;;  %p24117_p11 = scmp.lt.s32.totalorder %s2488_s12, %s2488_s12 }
 0x31c   : > { %p24118_p12 = scmp.lt.s32.totalorder %s24110_s11, %s24110_s11 }
 0x31d   : > { %p24112_p9 = pnand %p24111_p8, %p20783_p3 }
 0x31e   : > { %20572 = dma.hbm_to_vmem [thread:$0]  (%p20783_p3), %s26890_s23, 32, %s2464_s3, [#allocation53]  }
 0x31f   : > { %p24113_p10 = pneg %p24112_p9  ;;  %p24119_p2 = por %p24118_p12, %p24117_p11 }
 0x321   : > { %p24120_p13 = pnand %p24119_p2, %p24113_p10 }
 0x323   : > { %24123 = shalt.err (!%p24120_p13)
}
 0x324   : > { %s26891_s5 = sld [smem:[#allocation181_spill]]  ;;  %s24134_s3 = scalar_lea.vmem %s2516_s8, 64 }
 0x325   : > { %p24135_p0 = scmp.ne.s32.totalorder %s2516_s8, %s24134_s3  ;;  %p24141_p5 = scmp.lt.s32.totalorder %s2516_s8, %s2516_s8 }
 0x326   : > { %p24142_p6 = scmp.lt.s32.totalorder %s24134_s3, %s24134_s3 }
 0x327   : > { %p24136_p1 = pnand %p24135_p0, %p20783_p3 }
 0x328   : > { %p24143_p7 = por %p24142_p6, %p24141_p5 }
 0x329   : > { %p24137_p4 = pneg %p24136_p1 }
 0x32a   : > { %20576 = dma.hbm_to_vmem [thread:$0]  (%p20783_p3), %s26891_s5, 32, %s2488_s12, [#allocation56]  }
 0x32b   : > { %p24144_p8 = pnand %p24143_p7, %p24137_p4 }
 0x32d   : > { %24147 = shalt.err (!%p24144_p8)
}
 0x32e   : > { %s26892_s7 = sld [smem:[#allocation185_spill]]  ;;  %s24830_s23 = smov [#allocation63]  }
 0x32f   : > { %s2536_s10 = sshll.u32 %s24830_s23, 4  ;;  %s24831_s26 = smov [#allocation66]   ;;  %s2537_s10 = int_to_ptr.vmem [resolvable:$true] %s2536_s10 }
 0x330   : > { %s2563_s11 = sshll.u32 %s24831_s26, 4  ;;  %s24158_s12 = scalar_lea.vmem %s2537_s10, 2048  ;;  %s2564_s11 = int_to_ptr.vmem [resolvable:$true] %s2563_s11 }
 0x331   : > { %p24159_p9 = scmp.ne.s32.totalorder %s2537_s10, %s24158_s12  ;;  %p24165_p12 = scmp.lt.s32.totalorder %s2537_s10, %s2537_s10 }
 0x332   : > { %p24166_p2 = scmp.lt.s32.totalorder %s24158_s12, %s24158_s12 }
 0x333   : > { %p24160_p10 = pnand %p24159_p9, %p20783_p3 }
 0x334   : > { %20580 = dma.hbm_to_vmem [thread:$0]  (%p20783_p3), %s26892_s7, 64, %s2516_s8, [#allocation59]  }
 0x335   : > { %p24161_p11 = pneg %p24160_p10  ;;  %p24167_p13 = por %p24166_p2, %p24165_p12 }
 0x337   : > { %p24168_p0 = pnand %p24167_p13, %p24161_p11 }
 0x339   : > { %24171 = shalt.err (!%p24168_p0)
}
 0x33a   : > { %s26893_s8 = sld [smem:[#allocation187_spill]]  ;;  %s24182_s5 = scalar_lea.vmem %s2564_s11, 32 }
 0x33b   : > { %p24183_p1 = scmp.ne.s32.totalorder %s2564_s11, %s24182_s5  ;;  %p24189_p6 = scmp.lt.s32.totalorder %s2564_s11, %s2564_s11 }
 0x33c   : > { %p24190_p7 = scmp.lt.s32.totalorder %s24182_s5, %s24182_s5 }
 0x33d   : > { %p24184_p4 = pnand %p24183_p1, %p20783_p3 }
 0x33e   : > { %p24191_p8 = por %p24190_p7, %p24189_p6 }
 0x33f   : > { %p24185_p5 = pneg %p24184_p4 }
 0x340   : > { %20584 = dma.hbm_to_vmem [thread:$0]  (%p20783_p3), %s26893_s8, 2048, %s2537_s10, [#allocation62], %s26865_s6, %s26865_s6, %s26864_s22  }
 0x341   : > { %p24192_p9 = pnand %p24191_p8, %p24185_p5 }
 0x343   : > { %24195 = shalt.err (!%p24192_p9)
}
 0x344   : > { %s26894_s3 = sld [smem:[#allocation189_spill]]  ;;  %s24832_s7 = smov [#allocation69]  }
 0x345   : > { %s2587_s23 = sshll.u32 %s24832_s7, 4  ;;  %s24833_s26 = smov [#allocation72]   ;;  %s2588_s23 = int_to_ptr.vmem [resolvable:$true] %s2587_s23 }
 0x346   : > { %s2611_s12 = sshll.u32 %s24833_s26, 4  ;;  %s24206_s6 = scalar_lea.vmem %s2588_s23, 32  ;;  %s2612_s12 = int_to_ptr.vmem [resolvable:$true] %s2611_s12 }
 0x347   : > { %p24207_p10 = scmp.ne.s32.totalorder %s2588_s23, %s24206_s6  ;;  %p24213_p2 = scmp.lt.s32.totalorder %s2588_s23, %s2588_s23 }
 0x348   : > { %p24214_p13 = scmp.lt.s32.totalorder %s24206_s6, %s24206_s6 }
 0x349   : > { %p24208_p11 = pnand %p24207_p10, %p20783_p3 }
 0x34a   : > { %20588 = dma.hbm_to_vmem [thread:$0]  (%p20783_p3), %s26894_s3, 32, %s2564_s11, [#allocation65]  }
 0x34b   : > { %p24209_p12 = pneg %p24208_p11  ;;  %p24215_p0 = por %p24214_p13, %p24213_p2 }
 0x34d   : > { %p24216_p1 = pnand %p24215_p0, %p24209_p12 }
 0x34f   : > { %24219 = shalt.err (!%p24216_p1)
}
 0x350   : > { %s26895_s22 = sld [smem:[#allocation191_spill]]  ;;  %s24230_s10 = scalar_lea.vmem %s2612_s12, 32 }
 0x351   : > { %p24231_p4 = scmp.ne.s32.totalorder %s2612_s12, %s24230_s10  ;;  %p24237_p7 = scmp.lt.s32.totalorder %s2612_s12, %s2612_s12 }
 0x352   : > { %p24238_p8 = scmp.lt.s32.totalorder %s24230_s10, %s24230_s10 }
 0x353   : > { %p24232_p5 = pnand %p24231_p4, %p20783_p3 }
 0x354   : > { %p24239_p9 = por %p24238_p8, %p24237_p7 }
 0x355   : > { %p24233_p6 = pneg %p24232_p5 }
 0x356   : > { %20592 = dma.hbm_to_vmem [thread:$0]  (%p20783_p3), %s26895_s22, 32, %s2588_s23, [#allocation68]  }
 0x357   : > { %p24240_p10 = pnand %p24239_p9, %p24233_p6 }
 0x359   : > { %24243 = shalt.err (!%p24240_p10)
}
 0x35a   : > { %s26896_s11 = sld [smem:[#allocation193_spill]]  ;;  %s24834_s8 = smov [#allocation75]  }
 0x35b   : > { %s2635_s5 = sshll.u32 %s24834_s8, 4  ;;  %s24835_s3 = smov [#allocation78]   ;;  %s2636_s5 = int_to_ptr.vmem [resolvable:$true] %s2635_s5 }
 0x35c   : > { %s2662_s7 = sshll.u32 %s24835_s3, 4  ;;  %s24254_s23 = scalar_lea.vmem %s2636_s5, 32  ;;  %s2663_s7 = int_to_ptr.vmem [resolvable:$true] %s2662_s7 }
 0x35d   : > { %p24255_p11 = scmp.ne.s32.totalorder %s2636_s5, %s24254_s23  ;;  %p24261_p13 = scmp.lt.s32.totalorder %s2636_s5, %s2636_s5 }
 0x35e   : > { %p24262_p0 = scmp.lt.s32.totalorder %s24254_s23, %s24254_s23 }
 0x35f   : > { %p24256_p12 = pnand %p24255_p11, %p20783_p3 }
 0x360   : > { %20596 = dma.hbm_to_vmem [thread:$0]  (%p20783_p3), %s26896_s11, 32, %s2612_s12, [#allocation71]  }
 0x361   : > { %p24257_p2 = pneg %p24256_p12  ;;  %p24263_p1 = por %p24262_p0, %p24261_p13 }
 0x363   : > { %p24264_p4 = pnand %p24263_p1, %p24257_p2 }
 0x365   : > { %24267 = shalt.err (!%p24264_p4)
}
 0x366   : > { %s26897_s26 = sld [smem:[#allocation195_spill]]  ;;  %s24278_s12 = scalar_lea.vmem %s2663_s7, 16 }
 0x367   : > { %p24279_p5 = scmp.ne.s32.totalorder %s2663_s7, %s24278_s12  ;;  %s24284_s6 = scalar_lea.vmem %s2663_s7, 32 }
 0x368   : > { %p24285_p8 = scmp.lt.s32.totalorder %s2663_s7, %s2663_s7  ;;  %p24286_p9 = scmp.lt.s32.totalorder %s24284_s6, %s24278_s12 }
 0x369   : > { %p24280_p6 = pnand %p24279_p5, %p20783_p3 }
 0x36a   : > { %p24287_p10 = por %p24286_p9, %p24285_p8 }
 0x36b   : > { %p24281_p7 = pneg %p24280_p6 }
 0x36c   : > { %20600 = dma.hbm_to_vmem [thread:$0]  (%p20783_p3), %s26897_s26, 32, %s2636_s5, [#allocation74]  }
 0x36d   : > { %p24288_p11 = pnand %p24287_p10, %p24281_p7 }
 0x36f   : > { %24291 = shalt.err (!%p24288_p11)
}
 0x370   : > { %s26898_s22 = sld [smem:[#allocation198_spill]]  ;;  %s24836_s10 = smov [#allocation81]  }
 0x371   : > { %s2686_s11 = sshll.u32 %s24836_s10, 4  ;;  %s24837_s8 = smov [#allocation84]   ;;  %s2687_s11 = int_to_ptr.vmem [resolvable:$true] %s2686_s11 }
 0x372   : > { %s2709_s5 = sshll.u32 %s24837_s8, 4  ;;  %s24302_s3 = scalar_lea.vmem %s2687_s11, 16  ;;  %s2710_s5 = int_to_ptr.vmem [resolvable:$true] %s2709_s5 }
 0x373   : > { %p24303_p12 = scmp.ne.s32.totalorder %s2687_s11, %s24302_s3  ;;  %s24308_s23 = scalar_lea.vmem %s2687_s11, 32 }
 0x374   : > { %p24309_p0 = scmp.lt.s32.totalorder %s2687_s11, %s2687_s11  ;;  %p24310_p1 = scmp.lt.s32.totalorder %s24308_s23, %s24302_s3 }
 0x375   : > { %p24304_p2 = pnand %p24303_p12, %p20783_p3 }
 0x376   : > { %20604 = dma.hbm_to_vmem [thread:$0]  (%p20783_p3), %s26898_s22, 16, %s2663_s7, [#allocation77]  }
 0x377   : > { %p24305_p13 = pneg %p24304_p2  ;;  %p24311_p4 = por %p24310_p1, %p24309_p0 }
 0x379   : > { %p24312_p5 = pnand %p24311_p4, %p24305_p13 }
 0x37b   : > { %24315 = shalt.err (!%p24312_p5)
}
 0x37c   : > { %s26899_s7 = sld [smem:[#allocation200_spill]]  ;;  %s24326_s26 = scalar_lea.vmem %s2710_s5, 12288 }
 0x37d   : > { %p24327_p6 = scmp.ne.s32.totalorder %s2710_s5, %s24326_s26  ;;  %p24333_p9 = scmp.lt.s32.totalorder %s2710_s5, %s2710_s5 }
 0x37e   : > { %p24334_p10 = scmp.lt.s32.totalorder %s24326_s26, %s24326_s26 }
 0x37f   : > { %p24328_p7 = pnand %p24327_p6, %p20783_p3 }
 0x380   : > { %p24335_p11 = por %p24334_p10, %p24333_p9 }
 0x381   : > { %p24329_p8 = pneg %p24328_p7 }
 0x382   : > { %20608 = dma.hbm_to_vmem [thread:$0]  (%p20783_p3), %s26899_s7, 16, %s2687_s11, [#allocation80]  }
 0x383   : > { %p24336_p12 = pnand %p24335_p11, %p24329_p8 }
 0x385   : > { %24339 = shalt.err (!%p24336_p12)
}
 0x386   : > { %s26900_s12 = sld [smem:[#allocation202_spill]]  ;;  %s24838_s6 = smov [#allocation87]  }
 0x387   : > { %s2733_s22 = sshll.u32 %s24838_s6, 4  ;;  %s24839_s10 = smov [#allocation90]   ;;  %s2734_s22 = int_to_ptr.vmem [resolvable:$true] %s2733_s22 }
 0x388   : > { %s2757_s11 = sshll.u32 %s24839_s10, 4  ;;  %s24350_s8 = scalar_lea.vmem %s2734_s22, 4096  ;;  %s2758_s11 = int_to_ptr.vmem [resolvable:$true] %s2757_s11 }
 0x389   : > { %p24351_p2 = scmp.ne.s32.totalorder %s2734_s22, %s24350_s8  ;;  %p24357_p1 = scmp.lt.s32.totalorder %s2734_s22, %s2734_s22 }
 0x38a   : > { %p24358_p4 = scmp.lt.s32.totalorder %s24350_s8, %s24350_s8 }
 0x38b   : > { %p24352_p13 = pnand %p24351_p2, %p20783_p3 }
 0x38c   : > { %20612 = dma.hbm_to_vmem [thread:$0]  (%p20783_p3), %s26900_s12, 12288, %s2710_s5, [#allocation83], %s26852_s18, %s26852_s18, %s26851_s2  }
 0x38d   : > { %p24353_p0 = pneg %p24352_p13  ;;  %p24359_p5 = por %p24358_p4, %p24357_p1 }
 0x38f   : > { %p24360_p6 = pnand %p24359_p5, %p24353_p0 }
 0x391   : > { %24363 = shalt.err (!%p24360_p6)
}
 0x392   : > { %s26901_s5 = sld [smem:[#allocation204_spill]]  ;;  %s24374_s3 = scalar_lea.vmem %s2758_s11, 12288 }
 0x393   : > { %p24375_p7 = scmp.ne.s32.totalorder %s2758_s11, %s24374_s3  ;;  %p24381_p10 = scmp.lt.s32.totalorder %s2758_s11, %s2758_s11 }
 0x394   : > { %p24382_p11 = scmp.lt.s32.totalorder %s24374_s3, %s24374_s3 }
 0x395   : > { %p24376_p8 = pnand %p24375_p7, %p20783_p3 }
 0x396   : > { %p24383_p12 = por %p24382_p11, %p24381_p10 }
 0x397   : > { %p24377_p9 = pneg %p24376_p8 }
 0x398   : > { %20616 = dma.hbm_to_vmem [thread:$0]  (%p20783_p3), %s26901_s5, 4096, %s2734_s22, [#allocation86], %s26852_s18, %s26852_s18, %s26851_s2  }
 0x399   : > { %p24384_p2 = pnand %p24383_p12, %p24377_p9 }
 0x39b   : > { %24387 = shalt.err (!%p24384_p2)
}
 0x39c   : > { %s26902_s23 = sld [smem:[#allocation206_spill]]  ;;  %s24840_s7 = smov [#allocation93]  }
 0x39d   : > { %s2781_s26 = sshll.u32 %s24840_s7, 4  ;;  %s24841_s12 = smov [#allocation96]   ;;  %s2782_s26 = int_to_ptr.vmem [resolvable:$true] %s2781_s26 }
 0x39e   : > { %s2805_s6 = sshll.u32 %s24841_s12, 4  ;;  %s24398_s22 = scalar_lea.vmem %s2782_s26, 4096  ;;  %s2806_s6 = int_to_ptr.vmem [resolvable:$true] %s2805_s6 }
 0x39f   : > { %p24399_p13 = scmp.ne.s32.totalorder %s2782_s26, %s24398_s22  ;;  %p24405_p4 = scmp.lt.s32.totalorder %s2782_s26, %s2782_s26 }
 0x3a0   : > { %p24406_p5 = scmp.lt.s32.totalorder %s24398_s22, %s24398_s22 }
 0x3a1   : > { %p24400_p0 = pnand %p24399_p13, %p20783_p3 }
 0x3a2   : > { %20620 = dma.hbm_to_vmem [thread:$0]  (%p20783_p3), %s26902_s23, 12288, %s2758_s11, [#allocation89], %s26852_s18, %s26852_s18, %s26851_s2  }
 0x3a3   : > { %p24401_p1 = pneg %p24400_p0  ;;  %p24407_p6 = por %p24406_p5, %p24405_p4 }
 0x3a5   : > { %p24408_p7 = pnand %p24407_p6, %p24401_p1 }
 0x3a7   : > { %24411 = shalt.err (!%p24408_p7)
}
 0x3a8   : > { %s26903_s10 = sld [smem:[#allocation208_spill]]  ;;  %s24422_s11 = scalar_lea.vmem %s2806_s6, 4096 }
 0x3a9   : > { %p24423_p8 = scmp.ne.s32.totalorder %s2806_s6, %s24422_s11  ;;  %p24429_p11 = scmp.lt.s32.totalorder %s2806_s6, %s2806_s6 }
 0x3aa   : > { %p24430_p12 = scmp.lt.s32.totalorder %s24422_s11, %s24422_s11 }
 0x3ab   : > { %p24424_p9 = pnand %p24423_p8, %p20783_p3 }
 0x3ac   : > { %p24431_p2 = por %p24430_p12, %p24429_p11 }
 0x3ad   : > { %p24425_p10 = pneg %p24424_p9 }
 0x3ae   : > { %20624 = dma.hbm_to_vmem [thread:$0]  (%p20783_p3), %s26903_s10, 4096, %s2782_s26, [#allocation92], %s26852_s18, %s26852_s18, %s26851_s2  }
 0x3af   : > { %p24432_p13 = pnand %p24431_p2, %p24425_p10 }
 0x3b1   : > { %24435 = shalt.err (!%p24432_p13)
}
 0x3b2   : > { %s26904_s8 = sld [smem:[#allocation210_spill]]  ;;  %s24842_s5 = smov [#allocation99]  }
 0x3b3   : > { %s2832_s3 = sshll.u32 %s24842_s5, 4  ;;  %s24843_s23 = smov [#allocation102]   ;;  %s2833_s3 = int_to_ptr.vmem [resolvable:$true] %s2832_s3 }
 0x3b4   : > { %s2856_s7 = sshll.u32 %s24843_s23, 4  ;;  %s24446_s26 = scalar_lea.vmem %s2833_s3, 512  ;;  %s2857_s7 = int_to_ptr.vmem [resolvable:$true] %s2856_s7 }
 0x3b5   : > { %p24447_p0 = scmp.ne.s32.totalorder %s2833_s3, %s24446_s26  ;;  %p24453_p5 = scmp.lt.s32.totalorder %s2833_s3, %s2833_s3 }
 0x3b6   : > { %p24454_p6 = scmp.lt.s32.totalorder %s24446_s26, %s24446_s26 }
 0x3b7   : > { %p24448_p1 = pnand %p24447_p0, %p20783_p3 }
 0x3b8   : > { %20628 = dma.hbm_to_vmem [thread:$0]  (%p20783_p3), %s26904_s8, 4096, %s2806_s6, [#allocation95], %s26852_s18, %s26852_s18, %s26851_s2  }
 0x3b9   : > { %p24449_p4 = pneg %p24448_p1  ;;  %p24455_p7 = por %p24454_p6, %p24453_p5 }
 0x3bb   : > { %p24456_p8 = pnand %p24455_p7, %p24449_p4 }
 0x3bd   : > { %24459 = shalt.err (!%p24456_p8)
}
 0x3be   : > { %s26905_s12 = sld [smem:[#allocation213_spill]]  ;;  %s24470_s6 = scalar_lea.vmem %s2857_s7, 12288 }
 0x3bf   : > { %p24471_p9 = scmp.ne.s32.totalorder %s2857_s7, %s24470_s6  ;;  %p24477_p12 = scmp.lt.s32.totalorder %s2857_s7, %s2857_s7 }
 0x3c0   : > { %p24478_p2 = scmp.lt.s32.totalorder %s24470_s6, %s24470_s6 }
 0x3c1   : > { %p24472_p10 = pnand %p24471_p9, %p20783_p3 }
 0x3c2   : > { %p24479_p13 = por %p24478_p2, %p24477_p12 }
 0x3c3   : > { %p24473_p11 = pneg %p24472_p10 }
 0x3c4   : > { %20632 = dma.hbm_to_vmem [thread:$0]  (%p20783_p3), %s26905_s12, 512, %s2833_s3, [#allocation98], %s26852_s18, %s26852_s18, %s26851_s2  }
 0x3c5   : > { %p24480_p0 = pnand %p24479_p13, %p24473_p11 }
 0x3c7   : > { %24483 = shalt.err (!%p24480_p0)
}
 0x3c8   : > { %s26906_s22 = sld [smem:[#allocation215_spill]]  ;;  %s24844_s10 = smov [#allocation105]  }
 0x3c9   : > { %s2880_s11 = sshll.u32 %s24844_s10, 4  ;;  %s24845_s8 = smov [#allocation106]   ;;  %s2881_s11 = int_to_ptr.vmem [resolvable:$true] %s2880_s11 }
 0x3ca   : > { %s2894_s5 = sshll.u32 %s24845_s8, 4  ;;  %s24494_s3 = scalar_lea.vmem %s2881_s11, 2048  ;;  %s2895_s5 = int_to_ptr.vmem [resolvable:$true] %s2894_s5 }
 0x3cb   : > { %p24495_p1 = scmp.ne.s32.totalorder %s2881_s11, %s24494_s3  ;;  %p24501_p6 = scmp.lt.s32.totalorder %s2881_s11, %s2881_s11 }
 0x3cc   : > { %p24502_p7 = scmp.lt.s32.totalorder %s24494_s3, %s24494_s3 }
 0x3cd   : > { %p24496_p4 = pnand %p24495_p1, %p20783_p3 }
 0x3ce   : > { %20636 = dma.hbm_to_vmem [thread:$0]  (%p20783_p3), %s26906_s22, 12288, %s2857_s7, [#allocation101], %s26852_s18, %s26852_s18, %s26851_s2  }
 0x3cf   : > { %p24497_p5 = pneg %p24496_p4  ;;  %p24503_p8 = por %p24502_p7, %p24501_p6 }
 0x3d1   : > { %p24504_p9 = pnand %p24503_p8, %p24497_p5 }
 0x3d3   : > { %24507 = shalt.err (!%p24504_p9)
}
 0x3d4   : > { %20640 = dma.hbm_to_vmem [thread:$0]  (%p20783_p3), %s25270_s9, 2048, %s2881_s11, [#allocation104], %s26861_s16, %s26861_s16, %s26860_s15  }
 0x3d5   : > { %s24518_s2 = scalar_lea.vmem %s2895_s5, 16  ;;  %s24524_s18 = scalar_lea.vmem %s2895_s5, 32 }
 0x3d6   : > { %p24519_p10 = scmp.ne.s32.totalorder %s2895_s5, %s24518_s2  ;;  %p24525_p2 = scmp.lt.s32.totalorder %s2895_s5, %s2895_s5 }
 0x3d7   : > { %p24526_p13 = scmp.lt.s32.totalorder %s24524_s18, %s24518_s2 }
 0x3d8   : > { %p24520_p11 = pnand %p24519_p10, %p20783_p3 }
 0x3d9   : > { %p24527_p0 = por %p24526_p13, %p24525_p2 }
 0x3da   : > { %p24521_p12 = pneg %p24520_p11 }
 0x3dc   : > { %p24528_p1 = pnand %p24527_p0, %p24521_p12 }
 0x3de   : > { %24531 = shalt.err (!%p24528_p1)
}
 0x3df   : > { %20642 = dma.hbm_to_vmem [thread:$0]  (%p20783_p3), %s25275_s21, 16, %s2895_s5, [#allocation107]  }
 0x3e0 PF: > { %p26907_p4 = scmp.ne.s32.totalorder %s26842_s1, 0 }
 0x3e1   : > { %p20853_p5 = scmp.eq.s32.totalorder (!%p26907_p4), %s25288_s28, 0 }
 0x3e2   : > { %2916 = sbr.rel (%p26907_p4) target bundleno = 12484 (0x30c4), region = 356 }
 0x3e7   : > { %24537 = dma.done.wait (%p20853_p5), [#allocation3], 768  }
 0x3e8   : > { %24539 = vsyncadd (%p20853_p5), [#allocation3], 4294966528 }
 0x3e9   : > { %24541 = dma.done.wait (%p20853_p5), [#allocation5], 1152  }
 0x3ea   : > { %24543 = vsyncadd (%p20853_p5), [#allocation5], 4294966144 }
 0x3eb   : > { %24545 = dma.done.wait (%p20853_p5), [#allocation8], 576  }
 0x3ec   : > { %24547 = vsyncadd (%p20853_p5), [#allocation8], 4294966720 }
 0x3ed   : > { %24549 = dma.done.wait (%p20853_p5), [#allocation11], 3168  }
 0x3ee   : > { %24551 = vsyncadd (%p20853_p5), [#allocation11], 4294964128 }
 0x3ef   : > { %24553 = dma.done.wait (%p20853_p5), [#allocation14], 3088  }
 0x3f0   : > { %24555 = vsyncadd (%p20853_p5), [#allocation14], 4294964208 }
 0x3f1   : > { %24557 = dma.done.wait (%p20853_p5), [#allocation17], 48  }
 0x3f2   : > { %24559 = vsyncadd (%p20853_p5), [#allocation17], 4294967248 }
 0x3f3   : > { %24561 = dma.done.wait (%p20853_p5), [#allocation20], 1040  }
 0x3f4   : > { %24563 = vsyncadd (%p20853_p5), [#allocation20], 4294966256 }
 0x3f5   : > { %24565 = dma.done.wait (%p20853_p5), [#allocation23], 4128  }
 0x3f6   : > { %24567 = vsyncadd (%p20853_p5), [#allocation23], 4294963168 }
 0x3f7   : > { %24569 = dma.done.wait (%p20853_p5), [#allocation26], 48  }
 0x3f8   : > { %24571 = vsyncadd (%p20853_p5), [#allocation26], 4294967248 }
 0x3f9   : > { %24573 = dma.done.wait (%p20853_p5), [#allocation29], 48  }
 0x3fa   : > { %24575 = vsyncadd (%p20853_p5), [#allocation29], 4294967248 }
 0x3fb   : > { %24577 = dma.done.wait (%p20853_p5), [#allocation32], 3072  }
 0x3fc   : > { %24579 = vsyncadd (%p20853_p5), [#allocation32], 4294964224 }
 0x3fd   : > { %24581 = dma.done.wait (%p20853_p5), [#allocation35], 2080  }
 0x3fe   : > { %24583 = vsyncadd (%p20853_p5), [#allocation35], 4294965216 }
 0x3ff   : > { %24585 = dma.done.wait (%p20853_p5), [#allocation38], 6160  }
 0x400   : > { %24587 = vsyncadd (%p20853_p5), [#allocation38], 4294961136 }
 0x401   : > { %24589 = dma.done.wait (%p20853_p5), [#allocation41], 4128  }
 0x402   : > { %24591 = vsyncadd (%p20853_p5), [#allocation41], 4294963168 }
 0x403   : > { %24593 = dma.done.wait (%p20853_p5), [#allocation44], 48  }
 0x404   : > { %24595 = vsyncadd (%p20853_p5), [#allocation44], 4294967248 }
 0x405   : > { %24597 = dma.done.wait (%p20853_p5), [#allocation47], 48  }
 0x406   : > { %24599 = vsyncadd (%p20853_p5), [#allocation47], 4294967248 }
 0x407   : > { %24601 = dma.done.wait (%p20853_p5), [#allocation50], 5120  }
 0x408   : > { %24603 = vsyncadd (%p20853_p5), [#allocation50], 4294962176 }
 0x409   : > { %24605 = dma.done.wait (%p20853_p5), [#allocation53], 64  }
 0x40a   : > { %24607 = vsyncadd (%p20853_p5), [#allocation53], 4294967232 }
 0x40b   : > { %24609 = dma.done.wait (%p20853_p5), [#allocation56], 4128  }
 0x40c   : > { %24611 = vsyncadd (%p20853_p5), [#allocation56], 4294963168 }
 0x40d   : > { %24613 = dma.done.wait (%p20853_p5), [#allocation59], 80  }
 0x40e   : > { %24615 = vsyncadd (%p20853_p5), [#allocation59], 4294967216 }
 0x40f   : > { %24617 = dma.done.wait (%p20853_p5), [#allocation62], 2064  }
 0x410   : > { %24619 = vsyncadd (%p20853_p5), [#allocation62], 4294965232 }
 0x411   : > { %24621 = dma.done.wait (%p20853_p5), [#allocation65], 12320  }
 0x412   : > { %24623 = vsyncadd (%p20853_p5), [#allocation65], 4294954976 }
 0x413   : > { %24625 = dma.done.wait (%p20853_p5), [#allocation68], 4128  }
 0x414   : > { %24627 = vsyncadd (%p20853_p5), [#allocation68], 4294963168 }
 0x415   : > { %24629 = dma.done.wait (%p20853_p5), [#allocation71], 12320  }
 0x416   : > { %24631 = vsyncadd (%p20853_p5), [#allocation71], 4294954976 }
 0x417   : > { %24633 = dma.done.wait (%p20853_p5), [#allocation74], 4128  }
 0x418   : > { %24635 = vsyncadd (%p20853_p5), [#allocation74], 4294963168 }
 0x419   : > { %24637 = dma.done.wait (%p20853_p5), [#allocation77], 2064  }
 0x41a   : > { %24639 = vsyncadd (%p20853_p5), [#allocation77], 4294965232 }
 0x41b   : > { %24641 = dma.done.wait (%p20853_p5), [#allocation80], 144  }
 0x41c   : > { %24643 = vsyncadd (%p20853_p5), [#allocation80], 4294967152 }
 0x41d   : > { %24645 = dma.done.wait (%p20853_p5), [#allocation83], 16384  }
 0x41e   : > { %24647 = vsyncadd (%p20853_p5), [#allocation83], 4294950912 }
 0x41f   : > { %24649 = dma.done.wait (%p20853_p5), [#allocation86], 4128  }
 0x420   : > { %24651 = vsyncadd (%p20853_p5), [#allocation86], 4294963168 }
 0x421   : > { %24653 = dma.done.wait (%p20853_p5), [#allocation89], 12320  }
 0x422   : > { %24655 = vsyncadd (%p20853_p5), [#allocation89], 4294954976 }
 0x423   : > { %24657 = dma.done.wait (%p20853_p5), [#allocation92], 4128  }
 0x424   : > { %24659 = vsyncadd (%p20853_p5), [#allocation92], 4294963168 }
 0x425   : > { %24661 = dma.done.wait (%p20853_p5), [#allocation95], 4128  }
 0x426   : > { %24663 = vsyncadd (%p20853_p5), [#allocation95], 4294963168 }
 0x427   : > { %24665 = dma.done.wait (%p20853_p5), [#allocation98], 528  }
 0x428   : > { %24667 = vsyncadd (%p20853_p5), [#allocation98], 4294966768 }
 0x429   : > { %24669 = dma.done.wait (%p20853_p5), [#allocation101], 12320  }
 0x42a   : > { %24671 = vsyncadd (%p20853_p5), [#allocation101], 4294954976 }
 0x42b   : > { %24673 = dma.done.wait (%p20853_p5), [#allocation104], 2080  }
 0x42c   : > { %24675 = vsyncadd (%p20853_p5), [#allocation104], 4294965216 }
 0x42d   : > { %24677 = dma.done.wait (%p20853_p5), [#allocation107], 16  }
 0x42e   : > { %24679 = vsyncadd (%p20853_p5), [#allocation107], 4294967280  ;;  %s26908_s1 = sld [smem:[#allocation144_spill]]  ;;  %s18478_s15 = sshll.u32 %s25288_s28, 2  ;;  %v3392_v4 = vld [vmem:[#allocation2] sm:$0xff]  ;;  %v3477_v5 = vld [vmem:[#allocation2 + $0x10] sm:$0xff] }
 0x42f   : > { %p3378_p3 = scmp.lt.s32.totalorder %s18478_s15, 7  ;;  %vm3394_vm0 = vcmask 261120   ;;  %v3393_v6 = vld [vmem:[#allocation2 + $0x8] sm:$0xff]  ;;  %v3478_v7 = vld [vmem:[#allocation2 + $0x18] sm:$0xff]  ;;  %v3561_v8 = vld [vmem:[#allocation2 + $0x20] sm:$0xff]  ;;  %v24846_v18 = vmov 0.0  }
 0x430   : > { %20274 = vmatprep.mubr.msk.f32.mxu0 %vm3394_vm0, %v3392_v4  ;;  %v21099_v9 = vld [vmem:[#allocation12 + $0x78] sm:$0xff]   ;;  %20285 = vmatprep.mubr.msk.f32.mxu1 %vm3394_vm0, %v3477_v5  ;;  %v21101_v11 = vld [vmem:[#allocation12 + $0x70] sm:$0xff]   ;;  %v21103_v13 = vld [vmem:[#allocation12 + $0x68] sm:$0xff]   ;;  %vm24847_vm1 = vmmov 0   ;;  %vm3932_vm2 = vcmask 130048   ;;  %s26909_s7 = sld [smem:[#allocation153_spill]] }
 0x431   : > { %s26923_s15 = smov (!%p3378_p3, %s18478_s15), 7  ;;  %v21100_v10 = vld [vmem:[#allocation12 + $0x38] sm:$0xff]   ;;  %v21102_v12 = vld [vmem:[#allocation12 + $0x30] sm:$0xff]   ;;  %v3562_v14 = vld [vmem:[#allocation2 + $0x28] sm:$0xff]  ;;  %s26910_s26 = sld [smem:[#allocation147_spill]]  ;;  %vm5741_vm3 = vcmask 64512  }
 0x432   : > { %s18479_s16 = sshll.u32 %s26923_s15, 3  ;;  %v21104_v15 = vld [vmem:[#allocation12 + $0xb8] sm:$0xff]   ;;  %v21105_v16 = vld [vmem:[#allocation12 + $0x28] sm:$0xff]   ;;  %v21106_v17 = vld [vmem:[#allocation12 + $0x60] sm:$0xff]   ;;  %s26911_s12 = sld [smem:[#allocation156_spill]]  ;;  %vm6912_vm4 = vcmask 1041408  }
 0x433   : > { %v21107_v19 = vld [vmem:[#allocation12 + $0xb0] sm:$0xff]   ;;  %v21108_v20 = vld [vmem:[#allocation12 + $0x20] sm:$0xff]   ;;  %v21109_v21 = vld [vmem:[#allocation12 + $0x58] sm:$0xff]   ;;  %s26912_s6 = sld [smem:[#allocation160_spill]]  ;;  %vm6908_vm5 = vcmask 31744   ;;  %vm10128_vm6 = vcmask 1043456  }
 0x434   : > { %s3381_s23 = scalar_lea.vmem %s26908_s1, %s18479_s16  ;;  %v21110_v22 = vld [vmem:[#allocation12 + $0xa8] sm:$0xff]   ;;  %v21111_v23 = vld [vmem:[#allocation12 + $0x18] sm:$0xff]   ;;  %v21112_v24 = vld [vmem:[#allocation12 + $0x50] sm:$0xff]   ;;  %s26913_s22 = sld [smem:[#allocation161_spill]]  ;;  %vm10410_vm7 = vcmask 523264   ;;  %vm12992_vm8 = vcmask 15360  }
 0x435   : > { %v3391_v0 = vld [vmem:[%s3381_s23 + $0x18] sm:$0xff]  ;;  %v3390_v1 = vld [vmem:[%s3381_s23 + $0x10] sm:$0xff]  ;;  %v3389_v2 = vld [vmem:[%s3381_s23 + $0x8] sm:$0xff]  ;;  %s26914_s10 = sld [smem:[#allocation170_spill]]  ;;  %p3383_p6 = scmp.lt.s32.totalorder %s25288_s28, 1 }
 0x436   : > { %20266 = vmatprep.subr.mxu0 %v3391_v0  ;;  %20277 = vmatprep.subr.mxu1 %v3391_v0  ;;  %v3388_v3 = vld [vmem:[%s3381_s23] sm:$0xff]  ;;  %v21114_v26 = vld [vmem:[#allocation12 + $0x10] sm:$0xff]   ;;  %v21115_v27 = vld [vmem:[#allocation12 + $0x48] sm:$0xff]   ;;  %s26915_s11 = sld [smem:[#allocation171_spill]] }
 0x437   : > { %20267 = vmatpush3.msra.mxu0 %v3391_v0  ;;  %20278 = vmatpush3.msra.mxu1 %v3391_v0  ;;  %v21113_v25 = vld [vmem:[#allocation12 + $0xa0] sm:$0xff]   ;;  %v21116_v28 = vld [vmem:[#allocation12 + $0x98] sm:$0xff]   ;;  %v21117_v29 = vld [vmem:[#allocation12 + $0x8] sm:$0xff]   ;;  %s26916_s8 = sld [smem:[#allocation178_spill]]  ;;  %s26925_s28 = smov (!%p3383_p6, %s25288_s28), 1 }
 0x438   : > { %20268 = vmatprep.subr.mxu0 %v3390_v1  ;;  %20279 = vmatprep.subr.mxu1 %v3390_v1  ;;  %v21118_v30 = vld [vmem:[#allocation12 + $0x40] sm:$0xff]   ;;  %v21119_v31 = vld [vmem:[#allocation12 + $0x90] sm:$0xff]   ;;  %v21121_v33 = vld [vmem:[#allocation12 + $0x88] sm:$0xff]   ;;  %s26917_s5 = sld [smem:[#allocation182_spill]]  ;;  %s18480_s15 = sshll.u32 %s26925_s28, 3 }
 0x439   : > { %20269 = vmatpush3.msra.mxu0 %v3390_v1  ;;  %20280 = vmatpush3.msra.mxu1 %v3390_v1  ;;  %v21120_v32 = vld [vmem:[#allocation12] sm:$0xff]   ;;  %v3930_v44 = vld [vmem:[#allocation4] sm:$0xff]  ;;  %v25915_v62 = vld [vmem:[#allocation4 + $0x8] sm:$0xff]  ;;  %s26918_s3 = sld [smem:[#allocation183_spill]]  ;;  %s3386_s16 = scalar_lea.vmem %s25280_s17, %s18480_s15 }
 0x43a   : > { %20270 = vmatprep.subr.mxu0 %v3389_v2  ;;  %20281 = vmatprep.subr.mxu1 %v3389_v2  ;;  %v21122_v34 = vld [vmem:[#allocation12 + $0x80] sm:$0xff]   ;;  %v4099_v45 = vld [vmem:[#allocation4 + $0x20] sm:$0xff]  ;;  %s26919_s2 = sld [smem:[#allocation197_spill]] }
 0x43b   : > { %20271 = vmatpush3.msra.mxu0 %v3389_v2  ;;  %20282 = vmatpush3.msra.mxu1 %v3389_v2  ;;  %v18487_v49 = vld [vmem:[#allocation13] ss:$0 sm:$0xff]  ;;  %s26920_s18 = sld [smem:[#allocation150_spill]] }
 0x43c   : > { %20272 = vmatprep.subr.mxu0 %v3388_v3  ;;  %20283 = vmatprep.subr.mxu1 %v3388_v3  ;;  %v21124_v4 = vld [vmem:[#allocation15 + $0x78] sm:$0xff]   ;;  %s26921_s1 = sld [smem:[#allocation211_spill]] }
 0x43d   : > { %20273 = vmatpush3.msra.mxu0 %v3388_v3  ;;  %20284 = vmatpush3.msra.mxu1 %v3388_v3  ;;  %v21125_v5 = vld [vmem:[#allocation15 + $0x38] sm:$0xff]  }
 0x43e   : > { %20275 = vmatmul.mubr.msk.f32.vlgmr.msra.gmra.mxu0 %vm3394_vm0, %v3393_v6  ;;  %20286 = vmatmul.mubr.msk.f32.vlgmr.msra.gmra.mxu1 %vm3394_vm0, %v3478_v7  ;;  %v21127_v6 = vld [vmem:[#allocation15 + $0x70] sm:$0xff]  }
 0x43f   : > { %20288 = vmatprep.subr.mxu0 %v3391_v0  ;;  %20296 = vmatprep.mubr.msk.f32.mxu0 %vm3394_vm0, %v3561_v8  ;;  %v21126_v7 = vld [vmem:[#allocation15 + $0xb0] sm:$0xff]  }
 0x440   : > { %20289 = vmatpush3.msra.mxu0 %v3391_v0  ;;  %19872 = vmatprep.subr.bf16.mxu1 %v21099_v9  ;;  %v25917_v0 = vld [vmem:[#allocation4 + $0x10] sm:$0xff]  ;;  %v21128_v8 = vld [vmem:[#allocation15 + $0x30] sm:$0xff]   ;;  %v21130_v9 = vld [vmem:[#allocation15 + $0x68] sm:$0xff]  }
 0x441   : > { %20290 = vmatprep.subr.mxu0 %v3390_v1  ;;  %19873 = vmatpush3.bf16.msra.mxu1 %v21100_v10  ;;  %v21129_v10 = vld [vmem:[#allocation15 + $0xa8] sm:$0xff]  }
 0x442   : > { %20291 = vmatpush3.msra.mxu0 %v3390_v1  ;;  %19874 = vmatprep.subr.bf16.mxu1 %v21101_v11  ;;  %v25919_v1 = vld [vmem:[#allocation4 + $0x28] sm:$0xff]  ;;  %v21131_v11 = vld [vmem:[#allocation15 + $0x28] sm:$0xff]  }
 0x443   : > { %20292 = vmatprep.subr.mxu0 %v3389_v2 }
 0x444   : > { %20293 = vmatpush3.msra.mxu0 %v3389_v2  ;;  %v21123_v2 = vld [vmem:[#allocation15 + $0xb8] sm:$0xff]  }
 0x445   : > { %20294 = vmatprep.subr.mxu0 %v3388_v3  ;;  %19875 = vmatpush3.bf16.msra.mxu1 %v21102_v12  ;;  %v21133_v12 = vld [vmem:[#allocation15 + $0x60] sm:$0xff]  }
 0x446   : > { %20295 = vmatpush3.msra.mxu0 %v3388_v3  ;;  %19876 = vmatprep.subr.bf16.mxu1 %v21103_v13  ;;  %v25921_v3 = vld [vmem:[#allocation4 + $0x18] sm:$0xff] }
 0x447   : > { %20297 = vmatmul.mubr.msk.f32.vlgmr.msra.gmra.mxu0 %vm3394_vm0, %v3562_v14  ;;  %20299 = vmatprep.subr.bf16.mxu0 %v24846_v18  ;;  %v21132_v13 = vld [vmem:[#allocation15 + $0xa0] sm:$0xff]  }
 0x448   : > { %20300 = vmatpush3.bf16.msra.mxu0 %v21104_v15  ;;  %20315 = vmatprep.mubr.msk.bf16.mxu0 %vm24847_vm1, %v24846_v18  ;;  %v21134_v14 = vld [vmem:[#allocation15 + $0x20] sm:$0xff]   ;;  %v21136_v15 = vld [vmem:[#allocation15 + $0x58] sm:$0xff]  }
 0x449   : > { %19877 = vmatpush3.bf16.msra.mxu1 %v21105_v16  ;;  %20301 = vmatprep.subr.bf16.mxu0 %v24846_v18  ;;  %v21135_v16 = vld [vmem:[#allocation15 + $0x98] sm:$0xff]  }
 0x44a   : > { %19878 = vmatprep.subr.bf16.mxu1 %v21106_v17  ;;  %v21137_v17 = vld [vmem:[#allocation15 + $0x18] sm:$0xff]  }
 0x44c   : > { %20302 = vmatpush3.bf16.msra.mxu0 %v21107_v19  ;;  %v21139_v19 = vld [vmem:[#allocation15 + $0x50] sm:$0xff]  }
 0x44d   : > { %19879 = vmatpush3.bf16.msra.mxu1 %v21108_v20  ;;  %20303 = vmatprep.subr.bf16.mxu0 %v24846_v18  ;;  %v21138_v20 = vld [vmem:[#allocation15 + $0x90] sm:$0xff]  }
 0x44e   : > { %19880 = vmatprep.subr.bf16.mxu1 %v21109_v21  ;;  %v21140_v21 = vld [vmem:[#allocation15 + $0x10] sm:$0xff]  }
 0x450   : > { %20304 = vmatpush3.bf16.msra.mxu0 %v21110_v22  ;;  %v21141_v22 = vld [vmem:[#allocation15 + $0x88] sm:$0xff]  }
 0x451   : > { %19881 = vmatpush3.bf16.msra.mxu1 %v21111_v23  ;;  %20305 = vmatprep.subr.bf16.mxu0 %v24846_v18  ;;  %v21142_v23 = vld [vmem:[#allocation15 + $0x48] sm:$0xff]  }
 0x452   : > { %19882 = vmatprep.subr.bf16.mxu1 %v21112_v24  ;;  %v21143_v24 = vld [vmem:[#allocation15 + $0x8] sm:$0xff]  }
 0x454   : > { %20306 = vmatpush3.bf16.msra.mxu0 %v21113_v25  ;;  %v21144_v25 = vld [vmem:[#allocation15 + $0x80] sm:$0xff]  }
 0x455   : > { %19883 = vmatpush3.bf16.msra.mxu1 %v21114_v26  ;;  %20307 = vmatprep.subr.bf16.mxu0 %v24846_v18  ;;  %v21145_v26 = vld [vmem:[#allocation15 + $0x40] sm:$0xff]  }
 0x456   : > { %19884 = vmatprep.subr.bf16.mxu1 %v21115_v27  ;;  %v21146_v27 = vld [vmem:[#allocation15] sm:$0xff]  }
 0x458   : > { %20308 = vmatpush3.bf16.msra.mxu0 %v21116_v28 }
 0x459   : > { %19885 = vmatpush3.bf16.msra.mxu1 %v21117_v29  ;;  %20309 = vmatprep.subr.bf16.mxu0 %v24846_v18 }
 0x45a   : > { %19886 = vmatprep.subr.bf16.mxu1 %v21118_v30 }
 0x45c   : > { %20310 = vmatpush3.bf16.msra.mxu0 %v21119_v31 }
 0x45d   : > { %19887 = vmatpush3.bf16.msra.mxu1 %v21120_v32  ;;  %20311 = vmatprep.subr.bf16.mxu0 %v24846_v18 }
 0x460   : > { %20312 = vmatpush3.bf16.msra.mxu0 %v21121_v33 }
 0x461   : > { %20313 = vmatprep.subr.bf16.mxu0 %v24846_v18 }
 0x464   : > { %20314 = vmatpush3.bf16.msra.mxu0 %v21122_v34 }
 0x4fe   : > { %v20276_v35 = vpop.f32.mrf.mxu0  ;;  %v20287_v36 = vpop.f32.mrf.mxu1 }
 0x500   : > { %v3467_v37 = vpop.f32.mrf.mxu0  ;;  %v3551_v38 = vpop.f32.mrf.mxu1 }
 0x501   : > { %v3644_v39 = vpack.c.bf16 %v20276_v35, %v3467_v37  ;;  %v3645_v40 = vpack.c.bf16 %v20287_v36, %v3551_v38  ;;  %v22850_v37 = vld [vmem:[#allocation4] sm:$0xff] }
 0x503   : > { %3878 = vmatprep.mubr.bf16.mxu1 %v3645_v40 }
 0x504   : > { %3879 = vmatmul.mubr.bf16.vlgmr.msra.gmra.mxu1 %v3644_v39 }
 0x505   : > { %20323 = vmatprep.mubr.msk.f32.mxu1 %vm3932_vm2, %v3930_v44 }
 0x507   : > { %v20298_v41 = vpop.f32.mrf.mxu0 }
 0x509   : > { %v3635_v42 = vpop.f32.mrf.mxu0 }
 0x50a   : > { %v3646_v43 = vpack.c.bf16 %v20298_v41, %v3635_v42 }
 0x50c   : > { %20316 = vmatmul.mubr.bf16.vlgmr.msra.gmra.mxu0 %v3646_v43 }
 0x50d   : > { %20337 = vmatprep.mubr.msk.f32.mxu0 %vm3932_vm2, %v4099_v45  ;;  %v18518_v45 = vld [vmem:[#allocation16] ss:$0 sm:$0xff] }
 0x5c4   : > { %v19888_v46 = vpop.f32.mrf.mxu1 }
 0x5c6   : > { %v19889_v47 = vpop.f32.mrf.mxu1 }
 0x5c7   : > { %v19890_v50 = vadd.f32 %v19889_v47, %v19888_v46 }
 0x5c8   : > { %v19891_v48 = vpop.f32.mrf.mxu1 }
 0x5c9   : > { %v3881_v54 = vadd.f32 %v19890_v50, %v18487_v49 }
 0x5ca   : > { %v19892_v51 = vpop.f32.mrf.mxu1 }
 0x5cb   : > { %v19893_v52 = vadd.f32 %v19892_v51, %v19891_v48 }
 0x5cc   : > { %v3921_v53 = vpop.f32.mrf.mxu0 }
 0x5cd   : > { %v3884_v55 = vadd.f32 %v19893_v52, %v18487_v49  ;;  %v3922_v58 = vadd.f32 %v3921_v53, %v3881_v54 }
 0x5ce   : > { %v20317_v56 = vpop.f32.mrf.mxu0 }
 0x5cf   : > { %v3928_v63 = vmax.f32 %v3922_v58, 0.0  ;;  %v21147_v56 = vld [vmem:[%s26909_s7 + $0x70] ss:$8 sps:$4 sm:$0xff]  }
 0x5d0   : > { %v3924_v57 = vpop.f32.mrf.mxu0  ;;  %v22851_v58 = vld [vmem:[#allocation4 + $0x20] sm:$0xff] }
 0x5d1   : > { %v3925_v59 = vadd.f32 %v3924_v57, %v3884_v55  ;;  %v21149_v55 = vld [vmem:[%s26909_s7 + $0x74] ss:$8 sps:$4 sm:$0xff]   ;;  %v21152_v57 = vld [vmem:[%s26909_s7 + $0x64] ss:$8 sps:$4 sm:$0xff]  }
 0x5d2   : > { %v20318_v60 = vpop.f32.mrf.mxu0 }
 0x5d3   : > { %v3929_v61 = vmax.f32 %v3925_v59, 0.0  ;;  %v21176_v59 = vld [vmem:[%s26909_s7 + $0x174] ss:$8 sps:$4 sm:$0xff]   ;;  %v21174_v60 = vld [vmem:[%s26909_s7 + $0x170] ss:$8 sps:$4 sm:$0xff]  }
 0x5d5   : > { %20319 = vmatprep.subr.mxu1 %v3929_v61  ;;  %20333 = vmatprep.subr.mxu0 %v3929_v61 }
 0x5d6   : > { %20320 = vmatpush3.msra.mxu1 %v3929_v61  ;;  %20334 = vmatpush3.msra.mxu0 %v3929_v61 }
 0x5d7   : > { %20321 = vmatprep.subr.mxu1 %v3928_v63  ;;  %20335 = vmatprep.subr.mxu0 %v3928_v63 }
 0x5d8   : > { %20322 = vmatpush3.msra.mxu1 %v3928_v63  ;;  %20336 = vmatpush3.msra.mxu0 %v3928_v63 }
 0x5d9   : > { %20324 = vmatmul.mubr.msk.f32.vlgmr.msra.gmra.mxu1 %vm3932_vm2, %v25915_v62  ;;  %20326 = vmatprep.subr.mxu1 %v3929_v61 }
 0x5da   : > { %20327 = vmatpush3.msra.mxu1 %v3929_v61  ;;  %20330 = vmatprep.mubr.msk.f32.mxu1 %vm3932_vm2, %v25917_v0  ;;  %v21150_v61 = vld [vmem:[%s26909_s7 + $0x60] ss:$8 sps:$4 sm:$0xff]  }
 0x5db   : > { %20328 = vmatprep.subr.mxu1 %v3928_v63  ;;  %20338 = vmatmul.mubr.msk.f32.vlgmr.msra.gmra.mxu0 %vm3932_vm2, %v25919_v1 }
 0x5dc   : > { %20329 = vmatpush3.msra.mxu1 %v3928_v63  ;;  %20340 = vmatprep.subr.bf16.mxu0 %v24846_v18  ;;  %v21155_v63 = vld [vmem:[%s26909_s7 + $0x54] ss:$8 sps:$4 sm:$0xff]  }
 0x5dd   : > { %20331 = vmatmul.mubr.msk.f32.vlgmr.msra.gmra.mxu1 %vm3932_vm2, %v25921_v3  ;;  %20341 = vmatpush3.bf16.msra.mxu0 %v21123_v2  ;;  %v21153_v2 = vld [vmem:[%s26909_s7 + $0x50] ss:$8 sps:$4 sm:$0xff]  }
 0x5de   : > { %19915 = vmatprep.subr.bf16.mxu1 %v21124_v4  ;;  %20342 = vmatprep.subr.bf16.mxu0 %v24846_v18  ;;  %v21158_v4 = vld [vmem:[%s26909_s7 + $0x44] ss:$8 sps:$4 sm:$0xff]  }
 0x5df   : > { %19916 = vmatpush3.bf16.msra.mxu1 %v21125_v5  ;;  %20356 = vmatprep.mubr.msk.bf16.mxu0 %vm24847_vm1, %v24846_v18  ;;  %v21186_v5 = vld [vmem:[%s26909_s7 + $0x150] ss:$8 sps:$4 sm:$0xff]  }
 0x5e0   : > { %19917 = vmatprep.subr.bf16.mxu1 %v21127_v6  ;;  %v21156_v6 = vld [vmem:[%s26909_s7 + $0x40] ss:$8 sps:$4 sm:$0xff]  }
 0x5e1   : > { %20343 = vmatpush3.bf16.msra.mxu0 %v21126_v7  ;;  %v21161_v7 = vld [vmem:[%s26909_s7 + $0x34] ss:$8 sps:$4 sm:$0xff]  }
 0x5e2   : > { %20344 = vmatprep.subr.bf16.mxu0 %v24846_v18 }
 0x5e3   : > { %19918 = vmatpush3.bf16.msra.mxu1 %v21128_v8  ;;  %v21192_v8 = vld [vmem:[%s26909_s7 + $0x140] ss:$8 sps:$4 sm:$0xff]  }
 0x5e4   : > { %19919 = vmatprep.subr.bf16.mxu1 %v21130_v9  ;;  %v21159_v9 = vld [vmem:[%s26909_s7 + $0x30] ss:$8 sps:$4 sm:$0xff]  }
 0x5e5   : > { %20345 = vmatpush3.bf16.msra.mxu0 %v21129_v10  ;;  %v21200_v10 = vld [vmem:[%s26909_s7 + $0x134] ss:$8 sps:$4 sm:$0xff]  }
 0x5e6   : > { %20346 = vmatprep.subr.bf16.mxu0 %v24846_v18 }
 0x5e7   : > { %19920 = vmatpush3.bf16.msra.mxu1 %v21131_v11  ;;  %v21164_v11 = vld [vmem:[%s26909_s7 + $0x24] ss:$8 sps:$4 sm:$0xff]  }
 0x5e8   : > { %19921 = vmatprep.subr.bf16.mxu1 %v21133_v12  ;;  %v21198_v12 = vld [vmem:[%s26909_s7 + $0x130] ss:$8 sps:$4 sm:$0xff]  }
 0x5e9   : > { %20347 = vmatpush3.bf16.msra.mxu0 %v21132_v13  ;;  %v21162_v13 = vld [vmem:[%s26909_s7 + $0x20] ss:$8 sps:$4 sm:$0xff]  }
 0x5ea   : > { %20348 = vmatprep.subr.bf16.mxu0 %v24846_v18 }
 0x5eb   : > { %19922 = vmatpush3.bf16.msra.mxu1 %v21134_v14  ;;  %v21206_v14 = vld [vmem:[%s26909_s7 + $0x124] ss:$8 sps:$4 sm:$0xff]  }
 0x5ec   : > { %19923 = vmatprep.subr.bf16.mxu1 %v21136_v15  ;;  %v21167_v15 = vld [vmem:[%s26909_s7 + $0x14] ss:$8 sps:$4 sm:$0xff]  }
 0x5ed   : > { %20349 = vmatpush3.bf16.msra.mxu0 %v21135_v16  ;;  %v21204_v16 = vld [vmem:[%s26909_s7 + $0x120] ss:$8 sps:$4 sm:$0xff]  }
 0x5ee   : > { %20350 = vmatprep.subr.bf16.mxu0 %v24846_v18 }
 0x5ef   : > { %19924 = vmatpush3.bf16.msra.mxu1 %v21137_v17  ;;  %v21165_v17 = vld [vmem:[%s26909_s7 + $0x10] ss:$8 sps:$4 sm:$0xff]  }
 0x5f0   : > { %19925 = vmatprep.subr.bf16.mxu1 %v21139_v19  ;;  %v21170_v19 = vld [vmem:[%s26909_s7 + $0x4] ss:$8 sps:$4 sm:$0xff]  }
 0x5f1   : > { %20351 = vmatpush3.bf16.msra.mxu0 %v21138_v20  ;;  %v21168_v20 = vld [vmem:[%s26909_s7] ss:$8 sps:$4 sm:$0xff]  }
 0x5f2   : > { %20352 = vmatprep.subr.bf16.mxu0 %v24846_v18 }
 0x5f3   : > { %19926 = vmatpush3.bf16.msra.mxu1 %v21140_v21  ;;  %v21173_v21 = vld [vmem:[%s26909_s7 + $0xf4] ss:$8 sps:$4 sm:$0xff]  }
 0x5f4   : > { %19927 = vmatprep.subr.bf16.mxu1 %v21142_v23  ;;  %v21179_v23 = vld [vmem:[%s26909_s7 + $0xe4] ss:$8 sps:$4 sm:$0xff]  }
 0x5f5   : > { %20353 = vmatpush3.bf16.msra.mxu0 %v21141_v22  ;;  %v21171_v22 = vld [vmem:[%s26909_s7 + $0xf0] ss:$8 sps:$4 sm:$0xff]  }
 0x5f6   : > { %20354 = vmatprep.subr.bf16.mxu0 %v24846_v18 }
 0x5f7   : > { %19928 = vmatpush3.bf16.msra.mxu1 %v21143_v24  ;;  %v21177_v24 = vld [vmem:[%s26909_s7 + $0xe0] ss:$8 sps:$4 sm:$0xff]  }
 0x5f8   : > { %19929 = vmatprep.subr.bf16.mxu1 %v21145_v26  ;;  %v21183_v26 = vld [vmem:[%s26909_s7 + $0xd0] ss:$8 sps:$4 sm:$0xff]  }
 0x5f9   : > { %20355 = vmatpush3.bf16.msra.mxu0 %v21144_v25  ;;  %v21185_v25 = vld [vmem:[%s26909_s7 + $0xd4] ss:$8 sps:$4 sm:$0xff]  }
 0x5fb   : > { %19930 = vmatpush3.bf16.msra.mxu1 %v21146_v27  ;;  %v21191_v27 = vld [vmem:[%s26909_s7 + $0xc4] ss:$8 sps:$4 sm:$0xff]  }
 0x699   : > { %v20325_v28 = vpop.f32.mrf.mxu1 }
 0x69b   : > { %v4005_v29 = vpop.f32.mrf.mxu1  ;;  %v20339_v30 = vpop.f32.mrf.mxu0 }
 0x69c   : > { %v4182_v36 = vpack.c.bf16 %v20325_v28, %v4005_v29  ;;  %v21189_v28 = vld [vmem:[%s26909_s7 + $0xc0] ss:$8 sps:$4 sm:$0xff]   ;;  %v21197_v29 = vld [vmem:[%s26909_s7 + $0xb4] ss:$8 sps:$4 sm:$0xff]  }
 0x69d   : > { %v20332_v31 = vpop.f32.mrf.mxu1  ;;  %v4173_v32 = vpop.f32.mrf.mxu0 }
 0x69e   : > { %v4184_v33 = vpack.c.bf16 %v20339_v30, %v4173_v32  ;;  %v21195_v30 = vld [vmem:[%s26909_s7 + $0xb0] ss:$8 sps:$4 sm:$0xff]   ;;  %v21201_v32 = vld [vmem:[%s26909_s7 + $0xa0] ss:$8 sps:$4 sm:$0xff]  }
 0x69f   : > { %v4089_v34 = vpop.f32.mrf.mxu1 }
 0x6a0   : > { %v4183_v35 = vpack.c.bf16 %v20332_v31, %v4089_v34  ;;  %20357 = vmatmul.mubr.bf16.vlgmr.msra.gmra.mxu0 %v4184_v33  ;;  %v21203_v31 = vld [vmem:[%s26909_s7 + $0xa4] ss:$8 sps:$4 sm:$0xff]   ;;  %v21209_v33 = vld [vmem:[%s26909_s7 + $0x94] ss:$8 sps:$4 sm:$0xff]   ;;  %v21207_v34 = vld [vmem:[%s26909_s7 + $0x90] ss:$8 sps:$4 sm:$0xff]  }
 0x6a1   : > { %20371 = vmatprep.mubr.msk.f32.mxu0 %vm3932_vm2, %v25917_v0  ;;  %v21180_v0 = vld [vmem:[%s26909_s7 + $0x160] ss:$8 sps:$4 sm:$0xff]  }
 0x6a2   : > { %4416 = vmatprep.mubr.bf16.mxu1 %v4183_v35  ;;  %v21210_v35 = vld [vmem:[%s26909_s7 + $0x110] ss:$8 sps:$4 sm:$0xff]  }
 0x6a3   : > { %4417 = vmatmul.mubr.bf16.vlgmr.msra.gmra.mxu1 %v4182_v36  ;;  %v21212_v36 = vld [vmem:[%s26909_s7 + $0x114] ss:$8 sps:$4 sm:$0xff]  }
 0x6a4   : > { %20364 = vmatprep.mubr.msk.f32.mxu1 %vm3932_vm2, %v22850_v37  ;;  %v21215_v37 = vld [vmem:[%s26909_s7 + $0x84] ss:$8 sps:$4 sm:$0xff]  }
 0x760   : > { %v4459_v38 = vpop.f32.mrf.mxu0 }
 0x762   : > { %v20358_v39 = vpop.f32.mrf.mxu0 }
 0x763   : > { %v19931_v40 = vpop.f32.mrf.mxu1  ;;  %v21218_v39 = vld [vmem:[%s26909_s7 + $0x104] ss:$8 sps:$4 sm:$0xff]  }
 0x764   : > { %v4462_v41 = vpop.f32.mrf.mxu0 }
 0x765   : > { %v19932_v42 = vpop.f32.mrf.mxu1 }
 0x766   : > { %v19933_v43 = vadd.f32 %v19932_v42, %v19931_v40  ;;  %v20359_v44 = vpop.f32.mrf.mxu0  ;;  %v21216_v40 = vld [vmem:[%s26909_s7 + $0x100] ss:$8 sps:$4 sm:$0xff]  }
 0x767   : > { %v19934_v46 = vpop.f32.mrf.mxu1 }
 0x768   : > { %v4419_v48 = vadd.f32 %v19933_v43, %v18518_v45 }
 0x769   : > { %v19935_v47 = vpop.f32.mrf.mxu1 }
 0x76a   : > { %v19936_v49 = vadd.f32 %v19935_v47, %v19934_v46  ;;  %v4460_v51 = vadd.f32 %v4459_v38, %v4419_v48  ;;  %v21213_v38 = vld [vmem:[%s26909_s7 + $0x80] ss:$8 sps:$4 sm:$0xff]  }
 0x76c   : > { %v4422_v50 = vadd.f32 %v19936_v49, %v18518_v45  ;;  %v4466_v54 = vmax.f32 %v4460_v51, 0.0  ;;  %v18631_v51 = vld [vmem:[%s26910_s26 + $0x1f8] sm:$0xff] }
 0x76e   : > { %v4463_v52 = vadd.f32 %v4462_v41, %v4422_v50  ;;  %v24848_v41 = vmov 0  }
 0x770   : > { %v4467_v53 = vmax.f32 %v4463_v52, 0.0  ;;  %v18615_v52 = vld [vmem:[%s26910_s26 + $0x178] sm:$0xff] }
 0x772   : > { %20360 = vmatprep.subr.mxu1 %v4467_v53  ;;  %20367 = vmatprep.subr.mxu0 %v4467_v53 }
 0x773   : > { %20361 = vmatpush3.msra.mxu1 %v4467_v53  ;;  %20368 = vmatpush3.msra.mxu0 %v4467_v53 }
 0x774   : > { %20362 = vmatprep.subr.mxu1 %v4466_v54  ;;  %20369 = vmatprep.subr.mxu0 %v4466_v54 }
 0x775   : > { %20363 = vmatpush3.msra.mxu1 %v4466_v54  ;;  %20370 = vmatpush3.msra.mxu0 %v4466_v54 }
 0x776   : > { %20365 = vmatmul.mubr.msk.f32.vlgmr.msra.gmra.mxu1 %vm3932_vm2, %v25915_v62  ;;  %20372 = vmatmul.mubr.msk.f32.vlgmr.msra.gmra.mxu0 %vm3932_vm2, %v25921_v3  ;;  %v21182_v62 = vld [vmem:[%s26909_s7 + $0x164] ss:$8 sps:$4 sm:$0xff]   ;;  %v21188_v3 = vld [vmem:[%s26909_s7 + $0x154] ss:$8 sps:$4 sm:$0xff]  }
 0x777   : > { %20374 = vmatprep.subr.mxu1 %v4467_v53  ;;  %20378 = vmatprep.mubr.msk.f32.mxu1 %vm3932_vm2, %v22851_v58  ;;  %v18612_v58 = vld [vmem:[%s26910_s26 + $0x160] sm:$0xff] }
 0x778   : > { %20375 = vmatpush3.msra.mxu1 %v4467_v53  ;;  %4996 = vmatprep.subr.bf16.mxu0 %v21149_v55  ;;  %v18630_v53 = vld [vmem:[%s26910_s26 + $0x1f0] sm:$0xff]  ;;  %v18629_v55 = vld [vmem:[%s26910_s26 + $0x1e8] sm:$0xff] }
 0x779   : > { %20376 = vmatprep.subr.mxu1 %v4466_v54  ;;  %4997 = vmatpush1.bf16.msra.mxu0 %v21147_v56  ;;  %v18613_v56 = vld [vmem:[%s26910_s26 + $0x168] sm:$0xff] }
 0x77a   : > { %20377 = vmatpush3.msra.mxu1 %v4466_v54  ;;  %4998 = vmatprep.subr.bf16.mxu0 %v21152_v57  ;;  %v18614_v54 = vld [vmem:[%s26910_s26 + $0x170] sm:$0xff]  ;;  %v18628_v57 = vld [vmem:[%s26910_s26 + $0x1e0] sm:$0xff] }
 0x77b   : > { %20379 = vmatmul.mubr.msk.f32.vlgmr.msra.gmra.mxu1 %vm3932_vm2, %v25919_v1  ;;  %5039 = vmatprep.subr.bf16.mxu1 %v21176_v59  ;;  %v21194_v1 = vld [vmem:[%s26909_s7 + $0x144] ss:$8 sps:$4 sm:$0xff]   ;;  %v18627_v59 = vld [vmem:[%s26910_s26 + $0x1d8] sm:$0xff] }
 0x77c   : > { %5040 = vmatpush1.bf16.msra.mxu1 %v21174_v60  ;;  %5071 = vmatprep.mubr.bf16.mxu1 %v24848_v41  ;;  %v18611_v60 = vld [vmem:[%s26910_s26 + $0x158] sm:$0xff] }
 0x77d   : > { %4999 = vmatpush1.bf16.msra.mxu0 %v21150_v61  ;;  %5041 = vmatprep.subr.bf16.mxu1 %v21182_v62  ;;  %v18626_v61 = vld [vmem:[%s26910_s26 + $0x1d0] sm:$0xff] }
 0x77e   : > { %5000 = vmatprep.subr.bf16.mxu0 %v21155_v63  ;;  %v18610_v62 = vld [vmem:[%s26910_s26 + $0x150] sm:$0xff]  ;;  %v18625_v63 = vld [vmem:[%s26910_s26 + $0x1c8] sm:$0xff] }
 0x780   : > { %5042 = vmatpush1.bf16.msra.mxu1 %v21180_v0  ;;  %v18609_v0 = vld [vmem:[%s26910_s26 + $0x148] sm:$0xff] }
 0x781   : > { %5001 = vmatpush1.bf16.msra.mxu0 %v21153_v2  ;;  %5043 = vmatprep.subr.bf16.mxu1 %v21188_v3  ;;  %v18624_v2 = vld [vmem:[%s26910_s26 + $0x1c0] sm:$0xff] }
 0x782   : > { %5002 = vmatprep.subr.bf16.mxu0 %v21158_v4  ;;  %v18608_v3 = vld [vmem:[%s26910_s26 + $0x140] sm:$0xff]  ;;  %v18623_v4 = vld [vmem:[%s26910_s26 + $0x1b8] sm:$0xff] }
 0x784   : > { %5044 = vmatpush1.bf16.msra.mxu1 %v21186_v5  ;;  %v18607_v5 = vld [vmem:[%s26910_s26 + $0x138] sm:$0xff] }
 0x785   : > { %5003 = vmatpush1.bf16.msra.mxu0 %v21156_v6  ;;  %5045 = vmatprep.subr.bf16.mxu1 %v21194_v1  ;;  %v4746_v6 = vlaneseq }
 0x786   : > { %5004 = vmatprep.subr.bf16.mxu0 %v21161_v7 }
 0x787   : > { %v4747_v1 = vshrl.u32 %v4746_v6, 7  ;;  %v18619_v6 = vld [vmem:[%s26910_s26 + $0x198] sm:$0xff] }
 0x788   : > { %5046 = vmatpush1.bf16.msra.mxu1 %v21192_v8 }
 0x789   : > { %5005 = vmatpush1.bf16.msra.mxu0 %v21159_v9  ;;  %5047 = vmatprep.subr.bf16.mxu1 %v21200_v10  ;;  %v26019_v7 = vsub.s32 1, %v4747_v1  ;;  %v26021_v8 = vsub.s32 0, %v4747_v1  ;;  %v4744_v10 = vld [vmem:[#allocation18] sm:$0x3]  ;;  %v5335_v1 = vld [vmem:[%s26910_s26 + $0x90] sm:$0xff] }
 0x78a   : > { %5006 = vmatprep.subr.bf16.mxu0 %v21164_v11 }
 0x78c   : > { %5048 = vmatpush1.bf16.msra.mxu1 %v21198_v12  ;;  %v4753_v12 = vrot.slane %v4744_v10, %v26019_v7 }
 0x78d   : > { %5007 = vmatpush1.bf16.msra.mxu0 %v21162_v13  ;;  %5049 = vmatprep.subr.bf16.mxu1 %v21206_v14  ;;  %v4749_v13 = vrot.slane %v4744_v10, %v26021_v8  ;;  %v5319_v10 = vld [vmem:[%s26910_s26 + $0x10] sm:$0xff] }
 0x78e   : > { %5008 = vmatprep.subr.bf16.mxu0 %v21167_v15 }
 0x790   : > { %5050 = vmatpush1.bf16.msra.mxu1 %v21204_v16 }
 0x791   : > { %5009 = vmatpush1.bf16.msra.mxu0 %v21165_v17  ;;  %5051 = vmatprep.subr.bf16.mxu1 %v21212_v36  ;;  %v5348_v36 = vld [vmem:[%s26910_s26 + $0xf8] sm:$0xff] }
 0x792   : > { %5010 = vmatprep.subr.bf16.mxu0 %v21170_v19 }
 0x794   : > { %5052 = vmatpush1.bf16.msra.mxu1 %v21210_v35  ;;  %v5240_v35 = vld [vmem:[#allocation6 + $0x10] sm:$0xff] }
 0x795   : > { %5011 = vmatpush1.bf16.msra.mxu0 %v21168_v20  ;;  %5053 = vmatprep.subr.bf16.mxu1 %v21218_v39  ;;  %v5331_v39 = vld [vmem:[%s26910_s26 + $0x70] sm:$0xff] }
 0x796   : > { %5012 = vmatprep.subr.bf16.mxu0 %v21173_v21 }
 0x798   : > { %5054 = vmatpush1.bf16.msra.mxu1 %v21216_v40  ;;  %v5346_v40 = vld [vmem:[%s26910_s26 + $0xe8] sm:$0xff] }
 0x799   : > { %5013 = vmatpush2.bf16.msra.mxu0 %v21171_v22 }
 0x79a   : > { %5014 = vmatprep.subr.bf16.mxu0 %v21179_v23 }
 0x79d   : > { %5015 = vmatpush2.bf16.msra.mxu0 %v21177_v24 }
 0x79e   : > { %5016 = vmatprep.subr.bf16.mxu0 %v21185_v25 }
 0x7a1   : > { %5017 = vmatpush2.bf16.msra.mxu0 %v21183_v26 }
 0x7a2   : > { %5018 = vmatprep.subr.bf16.mxu0 %v21191_v27 }
 0x7a5   : > { %5019 = vmatpush2.bf16.msra.mxu0 %v21189_v28 }
 0x7a6   : > { %5020 = vmatprep.subr.bf16.mxu0 %v21197_v29 }
 0x7a9   : > { %5021 = vmatpush2.bf16.msra.mxu0 %v21195_v30 }
 0x7aa   : > { %5022 = vmatprep.subr.bf16.mxu0 %v21203_v31 }
 0x7ad   : > { %5023 = vmatpush2.bf16.msra.mxu0 %v21201_v32 }
 0x7ae   : > { %5024 = vmatprep.subr.bf16.mxu0 %v21209_v33  ;;  %v5086_v33 = vld [vmem:[#allocation6] sm:$0xff] }
 0x7b1   : > { %5025 = vmatpush2.bf16.msra.mxu0 %v21207_v34  ;;  %v5162_v34 = vld [vmem:[#allocation6 + $0x8] sm:$0xff] }
 0x7b2   : > { %5026 = vmatprep.subr.bf16.mxu0 %v21215_v37  ;;  %v5332_v37 = vld [vmem:[%s26910_s26 + $0x78] sm:$0xff] }
 0x7b5   : > { %5027 = vmatpush2.bf16.msra.mxu0 %v21213_v38  ;;  %v5347_v38 = vld [vmem:[%s26910_s26 + $0xf0] sm:$0xff] }
 0x7b6   : > { %19993 = vmatprep.subr.mxu0 %v18631_v51  ;;  %v5341_v51 = vld [vmem:[%s26910_s26 + $0xc0] sm:$0xff] }
 0x836   : > { %v20366_v42 = vpop.f32.mrf.mxu1  ;;  %v20373_v43 = vpop.f32.mrf.mxu0 }
 0x838   : > { %v4534_v44 = vpop.f32.mrf.mxu1  ;;  %v4609_v45 = vpop.f32.mrf.mxu0 }
 0x839   : > { %v4693_v46 = vpack.c.bf16 %v20366_v42, %v4534_v44  ;;  %v4694_v47 = vpack.c.bf16 %v20373_v43, %v4609_v45  ;;  %v5330_v42 = vld [vmem:[%s26910_s26 + $0x68] sm:$0xff]  ;;  %v5345_v43 = vld [vmem:[%s26910_s26 + $0xe0] sm:$0xff]  ;;  %v5344_v45 = vld [vmem:[%s26910_s26 + $0xd8] sm:$0xff] }
 0x83a   : > { %v5329_v44 = vld [vmem:[%s26910_s26 + $0x60] sm:$0xff] }
 0x83b   : > { %v20380_v48 = vpop.f32.mrf.mxu1  ;;  %5028 = vmatprep.mubr.bf16.mxu0 %v4694_v47  ;;  %v5343_v47 = vld [vmem:[%s26910_s26 + $0xd0] sm:$0xff] }
 0x83c   : > { %5029 = vmatmul.mubr.bf16.vlgmr.msra.gmra.mxu0 %v4693_v46  ;;  %v5328_v46 = vld [vmem:[%s26910_s26 + $0x58] sm:$0xff] }
 0x83d   : > { %v4684_v49 = vpop.f32.mrf.mxu1  ;;  %19994 = vmatpush3.msra.mxu0 %v18615_v52  ;;  %v5325_v52 = vld [vmem:[%s26910_s26 + $0x40] sm:$0xff] }
 0x83e   : > { %v4695_v50 = vpack.c.bf16 %v20380_v48, %v4684_v49  ;;  %19995 = vmatprep.subr.mxu0 %v18630_v53  ;;  %v5327_v48 = vld [vmem:[%s26910_s26 + $0x50] sm:$0xff]  ;;  %v5342_v49 = vld [vmem:[%s26910_s26 + $0xc8] sm:$0xff]  ;;  %v5340_v53 = vld [vmem:[%s26910_s26 + $0xb8] sm:$0xff] }
 0x83f   : > { %19996 = vmatpush3.msra.mxu0 %v18614_v54  ;;  %v5324_v54 = vld [vmem:[%s26910_s26 + $0x38] sm:$0xff] }
 0x840   : > { %5072 = vmatmul.mubr.bf16.vlgmr.msra.gmra.mxu1 %v4695_v50  ;;  %19997 = vmatprep.subr.mxu0 %v18629_v55  ;;  %v5326_v50 = vld [vmem:[%s26910_s26 + $0x48] sm:$0xff]  ;;  %v5339_v55 = vld [vmem:[%s26910_s26 + $0xb0] sm:$0xff] }
 0x841   : > { %5154 = vmatprep.mubr.f32.mxu1 %v24846_v18  ;;  %19998 = vmatpush3.msra.mxu0 %v18613_v56  ;;  %v5323_v56 = vld [vmem:[%s26910_s26 + $0x30] sm:$0xff] }
 0x842   : > { %19999 = vmatprep.subr.mxu0 %v18628_v57  ;;  %v18622_v57 = vld [vmem:[%s26910_s26 + $0x1b0] sm:$0xff] }
 0x843   : > { %20000 = vmatpush3.msra.mxu0 %v18612_v58  ;;  %v5338_v58 = vld [vmem:[%s26910_s26 + $0xa8] sm:$0xff] }
 0x844   : > { %20001 = vmatprep.subr.mxu0 %v18627_v59  ;;  %v18606_v59 = vld [vmem:[%s26910_s26 + $0x130] sm:$0xff] }
 0x845   : > { %20002 = vmatpush3.msra.mxu0 %v18611_v60  ;;  %v5322_v60 = vld [vmem:[%s26910_s26 + $0x28] sm:$0xff] }
 0x846   : > { %20003 = vmatprep.subr.mxu0 %v18626_v61  ;;  %v18621_v61 = vld [vmem:[%s26910_s26 + $0x1a8] sm:$0xff] }
 0x847   : > { %20004 = vmatpush3.msra.mxu0 %v18610_v62  ;;  %v5337_v62 = vld [vmem:[%s26910_s26 + $0xa0] sm:$0xff] }
 0x848   : > { %20005 = vmatprep.subr.mxu0 %v18625_v63  ;;  %v18605_v63 = vld [vmem:[%s26910_s26 + $0x128] sm:$0xff] }
 0x849   : > { %20006 = vmatpush3.msra.mxu0 %v18609_v0  ;;  %v5321_v0 = vld [vmem:[%s26910_s26 + $0x20] sm:$0xff] }
 0x84a   : > { %20007 = vmatprep.subr.mxu0 %v18624_v2  ;;  %v18620_v2 = vld [vmem:[%s26910_s26 + $0x1a0] sm:$0xff] }
 0x84b   : > { %20008 = vmatpush3.msra.mxu0 %v18608_v3  ;;  %v5336_v3 = vld [vmem:[%s26910_s26 + $0x98] sm:$0xff] }
 0x84c   : > { %20009 = vmatprep.subr.mxu0 %v18623_v4  ;;  %v18604_v4 = vld [vmem:[%s26910_s26 + $0x120] sm:$0xff] }
 0x84d   : > { %20010 = vmatpush3.msra.mxu0 %v18607_v5  ;;  %v5320_v5 = vld [vmem:[%s26910_s26 + $0x18] sm:$0xff] }
 0x84e   : > { %20011 = vmatprep.subr.mxu0 %v18622_v57  ;;  %v18651_v57 = vld [vmem:[%s26910_s26 + $0x298] sm:$0xff] }
 0x84f   : > { %20012 = vmatpush3.msra.mxu0 %v18606_v59  ;;  %v18650_v59 = vld [vmem:[%s26910_s26 + $0x290] sm:$0xff] }
 0x850   : > { %20013 = vmatprep.subr.mxu0 %v18621_v61  ;;  %v18649_v61 = vld [vmem:[%s26910_s26 + $0x288] sm:$0xff] }
 0x851   : > { %20014 = vmatpush3.msra.mxu0 %v18605_v63  ;;  %v18648_v63 = vld [vmem:[%s26910_s26 + $0x280] sm:$0xff] }
 0x852   : > { %20015 = vmatprep.subr.mxu0 %v18620_v2  ;;  %v21219_v2 = vld [vmem:[#allocation19 + $0x38] sm:$0xff]  }
 0x853   : > { %20016 = vmatpush3.msra.mxu0 %v18604_v4  ;;  %v21221_v4 = vld [vmem:[#allocation19 + $0x28] sm:$0xff]  }
 0x854   : > { %20017 = vmatprep.subr.mxu0 %v18619_v6  ;;  %v21223_v6 = vld [vmem:[#allocation19 + $0x18] sm:$0xff]  }
 0x8fc   : > { %v5030_v9 = vpop.f32.mrf.mxu0 }
 0x8fd   : > { %v5031_v22 = vadd.f32 %v5030_v9, %v4749_v13  ;;  %v18603_v9 = vld [vmem:[%s26910_s26 + $0x118] sm:$0xff] }
 0x8fe   : > { %v5032_v11 = vpop.f32.mrf.mxu0  ;;  %20018 = vmatpush3.msra.mxu0 %v18603_v9  ;;  %v21225_v9 = vld [vmem:[#allocation19 + $0x8] sm:$0xff]  }
 0x8ff   : > { %v5033_v20 = vadd.f32 %v5032_v11, %v4753_v12  ;;  %v18618_v11 = vld [vmem:[%s26910_s26 + $0x190] sm:$0xff] }
 0x900   : > { %v5073_v14 = vpop.f32.mrf.mxu1  ;;  %v5034_v15 = vpop.f32.mrf.mxu0  ;;  %20019 = vmatprep.subr.mxu0 %v18618_v11 }
 0x901   : > { %v5035_v16 = vadd.f32 %v5034_v15, %v4749_v13  ;;  %v5074_v28 = vadd.f32 %v5073_v14, %v5031_v22  ;;  %v18602_v13 = vld [vmem:[%s26910_s26 + $0x110] sm:$0xff]  ;;  %v5318_v14 = vld [vmem:[%s26910_s26 + $0x8] sm:$0xff]  ;;  %v18663_v22 = vld [vmem:[%s26910_s26 + $0x2f8] sm:$0xff] }
 0x902   : > { %v5075_v17 = vpop.f32.mrf.mxu1  ;;  %v5036_v19 = vpop.f32.mrf.mxu0  ;;  %20020 = vmatpush3.msra.mxu0 %v18602_v13  ;;  %v18617_v15 = vld [vmem:[%s26910_s26 + $0x188] sm:$0xff] }
 0x903   : > { %v5037_v21 = vadd.f32 %v5036_v19, %v4753_v12  ;;  %v5076_v26 = vadd.f32 %v5075_v17, %v5033_v20  ;;  %v5082_v32 = vmax.f32 %v5074_v28, 0.0  ;;  %v5334_v12 = vld [vmem:[%s26910_s26 + $0x88] sm:$0xff]  ;;  %20021 = vmatprep.subr.mxu0 %v18617_v15  ;;  %v5317_v19 = vld [vmem:[%s26910_s26] sm:$0xff] }
 0x904   : > { %v5077_v23 = vpop.f32.mrf.mxu1  ;;  %v18601_v17 = vld [vmem:[%s26910_s26 + $0x108] sm:$0xff]  ;;  %v18616_v20 = vld [vmem:[%s26910_s26 + $0x180] sm:$0xff] }
 0x905   : > { %v5078_v24 = vadd.f32 %v5077_v23, %v5035_v16  ;;  %v5083_v31 = vmax.f32 %v5076_v26, 0.0  ;;  %v5333_v16 = vld [vmem:[%s26910_s26 + $0x80] sm:$0xff]  ;;  %20022 = vmatpush3.msra.mxu0 %v18601_v17 }
 0x906   : > { %v5079_v25 = vpop.f32.mrf.mxu1  ;;  %20023 = vmatprep.subr.mxu0 %v18616_v20 }
 0x907   : > { %v5080_v27 = vadd.f32 %v5079_v25, %v5037_v21  ;;  %v5084_v30 = vmax.f32 %v5078_v24, 0.0  ;;  %v18600_v21 = vld [vmem:[%s26910_s26 + $0x100] sm:$0xff] }
 0x908   : > { %20024 = vmatpush3.msra.mxu0 %v18600_v21 }
 0x909   : > { %v5085_v29 = vmax.f32 %v5080_v27, 0.0  ;;  %20381 = vmatprep.subr.bf16.mxu0 %v24846_v18 }
 0x90b   : > { %5118 = vmatprep.subr.mxu1 %v5085_v29 }
 0x90c   : > { %5119 = vmatpush1.msra.mxu1 %v5084_v30 }
 0x90d   : > { %5120 = vmatprep.subr.mxu1 %v5083_v31 }
 0x90e   : > { %5121 = vmatpush1.msra.mxu1 %v5082_v32 }
 0x90f   : > { %18597 = vmatmul.mubr.msk.f32.vlgmr.msra.gmra.mxu1 %vm3932_vm2, %v5086_v33  ;;  %5194 = vmatprep.subr.mxu1 %v5085_v29  ;;  %v18647_v33 = vld [vmem:[%s26910_s26 + $0x278] sm:$0xff] }
 0x910   : > { %5195 = vmatpush1.msra.mxu1 %v5084_v30  ;;  %5230 = vmatprep.mubr.f32.mxu1 %v24846_v18 }
 0x911   : > { %5196 = vmatprep.subr.mxu1 %v5083_v31 }
 0x912   : > { %5197 = vmatpush1.msra.mxu1 %v5082_v32 }
 0x913   : > { %18598 = vmatmul.mubr.msk.f32.vlgmr.msra.gmra.mxu1 %vm3932_vm2, %v5162_v34  ;;  %5272 = vmatprep.subr.mxu1 %v5085_v29  ;;  %v18662_v34 = vld [vmem:[%s26910_s26 + $0x2f0] sm:$0xff] }
 0x914   : > { %5273 = vmatpush1.msra.mxu1 %v5084_v30  ;;  %5308 = vmatprep.mubr.f32.mxu1 %v24846_v18 }
 0x915   : > { %5274 = vmatprep.subr.mxu1 %v5083_v31 }
 0x916   : > { %5275 = vmatpush1.msra.mxu1 %v5082_v32 }
 0x917   : > { %18599 = vmatmul.mubr.msk.f32.vlgmr.msra.gmra.mxu1 %vm3932_vm2, %v5240_v35  ;;  %19958 = vmatprep.subr.mxu1 %v5348_v36  ;;  %v18646_v35 = vld [vmem:[%s26910_s26 + $0x270] sm:$0xff]  ;;  %v18661_v36 = vld [vmem:[%s26910_s26 + $0x2e8] sm:$0xff] }
 0x918   : > { %19959 = vmatpush3.msra.mxu1 %v5332_v37  ;;  %v18645_v37 = vld [vmem:[%s26910_s26 + $0x268] sm:$0xff] }
 0x919   : > { %19960 = vmatprep.subr.mxu1 %v5347_v38  ;;  %v18660_v38 = vld [vmem:[%s26910_s26 + $0x2e0] sm:$0xff] }
 0x91a   : > { %19961 = vmatpush3.msra.mxu1 %v5331_v39  ;;  %v18644_v39 = vld [vmem:[%s26910_s26 + $0x260] sm:$0xff] }
 0x91b   : > { %19962 = vmatprep.subr.mxu1 %v5346_v40  ;;  %v18659_v40 = vld [vmem:[%s26910_s26 + $0x2d8] sm:$0xff] }
 0x91c   : > { %19963 = vmatpush3.msra.mxu1 %v5330_v42  ;;  %v18643_v42 = vld [vmem:[%s26910_s26 + $0x258] sm:$0xff] }
 0x91d   : > { %19964 = vmatprep.subr.mxu1 %v5345_v43  ;;  %v18658_v43 = vld [vmem:[%s26910_s26 + $0x2d0] sm:$0xff] }
 0x91e   : > { %19965 = vmatpush3.msra.mxu1 %v5329_v44  ;;  %v18642_v44 = vld [vmem:[%s26910_s26 + $0x250] sm:$0xff] }
 0x91f   : > { %19966 = vmatprep.subr.mxu1 %v5344_v45  ;;  %v18657_v45 = vld [vmem:[%s26910_s26 + $0x2c8] sm:$0xff] }
 0x920   : > { %19967 = vmatpush3.msra.mxu1 %v5328_v46  ;;  %v18641_v46 = vld [vmem:[%s26910_s26 + $0x248] sm:$0xff] }
 0x921   : > { %19968 = vmatprep.subr.mxu1 %v5343_v47  ;;  %v18656_v47 = vld [vmem:[%s26910_s26 + $0x2c0] sm:$0xff] }
 0x922   : > { %19969 = vmatpush3.msra.mxu1 %v5327_v48  ;;  %v18640_v48 = vld [vmem:[%s26910_s26 + $0x240] sm:$0xff] }
 0x923   : > { %19970 = vmatprep.subr.mxu1 %v5342_v49  ;;  %v18655_v49 = vld [vmem:[%s26910_s26 + $0x2b8] sm:$0xff] }
 0x924   : > { %19971 = vmatpush3.msra.mxu1 %v5326_v50  ;;  %v18639_v50 = vld [vmem:[%s26910_s26 + $0x238] sm:$0xff] }
 0x925   : > { %19972 = vmatprep.subr.mxu1 %v5341_v51  ;;  %v18654_v51 = vld [vmem:[%s26910_s26 + $0x2b0] sm:$0xff] }
 0x926   : > { %19973 = vmatpush3.msra.mxu1 %v5325_v52  ;;  %v18638_v52 = vld [vmem:[%s26910_s26 + $0x230] sm:$0xff] }
 0x927   : > { %19974 = vmatprep.subr.mxu1 %v5340_v53  ;;  %v18653_v53 = vld [vmem:[%s26910_s26 + $0x2a8] sm:$0xff] }
 0x928   : > { %19975 = vmatpush3.msra.mxu1 %v5324_v54  ;;  %v18637_v54 = vld [vmem:[%s26910_s26 + $0x228] sm:$0xff] }
 0x929   : > { %19976 = vmatprep.subr.mxu1 %v5339_v55  ;;  %v18652_v55 = vld [vmem:[%s26910_s26 + $0x2a0] sm:$0xff] }
 0x92a   : > { %19977 = vmatpush3.msra.mxu1 %v5323_v56  ;;  %v18636_v56 = vld [vmem:[%s26910_s26 + $0x220] sm:$0xff] }
 0x92b   : > { %19978 = vmatprep.subr.mxu1 %v5338_v58  ;;  %v18635_v58 = vld [vmem:[%s26910_s26 + $0x218] sm:$0xff] }
 0x92c   : > { %19979 = vmatpush3.msra.mxu1 %v5322_v60  ;;  %v18634_v60 = vld [vmem:[%s26910_s26 + $0x210] sm:$0xff] }
 0x92d   : > { %19980 = vmatprep.subr.mxu1 %v5337_v62  ;;  %v18633_v62 = vld [vmem:[%s26910_s26 + $0x208] sm:$0xff] }
 0x92e   : > { %19981 = vmatpush3.msra.mxu1 %v5321_v0  ;;  %v18632_v0 = vld [vmem:[%s26910_s26 + $0x200] sm:$0xff] }
 0x92f   : > { %19982 = vmatprep.subr.mxu1 %v5336_v3  ;;  %v21220_v3 = vld [vmem:[#allocation19 + $0x30] sm:$0xff]  }
 0x930   : > { %19983 = vmatpush3.msra.mxu1 %v5320_v5  ;;  %v21222_v5 = vld [vmem:[#allocation19 + $0x20] sm:$0xff]  }
 0x931   : > { %19984 = vmatprep.subr.mxu1 %v5335_v1  ;;  %v21224_v1 = vld [vmem:[#allocation19 + $0x10] sm:$0xff]  }
 0x932   : > { %19985 = vmatpush3.msra.mxu1 %v5319_v10  ;;  %v21226_v10 = vld [vmem:[#allocation19] sm:$0xff]  }
 0x933   : > { %19986 = vmatprep.subr.mxu1 %v5334_v12 }
 0x934   : > { %19987 = vmatpush3.msra.mxu1 %v5318_v14 }
 0x935   : > { %19988 = vmatprep.subr.mxu1 %v5333_v16 }
 0x936   : > { %19989 = vmatpush3.msra.mxu1 %v5317_v19 }
 0x937   : > { %20028 = vmatprep.subr.mxu1 %v18663_v22 }
 0x9cf   : > { %v5156_v23 = vpop.f32.mrf.mxu1 }
 0x9d1   : > { %v5158_v24 = vpop.f32.mrf.mxu1 }
 0x9d3   : > { %v5232_v25 = vpop.f32.mrf.mxu1 }
 0x9d4   : > { %v5237_v29 = vmax.f32 %v5156_v23, %v5232_v25  ;;  %v21256_v25 = vld [vmem:[%s26911_s12 + $0x174] ss:$8 sps:$4 sm:$0xff]  }
 0x9d5   : > { %v5234_v26 = vpop.f32.mrf.mxu1 }
 0x9d6   : > { %v5238_v28 = vmax.f32 %v5158_v24, %v5234_v26  ;;  %v21254_v24 = vld [vmem:[%s26911_s12 + $0x170] ss:$8 sps:$4 sm:$0xff]   ;;  %v21260_v26 = vld [vmem:[%s26911_s12 + $0x160] ss:$8 sps:$4 sm:$0xff]  }
 0x9d7   : > { %v5310_v27 = vpop.f32.mrf.mxu1 }
 0x9d8   : > { %v26078_v32 = vmax.f32 %v5237_v29, %v5310_v27  ;;  %v21262_v27 = vld [vmem:[%s26911_s12 + $0x164] ss:$8 sps:$4 sm:$0xff]   ;;  %v21268_v29 = vld [vmem:[%s26911_s12 + $0x154] ss:$8 sps:$4 sm:$0xff]  }
 0x9d9   : > { %v5312_v30 = vpop.f32.mrf.mxu1 }
 0x9da   : > { %v5316_v31 = vmax.f32 %v5238_v28, %v5312_v30  ;;  %v21266_v28 = vld [vmem:[%s26911_s12 + $0x150] ss:$8 sps:$4 sm:$0xff]   ;;  %v21272_v30 = vld [vmem:[%s26911_s12 + $0x140] ss:$8 sps:$4 sm:$0xff]  }
 0x9dc   : > { %5413 = vmatprep.mubr.f32.mxu1 %v5316_v31  ;;  %5516 = vmatprep.mubr.f32.mxu0 %v5316_v31 }
 0x9dd   : > { %5414 = vmatmul.mubr.f32.vlgmr.msra.gmra.mxu1 %v26078_v32  ;;  %5517 = vmatmul.mubr.f32.vlgmr.msra.gmra.mxu0 %v26078_v32 }
 0x9de   : > { %20029 = vmatpush3.msra.mxu1 %v18647_v33  ;;  %5620 = vmatprep.mubr.f32.mxu1 %v5316_v31  ;;  %v21274_v31 = vld [vmem:[%s26911_s12 + $0x144] ss:$8 sps:$4 sm:$0xff]   ;;  %v21280_v33 = vld [vmem:[%s26911_s12 + $0x134] ss:$8 sps:$4 sm:$0xff]  }
 0x9df   : > { %20030 = vmatprep.subr.mxu1 %v18662_v34  ;;  %20397 = vmatprep.mubr.msk.bf16.mxu0 %vm24847_vm1, %v24846_v18  ;;  %v21284_v34 = vld [vmem:[%s26911_s12 + $0x120] ss:$8 sps:$4 sm:$0xff]  }
 0x9e0   : > { %20031 = vmatpush3.msra.mxu1 %v18646_v35  ;;  %20382 = vmatpush3.bf16.msra.mxu0 %v21219_v2  ;;  %v21286_v35 = vld [vmem:[%s26911_s12 + $0x124] ss:$8 sps:$4 sm:$0xff]  }
 0x9e1   : > { %20032 = vmatprep.subr.mxu1 %v18661_v36  ;;  %20383 = vmatprep.subr.bf16.mxu0 %v24846_v18  ;;  %v18664_v36 = vld [vmem:[#allocation21] ss:$0 sm:$0xff]  ;;  %v21259_v2 = vld [vmem:[%s26911_s12 + $0xe4] ss:$8 sps:$4 sm:$0xff]  }
 0x9e2   : > { %20033 = vmatpush3.msra.mxu1 %v18645_v37 }
 0x9e3   : > { %20034 = vmatprep.subr.mxu1 %v18660_v38 }
 0x9e4   : > { %20035 = vmatpush3.msra.mxu1 %v18644_v39  ;;  %20384 = vmatpush3.bf16.msra.mxu0 %v21220_v3  ;;  %v21257_v3 = vld [vmem:[%s26911_s12 + $0xe0] ss:$8 sps:$4 sm:$0xff]  }
 0x9e5   : > { %20036 = vmatprep.subr.mxu1 %v18659_v40  ;;  %20385 = vmatprep.subr.bf16.mxu0 %v24846_v18 }
 0x9e6   : > { %20037 = vmatpush3.msra.mxu1 %v18643_v42  ;;  %v26142_v42 = vld [vmem:[#allocation7] sm:$0xff] }
 0x9e7   : > { %20038 = vmatprep.subr.mxu1 %v18658_v43 }
 0x9e8   : > { %20039 = vmatpush3.msra.mxu1 %v18642_v44  ;;  %20386 = vmatpush3.bf16.msra.mxu0 %v21221_v4  ;;  %v21265_v4 = vld [vmem:[%s26911_s12 + $0xd4] ss:$8 sps:$4 sm:$0xff]  }
 0x9e9   : > { %20040 = vmatprep.subr.mxu1 %v18657_v45  ;;  %20387 = vmatprep.subr.bf16.mxu0 %v24846_v18  ;;  %v26149_v45 = vld [vmem:[#allocation7 + $0x8] sm:$0xff] }
 0x9ea   : > { %20041 = vmatpush3.msra.mxu1 %v18641_v46  ;;  %v21229_v46 = vld [vmem:[%s26911_s12 + $0x74] ss:$8 sps:$4 sm:$0xff]  }
 0x9eb   : > { %20042 = vmatprep.subr.mxu1 %v18656_v47  ;;  %v26157_v47 = vld [vmem:[#allocation7 + $0x10] sm:$0xff] }
 0x9ec   : > { %20043 = vmatpush3.msra.mxu1 %v18640_v48  ;;  %20388 = vmatpush3.bf16.msra.mxu0 %v21222_v5  ;;  %v21227_v48 = vld [vmem:[%s26911_s12 + $0x70] ss:$8 sps:$4 sm:$0xff]  }
 0x9ed   : > { %20044 = vmatprep.subr.mxu1 %v18655_v49  ;;  %20389 = vmatprep.subr.bf16.mxu0 %v24846_v18  ;;  %v21232_v49 = vld [vmem:[%s26911_s12 + $0x64] ss:$8 sps:$4 sm:$0xff]   ;;  %v21263_v5 = vld [vmem:[%s26911_s12 + $0xd0] ss:$8 sps:$4 sm:$0xff]  }
 0x9ee   : > { %20045 = vmatpush3.msra.mxu1 %v18639_v50  ;;  %v21230_v50 = vld [vmem:[%s26911_s12 + $0x60] ss:$8 sps:$4 sm:$0xff]  }
 0x9ef   : > { %20046 = vmatprep.subr.mxu1 %v18654_v51  ;;  %v21235_v51 = vld [vmem:[%s26911_s12 + $0x54] ss:$8 sps:$4 sm:$0xff]  }
 0x9f0   : > { %20047 = vmatpush3.msra.mxu1 %v18638_v52  ;;  %20390 = vmatpush3.bf16.msra.mxu0 %v21223_v6  ;;  %v21233_v52 = vld [vmem:[%s26911_s12 + $0x50] ss:$8 sps:$4 sm:$0xff]   ;;  %v21271_v6 = vld [vmem:[%s26911_s12 + $0xc4] ss:$8 sps:$4 sm:$0xff]  }
 0x9f1   : > { %20048 = vmatprep.subr.mxu1 %v18653_v53  ;;  %20391 = vmatprep.subr.bf16.mxu0 %v24846_v18  ;;  %v21238_v53 = vld [vmem:[%s26911_s12 + $0x44] ss:$8 sps:$4 sm:$0xff]  }
 0x9f2   : > { %20049 = vmatpush3.msra.mxu1 %v18637_v54  ;;  %v21236_v54 = vld [vmem:[%s26911_s12 + $0x40] ss:$8 sps:$4 sm:$0xff]  }
 0x9f3   : > { %20050 = vmatprep.subr.mxu1 %v18652_v55  ;;  %v21241_v55 = vld [vmem:[%s26911_s12 + $0x34] ss:$8 sps:$4 sm:$0xff]  }
 0x9f4   : > { %20051 = vmatpush3.msra.mxu1 %v18636_v56  ;;  %20392 = vmatpush3.bf16.msra.mxu0 %v21224_v1  ;;  %v21239_v56 = vld [vmem:[%s26911_s12 + $0x30] ss:$8 sps:$4 sm:$0xff]   ;;  %v21269_v1 = vld [vmem:[%s26911_s12 + $0xc0] ss:$8 sps:$4 sm:$0xff]  }
 0x9f5   : > { %20052 = vmatprep.subr.mxu1 %v18651_v57  ;;  %20393 = vmatprep.subr.bf16.mxu0 %v24846_v18  ;;  %v21244_v57 = vld [vmem:[%s26911_s12 + $0x24] ss:$8 sps:$4 sm:$0xff]  }
 0x9f6   : > { %20053 = vmatpush3.msra.mxu1 %v18635_v58  ;;  %v21242_v58 = vld [vmem:[%s26911_s12 + $0x20] ss:$8 sps:$4 sm:$0xff]  }
 0x9f7   : > { %20054 = vmatprep.subr.mxu1 %v18650_v59  ;;  %v21247_v59 = vld [vmem:[%s26911_s12 + $0x14] ss:$8 sps:$4 sm:$0xff]  }
 0x9f8   : > { %20055 = vmatpush3.msra.mxu1 %v18634_v60  ;;  %20394 = vmatpush3.bf16.msra.mxu0 %v21225_v9  ;;  %v21245_v60 = vld [vmem:[%s26911_s12 + $0x10] ss:$8 sps:$4 sm:$0xff]   ;;  %v21277_v9 = vld [vmem:[%s26911_s12 + $0xb4] ss:$8 sps:$4 sm:$0xff]  }
 0x9f9   : > { %20056 = vmatprep.subr.mxu1 %v18649_v61  ;;  %20395 = vmatprep.subr.bf16.mxu0 %v24846_v18  ;;  %v21250_v61 = vld [vmem:[%s26911_s12 + $0x4] ss:$8 sps:$4 sm:$0xff]  }
 0x9fa   : > { %20057 = vmatpush3.msra.mxu1 %v18633_v62  ;;  %v21248_v62 = vld [vmem:[%s26911_s12] ss:$8 sps:$4 sm:$0xff]  }
 0x9fb   : > { %20058 = vmatprep.subr.mxu1 %v18648_v63  ;;  %v21253_v63 = vld [vmem:[%s26911_s12 + $0xf4] ss:$8 sps:$4 sm:$0xff]  }
 0x9fc   : > { %20059 = vmatpush3.msra.mxu1 %v18632_v0  ;;  %20396 = vmatpush3.bf16.msra.mxu0 %v21226_v10  ;;  %v21251_v0 = vld [vmem:[%s26911_s12 + $0xf0] ss:$8 sps:$4 sm:$0xff]  }
 0x9fd   : > { %5621 = vmatmul.mubr.f32.vlgmr.msra.gmra.mxu1 %v26078_v32  ;;  %20401 = vmatprep.subr.mxu1 %v24846_v18  ;;  %v21278_v32 = vld [vmem:[%s26911_s12 + $0x130] ss:$8 sps:$4 sm:$0xff]  }
 0x9fe   : > { %20403 = vmatprep.mubr.msk.f32.mxu1 %vm24847_vm1, %v24846_v18  ;;  %6309 = vmatprep.subr.bf16.mxu0 %v21256_v25  ;;  %v21275_v10 = vld [vmem:[%s26911_s12 + $0xb0] ss:$8 sps:$4 sm:$0xff]  }
 0xa9d   : > { %v19990_v11 = vpop.f32.mrf.mxu1  ;;  %v20025_v12 = vpop.f32.mrf.mxu0 }
 0xa9f   : > { %v19991_v13 = vpop.f32.mrf.mxu1  ;;  %v20026_v14 = vpop.f32.mrf.mxu0 }
 0xaa0   : > { %v19992_v15 = vadd.f32 %v19991_v13, %v19990_v11  ;;  %v20027_v16 = vadd.f32 %v20026_v14, %v20025_v12  ;;  %v21283_v11 = vld [vmem:[%s26911_s12 + $0xa4] ss:$8 sps:$4 sm:$0xff]   ;;  %v21281_v12 = vld [vmem:[%s26911_s12 + $0xa0] ss:$8 sps:$4 sm:$0xff]   ;;  %v21289_v13 = vld [vmem:[%s26911_s12 + $0x94] ss:$8 sps:$4 sm:$0xff]  }
 0xaa1   : > { %v21287_v14 = vld [vmem:[%s26911_s12 + $0x90] ss:$8 sps:$4 sm:$0xff]  }
 0xaa2   : > { %v5522_v20 = vmax.f32 %v19992_v15, %v20027_v16  ;;  %v21290_v15 = vld [vmem:[%s26911_s12 + $0x110] ss:$8 sps:$4 sm:$0xff]   ;;  %v21292_v16 = vld [vmem:[%s26911_s12 + $0x114] ss:$8 sps:$4 sm:$0xff]  }
 0xabd   : > { %v20060_v17 = vpop.f32.mrf.mxu1 }
 0xabf   : > { %v20061_v19 = vpop.f32.mrf.mxu1 }
 0xac0   : > { %v20062_v21 = vadd.f32 %v20061_v19, %v20060_v17  ;;  %v21295_v17 = vld [vmem:[%s26911_s12 + $0x84] ss:$8 sps:$4 sm:$0xff]   ;;  %v21293_v19 = vld [vmem:[%s26911_s12 + $0x80] ss:$8 sps:$4 sm:$0xff]  }
 0xac2   : > { %v5626_v22 = vmax.f32 %v5522_v20, %v20062_v21  ;;  %v21298_v20 = vld [vmem:[%s26911_s12 + $0x104] ss:$8 sps:$4 sm:$0xff]   ;;  %v21296_v21 = vld [vmem:[%s26911_s12 + $0x100] ss:$8 sps:$4 sm:$0xff]  }
 0xac4   : > { %v26126_v23 = vpack.c.bf16 %v5626_v22, %v5626_v22  ;;  %v21301_v22 = vld [vmem:[#allocation24 + $0x74] ss:$8 sps:$4 sm:$0xff]  }
 0xac6   : > { %20398 = vmatmul.mubr.bf16.vlgmr.msra.gmra.mxu0 %v26126_v23 }
 0xac7   : > { %6341 = vmatprep.mubr.bf16.mxu0 %v24848_v41  ;;  %6310 = vmatpush1.bf16.msra.mxu0 %v21254_v24 }
 0xac8   : > { %6311 = vmatprep.subr.bf16.mxu0 %v21262_v27 }
 0xacb   : > { %6312 = vmatpush1.bf16.msra.mxu0 %v21260_v26 }
 0xacc   : > { %6313 = vmatprep.subr.bf16.mxu0 %v21268_v29 }
 0xacf   : > { %6314 = vmatpush1.bf16.msra.mxu0 %v21266_v28 }
 0xad0   : > { %6315 = vmatprep.subr.bf16.mxu0 %v21274_v31  ;;  %v21299_v31 = vld [vmem:[#allocation24 + $0x70] ss:$8 sps:$4 sm:$0xff]  }
 0xad3   : > { %6316 = vmatpush1.bf16.msra.mxu0 %v21272_v30 }
 0xad4   : > { %6317 = vmatprep.subr.bf16.mxu0 %v21280_v33  ;;  %v21304_v33 = vld [vmem:[#allocation24 + $0x64] ss:$8 sps:$4 sm:$0xff]  }
 0xad7   : > { %6318 = vmatpush1.bf16.msra.mxu0 %v21278_v32 }
 0xad8   : > { %6319 = vmatprep.subr.bf16.mxu0 %v21286_v35  ;;  %v21302_v35 = vld [vmem:[#allocation24 + $0x60] ss:$8 sps:$4 sm:$0xff]  }
 0xadb   : > { %6320 = vmatpush1.bf16.msra.mxu0 %v21284_v34 }
 0xadc   : > { %6321 = vmatprep.subr.bf16.mxu0 %v21292_v16 }
 0xadf   : > { %6322 = vmatpush1.bf16.msra.mxu0 %v21290_v15 }
 0xae0   : > { %6323 = vmatprep.subr.bf16.mxu0 %v21298_v20 }
 0xae3   : > { %6324 = vmatpush1.bf16.msra.mxu0 %v21296_v21 }
 0xae4   : > { %6558 = vmatprep.subr.bf16.mxu0 %v21301_v22 }
 0xb86   : > { %v5733_v37 = vpop.f32.mrf.mxu0 }
 0xb87   : > { %v5734_v38 = vadd.f32 %v18664_v36, %v5733_v37  ;;  %v21307_v36 = vld [vmem:[#allocation24 + $0x54] ss:$8 sps:$4 sm:$0xff]   ;;  %v21305_v37 = vld [vmem:[#allocation24 + $0x50] ss:$8 sps:$4 sm:$0xff]  }
 0xb88   : > { %v20399_v39 = vpop.f32.mrf.mxu0 }
 0xb89   : > { %v5739_v40 = vmax.f32 %v5734_v38, 0.0  ;;  %v21310_v38 = vld [vmem:[#allocation24 + $0x44] ss:$8 sps:$4 sm:$0xff]   ;;  %v21308_v39 = vld [vmem:[#allocation24 + $0x40] ss:$8 sps:$4 sm:$0xff]  }
 0xb8a   : > { %v5736_v43 = vpop.f32.mrf.mxu0 }
 0xb8b   : > { %20402 = vmatpush3.msra.mxu1 %v5739_v40  ;;  %v21311_v43 = vld [vmem:[#allocation24 + $0x30] ss:$8 sps:$4 sm:$0xff]  }
 0xb8c   : > { %v20400_v44 = vpop.f32.mrf.mxu0  ;;  %20404 = vmatmul.mubr.msk.f32.vlgmr.msra.gmra.mxu1 %vm5741_vm3, %v26142_v42  ;;  %20406 = vmatprep.subr.mxu1 %v24846_v18 }
 0xb8d   : > { %20407 = vmatpush3.msra.mxu1 %v5739_v40  ;;  %20408 = vmatprep.mubr.msk.f32.mxu1 %vm24847_vm1, %v24846_v18  ;;  %v21316_v44 = vld [vmem:[#allocation24 + $0x24] ss:$8 sps:$4 sm:$0xff]  }
 0xb8e   : > { %20411 = vmatprep.subr.mxu1 %v24846_v18 }
 0xb90   : > { %20409 = vmatmul.mubr.msk.f32.vlgmr.msra.gmra.mxu1 %vm5741_vm3, %v26149_v45 }
 0xb91   : > { %20412 = vmatpush3.msra.mxu1 %v5739_v40  ;;  %20413 = vmatprep.mubr.msk.f32.mxu1 %vm24847_vm1, %v24846_v18  ;;  %v21313_v40 = vld [vmem:[#allocation24 + $0x34] ss:$8 sps:$4 sm:$0xff]  }
 0xb92   : > { %6268 = vmatprep.subr.bf16.mxu1 %v21229_v46  ;;  %v21314_v46 = vld [vmem:[#allocation24 + $0x20] ss:$8 sps:$4 sm:$0xff]  }
 0xb94   : > { %20414 = vmatmul.mubr.msk.f32.vlgmr.msra.gmra.mxu1 %vm5741_vm3, %v26157_v47 }
 0xb95   : > { %6269 = vmatpush1.bf16.msra.mxu1 %v21227_v48  ;;  %v21319_v48 = vld [vmem:[#allocation24 + $0x14] ss:$8 sps:$4 sm:$0xff]  }
 0xb96   : > { %6270 = vmatprep.subr.bf16.mxu1 %v21232_v49  ;;  %v21317_v49 = vld [vmem:[#allocation24 + $0x10] ss:$8 sps:$4 sm:$0xff]  }
 0xb99   : > { %6271 = vmatpush1.bf16.msra.mxu1 %v21230_v50  ;;  %v21322_v50 = vld [vmem:[#allocation24 + $0x4] ss:$8 sps:$4 sm:$0xff]  }
 0xb9a   : > { %6272 = vmatprep.subr.bf16.mxu1 %v21235_v51  ;;  %v21320_v51 = vld [vmem:[#allocation24] ss:$8 sps:$4 sm:$0xff]  }
 0xb9d   : > { %6273 = vmatpush1.bf16.msra.mxu1 %v21233_v52  ;;  %v21325_v52 = vld [vmem:[#allocation24 + $0xf4] ss:$8 sps:$4 sm:$0xff]  }
 0xb9e   : > { %6274 = vmatprep.subr.bf16.mxu1 %v21238_v53  ;;  %v21323_v53 = vld [vmem:[#allocation24 + $0xf0] ss:$8 sps:$4 sm:$0xff]  }
 0xba1   : > { %6275 = vmatpush1.bf16.msra.mxu1 %v21236_v54  ;;  %v21328_v54 = vld [vmem:[#allocation24 + $0xe4] ss:$8 sps:$4 sm:$0xff]  }
 0xba2   : > { %6276 = vmatprep.subr.bf16.mxu1 %v21241_v55  ;;  %v21326_v55 = vld [vmem:[#allocation24 + $0xe0] ss:$8 sps:$4 sm:$0xff]  }
 0xba5   : > { %6277 = vmatpush1.bf16.msra.mxu1 %v21239_v56  ;;  %v21331_v56 = vld [vmem:[#allocation24 + $0xd4] ss:$8 sps:$4 sm:$0xff]  }
 0xba6   : > { %6278 = vmatprep.subr.bf16.mxu1 %v21244_v57  ;;  %v21329_v57 = vld [vmem:[#allocation24 + $0xd0] ss:$8 sps:$4 sm:$0xff]  }
 0xba9   : > { %6279 = vmatpush1.bf16.msra.mxu1 %v21242_v58  ;;  %v21334_v58 = vld [vmem:[#allocation24 + $0xc4] ss:$8 sps:$4 sm:$0xff]  }
 0xbaa   : > { %6280 = vmatprep.subr.bf16.mxu1 %v21247_v59  ;;  %v21332_v59 = vld [vmem:[#allocation24 + $0xc0] ss:$8 sps:$4 sm:$0xff]  }
 0xbad   : > { %6281 = vmatpush1.bf16.msra.mxu1 %v21245_v60  ;;  %v21337_v60 = vld [vmem:[#allocation24 + $0xb4] ss:$8 sps:$4 sm:$0xff]  }
 0xbae   : > { %6282 = vmatprep.subr.bf16.mxu1 %v21250_v61  ;;  %v21335_v61 = vld [vmem:[#allocation24 + $0xb0] ss:$8 sps:$4 sm:$0xff]  }
 0xbb1   : > { %6283 = vmatpush1.bf16.msra.mxu1 %v21248_v62  ;;  %v21340_v62 = vld [vmem:[#allocation24 + $0xa4] ss:$8 sps:$4 sm:$0xff]  }
 0xbb2   : > { %6284 = vmatprep.subr.bf16.mxu1 %v21253_v63  ;;  %v21338_v63 = vld [vmem:[#allocation24 + $0xa0] ss:$8 sps:$4 sm:$0xff]  }
 0xbb5   : > { %6285 = vmatpush2.bf16.msra.mxu1 %v21251_v0  ;;  %v21343_v0 = vld [vmem:[#allocation24 + $0x94] ss:$8 sps:$4 sm:$0xff]  }
 0xbb6   : > { %6286 = vmatprep.subr.bf16.mxu1 %v21259_v2  ;;  %v21341_v2 = vld [vmem:[#allocation24 + $0x90] ss:$8 sps:$4 sm:$0xff]  }
 0xbb9   : > { %6287 = vmatpush2.bf16.msra.mxu1 %v21257_v3  ;;  %v21346_v3 = vld [vmem:[#allocation24 + $0x84] ss:$8 sps:$4 sm:$0xff]  }
 0xbba   : > { %6288 = vmatprep.subr.bf16.mxu1 %v21265_v4  ;;  %v21344_v4 = vld [vmem:[#allocation24 + $0x80] ss:$8 sps:$4 sm:$0xff]  }
 0xbbd   : > { %6289 = vmatpush2.bf16.msra.mxu1 %v21263_v5  ;;  %v6016_v5 = vld [vmem:[#allocation22] sm:$0x3] }
 0xbbe   : > { %6290 = vmatprep.subr.bf16.mxu1 %v21271_v6  ;;  %v6021_v6 = vrot.slane %v6016_v5, %v26021_v8 }
 0xbc1   : > { %6291 = vmatpush2.bf16.msra.mxu1 %v21269_v1  ;;  %v6025_v1 = vrot.slane %v6016_v5, %v26019_v7 }
 0xbc2   : > { %6292 = vmatprep.subr.bf16.mxu1 %v21277_v9 }
 0xbc5   : > { %6293 = vmatpush2.bf16.msra.mxu1 %v21275_v10 }
 0xbc6   : > { %6294 = vmatprep.subr.bf16.mxu1 %v21283_v11 }
 0xbc9   : > { %6295 = vmatpush2.bf16.msra.mxu1 %v21281_v12 }
 0xbca   : > { %6296 = vmatprep.subr.bf16.mxu1 %v21289_v13 }
 0xbcd   : > { %6297 = vmatpush2.bf16.msra.mxu1 %v21287_v14 }
 0xbce   : > { %6298 = vmatprep.subr.bf16.mxu1 %v21295_v17 }
 0xbd1   : > { %6299 = vmatpush2.bf16.msra.mxu1 %v21293_v19 }
 0xc4c   : > { %v5811_v24 = vpop.f32.mrf.mxu1 }
 0xc4d   : > { %v5965_v28 = vpack.c.bf16 %v5811_v24, %v5811_v24 }
 0xc4e   : > { %v20405_v25 = vpop.f32.mrf.mxu1 }
 0xc50   : > { %v5886_v26 = vpop.f32.mrf.mxu1 }
 0xc51   : > { %v5966_v27 = vpack.c.bf16 %v5886_v26, %v5886_v26 }
 0xc52   : > { %v20410_v29 = vpop.f32.mrf.mxu1 }
 0xc53   : > { %6300 = vmatprep.mubr.bf16.mxu1 %v5966_v27  ;;  %v6386_v27 = vld [vmem:[#allocation25] sm:$0x3] }
 0xc54   : > { %v5961_v30 = vpop.f32.mrf.mxu1  ;;  %6301 = vmatmul.mubr.bf16.vlgmr.msra.gmra.mxu1 %v5965_v28  ;;  %v6395_v28 = vrot.slane %v6386_v27, %v26019_v7  ;;  %v6391_v29 = vrot.slane %v6386_v27, %v26021_v8  ;;  %v21379_v27 = vld [vmem:[#allocation33 + $0x34] ss:$8 sps:$4 sm:$0xff]  }
 0xc55   : > { %v5967_v32 = vpack.c.bf16 %v5961_v30, %v5961_v30  ;;  %6666 = vmatprep.mubr.f32.mxu1 %v24846_v18 }
 0xc56   : > { %v20415_v34 = vpop.f32.mrf.mxu1 }
 0xc57   : > { %6342 = vmatmul.mubr.bf16.vlgmr.msra.gmra.mxu0 %v5967_v32 }
 0xc58   : > { %6559 = vmatpush1.bf16.msra.mxu0 %v21299_v31 }
 0xc59   : > { %6560 = vmatprep.subr.bf16.mxu0 %v21304_v33  ;;  %v21347_v33 = vld [vmem:[%s26912_s6 + $0x78] sm:$0xff]  }
 0xc5c   : > { %6561 = vmatpush1.bf16.msra.mxu0 %v21302_v35 }
 0xc5d   : > { %6562 = vmatprep.subr.bf16.mxu0 %v21307_v36  ;;  %v21348_v36 = vld [vmem:[%s26912_s6 + $0x38] sm:$0xff]  }
 0xc60   : > { %6563 = vmatpush1.bf16.msra.mxu0 %v21305_v37  ;;  %v21349_v37 = vld [vmem:[%s26912_s6 + $0x70] sm:$0xff]  }
 0xc61   : > { %6564 = vmatprep.subr.bf16.mxu0 %v21310_v38 }
 0xc64   : > { %6565 = vmatpush1.bf16.msra.mxu0 %v21308_v39  ;;  %v24849_v39 = vmov 0.125  }
 0xc65   : > { %6566 = vmatprep.subr.bf16.mxu0 %v21313_v40  ;;  %v21350_v40 = vld [vmem:[%s26912_s6 + $0x30] sm:$0xff]  }
 0xc68   : > { %6567 = vmatpush1.bf16.msra.mxu0 %v21311_v43  ;;  %v21351_v43 = vld [vmem:[%s26912_s6 + $0x68] sm:$0xff]  }
 0xc69   : > { %6568 = vmatprep.subr.bf16.mxu0 %v21316_v44  ;;  %v21352_v44 = vld [vmem:[%s26912_s6 + $0x28] sm:$0xff]  }
 0xc6c   : > { %6569 = vmatpush1.bf16.msra.mxu0 %v21314_v46  ;;  %v21353_v46 = vld [vmem:[%s26912_s6 + $0x60] sm:$0xff]  }
 0xc6d   : > { %6570 = vmatprep.subr.bf16.mxu0 %v21319_v48  ;;  %v21354_v48 = vld [vmem:[%s26912_s6 + $0x20] sm:$0xff]  }
 0xc70   : > { %6571 = vmatpush1.bf16.msra.mxu0 %v21317_v49  ;;  %v21355_v49 = vld [vmem:[%s26912_s6 + $0x58] sm:$0xff]  }
 0xc71   : > { %6572 = vmatprep.subr.bf16.mxu0 %v21322_v50  ;;  %v21356_v50 = vld [vmem:[%s26912_s6 + $0x18] sm:$0xff]  }
 0xc74   : > { %6573 = vmatpush1.bf16.msra.mxu0 %v21320_v51  ;;  %v21357_v51 = vld [vmem:[%s26912_s6 + $0x50] sm:$0xff]  }
 0xc75   : > { %6574 = vmatprep.subr.bf16.mxu0 %v21325_v52  ;;  %v21358_v52 = vld [vmem:[%s26912_s6 + $0x10] sm:$0xff]  }
 0xc78   : > { %6575 = vmatpush2.bf16.msra.mxu0 %v21323_v53  ;;  %v21359_v53 = vld [vmem:[%s26912_s6 + $0x48] sm:$0xff]  }
 0xc79   : > { %6576 = vmatprep.subr.bf16.mxu0 %v21328_v54  ;;  %v21360_v54 = vld [vmem:[%s26912_s6 + $0x8] sm:$0xff]  }
 0xc7c   : > { %6577 = vmatpush2.bf16.msra.mxu0 %v21326_v55  ;;  %v21361_v55 = vld [vmem:[%s26912_s6 + $0x40] sm:$0xff]  }
 0xc7d   : > { %6578 = vmatprep.subr.bf16.mxu0 %v21331_v56  ;;  %v21362_v56 = vld [vmem:[%s26912_s6] sm:$0xff]  }
 0xc80   : > { %6579 = vmatpush2.bf16.msra.mxu0 %v21329_v57 }
 0xc81   : > { %6580 = vmatprep.subr.bf16.mxu0 %v21334_v58 }
 0xc84   : > { %6581 = vmatpush2.bf16.msra.mxu0 %v21332_v59 }
 0xc85   : > { %6582 = vmatprep.subr.bf16.mxu0 %v21337_v60 }
 0xc88   : > { %6583 = vmatpush2.bf16.msra.mxu0 %v21335_v61  ;;  %v21363_v61 = vld [vmem:[%s26913_s22 + $0x8] sm:$0xff]  }
 0xc89   : > { %6584 = vmatprep.subr.bf16.mxu0 %v21340_v62  ;;  %v21364_v62 = vld [vmem:[%s26913_s22] sm:$0xff]  }
 0xc8c   : > { %6585 = vmatpush2.bf16.msra.mxu0 %v21338_v63 }
 0xc8d   : > { %6586 = vmatprep.subr.bf16.mxu0 %v21343_v0 }
 0xc90   : > { %6587 = vmatpush2.bf16.msra.mxu0 %v21341_v2 }
 0xc91   : > { %6588 = vmatprep.subr.bf16.mxu0 %v21346_v3 }
 0xc94   : > { %6589 = vmatpush2.bf16.msra.mxu0 %v21344_v4 }
 0xc95   : > { %20416 = vmatprep.subr.bf16.mxu0 %v24846_v18 }
 0xd14   : > { %v6302_v9 = vpop.f32.mrf.mxu1 }
 0xd15   : > { %v6303_v10 = vadd.f32 %v6302_v9, %v6021_v6  ;;  %v6906_v6 = vld [vmem:[#allocation28] sm:$0x3] }
 0xd16   : > { %v6304_v11 = vpop.f32.mrf.mxu1  ;;  %v21367_v9 = vld [vmem:[#allocation33 + $0x74] ss:$8 sps:$4 sm:$0xff]  }
 0xd17   : > { %v6305_v12 = vadd.f32 %v6304_v11, %v6025_v1  ;;  %v6343_v13 = vpop.f32.mrf.mxu0  ;;  %v6914_v1 = vsel %vm6912_vm4, %v6906_v6, 0  ;;  %v21394_v6 = vld [vmem:[#allocation36 + $0x28] sm:$0xff]  }
 0xd18   : > { %v6344_v14 = vadd.f32 %v6343_v13, %v6303_v10  ;;  %v6306_v15 = vpop.f32.mrf.mxu1  ;;  %v6848_v10 = vld [vmem:[#allocation27] sm:$0x1] }
 0xd19   : > { %v6345_v16 = vpop.f32.mrf.mxu0 }
 0xd1a   : > { %v6346_v17 = vadd.f32 %v6345_v16, %v6305_v12  ;;  %v6307_v19 = vpop.f32.mrf.mxu1  ;;  %v6350_v20 = vmax.f32 %v6344_v14, 0.0  ;;  %v21365_v16 = vld [vmem:[#allocation33 + $0x70] ss:$8 sps:$4 sm:$0xff]  }
 0xd1b   : > { %v6347_v21 = vpop.f32.mrf.mxu0  ;;  %v21370_v19 = vld [vmem:[#allocation33 + $0x64] ss:$8 sps:$4 sm:$0xff]  }
 0xd1c   : > { %v6351_v22 = vmax.f32 %v6346_v17, 0.0  ;;  %v6352_v26 = vpack.c.bf16 %v6350_v20, %v6350_v20  ;;  %v21368_v21 = vld [vmem:[#allocation33 + $0x60] ss:$8 sps:$4 sm:$0xff]  }
 0xd1d   : > { %v6348_v24 = vpop.f32.mrf.mxu0 }
 0xd1e   : > { %v6353_v25 = vpack.c.bf16 %v6351_v22, %v6351_v22  ;;  %v21373_v22 = vld [vmem:[#allocation33 + $0x54] ss:$8 sps:$4 sm:$0xff]   ;;  %v21371_v24 = vld [vmem:[#allocation33 + $0x50] ss:$8 sps:$4 sm:$0xff]  }
 0xd20   : > { %6590 = vmatprep.mubr.bf16.mxu0 %v6353_v25  ;;  %v21376_v25 = vld [vmem:[#allocation33 + $0x44] ss:$8 sps:$4 sm:$0xff]  }
 0xd21   : > { %6591 = vmatmul.mubr.bf16.vlgmr.msra.gmra.mxu0 %v6352_v26  ;;  %v21374_v26 = vld [vmem:[#allocation33 + $0x40] ss:$8 sps:$4 sm:$0xff]  }
 0xd22   : > { %20420 = vmatprep.mubr.msk.bf16.mxu0 %vm24847_vm1, %v24846_v18  ;;  %20417 = vmatpush3.bf16.msra.mxu0 %v21363_v61 }
 0xd23   : > { %20418 = vmatprep.subr.bf16.mxu0 %v24846_v18 }
 0xd26   : > { %20419 = vmatpush3.bf16.msra.mxu0 %v21364_v62  ;;  %v21390_v62 = vld [vmem:[#allocation36 + $0x38] sm:$0xff]  }
 0xde1   : > { %v6592_v30 = vpop.f32.mrf.mxu0 }
 0xde2   : > { %v26207_v34 = vadd.f32 %v6592_v30, %v6391_v29  ;;  %v21382_v29 = vld [vmem:[#allocation33 + $0x24] ss:$8 sps:$4 sm:$0xff]   ;;  %v21380_v30 = vld [vmem:[#allocation33 + $0x20] ss:$8 sps:$4 sm:$0xff]  }
 0xde3   : > { %v6594_v31 = vpop.f32.mrf.mxu0 }
 0xde4   : > { %v26204_v32 = vadd.f32 %v6594_v31, %v6395_v28  ;;  %v21377_v28 = vld [vmem:[#allocation33 + $0x30] ss:$8 sps:$4 sm:$0xff]   ;;  %v21385_v31 = vld [vmem:[#allocation33 + $0x14] ss:$8 sps:$4 sm:$0xff]  }
 0xde5   : > { %v6596_v35 = vpop.f32.mrf.mxu0 }
 0xde6   : > { %6632 = vmatprep.subr.mxu1 %v26204_v32  ;;  %v21388_v35 = vld [vmem:[#allocation33 + $0x4] ss:$8 sps:$4 sm:$0xff]  }
 0xde7   : > { %v6597_v38 = vpop.f32.mrf.mxu0  ;;  %6633 = vmatpush1.msra.mxu1 %v26207_v34 }
 0xde8   : > { %18756 = vmatmul.mubr.msk.f32.vlgmr.msra.gmra.mxu1 %vm5741_vm3, %v24849_v39  ;;  %20078 = vmatprep.subr.bf16.mxu1 %v21347_v33  ;;  %v21383_v33 = vld [vmem:[#allocation33 + $0x10] ss:$8 sps:$4 sm:$0xff]  }
 0xde9   : > { %20079 = vmatpush3.bf16.msra.mxu1 %v21348_v36  ;;  %v21386_v36 = vld [vmem:[#allocation33] ss:$8 sps:$4 sm:$0xff]   ;;  %v6968_v38 = vld [vmem:[#allocation31 + $0x30] sm:$0xff] }
 0xdea   : > { %20080 = vmatprep.subr.bf16.mxu1 %v21349_v37  ;;  %v6969_v37 = vld [vmem:[#allocation31 + $0x38] sm:$0xff] }
 0xdeb   : > { %6997 = vmatprep.subr.mxu0 %v6969_v37 }
 0xded   : > { %20081 = vmatpush3.bf16.msra.mxu1 %v21350_v40  ;;  %v6967_v40 = vld [vmem:[#allocation31 + $0x28] sm:$0xff] }
 0xdee   : > { %20082 = vmatprep.subr.bf16.mxu1 %v21351_v43  ;;  %v6966_v43 = vld [vmem:[#allocation31 + $0x20] sm:$0xff] }
 0xdf1   : > { %20083 = vmatpush3.bf16.msra.mxu1 %v21352_v44  ;;  %v6965_v44 = vld [vmem:[#allocation31 + $0x18] sm:$0xff] }
 0xdf2   : > { %20084 = vmatprep.subr.bf16.mxu1 %v21353_v46  ;;  %v6964_v46 = vld [vmem:[#allocation31 + $0x10] sm:$0xff] }
 0xdf5   : > { %20085 = vmatpush3.bf16.msra.mxu1 %v21354_v48  ;;  %v6963_v48 = vld [vmem:[#allocation31 + $0x8] sm:$0xff] }
 0xdf6   : > { %20086 = vmatprep.subr.bf16.mxu1 %v21355_v49  ;;  %v6962_v49 = vld [vmem:[#allocation31] sm:$0xff] }
 0xdf9   : > { %20087 = vmatpush3.bf16.msra.mxu1 %v21356_v50  ;;  %v6907_v50 = vld [vmem:[#allocation30] sm:$0x1] }
 0xdfa   : > { %20088 = vmatprep.subr.bf16.mxu1 %v21357_v51 }
 0xdfd   : > { %20089 = vmatpush3.bf16.msra.mxu1 %v21358_v52 }
 0xdfe   : > { %20090 = vmatprep.subr.bf16.mxu1 %v21359_v53 }
 0xe01   : > { %20091 = vmatpush3.bf16.msra.mxu1 %v21360_v54 }
 0xe02   : > { %20092 = vmatprep.subr.bf16.mxu1 %v21361_v55 }
 0xe05   : > { %20093 = vmatpush3.bf16.msra.mxu1 %v21362_v56 }
 0xe06   : > { %20424 = vmatprep.subr.bf16.mxu1 %v24846_v18 }
 0xea8   : > { %v6668_v57 = vpop.f32.mrf.mxu1 }
 0xea9   : > { %v6673_v60 = vpack.c.bf16 %v6668_v57, %v6668_v57 }
 0xeaa   : > { %v6670_v58 = vpop.f32.mrf.mxu1 }
 0xeab   : > { %v6674_v59 = vpack.c.bf16 %v6670_v58, %v6670_v58 }
 0xead   : > { %6835 = vmatprep.mubr.bf16.mxu1 %v6674_v59 }
 0xeae   : > { %6836 = vmatmul.mubr.bf16.vlgmr.msra.gmra.mxu1 %v6673_v60 }
 0xeaf   : > { %20426 = vmatprep.mubr.msk.bf16.mxu1 %vm24847_vm1, %v24846_v18  ;;  %20425 = vmatpush3.bf16.msra.mxu1 %v6914_v1  ;;  %v21395_v1 = vld [vmem:[#allocation36 + $0x60] sm:$0xff]  }
 0xeb0   : > { %7162 = vmatprep.subr.bf16.mxu1 %v21367_v9  ;;  %v21396_v9 = vld [vmem:[#allocation36 + $0x20] sm:$0xff]  }
 0xf6e   : > { %v20094_v63 = vpop.f32.mrf.mxu1 }
 0xf70   : > { %v20095_v0 = vpop.f32.mrf.mxu1 }
 0xf71   : > { %v20096_v2 = vadd.f32 %v20095_v0, %v20094_v63  ;;  %v21391_v63 = vld [vmem:[#allocation36 + $0x70] sm:$0xff]  }
 0xf72   : > { %v20097_v3 = vpop.f32.mrf.mxu1 }
 0xf73   : > { %v6843_v4 = vpack.c.bf16 %v20096_v2, %v20096_v2 }
 0xf74   : > { %v20098_v5 = vpop.f32.mrf.mxu1 }
 0xf75   : > { %20421 = vmatmul.mubr.msk.bf16.vlgmr.msra.gmra.mxu0 %vm3394_vm0, %v6843_v4  ;;  %v21392_v4 = vld [vmem:[#allocation36 + $0x30] sm:$0xff]   ;;  %v21393_v5 = vld [vmem:[#allocation36 + $0x68] sm:$0xff]  }
 0xf76   : > { %7037 = vmatprep.mubr.f32.mxu0 %v24846_v18  ;;  %6998 = vmatpush1.msra.mxu0 %v6968_v38 }
 0xf77   : > { %6999 = vmatprep.subr.mxu0 %v6967_v40  ;;  %v18794_v40 = vld [vmem:[#allocation37] ss:$0 sm:$0xff] }
 0xf78   : > { %7000 = vmatpush1.msra.mxu0 %v6966_v43 }
 0xf79   : > { %7001 = vmatprep.subr.mxu0 %v6965_v44 }
 0xf7a   : > { %7002 = vmatpush1.msra.mxu0 %v6964_v46 }
 0xf7b   : > { %7003 = vmatprep.subr.mxu0 %v6963_v48 }
 0xf7c   : > { %7004 = vmatpush1.msra.mxu0 %v6962_v49 }
0x1035   : > { %v6898_v11 = vpop.f32.mrf.mxu0 }
0x1036   : > { %v6899_v12 = vadd.f32 %v6898_v11, %v6848_v10  ;;  %v21397_v10 = vld [vmem:[#allocation36 + $0x58] sm:$0xff]  }
0x1037   : > { %v20422_v13 = vpop.f32.mrf.mxu0  ;;  %v21398_v11 = vld [vmem:[#allocation36 + $0x18] sm:$0xff]  }
0x1038   : > { %v6904_v14 = vmax.f32 %v6899_v12, 0.0  ;;  %v21399_v12 = vld [vmem:[#allocation36 + $0x50] sm:$0xff]  }
0x1039   : > { %v6901_v15 = vpop.f32.mrf.mxu0  ;;  %v21400_v13 = vld [vmem:[#allocation36 + $0x10] sm:$0xff]  }
0x103a   : > { %v6905_v17 = vpack.c.bf16 %v6904_v14, %v6904_v14  ;;  %v21401_v14 = vld [vmem:[#allocation36 + $0x48] sm:$0xff]  }
0x103b   : > { %v20423_v20 = vpop.f32.mrf.mxu0  ;;  %v21402_v15 = vld [vmem:[#allocation36 + $0x8] sm:$0xff]  }
0x103c   : > { %20427 = vmatmul.mubr.msk.bf16.vlgmr.msra.gmra.mxu1 %vm6908_vm5, %v6905_v17  ;;  %v21404_v17 = vld [vmem:[#allocation36] sm:$0xff]  }
0x103d   : > { %7163 = vmatpush1.bf16.msra.mxu1 %v21365_v16  ;;  %7194 = vmatprep.mubr.bf16.mxu1 %v24848_v41  ;;  %v21403_v16 = vld [vmem:[#allocation36 + $0x40] sm:$0xff]  }
0x103e   : > { %7164 = vmatprep.subr.bf16.mxu1 %v21370_v19  ;;  %v7070_v19 = vld [vmem:[#allocation34] sm:$0x3] }
0x103f   : > { %v7075_v20 = vrot.slane %v7070_v19, %v26021_v8 }
0x1041   : > { %7165 = vmatpush1.bf16.msra.mxu1 %v21368_v21 }
0x1042   : > { %7166 = vmatprep.subr.bf16.mxu1 %v21373_v22  ;;  %v7079_v22 = vrot.slane %v7070_v19, %v26019_v7  ;;  %v21443_v19 = vld [vmem:[#allocation39 + $0xd4] ss:$8 sps:$4 sm:$0xff]  }
0x1045   : > { %7167 = vmatpush1.bf16.msra.mxu1 %v21371_v24 }
0x1046   : > { %7168 = vmatprep.subr.bf16.mxu1 %v21376_v25 }
0x1049   : > { %7169 = vmatpush1.bf16.msra.mxu1 %v21374_v26 }
0x104a   : > { %7170 = vmatprep.subr.bf16.mxu1 %v21379_v27 }
0x104d   : > { %7171 = vmatpush1.bf16.msra.mxu1 %v21377_v28 }
0x104e   : > { %7172 = vmatprep.subr.bf16.mxu1 %v21382_v29 }
0x1051   : > { %7173 = vmatpush1.bf16.msra.mxu1 %v21380_v30 }
0x1052   : > { %7174 = vmatprep.subr.bf16.mxu1 %v21385_v31 }
0x1055   : > { %7175 = vmatpush1.bf16.msra.mxu1 %v21383_v33 }
0x1056   : > { %7176 = vmatprep.subr.bf16.mxu1 %v21388_v35 }
0x1059   : > { %7177 = vmatpush1.bf16.msra.mxu1 %v21386_v36 }
0x105a   : > { %20430 = vmatprep.subr.mxu1 %v24846_v18 }
0x105c   : > { %7195 = vmatmul.mubr.bf16.vlgmr.msra.gmra.mxu1 %v26126_v23  ;;  %v21389_v23 = vld [vmem:[#allocation36 + $0x78] sm:$0xff]  }
0x105d   : > { %20432 = vmatprep.mubr.msk.f32.mxu1 %vm24847_vm1, %v24846_v18  ;;  %20105 = vmatprep.subr.bf16.mxu0 %v21389_v23  ;;  %v21407_v23 = vld [vmem:[#allocation39 + $0x74] ss:$8 sps:$4 sm:$0xff]  }
0x10fc   : > { %v6950_v51 = vpop.f32.mrf.mxu1 }
0x10fd   : > { %v6951_v52 = vadd.f32 %v6950_v51, %v6907_v50  ;;  %v21405_v50 = vld [vmem:[#allocation39 + $0x70] ss:$8 sps:$4 sm:$0xff]   ;;  %v21434_v51 = vld [vmem:[#allocation39 + $0x174] ss:$8 sps:$4 sm:$0xff]  }
0x10fe   : > { %v20428_v53 = vpop.f32.mrf.mxu1 }
0x10ff   : > { %v6956_v54 = vsub.f32 0.0, %v6951_v52  ;;  %v21410_v52 = vld [vmem:[#allocation39 + $0x64] ss:$8 sps:$4 sm:$0xff]   ;;  %v21432_v53 = vld [vmem:[#allocation39 + $0x170] ss:$8 sps:$4 sm:$0xff]  }
0x1100   : > { %v6953_v55 = vpop.f32.mrf.mxu1 }
0x1101   : > { %v6957_v56 = vmul.f32 1.442695, %v6956_v54  ;;  %v21440_v54 = vld [vmem:[#allocation39 + $0x164] ss:$8 sps:$4 sm:$0xff]   ;;  %v21408_v55 = vld [vmem:[#allocation39 + $0x60] ss:$8 sps:$4 sm:$0xff]  }
0x1102   : > { %v20429_v57 = vpop.f32.mrf.mxu1 }
0x1103   : > { %22826 = vpow2.f32 %v6957_v56  ;;  %v21446_v56 = vld [vmem:[#allocation39 + $0x154] ss:$8 sps:$4 sm:$0xff]   ;;  %v21411_v57 = vld [vmem:[#allocation39 + $0x50] ss:$8 sps:$4 sm:$0xff]  }
0x1110   : > { %v22827_v58 = vpop.eup %22826 }
0x1111   : > { %v6959_v59 = vadd.f32 1.0, %v22827_v58  ;;  %v21416_v58 = vld [vmem:[#allocation39 + $0x44] ss:$8 sps:$4 sm:$0xff]  }
0x1113   : > { %22828 = vrcp.f32 %v6959_v59  ;;  %v21444_v59 = vld [vmem:[#allocation39 + $0x150] ss:$8 sps:$4 sm:$0xff]  }
0x111c   : > { %v7196_v60 = vpop.f32.mrf.mxu1 }
0x111d   : > { %v7197_v26 = vadd.f32 %v7196_v60, %v7075_v20  ;;  %v21452_v60 = vld [vmem:[#allocation39 + $0x144] ss:$8 sps:$4 sm:$0xff]   ;;  %v21441_v20 = vld [vmem:[#allocation39 + $0xd0] ss:$8 sps:$4 sm:$0xff]  }
0x111e   : > { %v7198_v61 = vpop.f32.mrf.mxu1 }
0x111f   : > { %v7199_v29 = vadd.f32 %v7198_v61, %v7079_v22  ;;  %v21414_v61 = vld [vmem:[#allocation39 + $0x40] ss:$8 sps:$4 sm:$0xff]  }
0x1120   : > { %v22829_v0 = vpop.eup %22828  ;;  %v7200_v2 = vpop.f32.mrf.mxu1  ;;  %v21447_v22 = vld [vmem:[#allocation39 + $0xc0] ss:$8 sps:$4 sm:$0xff]  }
0x1121   : > { %18777 = vmatmul.mubr.msk.f32.vlgmr.msra.gmra.mxu0 %vm3394_vm0, %v22829_v0  ;;  %v21417_v0 = vld [vmem:[#allocation39 + $0x30] ss:$8 sps:$4 sm:$0xff]   ;;  %v21422_v2 = vld [vmem:[#allocation39 + $0x24] ss:$8 sps:$4 sm:$0xff]  }
0x1122   : > { %v7201_v3 = vpop.f32.mrf.mxu1  ;;  %20106 = vmatpush3.bf16.msra.mxu0 %v21390_v62  ;;  %v21450_v62 = vld [vmem:[#allocation39 + $0x140] ss:$8 sps:$4 sm:$0xff]  }
0x1123   : > { %20107 = vmatprep.subr.bf16.mxu0 %v21391_v63  ;;  %v21458_v63 = vld [vmem:[#allocation39 + $0x134] ss:$8 sps:$4 sm:$0xff]   ;;  %v21456_v3 = vld [vmem:[#allocation39 + $0x130] ss:$8 sps:$4 sm:$0xff]  }
0x1126   : > { %20108 = vmatpush3.bf16.msra.mxu0 %v21392_v4  ;;  %v21464_v4 = vld [vmem:[#allocation39 + $0x124] ss:$8 sps:$4 sm:$0xff]  }
0x1127   : > { %20109 = vmatprep.subr.bf16.mxu0 %v21393_v5  ;;  %v21420_v5 = vld [vmem:[#allocation39 + $0x20] ss:$8 sps:$4 sm:$0xff]  }
0x112a   : > { %20110 = vmatpush3.bf16.msra.mxu0 %v21394_v6  ;;  %v21425_v6 = vld [vmem:[#allocation39 + $0x14] ss:$8 sps:$4 sm:$0xff]  }
0x112b   : > { %20111 = vmatprep.subr.bf16.mxu0 %v21395_v1  ;;  %v21462_v1 = vld [vmem:[#allocation39 + $0x120] ss:$8 sps:$4 sm:$0xff]  }
0x112e   : > { %20112 = vmatpush3.bf16.msra.mxu0 %v21396_v9  ;;  %v21470_v9 = vld [vmem:[#allocation39 + $0x114] ss:$8 sps:$4 sm:$0xff]  }
0x112f   : > { %20113 = vmatprep.subr.bf16.mxu0 %v21397_v10  ;;  %v21423_v10 = vld [vmem:[#allocation39 + $0x10] ss:$8 sps:$4 sm:$0xff]  }
0x1132   : > { %20114 = vmatpush3.bf16.msra.mxu0 %v21398_v11  ;;  %v21428_v11 = vld [vmem:[#allocation39 + $0x4] ss:$8 sps:$4 sm:$0xff]  }
0x1133   : > { %20115 = vmatprep.subr.bf16.mxu0 %v21399_v12  ;;  %v21468_v12 = vld [vmem:[#allocation39 + $0x110] ss:$8 sps:$4 sm:$0xff]  }
0x1136   : > { %20116 = vmatpush3.bf16.msra.mxu0 %v21400_v13  ;;  %v21426_v13 = vld [vmem:[#allocation39] ss:$8 sps:$4 sm:$0xff]  }
0x1137   : > { %20117 = vmatprep.subr.bf16.mxu0 %v21401_v14  ;;  %v21431_v14 = vld [vmem:[#allocation39 + $0xf4] ss:$8 sps:$4 sm:$0xff]  }
0x113a   : > { %20118 = vmatpush3.bf16.msra.mxu0 %v21402_v15  ;;  %v21429_v15 = vld [vmem:[#allocation39 + $0xf0] ss:$8 sps:$4 sm:$0xff]  }
0x113b   : > { %20119 = vmatprep.subr.bf16.mxu0 %v21403_v16  ;;  %v21437_v16 = vld [vmem:[#allocation39 + $0xe4] ss:$8 sps:$4 sm:$0xff]  }
0x113e   : > { %20120 = vmatpush3.bf16.msra.mxu0 %v21404_v17  ;;  %v21435_v17 = vld [vmem:[#allocation39 + $0xe0] ss:$8 sps:$4 sm:$0xff]  }
0x113f   : > { %20435 = vmatprep.subr.mxu0 %v24846_v18 }
0x11e1   : > { %v7039_v21 = vpop.f32.mrf.mxu0 }
0x11e2   : > { %v7047_v24 = vrot.slane %v7039_v21, %v26021_v8  ;;  %v21449_v21 = vld [vmem:[#allocation39 + $0xc4] ss:$8 sps:$4 sm:$0xff]  }
0x11e3   : > { %v7041_v25 = vpop.f32.mrf.mxu0 }
0x11e4   : > { %v7052_v27 = vmul.f32 %v7047_v24, %v26207_v34  ;;  %v7051_v28 = vrot.slane %v7041_v25, %v26021_v8  ;;  %v21455_v24 = vld [vmem:[#allocation39 + $0xb4] ss:$8 sps:$4 sm:$0xff]   ;;  %v21453_v25 = vld [vmem:[#allocation39 + $0xb0] ss:$8 sps:$4 sm:$0xff]  }
0x11e6   : > { %v7203_v30 = vadd.f32 %v7197_v26, %v7052_v27  ;;  %v7053_v31 = vmul.f32 %v7051_v28, %v26204_v32  ;;  %v21461_v26 = vld [vmem:[#allocation39 + $0xa4] ss:$8 sps:$4 sm:$0xff]   ;;  %v21459_v27 = vld [vmem:[#allocation39 + $0xa0] ss:$8 sps:$4 sm:$0xff]   ;;  %v21467_v28 = vld [vmem:[#allocation39 + $0x94] ss:$8 sps:$4 sm:$0xff]  }
0x11e8   : > { %v7204_v33 = vadd.f32 %v7199_v29, %v7053_v31  ;;  %v26251_v35 = vmax.f32 %v7203_v30, 0.0  ;;  %v21465_v29 = vld [vmem:[#allocation39 + $0x90] ss:$8 sps:$4 sm:$0xff]   ;;  %v21473_v30 = vld [vmem:[#allocation39 + $0x84] ss:$8 sps:$4 sm:$0xff]  }
0x11e9   : > { %v21471_v31 = vld [vmem:[#allocation39 + $0x80] ss:$8 sps:$4 sm:$0xff]  }
0x11ea   : > { %v26253_v36 = vmax.f32 %v7204_v33, 0.0  ;;  %v7207_v38 = vpack.c.bf16 %v26251_v35, %v26251_v35  ;;  %v21476_v33 = vld [vmem:[#allocation39 + $0x104] ss:$8 sps:$4 sm:$0xff]  }
0x11ec   : > { %v7208_v37 = vpack.c.bf16 %v26253_v36, %v26253_v36 }
0x11ee   : > { %7376 = vmatprep.mubr.bf16.mxu0 %v7208_v37  ;;  %v21474_v37 = vld [vmem:[#allocation39 + $0x100] ss:$8 sps:$4 sm:$0xff]  }
0x11ef   : > { %7377 = vmatmul.mubr.bf16.vlgmr.msra.gmra.mxu0 %v7207_v38  ;;  %v21479_v38 = vld [vmem:[#allocation42 + $0x74] ss:$8 sps:$4 sm:$0xff]  }
0x11f0   : > { %20437 = vmatprep.mubr.msk.f32.mxu0 %vm24847_vm1, %v24846_v18 }
0x12af   : > { %v20121_v34 = vpop.f32.mrf.mxu0 }
0x12b1   : > { %v20122_v43 = vpop.f32.mrf.mxu0 }
0x12b2   : > { %v20123_v32 = vadd.f32 %v20122_v43, %v20121_v34 }
0x12b3   : > { %v20124_v44 = vpop.f32.mrf.mxu0 }
0x12b4   : > { %v7379_v46 = vadd.f32 %v20123_v32, %v18794_v40 }
0x12b5   : > { %v20125_v48 = vpop.f32.mrf.mxu0 }
0x12b6   : > { %v7384_v49 = vmax.f32 %v7379_v46, 0.0 }
0x12b8   : > { %20431 = vmatpush3.msra.mxu1 %v7384_v49  ;;  %20436 = vmatpush3.msra.mxu0 %v7384_v49 }
0x12b9   : > { %20433 = vmatmul.mubr.msk.f32.vlgmr.msra.gmra.mxu1 %vm5741_vm3, %v26142_v42  ;;  %20438 = vmatmul.mubr.msk.f32.vlgmr.msra.gmra.mxu0 %vm5741_vm3, %v26149_v45  ;;  %v21413_v42 = vld [vmem:[#allocation39 + $0x54] ss:$8 sps:$4 sm:$0xff]   ;;  %v21438_v45 = vld [vmem:[#allocation39 + $0x160] ss:$8 sps:$4 sm:$0xff]  }
0x12ba   : > { %20440 = vmatprep.subr.mxu1 %v24846_v18  ;;  %20442 = vmatprep.mubr.msk.f32.mxu1 %vm24847_vm1, %v24846_v18 }
0x12bb   : > { %20441 = vmatpush3.msra.mxu1 %v7384_v49  ;;  %7898 = vmatprep.subr.bf16.mxu0 %v21407_v23  ;;  %v21477_v49 = vld [vmem:[#allocation42 + $0x70] ss:$8 sps:$4 sm:$0xff]  }
0x12bc   : > { %7899 = vmatpush1.bf16.msra.mxu0 %v21405_v50  ;;  %7939 = vmatprep.subr.bf16.mxu1 %v21434_v51  ;;  %v21482_v50 = vld [vmem:[#allocation42 + $0x64] ss:$8 sps:$4 sm:$0xff]  }
0x12bd   : > { %20443 = vmatmul.mubr.msk.f32.vlgmr.msra.gmra.mxu1 %vm5741_vm3, %v26157_v47  ;;  %7900 = vmatprep.subr.bf16.mxu0 %v21410_v52  ;;  %v21419_v47 = vld [vmem:[#allocation39 + $0x34] ss:$8 sps:$4 sm:$0xff]   ;;  %v21480_v52 = vld [vmem:[#allocation42 + $0x60] ss:$8 sps:$4 sm:$0xff]  }
0x12be   : > { %7940 = vmatpush1.bf16.msra.mxu1 %v21432_v53  ;;  %7971 = vmatprep.mubr.bf16.mxu1 %v24848_v41  ;;  %v21485_v53 = vld [vmem:[#allocation42 + $0x54] ss:$8 sps:$4 sm:$0xff]  }
0x12bf   : > { %7941 = vmatprep.subr.bf16.mxu1 %v21440_v54  ;;  %v21483_v54 = vld [vmem:[#allocation42 + $0x50] ss:$8 sps:$4 sm:$0xff]  }
0x12c0   : > { %7901 = vmatpush1.bf16.msra.mxu0 %v21408_v55  ;;  %v21488_v55 = vld [vmem:[#allocation42 + $0x44] ss:$8 sps:$4 sm:$0xff]  }
0x12c1   : > { %7902 = vmatprep.subr.bf16.mxu0 %v21413_v42  ;;  %v21486_v42 = vld [vmem:[#allocation42 + $0x40] ss:$8 sps:$4 sm:$0xff]  }
0x12c2   : > { %7942 = vmatpush1.bf16.msra.mxu1 %v21438_v45  ;;  %v21491_v45 = vld [vmem:[#allocation42 + $0x34] ss:$8 sps:$4 sm:$0xff]  }
0x12c3   : > { %7943 = vmatprep.subr.bf16.mxu1 %v21446_v56  ;;  %v21489_v56 = vld [vmem:[#allocation42 + $0x30] ss:$8 sps:$4 sm:$0xff]  }
0x12c4   : > { %7903 = vmatpush1.bf16.msra.mxu0 %v21411_v57  ;;  %v21494_v57 = vld [vmem:[#allocation42 + $0x24] ss:$8 sps:$4 sm:$0xff]  }
0x12c5   : > { %7904 = vmatprep.subr.bf16.mxu0 %v21416_v58  ;;  %v21492_v58 = vld [vmem:[#allocation42 + $0x20] ss:$8 sps:$4 sm:$0xff]  }
0x12c6   : > { %7944 = vmatpush1.bf16.msra.mxu1 %v21444_v59  ;;  %v21497_v59 = vld [vmem:[#allocation42 + $0x14] ss:$8 sps:$4 sm:$0xff]  }
0x12c7   : > { %7945 = vmatprep.subr.bf16.mxu1 %v21452_v60  ;;  %v21495_v60 = vld [vmem:[#allocation42 + $0x10] ss:$8 sps:$4 sm:$0xff]  }
0x12c8   : > { %7905 = vmatpush1.bf16.msra.mxu0 %v21414_v61  ;;  %v21500_v61 = vld [vmem:[#allocation42 + $0x4] ss:$8 sps:$4 sm:$0xff]  }
0x12c9   : > { %7906 = vmatprep.subr.bf16.mxu0 %v21419_v47  ;;  %v21498_v47 = vld [vmem:[#allocation42] ss:$8 sps:$4 sm:$0xff]  }
0x12ca   : > { %7946 = vmatpush1.bf16.msra.mxu1 %v21450_v62  ;;  %v21503_v62 = vld [vmem:[#allocation42 + $0xf4] ss:$8 sps:$4 sm:$0xff]  }
0x12cb   : > { %7947 = vmatprep.subr.bf16.mxu1 %v21458_v63  ;;  %v21501_v63 = vld [vmem:[#allocation42 + $0xf0] ss:$8 sps:$4 sm:$0xff]  }
0x12cc   : > { %7907 = vmatpush1.bf16.msra.mxu0 %v21417_v0  ;;  %v21506_v0 = vld [vmem:[#allocation42 + $0xe4] ss:$8 sps:$4 sm:$0xff]  }
0x12cd   : > { %7908 = vmatprep.subr.bf16.mxu0 %v21422_v2  ;;  %v21504_v2 = vld [vmem:[#allocation42 + $0xe0] ss:$8 sps:$4 sm:$0xff]  }
0x12ce   : > { %7948 = vmatpush1.bf16.msra.mxu1 %v21456_v3  ;;  %v21509_v3 = vld [vmem:[#allocation42 + $0xd4] ss:$8 sps:$4 sm:$0xff]  }
0x12cf   : > { %7949 = vmatprep.subr.bf16.mxu1 %v21464_v4  ;;  %v21507_v4 = vld [vmem:[#allocation42 + $0xd0] ss:$8 sps:$4 sm:$0xff]  }
0x12d0   : > { %7909 = vmatpush1.bf16.msra.mxu0 %v21420_v5  ;;  %v21512_v5 = vld [vmem:[#allocation42 + $0xc4] ss:$8 sps:$4 sm:$0xff]  }
0x12d1   : > { %7910 = vmatprep.subr.bf16.mxu0 %v21425_v6  ;;  %v21510_v6 = vld [vmem:[#allocation42 + $0xc0] ss:$8 sps:$4 sm:$0xff]  }
0x12d2   : > { %7950 = vmatpush1.bf16.msra.mxu1 %v21462_v1  ;;  %v21515_v1 = vld [vmem:[#allocation42 + $0xb4] ss:$8 sps:$4 sm:$0xff]  }
0x12d3   : > { %7951 = vmatprep.subr.bf16.mxu1 %v21470_v9  ;;  %v21513_v9 = vld [vmem:[#allocation42 + $0xb0] ss:$8 sps:$4 sm:$0xff]  }
0x12d4   : > { %7911 = vmatpush1.bf16.msra.mxu0 %v21423_v10  ;;  %v21518_v10 = vld [vmem:[#allocation42 + $0xa4] ss:$8 sps:$4 sm:$0xff]  }
0x12d5   : > { %7912 = vmatprep.subr.bf16.mxu0 %v21428_v11  ;;  %v21516_v11 = vld [vmem:[#allocation42 + $0xa0] ss:$8 sps:$4 sm:$0xff]  }
0x12d6   : > { %7952 = vmatpush1.bf16.msra.mxu1 %v21468_v12  ;;  %v21521_v12 = vld [vmem:[#allocation42 + $0x94] ss:$8 sps:$4 sm:$0xff]  }
0x12d7   : > { %7953 = vmatprep.subr.bf16.mxu1 %v21476_v33 }
0x12d8   : > { %7913 = vmatpush1.bf16.msra.mxu0 %v21426_v13  ;;  %v21519_v13 = vld [vmem:[#allocation42 + $0x90] ss:$8 sps:$4 sm:$0xff]  }
0x12d9   : > { %7914 = vmatprep.subr.bf16.mxu0 %v21431_v14  ;;  %v21524_v14 = vld [vmem:[#allocation42 + $0x84] ss:$8 sps:$4 sm:$0xff]  }
0x12da   : > { %7954 = vmatpush1.bf16.msra.mxu1 %v21474_v37 }
0x12db   : > { %8188 = vmatprep.subr.bf16.mxu1 %v21479_v38 }
0x12dc   : > { %7915 = vmatpush2.bf16.msra.mxu0 %v21429_v15  ;;  %v21522_v15 = vld [vmem:[#allocation42 + $0x80] ss:$8 sps:$4 sm:$0xff]  }
0x12dd   : > { %7916 = vmatprep.subr.bf16.mxu0 %v21437_v16  ;;  %v7646_v16 = vld [vmem:[#allocation40] sm:$0x3] }
0x12e0   : > { %7917 = vmatpush2.bf16.msra.mxu0 %v21435_v17  ;;  %v7651_v17 = vrot.slane %v7646_v16, %v26021_v8 }
0x12e1   : > { %7918 = vmatprep.subr.bf16.mxu0 %v21443_v19  ;;  %v7655_v19 = vrot.slane %v7646_v16, %v26019_v7  ;;  %v8475_v16 = vld [vmem:[#allocation45] sm:$0x1] }
0x12e4   : > { %7919 = vmatpush2.bf16.msra.mxu0 %v21441_v20 }
0x12e5   : > { %7920 = vmatprep.subr.bf16.mxu0 %v21449_v21 }
0x12e8   : > { %7921 = vmatpush2.bf16.msra.mxu0 %v21447_v22 }
0x12e9   : > { %7922 = vmatprep.subr.bf16.mxu0 %v21455_v24 }
0x12ec   : > { %7923 = vmatpush2.bf16.msra.mxu0 %v21453_v25 }
0x12ed   : > { %7924 = vmatprep.subr.bf16.mxu0 %v21461_v26 }
0x12f0   : > { %7925 = vmatpush2.bf16.msra.mxu0 %v21459_v27 }
0x12f1   : > { %7926 = vmatprep.subr.bf16.mxu0 %v21467_v28 }
0x12f4   : > { %7927 = vmatpush2.bf16.msra.mxu0 %v21465_v29 }
0x12f5   : > { %7928 = vmatprep.subr.bf16.mxu0 %v21473_v30 }
0x12f8   : > { %7929 = vmatpush2.bf16.msra.mxu0 %v21471_v31 }
0x1379   : > { %v7451_v34 = vpop.f32.mrf.mxu1  ;;  %v7521_v40 = vpop.f32.mrf.mxu0 }
0x137a   : > { %v7595_v43 = vpack.c.bf16 %v7451_v34, %v7451_v34  ;;  %v7596_v32 = vpack.c.bf16 %v7521_v40, %v7521_v40 }
0x137b   : > { %v20434_v44 = vpop.f32.mrf.mxu1  ;;  %v20439_v46 = vpop.f32.mrf.mxu0 }
0x137c   : > { %7930 = vmatprep.mubr.bf16.mxu0 %v7596_v32 }
0x137d   : > { %v7591_v48 = vpop.f32.mrf.mxu1  ;;  %7931 = vmatmul.mubr.bf16.vlgmr.msra.gmra.mxu0 %v7595_v43  ;;  %v8016_v43 = vld [vmem:[#allocation43] sm:$0x3] }
0x137e   : > { %v7597_v23 = vpack.c.bf16 %v7591_v48, %v7591_v48  ;;  %8293 = vmatprep.mubr.f32.mxu0 %v24846_v18  ;;  %v8025_v32 = vrot.slane %v8016_v43, %v26019_v7  ;;  %v8021_v44 = vrot.slane %v8016_v43, %v26021_v8  ;;  %v21546_v43 = vld [vmem:[#allocation51 + $0x60] ss:$8 sps:$4 sm:$0xff]  }
0x137f   : > { %v20444_v51 = vpop.f32.mrf.mxu1 }
0x1380   : > { %7972 = vmatmul.mubr.bf16.vlgmr.msra.gmra.mxu1 %v7597_v23  ;;  %v21525_v23 = vld [vmem:[%s26914_s10 + $0x78] sm:$0xff]  }
0x1381   : > { %8189 = vmatpush1.bf16.msra.mxu1 %v21477_v49 }
0x1382   : > { %8190 = vmatprep.subr.bf16.mxu1 %v21482_v50 }
0x1385   : > { %8191 = vmatpush1.bf16.msra.mxu1 %v21480_v52  ;;  %v21526_v52 = vld [vmem:[%s26914_s10 + $0x38] sm:$0xff]  }
0x1386   : > { %8192 = vmatprep.subr.bf16.mxu1 %v21485_v53  ;;  %v21527_v53 = vld [vmem:[%s26914_s10 + $0x70] sm:$0xff]  }
0x1389   : > { %8193 = vmatpush1.bf16.msra.mxu1 %v21483_v54 }
0x138a   : > { %8194 = vmatprep.subr.bf16.mxu1 %v21488_v55  ;;  %v21528_v55 = vld [vmem:[%s26914_s10 + $0x30] sm:$0xff]  }
0x138d   : > { %8195 = vmatpush1.bf16.msra.mxu1 %v21486_v42  ;;  %v21529_v42 = vld [vmem:[%s26914_s10 + $0x68] sm:$0xff]  }
0x138e   : > { %8196 = vmatprep.subr.bf16.mxu1 %v21491_v45  ;;  %v21530_v45 = vld [vmem:[%s26914_s10 + $0x28] sm:$0xff]  }
0x1391   : > { %8197 = vmatpush1.bf16.msra.mxu1 %v21489_v56  ;;  %v21531_v56 = vld [vmem:[%s26914_s10 + $0x60] sm:$0xff]  }
0x1392   : > { %8198 = vmatprep.subr.bf16.mxu1 %v21494_v57  ;;  %v21532_v57 = vld [vmem:[%s26914_s10 + $0x20] sm:$0xff]  }
0x1395   : > { %8199 = vmatpush1.bf16.msra.mxu1 %v21492_v58  ;;  %v21533_v58 = vld [vmem:[%s26914_s10 + $0x58] sm:$0xff]  }
0x1396   : > { %8200 = vmatprep.subr.bf16.mxu1 %v21497_v59  ;;  %v21535_v59 = vld [vmem:[%s26914_s10 + $0x50] sm:$0xff]  }
0x1399   : > { %8201 = vmatpush1.bf16.msra.mxu1 %v21495_v60  ;;  %v21536_v60 = vld [vmem:[%s26914_s10 + $0x10] sm:$0xff]  }
0x139a   : > { %8202 = vmatprep.subr.bf16.mxu1 %v21500_v61  ;;  %v21537_v61 = vld [vmem:[%s26914_s10 + $0x48] sm:$0xff]  }
0x139d   : > { %8203 = vmatpush1.bf16.msra.mxu1 %v21498_v47  ;;  %v21538_v47 = vld [vmem:[%s26914_s10 + $0x8] sm:$0xff]  }
0x139e   : > { %8204 = vmatprep.subr.bf16.mxu1 %v21503_v62  ;;  %v21539_v62 = vld [vmem:[%s26914_s10 + $0x40] sm:$0xff]  }
0x13a1   : > { %8205 = vmatpush2.bf16.msra.mxu1 %v21501_v63  ;;  %v21540_v63 = vld [vmem:[%s26914_s10] sm:$0xff]  }
0x13a2   : > { %8206 = vmatprep.subr.bf16.mxu1 %v21506_v0 }
0x13a5   : > { %8207 = vmatpush2.bf16.msra.mxu1 %v21504_v2 }
0x13a6   : > { %8208 = vmatprep.subr.bf16.mxu1 %v21509_v3 }
0x13a9   : > { %8209 = vmatpush2.bf16.msra.mxu1 %v21507_v4 }
0x13aa   : > { %8210 = vmatprep.subr.bf16.mxu1 %v21512_v5  ;;  %v21541_v5 = vld [vmem:[%s26915_s11 + $0x8] sm:$0xff]  }
0x13ad   : > { %8211 = vmatpush2.bf16.msra.mxu1 %v21510_v6  ;;  %v21542_v6 = vld [vmem:[%s26915_s11] sm:$0xff]  }
0x13ae   : > { %8212 = vmatprep.subr.bf16.mxu1 %v21515_v1 }
0x13b1   : > { %8213 = vmatpush2.bf16.msra.mxu1 %v21513_v9 }
0x13b2   : > { %8214 = vmatprep.subr.bf16.mxu1 %v21518_v10 }
0x13b5   : > { %8215 = vmatpush2.bf16.msra.mxu1 %v21516_v11 }
0x13b6   : > { %8216 = vmatprep.subr.bf16.mxu1 %v21521_v12 }
0x13b9   : > { %8217 = vmatpush2.bf16.msra.mxu1 %v21519_v13 }
0x13ba   : > { %8218 = vmatprep.subr.bf16.mxu1 %v21524_v14  ;;  %v8533_v14 = vld [vmem:[#allocation46] sm:$0x3] }
0x13bd   : > { %8219 = vmatpush2.bf16.msra.mxu1 %v21522_v15  ;;  %v8539_v15 = vsel %vm6912_vm4, %v8533_v14, 0  ;;  %v21582_v14 = vld [vmem:[#allocation51 + $0xa0] ss:$8 sps:$4 sm:$0xff]  }
0x13be   : > { %20445 = vmatprep.subr.bf16.mxu1 %v24846_v18 }
0x143d   : > { %v7932_v20 = vpop.f32.mrf.mxu0 }
0x143e   : > { %v7933_v21 = vadd.f32 %v7932_v20, %v7651_v17 }
0x143f   : > { %v7934_v22 = vpop.f32.mrf.mxu0 }
0x1440   : > { %v7935_v24 = vadd.f32 %v7934_v22, %v7655_v19  ;;  %v7973_v25 = vpop.f32.mrf.mxu1 }
0x1441   : > { %v7974_v26 = vadd.f32 %v7973_v25, %v7933_v21  ;;  %v7936_v27 = vpop.f32.mrf.mxu0 }
0x1442   : > { %v7975_v28 = vpop.f32.mrf.mxu1  ;;  %v8593_v27 = vld [vmem:[#allocation49 + $0x30] sm:$0xff] }
0x1443   : > { %v7976_v29 = vadd.f32 %v7975_v28, %v7935_v24  ;;  %v7937_v30 = vpop.f32.mrf.mxu0  ;;  %v7980_v31 = vmax.f32 %v7974_v26, 0.0  ;;  %v8594_v26 = vld [vmem:[#allocation49 + $0x38] sm:$0xff]  ;;  %v8592_v28 = vld [vmem:[#allocation49 + $0x28] sm:$0xff] }
0x1444   : > { %v7977_v33 = vpop.f32.mrf.mxu1  ;;  %v8590_v30 = vld [vmem:[#allocation49 + $0x18] sm:$0xff] }
0x1445   : > { %v7981_v37 = vmax.f32 %v7976_v29, 0.0  ;;  %v7982_v40 = vpack.c.bf16 %v7980_v31, %v7980_v31  ;;  %v8591_v29 = vld [vmem:[#allocation49 + $0x20] sm:$0xff]  ;;  %v8589_v31 = vld [vmem:[#allocation49 + $0x10] sm:$0xff]  ;;  %v8588_v33 = vld [vmem:[#allocation49 + $0x8] sm:$0xff] }
0x1446   : > { %v7978_v38 = vpop.f32.mrf.mxu1 }
0x1447   : > { %v7983_v34 = vpack.c.bf16 %v7981_v37, %v7981_v37  ;;  %v8587_v37 = vld [vmem:[#allocation49] sm:$0xff]  ;;  %v21543_v38 = vld [vmem:[#allocation51 + $0x70] ss:$8 sps:$4 sm:$0xff]  }
0x1449   : > { %8220 = vmatprep.mubr.bf16.mxu1 %v7983_v34  ;;  %v21545_v34 = vld [vmem:[#allocation51 + $0x74] ss:$8 sps:$4 sm:$0xff]  }
0x144a   : > { %8221 = vmatmul.mubr.bf16.vlgmr.msra.gmra.mxu1 %v7982_v40  ;;  %v21548_v40 = vld [vmem:[#allocation51 + $0x64] ss:$8 sps:$4 sm:$0xff]  }
0x144b   : > { %20449 = vmatprep.mubr.msk.bf16.mxu1 %vm24847_vm1, %v24846_v18  ;;  %20446 = vmatpush3.bf16.msra.mxu1 %v21541_v5 }
0x144c   : > { %20447 = vmatprep.subr.bf16.mxu1 %v24846_v18 }
0x144f   : > { %20448 = vmatpush3.bf16.msra.mxu1 %v21542_v6 }
0x1450   : > { %8622 = vmatprep.subr.mxu1 %v8594_v26 }
0x150a   : > { %v8222_v46 = vpop.f32.mrf.mxu1 }
0x150b   : > { %v26282_v50 = vadd.f32 %v8222_v46, %v8021_v44  ;;  %v21549_v44 = vld [vmem:[#allocation51 + $0x50] ss:$8 sps:$4 sm:$0xff]   ;;  %v21554_v46 = vld [vmem:[#allocation51 + $0x44] ss:$8 sps:$4 sm:$0xff]  }
0x150c   : > { %v8224_v48 = vpop.f32.mrf.mxu1 }
0x150d   : > { %v26279_v49 = vadd.f32 %v8224_v48, %v8025_v32  ;;  %v21551_v32 = vld [vmem:[#allocation51 + $0x54] ss:$8 sps:$4 sm:$0xff]   ;;  %v21552_v48 = vld [vmem:[#allocation51 + $0x40] ss:$8 sps:$4 sm:$0xff]  }
0x150e   : > { %v8226_v51 = vpop.f32.mrf.mxu1 }
0x150f   : > { %8259 = vmatprep.subr.mxu0 %v26279_v49  ;;  %v21555_v51 = vld [vmem:[#allocation51 + $0x30] ss:$8 sps:$4 sm:$0xff]  }
0x1510   : > { %v8227_v54 = vpop.f32.mrf.mxu1  ;;  %8260 = vmatpush1.msra.mxu0 %v26282_v50 }
0x1511   : > { %18894 = vmatmul.mubr.msk.f32.vlgmr.msra.gmra.mxu0 %vm5741_vm3, %v24849_v39  ;;  %20133 = vmatprep.subr.bf16.mxu0 %v21525_v23  ;;  %v21534_v39 = vld [vmem:[%s26914_s10 + $0x18] sm:$0xff]  }
0x1512   : > { %20134 = vmatpush3.bf16.msra.mxu0 %v21526_v52  ;;  %v21557_v23 = vld [vmem:[#allocation51 + $0x34] ss:$8 sps:$4 sm:$0xff]   ;;  %v21560_v52 = vld [vmem:[#allocation51 + $0x24] ss:$8 sps:$4 sm:$0xff]  }
0x1513   : > { %20135 = vmatprep.subr.bf16.mxu0 %v21527_v53  ;;  %v21558_v53 = vld [vmem:[#allocation51 + $0x20] ss:$8 sps:$4 sm:$0xff]   ;;  %v21563_v54 = vld [vmem:[#allocation51 + $0x14] ss:$8 sps:$4 sm:$0xff]  }
0x1516   : > { %20136 = vmatpush3.bf16.msra.mxu0 %v21528_v55  ;;  %v21561_v55 = vld [vmem:[#allocation51 + $0x10] ss:$8 sps:$4 sm:$0xff]  }
0x1517   : > { %20137 = vmatprep.subr.bf16.mxu0 %v21529_v42  ;;  %v21566_v42 = vld [vmem:[#allocation51 + $0x4] ss:$8 sps:$4 sm:$0xff]  }
0x151a   : > { %20138 = vmatpush3.bf16.msra.mxu0 %v21530_v45  ;;  %v21564_v45 = vld [vmem:[#allocation51] ss:$8 sps:$4 sm:$0xff]  }
0x151b   : > { %20139 = vmatprep.subr.bf16.mxu0 %v21531_v56  ;;  %v21569_v56 = vld [vmem:[#allocation51 + $0xf4] ss:$8 sps:$4 sm:$0xff]  }
0x151e   : > { %20140 = vmatpush3.bf16.msra.mxu0 %v21532_v57  ;;  %v21567_v57 = vld [vmem:[#allocation51 + $0xf0] ss:$8 sps:$4 sm:$0xff]  }
0x151f   : > { %20141 = vmatprep.subr.bf16.mxu0 %v21533_v58  ;;  %v21572_v58 = vld [vmem:[#allocation51 + $0xe4] ss:$8 sps:$4 sm:$0xff]  }
0x1522   : > { %20142 = vmatpush3.bf16.msra.mxu0 %v21534_v39  ;;  %v21570_v39 = vld [vmem:[#allocation51 + $0xe0] ss:$8 sps:$4 sm:$0xff]  }
0x1523   : > { %20143 = vmatprep.subr.bf16.mxu0 %v21535_v59  ;;  %v21575_v59 = vld [vmem:[#allocation51 + $0xd4] ss:$8 sps:$4 sm:$0xff]  }
0x1526   : > { %20144 = vmatpush3.bf16.msra.mxu0 %v21536_v60  ;;  %v21573_v60 = vld [vmem:[#allocation51 + $0xd0] ss:$8 sps:$4 sm:$0xff]  }
0x1527   : > { %20145 = vmatprep.subr.bf16.mxu0 %v21537_v61  ;;  %v21578_v61 = vld [vmem:[#allocation51 + $0xc4] ss:$8 sps:$4 sm:$0xff]  }
0x152a   : > { %20146 = vmatpush3.bf16.msra.mxu0 %v21538_v47  ;;  %v21576_v47 = vld [vmem:[#allocation51 + $0xc0] ss:$8 sps:$4 sm:$0xff]  }
0x152b   : > { %20147 = vmatprep.subr.bf16.mxu0 %v21539_v62  ;;  %v21581_v62 = vld [vmem:[#allocation51 + $0xb4] ss:$8 sps:$4 sm:$0xff]  }
0x152e   : > { %20148 = vmatpush3.bf16.msra.mxu0 %v21540_v63  ;;  %v21579_v63 = vld [vmem:[#allocation51 + $0xb0] ss:$8 sps:$4 sm:$0xff]  }
0x152f   : > { %20453 = vmatprep.subr.bf16.mxu0 %v24846_v18 }
0x15d1   : > { %v8295_v0 = vpop.f32.mrf.mxu0 }
0x15d2   : > { %v8300_v4 = vpack.c.bf16 %v8295_v0, %v8295_v0  ;;  %v8534_v0 = vld [vmem:[#allocation48] sm:$0x1] }
0x15d3   : > { %v8297_v2 = vpop.f32.mrf.mxu0 }
0x15d4   : > { %v8301_v3 = vpack.c.bf16 %v8297_v2, %v8297_v2 }
0x15d6   : > { %8462 = vmatprep.mubr.bf16.mxu0 %v8301_v3 }
0x15d7   : > { %8463 = vmatmul.mubr.bf16.vlgmr.msra.gmra.mxu0 %v8300_v4 }
0x15d8   : > { %20455 = vmatprep.mubr.msk.bf16.mxu0 %vm24847_vm1, %v24846_v18  ;;  %20454 = vmatpush3.bf16.msra.mxu0 %v8539_v15  ;;  %v21587_v15 = vld [vmem:[#allocation51 + $0x94] ss:$8 sps:$4 sm:$0xff]  }
0x15d9   : > { %8889 = vmatprep.subr.bf16.mxu0 %v21545_v34  ;;  %v21615_v34 = vld [vmem:[%s26916_s8 + $0x140] ss:$8 sps:$4 sm:$0xff]  }
0x1697   : > { %v20149_v1 = vpop.f32.mrf.mxu0 }
0x1699   : > { %v20150_v9 = vpop.f32.mrf.mxu0 }
0x169a   : > { %v20151_v10 = vadd.f32 %v20150_v9, %v20149_v1 }
0x169b   : > { %v20152_v11 = vpop.f32.mrf.mxu0 }
0x169c   : > { %v8470_v12 = vpack.c.bf16 %v20151_v10, %v20151_v10 }
0x169d   : > { %v20153_v13 = vpop.f32.mrf.mxu0 }
0x169e   : > { %20450 = vmatmul.mubr.msk.bf16.vlgmr.msra.gmra.mxu1 %vm3394_vm0, %v8470_v12  ;;  %v21584_v13 = vld [vmem:[#allocation51 + $0xa4] ss:$8 sps:$4 sm:$0xff]  }
0x169f   : > { %8662 = vmatprep.mubr.f32.mxu1 %v24846_v18  ;;  %8623 = vmatpush1.msra.mxu1 %v8593_v27 }
0x16a0   : > { %8624 = vmatprep.subr.mxu1 %v8592_v28 }
0x16a1   : > { %8625 = vmatpush1.msra.mxu1 %v8591_v29 }
0x16a2   : > { %8626 = vmatprep.subr.mxu1 %v8590_v30 }
0x16a3   : > { %8627 = vmatpush1.msra.mxu1 %v8589_v31 }
0x16a4   : > { %8628 = vmatprep.subr.mxu1 %v8588_v33  ;;  %v21605_v33 = vld [vmem:[%s26916_s8 + $0x164] ss:$8 sps:$4 sm:$0xff]  }
0x16a5   : > { %8629 = vmatpush1.msra.mxu1 %v8587_v37  ;;  %v21609_v37 = vld [vmem:[%s26916_s8 + $0x150] ss:$8 sps:$4 sm:$0xff]  }
0x175e   : > { %v8525_v17 = vpop.f32.mrf.mxu1 }
0x175f   : > { %v8526_v19 = vadd.f32 %v8525_v17, %v8475_v16  ;;  %v21585_v16 = vld [vmem:[#allocation51 + $0x90] ss:$8 sps:$4 sm:$0xff]   ;;  %v21588_v17 = vld [vmem:[#allocation51 + $0x80] ss:$8 sps:$4 sm:$0xff]  }
0x1760   : > { %v20451_v20 = vpop.f32.mrf.mxu1 }
0x1761   : > { %v8531_v21 = vmax.f32 %v8526_v19, 0.0  ;;  %v21590_v19 = vld [vmem:[#allocation51 + $0x84] ss:$8 sps:$4 sm:$0xff]  }
0x1762   : > { %v8528_v22 = vpop.f32.mrf.mxu1 }
0x1763   : > { %v8532_v24 = vpack.c.bf16 %v8531_v21, %v8531_v21 }
0x1764   : > { %v20452_v25 = vpop.f32.mrf.mxu1 }
0x1765   : > { %20456 = vmatmul.mubr.msk.bf16.vlgmr.msra.gmra.mxu0 %vm6908_vm5, %v8532_v24 }
0x1766   : > { %8890 = vmatpush1.bf16.msra.mxu0 %v21543_v38  ;;  %v21611_v38 = vld [vmem:[%s26916_s8 + $0x154] ss:$8 sps:$4 sm:$0xff]  }
0x1767   : > { %8891 = vmatprep.subr.bf16.mxu0 %v21548_v40  ;;  %v21617_v40 = vld [vmem:[%s26916_s8 + $0x144] ss:$8 sps:$4 sm:$0xff]  }
0x176a   : > { %8892 = vmatpush1.bf16.msra.mxu0 %v21546_v43  ;;  %v21621_v43 = vld [vmem:[%s26916_s8 + $0x130] ss:$8 sps:$4 sm:$0xff]  }
0x176b   : > { %8893 = vmatprep.subr.bf16.mxu0 %v21551_v32  ;;  %v21623_v32 = vld [vmem:[%s26916_s8 + $0x134] ss:$8 sps:$4 sm:$0xff]  }
0x176e   : > { %8894 = vmatpush1.bf16.msra.mxu0 %v21549_v44  ;;  %v21627_v44 = vld [vmem:[%s26916_s8 + $0x120] ss:$8 sps:$4 sm:$0xff]  }
0x176f   : > { %8895 = vmatprep.subr.bf16.mxu0 %v21554_v46  ;;  %v21629_v46 = vld [vmem:[%s26916_s8 + $0x124] ss:$8 sps:$4 sm:$0xff]  }
0x1772   : > { %8896 = vmatpush1.bf16.msra.mxu0 %v21552_v48  ;;  %v21633_v48 = vld [vmem:[%s26916_s8 + $0x110] ss:$8 sps:$4 sm:$0xff]  }
0x1773   : > { %8897 = vmatprep.subr.bf16.mxu0 %v21557_v23  ;;  %v21635_v23 = vld [vmem:[%s26916_s8 + $0x114] ss:$8 sps:$4 sm:$0xff]  }
0x1776   : > { %8898 = vmatpush1.bf16.msra.mxu0 %v21555_v51  ;;  %v21639_v51 = vld [vmem:[%s26916_s8 + $0x100] ss:$8 sps:$4 sm:$0xff]  }
0x1777   : > { %8899 = vmatprep.subr.bf16.mxu0 %v21560_v52  ;;  %v21641_v52 = vld [vmem:[%s26916_s8 + $0x104] ss:$8 sps:$4 sm:$0xff]  }
0x177a   : > { %8900 = vmatpush1.bf16.msra.mxu0 %v21558_v53  ;;  %v21645_v53 = vld [vmem:[%s26916_s8 + $0x1f0] ss:$8 sps:$4 sm:$0xff]  }
0x177b   : > { %8901 = vmatprep.subr.bf16.mxu0 %v21563_v54  ;;  %v21647_v54 = vld [vmem:[%s26916_s8 + $0x1f4] ss:$8 sps:$4 sm:$0xff]  }
0x177e   : > { %8902 = vmatpush1.bf16.msra.mxu0 %v21561_v55  ;;  %v21651_v55 = vld [vmem:[%s26916_s8 + $0x1e0] ss:$8 sps:$4 sm:$0xff]  }
0x177f   : > { %8903 = vmatprep.subr.bf16.mxu0 %v21566_v42  ;;  %v21653_v42 = vld [vmem:[%s26916_s8 + $0x1e4] ss:$8 sps:$4 sm:$0xff]  }
0x1782   : > { %8904 = vmatpush1.bf16.msra.mxu0 %v21564_v45  ;;  %v21657_v45 = vld [vmem:[%s26916_s8 + $0x1d0] ss:$8 sps:$4 sm:$0xff]  }
0x1783   : > { %8905 = vmatprep.subr.bf16.mxu0 %v21569_v56  ;;  %v21659_v56 = vld [vmem:[%s26916_s8 + $0x1d4] ss:$8 sps:$4 sm:$0xff]  }
0x1786   : > { %8906 = vmatpush2.bf16.msra.mxu0 %v21567_v57  ;;  %v21663_v57 = vld [vmem:[%s26916_s8 + $0x1c0] ss:$8 sps:$4 sm:$0xff]  }
0x1787   : > { %8907 = vmatprep.subr.bf16.mxu0 %v21572_v58  ;;  %v21665_v58 = vld [vmem:[%s26916_s8 + $0x1c4] ss:$8 sps:$4 sm:$0xff]  }
0x178a   : > { %8908 = vmatpush2.bf16.msra.mxu0 %v21570_v39  ;;  %v21669_v39 = vld [vmem:[%s26916_s8 + $0x1b0] ss:$8 sps:$4 sm:$0xff]  }
0x178b   : > { %8909 = vmatprep.subr.bf16.mxu0 %v21575_v59  ;;  %v21671_v59 = vld [vmem:[%s26916_s8 + $0x1b4] ss:$8 sps:$4 sm:$0xff]  }
0x178e   : > { %8910 = vmatpush2.bf16.msra.mxu0 %v21573_v60  ;;  %v21675_v60 = vld [vmem:[%s26916_s8 + $0x1a0] ss:$8 sps:$4 sm:$0xff]  }
0x178f   : > { %8911 = vmatprep.subr.bf16.mxu0 %v21578_v61  ;;  %v21677_v61 = vld [vmem:[%s26916_s8 + $0x1a4] ss:$8 sps:$4 sm:$0xff]  }
0x1792   : > { %8912 = vmatpush2.bf16.msra.mxu0 %v21576_v47  ;;  %v8717_v47 = vld [vmem:[#allocation52] sm:$0x3] }
0x1793   : > { %8913 = vmatprep.subr.bf16.mxu0 %v21581_v62  ;;  %v8722_v62 = vrot.slane %v8717_v47, %v26021_v8 }
0x1796   : > { %8914 = vmatpush2.bf16.msra.mxu0 %v21579_v63  ;;  %v8726_v63 = vrot.slane %v8717_v47, %v26019_v7 }
0x1797   : > { %8915 = vmatprep.subr.bf16.mxu0 %v21584_v13  ;;  %v26370_v13 = vld [vmem:[#allocation9 + $0x8] sm:$0xf] }
0x179a   : > { %8916 = vmatpush2.bf16.msra.mxu0 %v21582_v14  ;;  %v21591_v14 = vld [vmem:[%s26916_s8 + $0x70] ss:$8 sps:$4 sm:$0xff]  }
0x179b   : > { %8917 = vmatprep.subr.bf16.mxu0 %v21587_v15  ;;  %v21596_v15 = vld [vmem:[%s26916_s8 + $0x64] ss:$8 sps:$4 sm:$0xff]  }
0x179e   : > { %8918 = vmatpush2.bf16.msra.mxu0 %v21585_v16  ;;  %v21594_v16 = vld [vmem:[%s26916_s8 + $0x60] ss:$8 sps:$4 sm:$0xff]  }
0x179f   : > { %8919 = vmatprep.subr.bf16.mxu0 %v21590_v19  ;;  %v21600_v19 = vld [vmem:[%s26916_s8 + $0x50] ss:$8 sps:$4 sm:$0xff]  }
0x17a2   : > { %8920 = vmatpush2.bf16.msra.mxu0 %v21588_v17  ;;  %v21602_v17 = vld [vmem:[%s26916_s8 + $0x54] ss:$8 sps:$4 sm:$0xff]  }
0x1825   : > { %v8575_v2 = vpop.f32.mrf.mxu0 }
0x1826   : > { %v8576_v3 = vadd.f32 %v8575_v2, %v8534_v0 }
0x1827   : > { %v20457_v4 = vpop.f32.mrf.mxu0 }
0x1828   : > { %v8581_v5 = vsub.f32 0.0, %v8576_v3 }
0x1829   : > { %v8578_v6 = vpop.f32.mrf.mxu0 }
0x182a   : > { %v8582_v1 = vmul.f32 1.442695, %v8581_v5 }
0x182b   : > { %v20458_v9 = vpop.f32.mrf.mxu0 }
0x182c   : > { %22830 = vpow2.f32 %v8582_v1 }
0x1839   : > { %v22831_v10 = vpop.eup %22830 }
0x183a   : > { %v8584_v11 = vadd.f32 1.0, %v22831_v10  ;;  %v26359_v10 = vld [vmem:[#allocation9] sm:$0xf] }
0x183c   : > { %22832 = vrcp.f32 %v8584_v11  ;;  %v26364_v11 = vld [vmem:[#allocation9 + $0x4] sm:$0xf] }
0x1849   : > { %v22833_v12 = vpop.eup %22832 }
0x184a   : > { %18915 = vmatmul.mubr.msk.f32.vlgmr.msra.gmra.mxu1 %vm3394_vm0, %v22833_v12  ;;  %v21593_v12 = vld [vmem:[%s26916_s8 + $0x74] ss:$8 sps:$4 sm:$0xff]  }
0x184b   : > { %9000 = vmatprep.mubr.f32.mxu1 %v24846_v18 }
0x190a   : > { %v8664_v20 = vpop.f32.mrf.mxu1 }
0x190b   : > { %v8672_v21 = vrot.slane %v8664_v20, %v26021_v8  ;;  %v21608_v20 = vld [vmem:[%s26916_s8 + $0x44] ss:$8 sps:$4 sm:$0xff]  }
0x190c   : > { %v8666_v22 = vpop.f32.mrf.mxu1 }
0x190d   : > { %v8677_v24 = vmul.f32 %v8672_v21, %v26282_v50  ;;  %v8676_v25 = vrot.slane %v8666_v22, %v26021_v8  ;;  %v21606_v21 = vld [vmem:[%s26916_s8 + $0x40] ss:$8 sps:$4 sm:$0xff]   ;;  %v21614_v22 = vld [vmem:[%s26916_s8 + $0x34] ss:$8 sps:$4 sm:$0xff]  }
0x190f   : > { %v8679_v26 = vadd.f32 %v8677_v24, %v26251_v35  ;;  %v8678_v27 = vmul.f32 %v8676_v25, %v26279_v49  ;;  %v21597_v35 = vld [vmem:[%s26916_s8 + $0x170] ss:$8 sps:$4 sm:$0xff]   ;;  %v21599_v49 = vld [vmem:[%s26916_s8 + $0x174] ss:$8 sps:$4 sm:$0xff]   ;;  %v21620_v25 = vld [vmem:[%s26916_s8 + $0x24] ss:$8 sps:$4 sm:$0xff]  }
0x1910   : > { %9794 = vmatprep.subr.bf16.mxu0 %v21599_v49  ;;  %v21612_v24 = vld [vmem:[%s26916_s8 + $0x30] ss:$8 sps:$4 sm:$0xff]  }
0x1911   : > { %v8680_v28 = vadd.f32 %v8678_v27, %v26253_v36  ;;  %v26321_v29 = vmax.f32 %v8679_v26, 0.0  ;;  %v21603_v36 = vld [vmem:[%s26916_s8 + $0x160] ss:$8 sps:$4 sm:$0xff]   ;;  %v21626_v27 = vld [vmem:[%s26916_s8 + $0x14] ss:$8 sps:$4 sm:$0xff]  }
0x1912   : > { %v21618_v26 = vld [vmem:[%s26916_s8 + $0x20] ss:$8 sps:$4 sm:$0xff]   ;;  %v21636_v49 = vld [vmem:[%s26916_s8 + $0xf0] ss:$8 sps:$4 sm:$0xff]  }
0x1913   : > { %v26323_v30 = vmax.f32 %v8680_v28, 0.0  ;;  %v8683_v50 = vpack.c.bf16 %v26321_v29, %v26321_v29  ;;  %v21624_v28 = vld [vmem:[%s26916_s8 + $0x10] ss:$8 sps:$4 sm:$0xff]  }
0x1915   : > { %v8684_v31 = vpack.c.bf16 %v26323_v30, %v26323_v30 }
0x1917   : > { %8921 = vmatprep.mubr.bf16.mxu0 %v8684_v31  ;;  %v21632_v31 = vld [vmem:[%s26916_s8 + $0x4] ss:$8 sps:$4 sm:$0xff]  }
0x1918   : > { %8922 = vmatmul.mubr.bf16.vlgmr.msra.gmra.mxu0 %v8683_v50  ;;  %v21630_v50 = vld [vmem:[%s26916_s8] ss:$8 sps:$4 sm:$0xff]  }
0x1919   : > { %9795 = vmatpush1.bf16.msra.mxu0 %v21597_v35  ;;  %v21638_v35 = vld [vmem:[%s26916_s8 + $0xf4] ss:$8 sps:$4 sm:$0xff]  }
0x191a   : > { %9796 = vmatprep.subr.bf16.mxu0 %v21605_v33  ;;  %v21642_v33 = vld [vmem:[%s26916_s8 + $0xe0] ss:$8 sps:$4 sm:$0xff]  }
0x191d   : > { %9797 = vmatpush1.bf16.msra.mxu0 %v21603_v36  ;;  %v21644_v36 = vld [vmem:[%s26916_s8 + $0xe4] ss:$8 sps:$4 sm:$0xff]  }
0x191e   : > { %9798 = vmatprep.subr.bf16.mxu0 %v21611_v38  ;;  %v21648_v38 = vld [vmem:[%s26916_s8 + $0xd0] ss:$8 sps:$4 sm:$0xff]  }
0x1921   : > { %9799 = vmatpush1.bf16.msra.mxu0 %v21609_v37  ;;  %v21650_v37 = vld [vmem:[%s26916_s8 + $0xd4] ss:$8 sps:$4 sm:$0xff]  }
0x1922   : > { %9800 = vmatprep.subr.bf16.mxu0 %v21617_v40  ;;  %v21654_v40 = vld [vmem:[%s26916_s8 + $0xc0] ss:$8 sps:$4 sm:$0xff]  }
0x1925   : > { %9801 = vmatpush1.bf16.msra.mxu0 %v21615_v34  ;;  %v21656_v34 = vld [vmem:[%s26916_s8 + $0xc4] ss:$8 sps:$4 sm:$0xff]  }
0x1926   : > { %9802 = vmatprep.subr.bf16.mxu0 %v21623_v32  ;;  %v21660_v32 = vld [vmem:[%s26916_s8 + $0xb0] ss:$8 sps:$4 sm:$0xff]  }
0x1929   : > { %9803 = vmatpush1.bf16.msra.mxu0 %v21621_v43  ;;  %v21662_v43 = vld [vmem:[%s26916_s8 + $0xb4] ss:$8 sps:$4 sm:$0xff]  }
0x192a   : > { %9804 = vmatprep.subr.bf16.mxu0 %v21629_v46  ;;  %v21666_v46 = vld [vmem:[%s26916_s8 + $0xa0] ss:$8 sps:$4 sm:$0xff]  }
0x192d   : > { %9805 = vmatpush1.bf16.msra.mxu0 %v21627_v44  ;;  %v21668_v44 = vld [vmem:[%s26916_s8 + $0xa4] ss:$8 sps:$4 sm:$0xff]  }
0x192e   : > { %9806 = vmatprep.subr.bf16.mxu0 %v21635_v23  ;;  %v21672_v23 = vld [vmem:[%s26916_s8 + $0x90] ss:$8 sps:$4 sm:$0xff]  }
0x1931   : > { %9807 = vmatpush1.bf16.msra.mxu0 %v21633_v48  ;;  %v21674_v48 = vld [vmem:[%s26916_s8 + $0x94] ss:$8 sps:$4 sm:$0xff]  }
0x1932   : > { %9808 = vmatprep.subr.bf16.mxu0 %v21641_v52  ;;  %v21678_v52 = vld [vmem:[%s26916_s8 + $0x80] ss:$8 sps:$4 sm:$0xff]  }
0x1935   : > { %9809 = vmatpush1.bf16.msra.mxu0 %v21639_v51  ;;  %v21680_v51 = vld [vmem:[%s26916_s8 + $0x84] ss:$8 sps:$4 sm:$0xff]  }
0x1936   : > { %9810 = vmatprep.subr.bf16.mxu0 %v21647_v54  ;;  %v21681_v54 = vld [vmem:[%s26916_s8 + $0x190] ss:$8 sps:$4 sm:$0xff]  }
0x1939   : > { %9811 = vmatpush2.bf16.msra.mxu0 %v21645_v53  ;;  %v21683_v53 = vld [vmem:[%s26916_s8 + $0x194] ss:$8 sps:$4 sm:$0xff]  }
0x193a   : > { %9812 = vmatprep.subr.bf16.mxu0 %v21653_v42  ;;  %v21689_v42 = vld [vmem:[%s26916_s8 + $0x184] ss:$8 sps:$4 sm:$0xff]  }
0x193d   : > { %9813 = vmatpush2.bf16.msra.mxu0 %v21651_v55  ;;  %v21686_v55 = vld [vmem:[%s26916_s8 + $0x274] ss:$8 sps:$4 sm:$0xff]  }
0x193e   : > { %9814 = vmatprep.subr.bf16.mxu0 %v21659_v56 }
0x1941   : > { %9815 = vmatpush2.bf16.msra.mxu0 %v21657_v45  ;;  %v21687_v45 = vld [vmem:[%s26916_s8 + $0x180] ss:$8 sps:$4 sm:$0xff]  }
0x1942   : > { %9816 = vmatprep.subr.bf16.mxu0 %v21665_v58 }
0x1945   : > { %9817 = vmatpush2.bf16.msra.mxu0 %v21663_v57 }
0x1946   : > { %9818 = vmatprep.subr.bf16.mxu0 %v21671_v59 }
0x1949   : > { %9819 = vmatpush2.bf16.msra.mxu0 %v21669_v39  ;;  %v21684_v39 = vld [vmem:[%s26916_s8 + $0x270] ss:$8 sps:$4 sm:$0xff]  }
0x194a   : > { %9820 = vmatprep.subr.bf16.mxu0 %v21677_v61  ;;  %v21692_v61 = vld [vmem:[%s26916_s8 + $0x264] ss:$8 sps:$4 sm:$0xff]  }
0x194d   : > { %9821 = vmatpush2.bf16.msra.mxu0 %v21675_v60 }
0x194e   : > { %9822 = vmatprep.subr.bf16.mxu0 %v21683_v53  ;;  %v21744_v53 = vld [vmem:[#allocation55 + $0x40] ss:$8 sps:$4 sm:$0xff]  }
0x1951   : > { %9823 = vmatpush2.bf16.msra.mxu0 %v21681_v54  ;;  %v21749_v54 = vld [vmem:[#allocation55 + $0x34] ss:$8 sps:$4 sm:$0xff]  }
0x1952   : > { %9824 = vmatprep.subr.bf16.mxu0 %v21689_v42  ;;  %v21752_v42 = vld [vmem:[#allocation55 + $0x24] ss:$8 sps:$4 sm:$0xff]  }
0x1955   : > { %9825 = vmatpush2.bf16.msra.mxu0 %v21687_v45  ;;  %v21750_v45 = vld [vmem:[#allocation55 + $0x20] ss:$8 sps:$4 sm:$0xff]  }
0x19d8   : > { %v8923_v0 = vpop.f32.mrf.mxu0 }
0x19d9   : > { %v8924_v2 = vadd.f32 %v8923_v0, %v8722_v62  ;;  %v21690_v0 = vld [vmem:[%s26916_s8 + $0x260] ss:$8 sps:$4 sm:$0xff]  }
0x19da   : > { %v8925_v3 = vpop.f32.mrf.mxu0 }
0x19db   : > { %v8926_v4 = vadd.f32 %v8925_v3, %v8726_v63  ;;  %v8930_v1 = vmax.f32 %v8924_v2, 0.0  ;;  %v21695_v2 = vld [vmem:[%s26916_s8 + $0x254] ss:$8 sps:$4 sm:$0xff]  }
0x19dc   : > { %v8927_v5 = vpop.f32.mrf.mxu0 }
0x19dd   : > { %v8931_v6 = vmax.f32 %v8926_v4, 0.0  ;;  %v21693_v5 = vld [vmem:[%s26916_s8 + $0x250] ss:$8 sps:$4 sm:$0xff]  }
0x19de   : > { %v8928_v9 = vpop.f32.mrf.mxu0 }
0x19df   : > { %8966 = vmatprep.subr.mxu1 %v8931_v6  ;;  %v21696_v9 = vld [vmem:[%s26916_s8 + $0x240] ss:$8 sps:$4 sm:$0xff]  }
0x19e0   : > { %8967 = vmatpush1.msra.mxu1 %v8930_v1 }
0x19e1   : > { %18948 = vmatmul.mubr.msk.f32.vlgmr.msra.gmra.mxu1 %vm5741_vm3, %v26359_v10  ;;  %9042 = vmatprep.subr.mxu1 %v8931_v6 }
0x19e2   : > { %9043 = vmatpush1.msra.mxu1 %v8930_v1  ;;  %9076 = vmatprep.mubr.f32.mxu1 %v24846_v18 }
0x19e3   : > { %9118 = vmatprep.subr.mxu1 %v8931_v6 }
0x19e5   : > { %18949 = vmatmul.mubr.msk.f32.vlgmr.msra.gmra.mxu1 %vm5741_vm3, %v26364_v11 }
0x19e6   : > { %9119 = vmatpush1.msra.mxu1 %v8930_v1  ;;  %9152 = vmatprep.mubr.f32.mxu1 %v24846_v18  ;;  %v21698_v1 = vld [vmem:[%s26916_s8 + $0x244] ss:$8 sps:$4 sm:$0xff]  }
0x19e7   : > { %9753 = vmatprep.subr.bf16.mxu1 %v21593_v12  ;;  %v21701_v12 = vld [vmem:[%s26916_s8 + $0x234] ss:$8 sps:$4 sm:$0xff]  }
0x19e9   : > { %18950 = vmatmul.mubr.msk.f32.vlgmr.msra.gmra.mxu1 %vm5741_vm3, %v26370_v13 }
0x19ea   : > { %9754 = vmatpush1.bf16.msra.mxu1 %v21591_v14  ;;  %v21699_v14 = vld [vmem:[%s26916_s8 + $0x230] ss:$8 sps:$4 sm:$0xff]  }
0x19eb   : > { %9755 = vmatprep.subr.bf16.mxu1 %v21596_v15  ;;  %v21704_v15 = vld [vmem:[%s26916_s8 + $0x224] ss:$8 sps:$4 sm:$0xff]  }
0x19ee   : > { %9756 = vmatpush1.bf16.msra.mxu1 %v21594_v16  ;;  %v21702_v16 = vld [vmem:[%s26916_s8 + $0x220] ss:$8 sps:$4 sm:$0xff]  }
0x19ef   : > { %9757 = vmatprep.subr.bf16.mxu1 %v21602_v17  ;;  %v21707_v17 = vld [vmem:[%s26916_s8 + $0x214] ss:$8 sps:$4 sm:$0xff]  }
0x19f2   : > { %9758 = vmatpush1.bf16.msra.mxu1 %v21600_v19  ;;  %v21705_v19 = vld [vmem:[%s26916_s8 + $0x210] ss:$8 sps:$4 sm:$0xff]  }
0x19f3   : > { %9759 = vmatprep.subr.bf16.mxu1 %v21608_v20  ;;  %v21710_v20 = vld [vmem:[%s26916_s8 + $0x204] ss:$8 sps:$4 sm:$0xff]  }
0x19f6   : > { %9760 = vmatpush1.bf16.msra.mxu1 %v21606_v21  ;;  %v21708_v21 = vld [vmem:[%s26916_s8 + $0x200] ss:$8 sps:$4 sm:$0xff]  }
0x19f7   : > { %9761 = vmatprep.subr.bf16.mxu1 %v21614_v22  ;;  %v21713_v22 = vld [vmem:[%s26916_s8 + $0x2f4] ss:$8 sps:$4 sm:$0xff]  }
0x19fa   : > { %9762 = vmatpush1.bf16.msra.mxu1 %v21612_v24  ;;  %v21711_v24 = vld [vmem:[%s26916_s8 + $0x2f0] ss:$8 sps:$4 sm:$0xff]  }
0x19fb   : > { %9763 = vmatprep.subr.bf16.mxu1 %v21620_v25  ;;  %v21716_v25 = vld [vmem:[%s26916_s8 + $0x2e4] ss:$8 sps:$4 sm:$0xff]  }
0x19fe   : > { %9764 = vmatpush1.bf16.msra.mxu1 %v21618_v26  ;;  %v21714_v26 = vld [vmem:[%s26916_s8 + $0x2e0] ss:$8 sps:$4 sm:$0xff]  }
0x19ff   : > { %9765 = vmatprep.subr.bf16.mxu1 %v21626_v27  ;;  %v21719_v27 = vld [vmem:[%s26916_s8 + $0x2d4] ss:$8 sps:$4 sm:$0xff]  }
0x1a02   : > { %9766 = vmatpush1.bf16.msra.mxu1 %v21624_v28  ;;  %v21717_v28 = vld [vmem:[%s26916_s8 + $0x2d0] ss:$8 sps:$4 sm:$0xff]  }
0x1a03   : > { %9767 = vmatprep.subr.bf16.mxu1 %v21632_v31  ;;  %v21722_v31 = vld [vmem:[%s26916_s8 + $0x2c4] ss:$8 sps:$4 sm:$0xff]  }
0x1a06   : > { %9768 = vmatpush1.bf16.msra.mxu1 %v21630_v50  ;;  %v21720_v50 = vld [vmem:[%s26916_s8 + $0x2c0] ss:$8 sps:$4 sm:$0xff]  }
0x1a07   : > { %9769 = vmatprep.subr.bf16.mxu1 %v21638_v35  ;;  %v21725_v35 = vld [vmem:[%s26916_s8 + $0x2b4] ss:$8 sps:$4 sm:$0xff]  }
0x1a0a   : > { %9770 = vmatpush2.bf16.msra.mxu1 %v21636_v49  ;;  %v21723_v49 = vld [vmem:[%s26916_s8 + $0x2b0] ss:$8 sps:$4 sm:$0xff]  }
0x1a0b   : > { %9771 = vmatprep.subr.bf16.mxu1 %v21644_v36  ;;  %v21728_v36 = vld [vmem:[%s26916_s8 + $0x2a4] ss:$8 sps:$4 sm:$0xff]  }
0x1a0e   : > { %9772 = vmatpush2.bf16.msra.mxu1 %v21642_v33  ;;  %v21726_v33 = vld [vmem:[%s26916_s8 + $0x2a0] ss:$8 sps:$4 sm:$0xff]  }
0x1a0f   : > { %9773 = vmatprep.subr.bf16.mxu1 %v21650_v37  ;;  %v21731_v37 = vld [vmem:[%s26916_s8 + $0x294] ss:$8 sps:$4 sm:$0xff]  }
0x1a12   : > { %9774 = vmatpush2.bf16.msra.mxu1 %v21648_v38  ;;  %v21729_v38 = vld [vmem:[%s26916_s8 + $0x290] ss:$8 sps:$4 sm:$0xff]  }
0x1a13   : > { %9775 = vmatprep.subr.bf16.mxu1 %v21656_v34  ;;  %v21734_v34 = vld [vmem:[%s26916_s8 + $0x284] ss:$8 sps:$4 sm:$0xff]  }
0x1a16   : > { %9776 = vmatpush2.bf16.msra.mxu1 %v21654_v40  ;;  %v21732_v40 = vld [vmem:[%s26916_s8 + $0x280] ss:$8 sps:$4 sm:$0xff]  }
0x1a17   : > { %9777 = vmatprep.subr.bf16.mxu1 %v21662_v43 }
0x1a1a   : > { %9778 = vmatpush2.bf16.msra.mxu1 %v21660_v32  ;;  %v21735_v32 = vld [vmem:[#allocation55 + $0x70] ss:$8 sps:$4 sm:$0xff]  }
0x1a1b   : > { %9779 = vmatprep.subr.bf16.mxu1 %v21668_v44  ;;  %v21737_v44 = vld [vmem:[#allocation55 + $0x74] ss:$8 sps:$4 sm:$0xff]  }
0x1a1c   : > { %10084 = vmatprep.subr.bf16.mxu0 %v21737_v44 }
0x1a1e   : > { %9780 = vmatpush2.bf16.msra.mxu1 %v21666_v46  ;;  %v21740_v46 = vld [vmem:[#allocation55 + $0x64] ss:$8 sps:$4 sm:$0xff]  }
0x1a1f   : > { %9781 = vmatprep.subr.bf16.mxu1 %v21674_v48  ;;  %v21738_v48 = vld [vmem:[#allocation55 + $0x60] ss:$8 sps:$4 sm:$0xff]  }
0x1a22   : > { %9782 = vmatpush2.bf16.msra.mxu1 %v21672_v23  ;;  %v21743_v23 = vld [vmem:[#allocation55 + $0x54] ss:$8 sps:$4 sm:$0xff]  }
0x1a23   : > { %9783 = vmatprep.subr.bf16.mxu1 %v21680_v51  ;;  %v21741_v51 = vld [vmem:[#allocation55 + $0x50] ss:$8 sps:$4 sm:$0xff]  }
0x1a26   : > { %9784 = vmatpush2.bf16.msra.mxu1 %v21678_v52  ;;  %v21746_v52 = vld [vmem:[#allocation55 + $0x44] ss:$8 sps:$4 sm:$0xff]  }
0x1a27   : > { %9835 = vmatprep.subr.bf16.mxu1 %v21686_v55  ;;  %v21747_v55 = vld [vmem:[#allocation55 + $0x30] ss:$8 sps:$4 sm:$0xff]  }
0x1aa1   : > { %v9002_v56 = vpop.f32.mrf.mxu1 }
0x1aa2   : > { %v9159_v59 = vpack.c.bf16 %v9002_v56, %v9002_v56  ;;  %v21755_v56 = vld [vmem:[#allocation55 + $0x14] ss:$8 sps:$4 sm:$0xff]  }
0x1aa3   : > { %v9004_v57 = vpop.f32.mrf.mxu1 }
0x1aa4   : > { %v9160_v58 = vpack.c.bf16 %v9004_v57, %v9004_v57  ;;  %v21753_v57 = vld [vmem:[#allocation55 + $0x10] ss:$8 sps:$4 sm:$0xff]  }
0x1aa5   : > { %v9078_v60 = vpop.f32.mrf.mxu1 }
0x1aa6   : > { %9785 = vmatprep.mubr.bf16.mxu1 %v9160_v58  ;;  %v9161_v47 = vpack.c.bf16 %v9078_v60, %v9078_v60  ;;  %v21758_v58 = vld [vmem:[#allocation55 + $0x4] ss:$8 sps:$4 sm:$0xff]   ;;  %v21759_v60 = vld [vmem:[#allocation55 + $0xf0] ss:$8 sps:$4 sm:$0xff]  }
0x1aa7   : > { %v9080_v62 = vpop.f32.mrf.mxu1  ;;  %9786 = vmatmul.mubr.bf16.vlgmr.msra.gmra.mxu1 %v9159_v59  ;;  %v21761_v59 = vld [vmem:[#allocation55 + $0xf4] ss:$8 sps:$4 sm:$0xff]  }
0x1aa8   : > { %v9162_v63 = vpack.c.bf16 %v9080_v62, %v9080_v62  ;;  %9836 = vmatpush1.bf16.msra.mxu1 %v21684_v39  ;;  %v21756_v39 = vld [vmem:[#allocation55] ss:$8 sps:$4 sm:$0xff]   ;;  %v21767_v62 = vld [vmem:[#allocation55 + $0xd4] ss:$8 sps:$4 sm:$0xff]  }
0x1aa9   : > { %9837 = vmatprep.subr.bf16.mxu1 %v21692_v61  ;;  %v26414_v3 = vpop.f32.mrf.mxu1  ;;  %v21764_v61 = vld [vmem:[#allocation55 + $0xe4] ss:$8 sps:$4 sm:$0xff]  }
0x1aaa   : > { %9826 = vmatprep.mubr.bf16.mxu0 %v9162_v63  ;;  %v9163_v43 = vpack.c.bf16 %v26414_v3, %v26414_v3  ;;  %v21765_v63 = vld [vmem:[#allocation55 + $0xd0] ss:$8 sps:$4 sm:$0xff]   ;;  %v21773_v3 = vld [vmem:[#allocation55 + $0xb4] ss:$8 sps:$4 sm:$0xff]  }
0x1aab   : > { %9827 = vmatmul.mubr.bf16.vlgmr.msra.gmra.mxu0 %v9161_v47  ;;  %v9156_v4 = vpop.f32.mrf.mxu1  ;;  %v21762_v47 = vld [vmem:[#allocation55 + $0xe0] ss:$8 sps:$4 sm:$0xff]  }
0x1aac   : > { %9838 = vmatpush1.bf16.msra.mxu1 %v21690_v0  ;;  %v9164_v6 = vpack.c.bf16 %v9156_v4, %v9156_v4  ;;  %10085 = vmatpush1.bf16.msra.mxu0 %v21735_v32  ;;  %v21770_v0 = vld [vmem:[#allocation55 + $0xc4] ss:$8 sps:$4 sm:$0xff]   ;;  %v21771_v4 = vld [vmem:[#allocation55 + $0xb0] ss:$8 sps:$4 sm:$0xff]  }
0x1aad   : > { %9839 = vmatprep.subr.bf16.mxu1 %v21695_v2  ;;  %10086 = vmatprep.subr.bf16.mxu0 %v21740_v46  ;;  %v21768_v2 = vld [vmem:[#allocation55 + $0xc0] ss:$8 sps:$4 sm:$0xff]  }
0x1aae   : > { %9867 = vmatprep.mubr.bf16.mxu1 %v9164_v6  ;;  %v21774_v6 = vld [vmem:[#allocation55 + $0xa0] ss:$8 sps:$4 sm:$0xff]  }
0x1aaf   : > { %v9912_v46 = vld [vmem:[#allocation57] sm:$0x3] }
0x1ab0   : > { %9840 = vmatpush1.bf16.msra.mxu1 %v21693_v5  ;;  %10087 = vmatpush1.bf16.msra.mxu0 %v21738_v48  ;;  %v21776_v5 = vld [vmem:[#allocation55 + $0xa4] ss:$8 sps:$4 sm:$0xff]   ;;  %v9921_v48 = vrot.slane %v9912_v46, %v26019_v7 }
0x1ab1   : > { %9841 = vmatprep.subr.bf16.mxu1 %v21698_v1  ;;  %10088 = vmatprep.subr.bf16.mxu0 %v21743_v23  ;;  %v21779_v1 = vld [vmem:[#allocation55 + $0x94] ss:$8 sps:$4 sm:$0xff]   ;;  %v9917_v23 = vrot.slane %v9912_v46, %v26021_v8 }
0x1ab2   : > { %v10520_v46 = vld [vmem:[#allocation63 + $0x50] sm:$0xff] }
0x1ab4   : > { %9842 = vmatpush1.bf16.msra.mxu1 %v21696_v9  ;;  %10089 = vmatpush1.bf16.msra.mxu0 %v21741_v51  ;;  %v21777_v9 = vld [vmem:[#allocation55 + $0x90] ss:$8 sps:$4 sm:$0xff]  }
0x1ab5   : > { %9843 = vmatprep.subr.bf16.mxu1 %v21701_v12  ;;  %10090 = vmatprep.subr.bf16.mxu0 %v21746_v52  ;;  %v21782_v12 = vld [vmem:[#allocation55 + $0x84] ss:$8 sps:$4 sm:$0xff]  }
0x1ab8   : > { %9844 = vmatpush1.bf16.msra.mxu1 %v21699_v14  ;;  %10091 = vmatpush1.bf16.msra.mxu0 %v21744_v53  ;;  %v21780_v14 = vld [vmem:[#allocation55 + $0x80] ss:$8 sps:$4 sm:$0xff]  }
0x1ab9   : > { %9845 = vmatprep.subr.bf16.mxu1 %v21704_v15  ;;  %10092 = vmatprep.subr.bf16.mxu0 %v21749_v54  ;;  %v21783_v54 = vld [vmem:[%s26917_s5 + $0x78] sm:$0xff]  }
0x1abc   : > { %9846 = vmatpush1.bf16.msra.mxu1 %v21702_v16  ;;  %10093 = vmatpush1.bf16.msra.mxu0 %v21747_v55 }
0x1abd   : > { %9847 = vmatprep.subr.bf16.mxu1 %v21707_v17  ;;  %10094 = vmatprep.subr.bf16.mxu0 %v21752_v42 }
0x1ac0   : > { %9848 = vmatpush1.bf16.msra.mxu1 %v21705_v19  ;;  %10095 = vmatpush1.bf16.msra.mxu0 %v21750_v45  ;;  %v21784_v45 = vld [vmem:[%s26917_s5 + $0x38] sm:$0xff]  }
0x1ac1   : > { %9849 = vmatprep.subr.bf16.mxu1 %v21710_v20  ;;  %10096 = vmatprep.subr.bf16.mxu0 %v21755_v56  ;;  %v21785_v56 = vld [vmem:[%s26917_s5 + $0x70] sm:$0xff]  }
0x1ac4   : > { %9850 = vmatpush1.bf16.msra.mxu1 %v21708_v21  ;;  %10097 = vmatpush1.bf16.msra.mxu0 %v21753_v57 }
0x1ac5   : > { %9851 = vmatprep.subr.bf16.mxu1 %v21713_v22  ;;  %10098 = vmatprep.subr.bf16.mxu0 %v21758_v58  ;;  %v24850_v58 = vmov 0.25  }
0x1ac8   : > { %9852 = vmatpush2.bf16.msra.mxu1 %v21711_v24  ;;  %10099 = vmatpush1.bf16.msra.mxu0 %v21756_v39  ;;  %v21786_v39 = vld [vmem:[%s26917_s5 + $0x30] sm:$0xff]  }
0x1ac9   : > { %9853 = vmatprep.subr.bf16.mxu1 %v21716_v25  ;;  %10100 = vmatprep.subr.bf16.mxu0 %v21761_v59  ;;  %v9261_v25 = vld [vmem:[#allocation54] sm:$0x3]  ;;  %v21787_v59 = vld [vmem:[%s26917_s5 + $0x68] sm:$0xff]  }
0x1acc   : > { %9854 = vmatpush2.bf16.msra.mxu1 %v21714_v26  ;;  %10101 = vmatpush2.bf16.msra.mxu0 %v21759_v60  ;;  %v9266_v26 = vrot.slane %v9261_v25, %v26021_v8  ;;  %v21788_v60 = vld [vmem:[%s26917_s5 + $0x28] sm:$0xff]  }
0x1acd   : > { %9855 = vmatprep.subr.bf16.mxu1 %v21719_v27  ;;  %10102 = vmatprep.subr.bf16.mxu0 %v21764_v61  ;;  %v9270_v27 = vrot.slane %v9261_v25, %v26019_v7  ;;  %v21789_v61 = vld [vmem:[%s26917_s5 + $0x60] sm:$0xff]  }
0x1ad0   : > { %9856 = vmatpush2.bf16.msra.mxu1 %v21717_v28  ;;  %10103 = vmatpush2.bf16.msra.mxu0 %v21762_v47  ;;  %v21790_v47 = vld [vmem:[%s26917_s5 + $0x20] sm:$0xff]  }
0x1ad1   : > { %9857 = vmatprep.subr.bf16.mxu1 %v21722_v31  ;;  %10104 = vmatprep.subr.bf16.mxu0 %v21767_v62  ;;  %v21791_v62 = vld [vmem:[%s26917_s5 + $0x58] sm:$0xff]  }
0x1ad4   : > { %9858 = vmatpush2.bf16.msra.mxu1 %v21720_v50  ;;  %10105 = vmatpush2.bf16.msra.mxu0 %v21765_v63  ;;  %v21792_v63 = vld [vmem:[%s26917_s5 + $0x18] sm:$0xff]  }
0x1ad5   : > { %9859 = vmatprep.subr.bf16.mxu1 %v21725_v35  ;;  %10106 = vmatprep.subr.bf16.mxu0 %v21770_v0  ;;  %v21793_v0 = vld [vmem:[%s26917_s5 + $0x50] sm:$0xff]  }
0x1ad8   : > { %9860 = vmatpush2.bf16.msra.mxu1 %v21723_v49  ;;  %10107 = vmatpush2.bf16.msra.mxu0 %v21768_v2  ;;  %v21794_v2 = vld [vmem:[%s26917_s5 + $0x10] sm:$0xff]  }
0x1ad9   : > { %9861 = vmatprep.subr.bf16.mxu1 %v21728_v36  ;;  %10108 = vmatprep.subr.bf16.mxu0 %v21773_v3  ;;  %v21795_v3 = vld [vmem:[%s26917_s5 + $0x48] sm:$0xff]  }
0x1adc   : > { %9862 = vmatpush2.bf16.msra.mxu1 %v21726_v33  ;;  %10109 = vmatpush2.bf16.msra.mxu0 %v21771_v4  ;;  %v21796_v4 = vld [vmem:[%s26917_s5 + $0x8] sm:$0xff]  }
0x1add   : > { %9863 = vmatprep.subr.bf16.mxu1 %v21731_v37  ;;  %10110 = vmatprep.subr.bf16.mxu0 %v21776_v5  ;;  %v21797_v5 = vld [vmem:[%s26917_s5 + $0x40] sm:$0xff]  }
0x1ae0   : > { %9864 = vmatpush2.bf16.msra.mxu1 %v21729_v38  ;;  %10111 = vmatpush2.bf16.msra.mxu0 %v21774_v6  ;;  %v21798_v6 = vld [vmem:[%s26917_s5] sm:$0xff]  }
0x1ae1   : > { %9865 = vmatprep.subr.bf16.mxu1 %v21734_v34  ;;  %10112 = vmatprep.subr.bf16.mxu0 %v21779_v1 }
0x1ae4   : > { %9866 = vmatpush2.bf16.msra.mxu1 %v21732_v40  ;;  %10113 = vmatpush2.bf16.msra.mxu0 %v21777_v9 }
0x1ae5   : > { %10114 = vmatprep.subr.bf16.mxu0 %v21782_v12 }
0x1ae7   : > { %9868 = vmatmul.mubr.bf16.vlgmr.msra.gmra.mxu1 %v9163_v43 }
0x1ae8   : > { %10199 = vmatprep.mubr.f32.mxu1 %v24846_v18  ;;  %10115 = vmatpush2.bf16.msra.mxu0 %v21780_v14  ;;  %v21799_v14 = vld [vmem:[%s26918_s3 + $0x18] sm:$0xff]  }
0x1ae9   : > { %20471 = vmatprep.subr.bf16.mxu0 %v24846_v18 }
0x1b67   : > { %v9787_v15 = vpop.f32.mrf.mxu1 }
0x1b68   : > { %v9788_v28 = vadd.f32 %v9787_v15, %v9266_v26 }
0x1b69   : > { %v9789_v16 = vpop.f32.mrf.mxu1 }
0x1b6a   : > { %v9790_v31 = vadd.f32 %v9789_v16, %v9270_v27  ;;  %v21800_v16 = vld [vmem:[%s26918_s3 + $0x10] sm:$0xff]   ;;  %v10456_v27 = vld [vmem:[#allocation60] sm:$0xf] }
0x1b6b   : > { %v9791_v17 = vpop.f32.mrf.mxu1  ;;  %v9828_v19 = vpop.f32.mrf.mxu0 }
0x1b6c   : > { %v9829_v50 = vadd.f32 %v9828_v19, %v9788_v28  ;;  %v21801_v17 = vld [vmem:[%s26918_s3 + $0x8] sm:$0xff]   ;;  %v21802_v19 = vld [vmem:[%s26918_s3] sm:$0xff]   ;;  %v10462_v28 = vsel %vm10128_vm6, %v10456_v27, 0  ;;  %v21878_v27 = vld [vmem:[#allocation64 + $0xa0] ss:$8 sps:$4 sm:$0xff]  }
0x1b6d   : > { %v9792_v20 = vpop.f32.mrf.mxu1  ;;  %v9830_v21 = vpop.f32.mrf.mxu0 }
0x1b6e   : > { %v9831_v49 = vadd.f32 %v9830_v21, %v9790_v31  ;;  %v10525_v31 = vld [vmem:[#allocation63 + $0x78] sm:$0xff] }
0x1b6f   : > { %v9832_v22 = vpop.f32.mrf.mxu0 }
0x1b71   : > { %v9833_v24 = vpop.f32.mrf.mxu0 }
0x1ba7   : > { %v9869_v35 = vpop.f32.mrf.mxu1 }
0x1ba8   : > { %v9870_v36 = vadd.f32 %v9869_v35, %v9829_v50  ;;  %v10385_v50 = vld [vmem:[#allocation58] sm:$0x1] }
0x1ba9   : > { %v9871_v33 = vpop.f32.mrf.mxu1 }
0x1baa   : > { %v9872_v37 = vadd.f32 %v9871_v33, %v9831_v49  ;;  %v9876_v38 = vmax.f32 %v9870_v36, 0.0 }
0x1bab   : > { %v9873_v34 = vpop.f32.mrf.mxu1 }
0x1bac   : > { %v9877_v40 = vmax.f32 %v9872_v37, 0.0  ;;  %v9878_v44 = vpack.c.bf16 %v9876_v38, %v9876_v38  ;;  %v10524_v34 = vld [vmem:[#allocation63 + $0x70] sm:$0xff] }
0x1bad   : > { %v9874_v43 = vpop.f32.mrf.mxu1 }
0x1bae   : > { %v9879_v32 = vpack.c.bf16 %v9877_v40, %v9877_v40  ;;  %v10523_v43 = vld [vmem:[#allocation63 + $0x68] sm:$0xff] }
0x1bb0   : > { %10116 = vmatprep.mubr.bf16.mxu0 %v9879_v32  ;;  %v10522_v32 = vld [vmem:[#allocation63 + $0x60] sm:$0xff] }
0x1bb1   : > { %10117 = vmatmul.mubr.bf16.vlgmr.msra.gmra.mxu0 %v9878_v44  ;;  %v10521_v44 = vld [vmem:[#allocation63 + $0x58] sm:$0xff] }
0x1bb2   : > { %20473 = vmatprep.mubr.msk.bf16.mxu0 %vm24847_vm1, %v24846_v18  ;;  %20472 = vmatpush3.bf16.msra.mxu0 %v10462_v28  ;;  %v10457_v28 = vld [vmem:[#allocation61] sm:$0x1] }
0x1bb3   : > { %10545 = vmatprep.subr.mxu0 %v10525_v31 }
0x1c71   : > { %v10118_v51 = vpop.f32.mrf.mxu0 }
0x1c72   : > { %v26456_v55 = vadd.f32 %v10118_v51, %v9917_v23  ;;  %v10518_v23 = vld [vmem:[#allocation63 + $0x40] sm:$0xff]  ;;  %v10517_v51 = vld [vmem:[#allocation63 + $0x38] sm:$0xff] }
0x1c73   : > { %v10120_v52 = vpop.f32.mrf.mxu0 }
0x1c74   : > { %v26453_v53 = vadd.f32 %v10120_v52, %v9921_v48  ;;  %v10519_v48 = vld [vmem:[#allocation63 + $0x48] sm:$0xff]  ;;  %v10516_v52 = vld [vmem:[#allocation63 + $0x30] sm:$0xff] }
0x1c75   : > { %v10122_v42 = vpop.f32.mrf.mxu0 }
0x1c76   : > { %19079 = vmatprep.subr.msk.mxu1 %vm10128_vm6, %v26453_v53  ;;  %v10514_v42 = vld [vmem:[#allocation63 + $0x20] sm:$0xff] }
0x1c77   : > { %v10123_v57 = vpop.f32.mrf.mxu0  ;;  %19080 = vmatpush1.msk.msra.mxu1 %vm10128_vm6, %v26456_v55 }
0x1c78   : > { %19081 = vmatmul.mubr.msk.f32.vlgmr.msra.gmra.mxu1 %vm6908_vm5, %v24850_v58  ;;  %20160 = vmatprep.subr.bf16.mxu1 %v21783_v54  ;;  %v10515_v54 = vld [vmem:[#allocation63 + $0x28] sm:$0xff]  ;;  %v10510_v58 = vld [vmem:[#allocation63] sm:$0xff] }
0x1c79   : > { %20161 = vmatpush3.bf16.msra.mxu1 %v21784_v45  ;;  %v10513_v45 = vld [vmem:[#allocation63 + $0x18] sm:$0xff]  ;;  %v10511_v57 = vld [vmem:[#allocation63 + $0x8] sm:$0xff] }
0x1c7a   : > { %20162 = vmatprep.subr.bf16.mxu1 %v21785_v56  ;;  %v10512_v56 = vld [vmem:[#allocation63 + $0x10] sm:$0xff] }
0x1c7d   : > { %20163 = vmatpush3.bf16.msra.mxu1 %v21786_v39  ;;  %v21803_v39 = vld [vmem:[#allocation64 + $0x70] ss:$8 sps:$4 sm:$0xff]  }
0x1c7e   : > { %20164 = vmatprep.subr.bf16.mxu1 %v21787_v59  ;;  %v21805_v59 = vld [vmem:[#allocation64 + $0x74] ss:$8 sps:$4 sm:$0xff]  }
0x1c81   : > { %20165 = vmatpush3.bf16.msra.mxu1 %v21788_v60  ;;  %v21808_v60 = vld [vmem:[#allocation64 + $0x64] ss:$8 sps:$4 sm:$0xff]  }
0x1c82   : > { %20166 = vmatprep.subr.bf16.mxu1 %v21789_v61  ;;  %v21806_v61 = vld [vmem:[#allocation64 + $0x60] ss:$8 sps:$4 sm:$0xff]  }
0x1c85   : > { %20167 = vmatpush3.bf16.msra.mxu1 %v21790_v47  ;;  %v21814_v47 = vld [vmem:[#allocation64 + $0x54] ss:$8 sps:$4 sm:$0xff]  }
0x1c86   : > { %20168 = vmatprep.subr.bf16.mxu1 %v21791_v62  ;;  %v21812_v62 = vld [vmem:[#allocation64 + $0x50] ss:$8 sps:$4 sm:$0xff]  }
0x1c89   : > { %20169 = vmatpush3.bf16.msra.mxu1 %v21792_v63  ;;  %v21820_v63 = vld [vmem:[#allocation64 + $0x44] ss:$8 sps:$4 sm:$0xff]  }
0x1c8a   : > { %20170 = vmatprep.subr.bf16.mxu1 %v21793_v0  ;;  %v21818_v0 = vld [vmem:[#allocation64 + $0x40] ss:$8 sps:$4 sm:$0xff]  }
0x1c8d   : > { %20171 = vmatpush3.bf16.msra.mxu1 %v21794_v2  ;;  %v21826_v2 = vld [vmem:[#allocation64 + $0x34] ss:$8 sps:$4 sm:$0xff]  }
0x1c8e   : > { %20172 = vmatprep.subr.bf16.mxu1 %v21795_v3  ;;  %v21824_v3 = vld [vmem:[#allocation64 + $0x30] ss:$8 sps:$4 sm:$0xff]  }
0x1c91   : > { %20173 = vmatpush3.bf16.msra.mxu1 %v21796_v4  ;;  %v21832_v4 = vld [vmem:[#allocation64 + $0x24] ss:$8 sps:$4 sm:$0xff]  }
0x1c92   : > { %20174 = vmatprep.subr.bf16.mxu1 %v21797_v5  ;;  %v21830_v5 = vld [vmem:[#allocation64 + $0x20] ss:$8 sps:$4 sm:$0xff]  }
0x1c95   : > { %20175 = vmatpush3.bf16.msra.mxu1 %v21798_v6  ;;  %v21838_v6 = vld [vmem:[#allocation64 + $0x14] ss:$8 sps:$4 sm:$0xff]  }
0x1c96   : > { %20459 = vmatprep.subr.bf16.mxu1 %v24846_v18 }
0x1d38   : > { %v10201_v1 = vpop.f32.mrf.mxu1 }
0x1d39   : > { %v10206_v15 = vpack.c.bf16 %v10201_v1, %v10201_v1  ;;  %v21836_v1 = vld [vmem:[#allocation64 + $0x10] ss:$8 sps:$4 sm:$0xff]  }
0x1d3a   : > { %v10203_v9 = vpop.f32.mrf.mxu1 }
0x1d3b   : > { %v10207_v12 = vpack.c.bf16 %v10203_v9, %v10203_v9  ;;  %v21844_v9 = vld [vmem:[#allocation64 + $0x4] ss:$8 sps:$4 sm:$0xff]  }
0x1d3d   : > { %10368 = vmatprep.mubr.bf16.mxu1 %v10207_v12  ;;  %v21842_v12 = vld [vmem:[#allocation64] ss:$8 sps:$4 sm:$0xff]  }
0x1d3e   : > { %10369 = vmatmul.mubr.bf16.vlgmr.msra.gmra.mxu1 %v10206_v15  ;;  %v21848_v15 = vld [vmem:[#allocation64 + $0xf0] ss:$8 sps:$4 sm:$0xff]  }
0x1d3f   : > { %20460 = vmatpush3.bf16.msra.mxu1 %v21799_v14  ;;  %20467 = vmatprep.mubr.msk.bf16.mxu1 %vm24847_vm1, %v24846_v18  ;;  %v21850_v14 = vld [vmem:[#allocation64 + $0xf4] ss:$8 sps:$4 sm:$0xff]  }
0x1d40   : > { %20461 = vmatprep.subr.bf16.mxu1 %v24846_v18 }
0x1d43   : > { %20462 = vmatpush3.bf16.msra.mxu1 %v21800_v16  ;;  %v21856_v16 = vld [vmem:[#allocation64 + $0xe4] ss:$8 sps:$4 sm:$0xff]  }
0x1d44   : > { %20463 = vmatprep.subr.bf16.mxu1 %v24846_v18 }
0x1d47   : > { %20464 = vmatpush3.bf16.msra.mxu1 %v21801_v17  ;;  %v21854_v17 = vld [vmem:[#allocation64 + $0xe0] ss:$8 sps:$4 sm:$0xff]  }
0x1d48   : > { %20465 = vmatprep.subr.bf16.mxu1 %v24846_v18 }
0x1d4b   : > { %20466 = vmatpush3.bf16.msra.mxu1 %v21802_v19  ;;  %v21862_v19 = vld [vmem:[#allocation64 + $0xd4] ss:$8 sps:$4 sm:$0xff]  }
0x1d4c   : > { %11417 = vmatprep.subr.bf16.mxu1 %v21805_v59  ;;  %v21871_v59 = vld [vmem:[#allocation64 + $0x1d4] ss:$8 sps:$4 sm:$0xff]  }
0x1dfe   : > { %v20176_v20 = vpop.f32.mrf.mxu1 }
0x1e00   : > { %v20177_v21 = vpop.f32.mrf.mxu1 }
0x1e01   : > { %v20178_v22 = vadd.f32 %v20177_v21, %v20176_v20  ;;  %v21860_v20 = vld [vmem:[#allocation64 + $0xd0] ss:$8 sps:$4 sm:$0xff]   ;;  %v21868_v21 = vld [vmem:[#allocation64 + $0xc4] ss:$8 sps:$4 sm:$0xff]  }
0x1e02   : > { %v20179_v24 = vpop.f32.mrf.mxu1 }
0x1e03   : > { %v10376_v25 = vpack.c.bf16 %v20178_v22, %v20178_v22  ;;  %v21866_v22 = vld [vmem:[#allocation64 + $0xc0] ss:$8 sps:$4 sm:$0xff]   ;;  %v21874_v24 = vld [vmem:[#allocation64 + $0xb4] ss:$8 sps:$4 sm:$0xff]  }
0x1e04   : > { %v20180_v26 = vpop.f32.mrf.mxu1 }
0x1e05   : > { %20468 = vmatmul.mubr.msk.bf16.vlgmr.msra.gmra.mxu1 %vm10410_vm7, %v10376_v25  ;;  %v21872_v25 = vld [vmem:[#allocation64 + $0xb0] ss:$8 sps:$4 sm:$0xff]   ;;  %v21880_v26 = vld [vmem:[#allocation64 + $0xa4] ss:$8 sps:$4 sm:$0xff]  }
0x1e06   : > { %11418 = vmatpush1.bf16.msra.mxu1 %v21803_v39  ;;  %v21863_v39 = vld [vmem:[#allocation64 + $0x1e0] ss:$8 sps:$4 sm:$0xff]  }
0x1e07   : > { %11419 = vmatprep.subr.bf16.mxu1 %v21808_v60  ;;  %v21869_v60 = vld [vmem:[#allocation64 + $0x1d0] ss:$8 sps:$4 sm:$0xff]  }
0x1e0a   : > { %11420 = vmatpush1.bf16.msra.mxu1 %v21806_v61  ;;  %v21877_v61 = vld [vmem:[#allocation64 + $0x1c4] ss:$8 sps:$4 sm:$0xff]  }
0x1e0b   : > { %11421 = vmatprep.subr.bf16.mxu1 %v21814_v47  ;;  %v21875_v47 = vld [vmem:[#allocation64 + $0x1c0] ss:$8 sps:$4 sm:$0xff]  }
0x1e0e   : > { %11422 = vmatpush1.bf16.msra.mxu1 %v21812_v62  ;;  %v21883_v62 = vld [vmem:[#allocation64 + $0x1b4] ss:$8 sps:$4 sm:$0xff]  }
0x1e0f   : > { %11423 = vmatprep.subr.bf16.mxu1 %v21820_v63  ;;  %v21881_v63 = vld [vmem:[#allocation64 + $0x1b0] ss:$8 sps:$4 sm:$0xff]  }
0x1e12   : > { %11424 = vmatpush1.bf16.msra.mxu1 %v21818_v0  ;;  %v21886_v0 = vld [vmem:[#allocation64 + $0x94] ss:$8 sps:$4 sm:$0xff]  }
0x1e13   : > { %11425 = vmatprep.subr.bf16.mxu1 %v21826_v2  ;;  %v21884_v2 = vld [vmem:[#allocation64 + $0x90] ss:$8 sps:$4 sm:$0xff]  }
0x1e16   : > { %11426 = vmatpush1.bf16.msra.mxu1 %v21824_v3  ;;  %v21889_v3 = vld [vmem:[#allocation64 + $0x1a4] ss:$8 sps:$4 sm:$0xff]  }
0x1e17   : > { %11427 = vmatprep.subr.bf16.mxu1 %v21832_v4  ;;  %v21887_v4 = vld [vmem:[#allocation64 + $0x1a0] ss:$8 sps:$4 sm:$0xff]  }
0x1e1a   : > { %11428 = vmatpush1.bf16.msra.mxu1 %v21830_v5  ;;  %v21892_v5 = vld [vmem:[#allocation64 + $0x84] ss:$8 sps:$4 sm:$0xff]  }
0x1e1b   : > { %11429 = vmatprep.subr.bf16.mxu1 %v21838_v6  ;;  %v21890_v6 = vld [vmem:[#allocation64 + $0x80] ss:$8 sps:$4 sm:$0xff]  }
0x1e1e   : > { %11430 = vmatpush1.bf16.msra.mxu1 %v21836_v1  ;;  %v21895_v1 = vld [vmem:[#allocation64 + $0x194] ss:$8 sps:$4 sm:$0xff]  }
0x1e1f   : > { %11431 = vmatprep.subr.bf16.mxu1 %v21844_v9  ;;  %v21893_v9 = vld [vmem:[#allocation64 + $0x190] ss:$8 sps:$4 sm:$0xff]  }
0x1e22   : > { %11432 = vmatpush1.bf16.msra.mxu1 %v21842_v12  ;;  %v21898_v12 = vld [vmem:[#allocation64 + $0x274] ss:$8 sps:$4 sm:$0xff]  }
0x1e23   : > { %11433 = vmatprep.subr.bf16.mxu1 %v21850_v14  ;;  %v21901_v14 = vld [vmem:[#allocation64 + $0x184] ss:$8 sps:$4 sm:$0xff]  }
0x1e26   : > { %11434 = vmatpush2.bf16.msra.mxu1 %v21848_v15  ;;  %v21899_v15 = vld [vmem:[#allocation64 + $0x180] ss:$8 sps:$4 sm:$0xff]  }
0x1e27   : > { %11435 = vmatprep.subr.bf16.mxu1 %v21856_v16 }
0x1e2a   : > { %11436 = vmatpush2.bf16.msra.mxu1 %v21854_v17 }
0x1e2b   : > { %11437 = vmatprep.subr.bf16.mxu1 %v21862_v19 }
0x1e2e   : > { %11438 = vmatpush2.bf16.msra.mxu1 %v21860_v20 }
0x1e2f   : > { %11439 = vmatprep.subr.bf16.mxu1 %v21868_v21 }
0x1e32   : > { %11440 = vmatpush2.bf16.msra.mxu1 %v21866_v22  ;;  %v21896_v22 = vld [vmem:[#allocation64 + $0x270] ss:$8 sps:$4 sm:$0xff]  }
0x1e33   : > { %11441 = vmatprep.subr.bf16.mxu1 %v21874_v24 }
0x1e36   : > { %11442 = vmatpush2.bf16.msra.mxu1 %v21872_v25 }
0x1e37   : > { %11443 = vmatprep.subr.bf16.mxu1 %v21880_v26  ;;  %v21904_v26 = vld [vmem:[#allocation64 + $0x264] ss:$8 sps:$4 sm:$0xff]  }
0x1e3a   : > { %11444 = vmatpush2.bf16.msra.mxu1 %v21878_v27 }
0x1e3b   : > { %11445 = vmatprep.subr.bf16.mxu1 %v21886_v0  ;;  %v21952_v0 = vld [vmem:[#allocation67 + $0x64] ss:$8 sps:$4 sm:$0xff]  }
0x1e3e   : > { %11446 = vmatpush2.bf16.msra.mxu1 %v21884_v2  ;;  %v21950_v2 = vld [vmem:[#allocation67 + $0x60] ss:$8 sps:$4 sm:$0xff]  }
0x1e3f   : > { %11447 = vmatprep.subr.bf16.mxu1 %v21892_v5  ;;  %v21958_v5 = vld [vmem:[#allocation67 + $0x44] ss:$8 sps:$4 sm:$0xff]  }
0x1e42   : > { %11448 = vmatpush2.bf16.msra.mxu1 %v21890_v6  ;;  %v21956_v6 = vld [vmem:[#allocation67 + $0x40] ss:$8 sps:$4 sm:$0xff]  }
0x1e43   : > { %11499 = vmatprep.subr.bf16.mxu1 %v21898_v12  ;;  %v21964_v12 = vld [vmem:[#allocation67 + $0x24] ss:$8 sps:$4 sm:$0xff]  }
0x1ec5   : > { %v10448_v35 = vpop.f32.mrf.mxu1 }
0x1ec6   : > { %v10449_v49 = vadd.f32 %v10448_v35, %v10385_v50 }
0x1ec7   : > { %v20469_v36 = vpop.f32.mrf.mxu1 }
0x1ec8   : > { %v10454_v33 = vmax.f32 %v10449_v49, 0.0 }
0x1ec9   : > { %v10451_v37 = vpop.f32.mrf.mxu1 }
0x1eca   : > { %v10455_v38 = vpack.c.bf16 %v10454_v33, %v10454_v33 }
0x1ecb   : > { %v20470_v40 = vpop.f32.mrf.mxu1 }
0x1ecc   : > { %20474 = vmatmul.mubr.msk.bf16.vlgmr.msra.gmra.mxu0 %vm5741_vm3, %v10455_v38 }
0x1ecd   : > { %10546 = vmatpush1.msra.mxu0 %v10524_v34  ;;  %10593 = vmatprep.mubr.f32.mxu0 %v24846_v18 }
0x1ece   : > { %10547 = vmatprep.subr.mxu0 %v10523_v43  ;;  %v21811_v43 = vld [vmem:[#allocation64 + $0x174] ss:$8 sps:$4 sm:$0xff]  }
0x1ecf   : > { %10548 = vmatpush1.msra.mxu0 %v10522_v32  ;;  %v21809_v32 = vld [vmem:[#allocation64 + $0x170] ss:$8 sps:$4 sm:$0xff]  }
0x1ed0   : > { %10549 = vmatprep.subr.mxu0 %v10521_v44  ;;  %v21817_v44 = vld [vmem:[#allocation64 + $0x164] ss:$8 sps:$4 sm:$0xff]  }
0x1ed1   : > { %10550 = vmatpush1.msra.mxu0 %v10520_v46  ;;  %v21823_v46 = vld [vmem:[#allocation64 + $0x154] ss:$8 sps:$4 sm:$0xff]  }
0x1ed2   : > { %10551 = vmatprep.subr.mxu0 %v10519_v48  ;;  %v21829_v48 = vld [vmem:[#allocation64 + $0x144] ss:$8 sps:$4 sm:$0xff]  }
0x1ed3   : > { %10552 = vmatpush1.msra.mxu0 %v10518_v23  ;;  %v21833_v23 = vld [vmem:[#allocation64 + $0x130] ss:$8 sps:$4 sm:$0xff]  }
0x1ed4   : > { %10553 = vmatprep.subr.mxu0 %v10517_v51  ;;  %v21841_v51 = vld [vmem:[#allocation64 + $0x124] ss:$8 sps:$4 sm:$0xff]  }
0x1ed5   : > { %10554 = vmatpush1.msra.mxu0 %v10516_v52  ;;  %v21839_v52 = vld [vmem:[#allocation64 + $0x120] ss:$8 sps:$4 sm:$0xff]  }
0x1ed6   : > { %10555 = vmatprep.subr.mxu0 %v10515_v54  ;;  %v21845_v54 = vld [vmem:[#allocation64 + $0x110] ss:$8 sps:$4 sm:$0xff]  }
0x1ed7   : > { %10556 = vmatpush1.msra.mxu0 %v10514_v42  ;;  %v21853_v42 = vld [vmem:[#allocation64 + $0x104] ss:$8 sps:$4 sm:$0xff]  }
0x1ed8   : > { %10557 = vmatprep.subr.mxu0 %v10513_v45  ;;  %v21851_v45 = vld [vmem:[#allocation64 + $0x100] ss:$8 sps:$4 sm:$0xff]  }
0x1ed9   : > { %10558 = vmatpush1.msra.mxu0 %v10512_v56  ;;  %v21859_v56 = vld [vmem:[#allocation64 + $0x1f4] ss:$8 sps:$4 sm:$0xff]  }
0x1eda   : > { %10559 = vmatprep.subr.mxu0 %v10511_v57  ;;  %v21857_v57 = vld [vmem:[#allocation64 + $0x1f0] ss:$8 sps:$4 sm:$0xff]  }
0x1edb   : > { %10560 = vmatpush1.msra.mxu0 %v10510_v58  ;;  %v21865_v58 = vld [vmem:[#allocation64 + $0x1e4] ss:$8 sps:$4 sm:$0xff]  }
0x1edc   : > { %10640 = vmatprep.subr.mxu0 %v26323_v30 }
0x1f8c   : > { %v10498_v31 = vpop.f32.mrf.mxu0 }
0x1f8d   : > { %v10499_v50 = vadd.f32 %v10498_v31, %v10457_v28 }
0x1f8e   : > { %v20475_v35 = vpop.f32.mrf.mxu0 }
0x1f8f   : > { %v10504_v49 = vsub.f32 0.0, %v10499_v50  ;;  %v21902_v50 = vld [vmem:[#allocation64 + $0x260] ss:$8 sps:$4 sm:$0xff]   ;;  %v21907_v35 = vld [vmem:[#allocation64 + $0x254] ss:$8 sps:$4 sm:$0xff]  }
0x1f90   : > { %v10501_v36 = vpop.f32.mrf.mxu0 }
0x1f91   : > { %v10505_v33 = vmul.f32 1.442695, %v10504_v49 }
0x1f92   : > { %v20476_v37 = vpop.f32.mrf.mxu0 }
0x1f93   : > { %22834 = vpow2.f32 %v10505_v33  ;;  %v21905_v33 = vld [vmem:[#allocation64 + $0x250] ss:$8 sps:$4 sm:$0xff]  }
0x1fa0   : > { %v22835_v38 = vpop.eup %22834 }
0x1fa1   : > { %v10507_v34 = vadd.f32 1.0, %v22835_v38  ;;  %v21910_v38 = vld [vmem:[#allocation64 + $0x244] ss:$8 sps:$4 sm:$0xff]  }
0x1fa3   : > { %22836 = vrcp.f32 %v10507_v34  ;;  %v21908_v34 = vld [vmem:[#allocation64 + $0x240] ss:$8 sps:$4 sm:$0xff]  }
0x1fb0   : > { %v22837_v40 = vpop.eup %22836 }
0x1fb1   : > { %19104 = vmatmul.mubr.msk.f32.vlgmr.msra.gmra.mxu0 %vm10410_vm7, %v22837_v40  ;;  %v21913_v40 = vld [vmem:[#allocation64 + $0x234] ss:$8 sps:$4 sm:$0xff]  }
0x1fb2   : > { %10641 = vmatpush1.msra.mxu0 %v26321_v29  ;;  %10674 = vmatprep.mubr.f32.mxu0 %v24846_v18 }
0x1fb3   : > { %10711 = vmatprep.subr.mxu0 %v26323_v30 }
0x1fb5   : > { %19105 = vmatmul.mubr.msk.f32.vlgmr.msra.gmra.mxu0 %vm5741_vm3, %v26359_v10  ;;  %v21815_v10 = vld [vmem:[#allocation64 + $0x160] ss:$8 sps:$4 sm:$0xff]  }
0x1fb6   : > { %10712 = vmatpush1.msra.mxu0 %v26321_v29  ;;  %10745 = vmatprep.mubr.f32.mxu0 %v24846_v18 }
0x1fb7   : > { %10782 = vmatprep.subr.mxu0 %v26323_v30  ;;  %v21821_v30 = vld [vmem:[#allocation64 + $0x150] ss:$8 sps:$4 sm:$0xff]  }
0x1fb9   : > { %19106 = vmatmul.mubr.msk.f32.vlgmr.msra.gmra.mxu0 %vm5741_vm3, %v26364_v11  ;;  %v21827_v11 = vld [vmem:[#allocation64 + $0x140] ss:$8 sps:$4 sm:$0xff]  }
0x1fba   : > { %10783 = vmatpush1.msra.mxu0 %v26321_v29  ;;  %10816 = vmatprep.mubr.f32.mxu0 %v24846_v18  ;;  %v21835_v29 = vld [vmem:[#allocation64 + $0x134] ss:$8 sps:$4 sm:$0xff]  }
0x1fbb   : > { %11458 = vmatprep.subr.bf16.mxu0 %v21811_v43  ;;  %v21911_v43 = vld [vmem:[#allocation64 + $0x230] ss:$8 sps:$4 sm:$0xff]  }
0x1fbd   : > { %19107 = vmatmul.mubr.msk.f32.vlgmr.msra.gmra.mxu0 %vm5741_vm3, %v26370_v13  ;;  %v21847_v13 = vld [vmem:[#allocation64 + $0x114] ss:$8 sps:$4 sm:$0xff]  }
0x1fbe   : > { %11459 = vmatpush1.bf16.msra.mxu0 %v21809_v32  ;;  %v21916_v32 = vld [vmem:[#allocation64 + $0x224] ss:$8 sps:$4 sm:$0xff]  }
0x1fbf   : > { %11460 = vmatprep.subr.bf16.mxu0 %v21817_v44  ;;  %v21914_v44 = vld [vmem:[#allocation64 + $0x220] ss:$8 sps:$4 sm:$0xff]  }
0x1fc2   : > { %11461 = vmatpush1.bf16.msra.mxu0 %v21815_v10  ;;  %v21919_v10 = vld [vmem:[#allocation64 + $0x214] ss:$8 sps:$4 sm:$0xff]  }
0x1fc3   : > { %11462 = vmatprep.subr.bf16.mxu0 %v21823_v46  ;;  %v21917_v46 = vld [vmem:[#allocation64 + $0x210] ss:$8 sps:$4 sm:$0xff]  }
0x1fc6   : > { %11463 = vmatpush1.bf16.msra.mxu0 %v21821_v30  ;;  %v21922_v30 = vld [vmem:[#allocation64 + $0x204] ss:$8 sps:$4 sm:$0xff]  }
0x1fc7   : > { %11464 = vmatprep.subr.bf16.mxu0 %v21829_v48  ;;  %v21920_v48 = vld [vmem:[#allocation64 + $0x200] ss:$8 sps:$4 sm:$0xff]  }
0x1fca   : > { %11465 = vmatpush1.bf16.msra.mxu0 %v21827_v11  ;;  %v21925_v11 = vld [vmem:[#allocation64 + $0x2f4] ss:$8 sps:$4 sm:$0xff]  }
0x1fcb   : > { %11466 = vmatprep.subr.bf16.mxu0 %v21835_v29  ;;  %v21923_v29 = vld [vmem:[#allocation64 + $0x2f0] ss:$8 sps:$4 sm:$0xff]  }
0x1fce   : > { %11467 = vmatpush1.bf16.msra.mxu0 %v21833_v23  ;;  %v21928_v23 = vld [vmem:[#allocation64 + $0x2e4] ss:$8 sps:$4 sm:$0xff]  }
0x1fcf   : > { %11468 = vmatprep.subr.bf16.mxu0 %v21841_v51  ;;  %v21926_v51 = vld [vmem:[#allocation64 + $0x2e0] ss:$8 sps:$4 sm:$0xff]  }
0x1fd2   : > { %11469 = vmatpush1.bf16.msra.mxu0 %v21839_v52  ;;  %v21931_v52 = vld [vmem:[#allocation64 + $0x2d4] ss:$8 sps:$4 sm:$0xff]  }
0x1fd3   : > { %11470 = vmatprep.subr.bf16.mxu0 %v21847_v13  ;;  %v21929_v13 = vld [vmem:[#allocation64 + $0x2d0] ss:$8 sps:$4 sm:$0xff]  }
0x1fd6   : > { %11471 = vmatpush1.bf16.msra.mxu0 %v21845_v54  ;;  %v21934_v54 = vld [vmem:[#allocation64 + $0x2c4] ss:$8 sps:$4 sm:$0xff]  }
0x1fd7   : > { %11472 = vmatprep.subr.bf16.mxu0 %v21853_v42  ;;  %v21932_v42 = vld [vmem:[#allocation64 + $0x2c0] ss:$8 sps:$4 sm:$0xff]  }
0x1fda   : > { %11473 = vmatpush1.bf16.msra.mxu0 %v21851_v45  ;;  %v21937_v45 = vld [vmem:[#allocation64 + $0x2b4] ss:$8 sps:$4 sm:$0xff]  }
0x1fdb   : > { %11474 = vmatprep.subr.bf16.mxu0 %v21859_v56  ;;  %v21935_v56 = vld [vmem:[#allocation64 + $0x2b0] ss:$8 sps:$4 sm:$0xff]  }
0x1fde   : > { %11475 = vmatpush2.bf16.msra.mxu0 %v21857_v57  ;;  %v21940_v57 = vld [vmem:[#allocation64 + $0x2a4] ss:$8 sps:$4 sm:$0xff]  }
0x1fdf   : > { %11476 = vmatprep.subr.bf16.mxu0 %v21865_v58  ;;  %v21938_v58 = vld [vmem:[#allocation64 + $0x2a0] ss:$8 sps:$4 sm:$0xff]  }
0x1fe2   : > { %11477 = vmatpush2.bf16.msra.mxu0 %v21863_v39  ;;  %v21943_v39 = vld [vmem:[#allocation64 + $0x294] ss:$8 sps:$4 sm:$0xff]  }
0x1fe3   : > { %11478 = vmatprep.subr.bf16.mxu0 %v21871_v59  ;;  %v21941_v59 = vld [vmem:[#allocation64 + $0x290] ss:$8 sps:$4 sm:$0xff]  }
0x1fe6   : > { %11479 = vmatpush2.bf16.msra.mxu0 %v21869_v60  ;;  %v21946_v60 = vld [vmem:[#allocation64 + $0x284] ss:$8 sps:$4 sm:$0xff]  }
0x1fe7   : > { %11480 = vmatprep.subr.bf16.mxu0 %v21877_v61  ;;  %v21944_v61 = vld [vmem:[#allocation64 + $0x280] ss:$8 sps:$4 sm:$0xff]  }
0x1fea   : > { %11481 = vmatpush2.bf16.msra.mxu0 %v21875_v47 }
0x1feb   : > { %11482 = vmatprep.subr.bf16.mxu0 %v21883_v62  ;;  %v21947_v62 = vld [vmem:[#allocation67 + $0x70] ss:$8 sps:$4 sm:$0xff]  }
0x1fee   : > { %11483 = vmatpush2.bf16.msra.mxu0 %v21881_v63  ;;  %v21949_v63 = vld [vmem:[#allocation67 + $0x74] ss:$8 sps:$4 sm:$0xff]  }
0x1fef   : > { %11484 = vmatprep.subr.bf16.mxu0 %v21889_v3  ;;  %v21955_v3 = vld [vmem:[#allocation67 + $0x54] ss:$8 sps:$4 sm:$0xff]  }
0x1ff2   : > { %11485 = vmatpush2.bf16.msra.mxu0 %v21887_v4  ;;  %v21953_v4 = vld [vmem:[#allocation67 + $0x50] ss:$8 sps:$4 sm:$0xff]  }
0x1ff3   : > { %11486 = vmatprep.subr.bf16.mxu0 %v21895_v1  ;;  %v21961_v1 = vld [vmem:[#allocation67 + $0x34] ss:$8 sps:$4 sm:$0xff]  }
0x1ff6   : > { %11487 = vmatpush2.bf16.msra.mxu0 %v21893_v9  ;;  %v21959_v9 = vld [vmem:[#allocation67 + $0x30] ss:$8 sps:$4 sm:$0xff]  }
0x1ff7   : > { %11488 = vmatprep.subr.bf16.mxu0 %v21901_v14  ;;  %v21962_v14 = vld [vmem:[#allocation67 + $0x20] ss:$8 sps:$4 sm:$0xff]  }
0x1ffa   : > { %11489 = vmatpush2.bf16.msra.mxu0 %v21899_v15  ;;  %v21967_v15 = vld [vmem:[#allocation67 + $0x14] ss:$8 sps:$4 sm:$0xff]  }
0x1ffb   : > { %11750 = vmatprep.subr.bf16.mxu0 %v21949_v63 }
0x2071   : > { %v26508_v16 = vpop.f32.mrf.mxu0 }
0x2073   : > { %v26510_v17 = vpop.f32.mrf.mxu0 }
0x2075   : > { %v10676_v19 = vpop.f32.mrf.mxu0 }
0x2076   : > { %v10823_v24 = vpack.c.bf16 %v10676_v19, %v10676_v19  ;;  %v21965_v19 = vld [vmem:[#allocation67 + $0x10] ss:$8 sps:$4 sm:$0xff]  }
0x2077   : > { %v10678_v20 = vpop.f32.mrf.mxu0 }
0x2078   : > { %v10824_v21 = vpack.c.bf16 %v10678_v20, %v10678_v20  ;;  %v21970_v20 = vld [vmem:[#allocation67 + $0x4] ss:$8 sps:$4 sm:$0xff]  }
0x2079   : > { %v10747_v25 = vpop.f32.mrf.mxu0 }
0x207a   : > { %11449 = vmatprep.mubr.bf16.mxu1 %v10824_v21  ;;  %v10825_v27 = vpack.c.bf16 %v10747_v25, %v10747_v25  ;;  %v21968_v21 = vld [vmem:[#allocation67] ss:$8 sps:$4 sm:$0xff]   ;;  %v21976_v25 = vld [vmem:[#allocation67 + $0xe4] ss:$8 sps:$4 sm:$0xff]  }
0x207b   : > { %v10749_v28 = vpop.f32.mrf.mxu0  ;;  %11450 = vmatmul.mubr.bf16.vlgmr.msra.gmra.mxu1 %v10823_v24  ;;  %v21971_v24 = vld [vmem:[#allocation67 + $0xf0] ss:$8 sps:$4 sm:$0xff]  }
0x207c   : > { %v10826_v31 = vpack.c.bf16 %v10749_v28, %v10749_v28  ;;  %11500 = vmatpush1.bf16.msra.mxu1 %v21896_v22  ;;  %v21973_v22 = vld [vmem:[#allocation67 + $0xf4] ss:$8 sps:$4 sm:$0xff]   ;;  %v21977_v28 = vld [vmem:[#allocation67 + $0xd0] ss:$8 sps:$4 sm:$0xff]  }
0x207d   : > { %11501 = vmatprep.subr.bf16.mxu1 %v21904_v26  ;;  %v26512_v49 = vpop.f32.mrf.mxu0  ;;  %v21974_v26 = vld [vmem:[#allocation67 + $0xe0] ss:$8 sps:$4 sm:$0xff]  }
0x207e   : > { %11490 = vmatprep.mubr.bf16.mxu0 %v10826_v31  ;;  %v10827_v47 = vpack.c.bf16 %v26512_v49, %v26512_v49  ;;  %v21982_v31 = vld [vmem:[#allocation67 + $0xc4] ss:$8 sps:$4 sm:$0xff]   ;;  %v21983_v49 = vld [vmem:[#allocation67 + $0xb0] ss:$8 sps:$4 sm:$0xff]  }
0x207f   : > { %11491 = vmatmul.mubr.bf16.vlgmr.msra.gmra.mxu0 %v10825_v27  ;;  %v10820_v36 = vpop.f32.mrf.mxu0  ;;  %v21979_v27 = vld [vmem:[#allocation67 + $0xd4] ss:$8 sps:$4 sm:$0xff]  }
0x2080   : > { %11502 = vmatpush1.bf16.msra.mxu1 %v21902_v50  ;;  %v10828_v37 = vpack.c.bf16 %v10820_v36, %v10820_v36  ;;  %11751 = vmatpush1.bf16.msra.mxu0 %v21947_v62  ;;  %v21980_v50 = vld [vmem:[#allocation67 + $0xc0] ss:$8 sps:$4 sm:$0xff]   ;;  %v21988_v36 = vld [vmem:[#allocation67 + $0xa4] ss:$8 sps:$4 sm:$0xff]  }
0x2081   : > { %11503 = vmatprep.subr.bf16.mxu1 %v21907_v35  ;;  %11752 = vmatprep.subr.bf16.mxu0 %v21952_v0  ;;  %v21985_v35 = vld [vmem:[#allocation67 + $0xb4] ss:$8 sps:$4 sm:$0xff]  }
0x2082   : > { %11531 = vmatprep.mubr.bf16.mxu1 %v10828_v37  ;;  %v21991_v37 = vld [vmem:[#allocation67 + $0x94] ss:$8 sps:$4 sm:$0xff]  }
0x2084   : > { %11504 = vmatpush1.bf16.msra.mxu1 %v21905_v33  ;;  %11753 = vmatpush1.bf16.msra.mxu0 %v21950_v2  ;;  %v21986_v33 = vld [vmem:[#allocation67 + $0xa0] ss:$8 sps:$4 sm:$0xff]  }
0x2085   : > { %11505 = vmatprep.subr.bf16.mxu1 %v21910_v38  ;;  %11754 = vmatprep.subr.bf16.mxu0 %v21955_v3  ;;  %v21989_v38 = vld [vmem:[#allocation67 + $0x90] ss:$8 sps:$4 sm:$0xff]  }
0x2088   : > { %11506 = vmatpush1.bf16.msra.mxu1 %v21908_v34  ;;  %11755 = vmatpush1.bf16.msra.mxu0 %v21953_v4  ;;  %v21994_v34 = vld [vmem:[#allocation67 + $0x84] ss:$8 sps:$4 sm:$0xff]  }
0x2089   : > { %11507 = vmatprep.subr.bf16.mxu1 %v21913_v40  ;;  %11756 = vmatprep.subr.bf16.mxu0 %v21958_v5  ;;  %v21992_v40 = vld [vmem:[#allocation67 + $0x80] ss:$8 sps:$4 sm:$0xff]  }
0x208c   : > { %11508 = vmatpush1.bf16.msra.mxu1 %v21911_v43  ;;  %11757 = vmatpush1.bf16.msra.mxu0 %v21956_v6 }
0x208d   : > { %11509 = vmatprep.subr.bf16.mxu1 %v21916_v32  ;;  %11758 = vmatprep.subr.bf16.mxu0 %v21961_v1 }
0x2090   : > { %11510 = vmatpush1.bf16.msra.mxu1 %v21914_v44  ;;  %11759 = vmatpush1.bf16.msra.mxu0 %v21959_v9 }
0x2091   : > { %11511 = vmatprep.subr.bf16.mxu1 %v21919_v10  ;;  %11760 = vmatprep.subr.bf16.mxu0 %v21964_v12 }
0x2094   : > { %11512 = vmatpush1.bf16.msra.mxu1 %v21917_v46  ;;  %11761 = vmatpush1.bf16.msra.mxu0 %v21962_v14 }
0x2095   : > { %11513 = vmatprep.subr.bf16.mxu1 %v21922_v30  ;;  %11762 = vmatprep.subr.bf16.mxu0 %v21967_v15 }
0x2098   : > { %11514 = vmatpush1.bf16.msra.mxu1 %v21920_v48  ;;  %11763 = vmatpush1.bf16.msra.mxu0 %v21965_v19 }
0x2099   : > { %11515 = vmatprep.subr.bf16.mxu1 %v21925_v11  ;;  %11764 = vmatprep.subr.bf16.mxu0 %v21970_v20  ;;  %v26536_v20 = vld [vmem:[#allocation10] sm:$0x3] }
0x209c   : > { %11516 = vmatpush2.bf16.msra.mxu1 %v21923_v29  ;;  %11765 = vmatpush1.bf16.msra.mxu0 %v21968_v21  ;;  %v10925_v29 = vld [vmem:[#allocation66] sm:$0x3]  ;;  %v26540_v21 = vld [vmem:[#allocation10 + $0x2] sm:$0x3] }
0x209d   : > { %11517 = vmatprep.subr.bf16.mxu1 %v21928_v23  ;;  %11766 = vmatprep.subr.bf16.mxu0 %v21973_v22  ;;  %v10930_v23 = vrot.slane %v10925_v29, %v26021_v8  ;;  %v21997_v22 = vld [vmem:[#allocation70 + $0x74] ss:$8 sps:$4 sm:$0xff]  }
0x20a0   : > { %11518 = vmatpush2.bf16.msra.mxu1 %v21926_v51  ;;  %11767 = vmatpush2.bf16.msra.mxu0 %v21971_v24  ;;  %v10934_v51 = vrot.slane %v10925_v29, %v26019_v7  ;;  %v21995_v24 = vld [vmem:[#allocation70 + $0x70] ss:$8 sps:$4 sm:$0xff]   ;;  %v22033_v29 = vld [vmem:[#allocation70 + $0x14] ss:$8 sps:$4 sm:$0xff]  }
0x20a1   : > { %11519 = vmatprep.subr.bf16.mxu1 %v21931_v52  ;;  %11768 = vmatprep.subr.bf16.mxu0 %v21976_v25  ;;  %v10603_v52 = vrot.slane %v26508_v16, %v26021_v8  ;;  %v22000_v25 = vld [vmem:[#allocation70 + $0x174] ss:$8 sps:$4 sm:$0xff]  }
0x20a4   : > { %11520 = vmatpush2.bf16.msra.mxu1 %v21929_v13  ;;  %11769 = vmatpush2.bf16.msra.mxu0 %v21974_v26  ;;  %v22003_v26 = vld [vmem:[#allocation70 + $0x64] ss:$8 sps:$4 sm:$0xff]  }
0x20a5   : > { %11521 = vmatprep.subr.bf16.mxu1 %v21934_v54  ;;  %11770 = vmatprep.subr.bf16.mxu0 %v21979_v27  ;;  %v10607_v54 = vrot.slane %v26510_v17, %v26021_v8  ;;  %v26550_v27 = vld [vmem:[#allocation10 + $0x4] sm:$0x3] }
0x20a8   : > { %11522 = vmatpush2.bf16.msra.mxu1 %v21932_v42  ;;  %11771 = vmatpush2.bf16.msra.mxu0 %v21977_v28  ;;  %v21998_v28 = vld [vmem:[#allocation70 + $0x170] ss:$8 sps:$4 sm:$0xff]  }
0x20a9   : > { %11523 = vmatprep.subr.bf16.mxu1 %v21937_v45  ;;  %11772 = vmatprep.subr.bf16.mxu0 %v21982_v31  ;;  %v22006_v31 = vld [vmem:[#allocation70 + $0x164] ss:$8 sps:$4 sm:$0xff]  }
0x20ac   : > { %11524 = vmatpush2.bf16.msra.mxu1 %v21935_v56  ;;  %11773 = vmatpush2.bf16.msra.mxu0 %v21980_v50  ;;  %v22001_v50 = vld [vmem:[#allocation70 + $0x60] ss:$8 sps:$4 sm:$0xff]  }
0x20ad   : > { %11525 = vmatprep.subr.bf16.mxu1 %v21940_v57  ;;  %11774 = vmatprep.subr.bf16.mxu0 %v21985_v35  ;;  %v10608_v57 = vmul.f32 %v10603_v52, %v26456_v55  ;;  %v22009_v35 = vld [vmem:[#allocation70 + $0x54] ss:$8 sps:$4 sm:$0xff]   ;;  %v22031_v52 = vld [vmem:[#allocation70 + $0x10] ss:$8 sps:$4 sm:$0xff]  }
0x20b0   : > { %11526 = vmatpush2.bf16.msra.mxu1 %v21938_v58  ;;  %11775 = vmatpush2.bf16.msra.mxu0 %v21983_v49  ;;  %v22004_v49 = vld [vmem:[#allocation70 + $0x160] ss:$8 sps:$4 sm:$0xff]  }
0x20b1   : > { %11527 = vmatprep.subr.bf16.mxu1 %v21943_v39  ;;  %11776 = vmatprep.subr.bf16.mxu0 %v21988_v36  ;;  %v22012_v36 = vld [vmem:[#allocation70 + $0x154] ss:$8 sps:$4 sm:$0xff]  }
0x20b4   : > { %11528 = vmatpush2.bf16.msra.mxu1 %v21941_v59  ;;  %11777 = vmatpush2.bf16.msra.mxu0 %v21986_v33  ;;  %v22007_v33 = vld [vmem:[#allocation70 + $0x50] ss:$8 sps:$4 sm:$0xff]  }
0x20b5   : > { %11529 = vmatprep.subr.bf16.mxu1 %v21946_v60  ;;  %11778 = vmatprep.subr.bf16.mxu0 %v21991_v37  ;;  %v10609_v60 = vmul.f32 %v10607_v54, %v26453_v53  ;;  %v11578_v53 = vld [vmem:[#allocation69] sm:$0x3]  ;;  %v22015_v37 = vld [vmem:[#allocation70 + $0x44] ss:$8 sps:$4 sm:$0xff]   ;;  %v22034_v54 = vld [vmem:[#allocation70 + $0x110] ss:$8 sps:$4 sm:$0xff]  }
0x20b6   : > { %v11583_v3 = vrot.slane %v11578_v53, %v26021_v8  ;;  %v11587_v4 = vrot.slane %v11578_v53, %v26019_v7  ;;  %v22058_v53 = vld [vmem:[#allocation70 + $0x1d0] ss:$8 sps:$4 sm:$0xff]  }
0x20b8   : > { %11530 = vmatpush2.bf16.msra.mxu1 %v21944_v61  ;;  %11779 = vmatpush2.bf16.msra.mxu0 %v21989_v38  ;;  %v22010_v38 = vld [vmem:[#allocation70 + $0x150] ss:$8 sps:$4 sm:$0xff]  }
0x20b9   : > { %11780 = vmatprep.subr.bf16.mxu0 %v21994_v34  ;;  %v22018_v34 = vld [vmem:[#allocation70 + $0x144] ss:$8 sps:$4 sm:$0xff]  }
0x20bb   : > { %11532 = vmatmul.mubr.bf16.vlgmr.msra.gmra.mxu1 %v10827_v47 }
0x20bc   : > { %11867 = vmatprep.mubr.f32.mxu1 %v24846_v18  ;;  %11781 = vmatpush2.bf16.msra.mxu0 %v21992_v40  ;;  %v22013_v40 = vld [vmem:[#allocation70 + $0x40] ss:$8 sps:$4 sm:$0xff]  }
0x213b   : > { %v11451_v43 = vpop.f32.mrf.mxu1 }
0x213c   : > { %v11452_v13 = vadd.f32 %v11451_v43, %v10930_v23  ;;  %v22021_v43 = vld [vmem:[#allocation70 + $0x34] ss:$8 sps:$4 sm:$0xff]   ;;  %v22028_v23 = vld [vmem:[#allocation70 + $0x120] ss:$8 sps:$4 sm:$0xff]  }
0x213d   : > { %v11453_v32 = vpop.f32.mrf.mxu1 }
0x213e   : > { %v11454_v42 = vadd.f32 %v11453_v32, %v10934_v51  ;;  %v22016_v32 = vld [vmem:[#allocation70 + $0x140] ss:$8 sps:$4 sm:$0xff]   ;;  %v22036_v51 = vld [vmem:[#allocation70 + $0x114] ss:$8 sps:$4 sm:$0xff]  }
0x213f   : > { %v11455_v44 = vpop.f32.mrf.mxu1  ;;  %v11492_v10 = vpop.f32.mrf.mxu0 }
0x2140   : > { %v11493_v45 = vadd.f32 %v11492_v10, %v11452_v13  ;;  %v22024_v44 = vld [vmem:[#allocation70 + $0x134] ss:$8 sps:$4 sm:$0xff]   ;;  %v22019_v10 = vld [vmem:[#allocation70 + $0x30] ss:$8 sps:$4 sm:$0xff]   ;;  %v22039_v13 = vld [vmem:[#allocation70 + $0x4] ss:$8 sps:$4 sm:$0xff]  }
0x2141   : > { %v11456_v46 = vpop.f32.mrf.mxu1  ;;  %v11494_v30 = vpop.f32.mrf.mxu0 }
0x2142   : > { %v11495_v58 = vadd.f32 %v11494_v30, %v11454_v42  ;;  %v22027_v46 = vld [vmem:[#allocation70 + $0x24] ss:$8 sps:$4 sm:$0xff]   ;;  %v22022_v30 = vld [vmem:[#allocation70 + $0x130] ss:$8 sps:$4 sm:$0xff]  }
0x2143   : > { %v11496_v48 = vpop.f32.mrf.mxu0  ;;  %v22042_v42 = vld [vmem:[#allocation70 + $0x104] ss:$8 sps:$4 sm:$0xff]  }
0x2144   : > { %v22030_v48 = vld [vmem:[#allocation70 + $0x124] ss:$8 sps:$4 sm:$0xff]  }
0x2145   : > { %v11497_v11 = vpop.f32.mrf.mxu0 }
0x2146   : > { %v22025_v11 = vld [vmem:[#allocation70 + $0x20] ss:$8 sps:$4 sm:$0xff]  }
0x217b   : > { %v11533_v56 = vpop.f32.mrf.mxu1 }
0x217c   : > { %v11534_v39 = vadd.f32 %v11533_v56, %v11493_v45  ;;  %v22037_v45 = vld [vmem:[#allocation70] ss:$8 sps:$4 sm:$0xff]   ;;  %v22045_v56 = vld [vmem:[#allocation70 + $0xf4] ss:$8 sps:$4 sm:$0xff]  }
0x217d   : > { %v11535_v59 = vpop.f32.mrf.mxu1 }
0x217e   : > { %v11540_v61 = vadd.f32 %v11534_v39, %v10608_v57  ;;  %v11536_v47 = vadd.f32 %v11535_v59, %v11495_v58  ;;  %v22040_v57 = vld [vmem:[#allocation70 + $0x100] ss:$8 sps:$4 sm:$0xff]   ;;  %v22048_v58 = vld [vmem:[#allocation70 + $0x1f4] ss:$8 sps:$4 sm:$0xff]   ;;  %v22043_v39 = vld [vmem:[#allocation70 + $0xf0] ss:$8 sps:$4 sm:$0xff]  }
0x217f   : > { %v11537_v62 = vpop.f32.mrf.mxu1  ;;  %v22051_v59 = vld [vmem:[#allocation70 + $0xe4] ss:$8 sps:$4 sm:$0xff]  }
0x2180   : > { %v11541_v63 = vadd.f32 %v11536_v47, %v10609_v60  ;;  %v26525_v0 = vmax.f32 %v11540_v61, 0.0  ;;  %v22046_v60 = vld [vmem:[#allocation70 + $0x1f0] ss:$8 sps:$4 sm:$0xff]   ;;  %v22054_v61 = vld [vmem:[#allocation70 + $0x1e4] ss:$8 sps:$4 sm:$0xff]  }
0x2181   : > { %v11538_v16 = vpop.f32.mrf.mxu1  ;;  %v22049_v47 = vld [vmem:[#allocation70 + $0xe0] ss:$8 sps:$4 sm:$0xff]   ;;  %v22057_v62 = vld [vmem:[#allocation70 + $0xd4] ss:$8 sps:$4 sm:$0xff]  }
0x2182   : > { %v26527_v2 = vmax.f32 %v11541_v63, 0.0  ;;  %v11544_v55 = vpack.c.bf16 %v26525_v0, %v26525_v0  ;;  %v22052_v63 = vld [vmem:[#allocation70 + $0x1e0] ss:$8 sps:$4 sm:$0xff]   ;;  %v22060_v16 = vld [vmem:[#allocation70 + $0x1d4] ss:$8 sps:$4 sm:$0xff]  }
0x2184   : > { %v11545_v17 = vpack.c.bf16 %v26527_v2, %v26527_v2 }
0x2186   : > { %11782 = vmatprep.mubr.bf16.mxu0 %v11545_v17  ;;  %v22055_v17 = vld [vmem:[#allocation70 + $0xd0] ss:$8 sps:$4 sm:$0xff]  }
0x2187   : > { %11783 = vmatmul.mubr.bf16.vlgmr.msra.gmra.mxu0 %v11544_v55  ;;  %v22063_v55 = vld [vmem:[#allocation70 + $0xc4] ss:$8 sps:$4 sm:$0xff]  }
0x2188   : > { %11943 = vmatprep.mubr.f32.mxu0 %v24846_v18 }
0x2247   : > { %v11784_v5 = vpop.f32.mrf.mxu0 }
0x2248   : > { %v11785_v6 = vadd.f32 %v11784_v5, %v11583_v3  ;;  %v22066_v3 = vld [vmem:[#allocation70 + $0x1c4] ss:$8 sps:$4 sm:$0xff]   ;;  %v22069_v5 = vld [vmem:[#allocation70 + $0xb4] ss:$8 sps:$4 sm:$0xff]  }
0x2249   : > { %v11786_v1 = vpop.f32.mrf.mxu0 }
0x224a   : > { %v11787_v9 = vadd.f32 %v11786_v1, %v11587_v4  ;;  %v11791_v15 = vmax.f32 %v11785_v6, 0.0  ;;  %v22061_v4 = vld [vmem:[#allocation70 + $0xc0] ss:$8 sps:$4 sm:$0xff]   ;;  %v22072_v1 = vld [vmem:[#allocation70 + $0x1b4] ss:$8 sps:$4 sm:$0xff]  }
0x224b   : > { %v11788_v12 = vpop.f32.mrf.mxu0  ;;  %v22064_v6 = vld [vmem:[#allocation70 + $0x1c0] ss:$8 sps:$4 sm:$0xff]  }
0x224c   : > { %v11792_v14 = vmax.f32 %v11787_v9, 0.0  ;;  %v22067_v9 = vld [vmem:[#allocation70 + $0xb0] ss:$8 sps:$4 sm:$0xff]   ;;  %v22075_v12 = vld [vmem:[#allocation70 + $0xa4] ss:$8 sps:$4 sm:$0xff]  }
0x224d   : > { %v11789_v19 = vpop.f32.mrf.mxu0 }
0x224e   : > { %19236 = vmatprep.subr.msk.mxu1 %vm10128_vm6, %v11792_v14  ;;  %19239 = vmatprep.subr.msk.mxu0 %vm10128_vm6, %v11792_v14  ;;  %v22073_v19 = vld [vmem:[#allocation70 + $0xa0] ss:$8 sps:$4 sm:$0xff]  }
0x224f   : > { %19237 = vmatpush1.msk.msra.mxu1 %vm10128_vm6, %v11791_v15  ;;  %19240 = vmatpush1.msk.msra.mxu0 %vm10128_vm6, %v11791_v15 }
0x2250   : > { %19238 = vmatmul.mubr.msk.f32.vlgmr.msra.gmra.mxu1 %vm6908_vm5, %v26536_v20  ;;  %19242 = vmatprep.subr.msk.mxu1 %vm10128_vm6, %v11792_v14  ;;  %v22070_v14 = vld [vmem:[#allocation70 + $0x1b0] ss:$8 sps:$4 sm:$0xff]  }
0x2251   : > { %19243 = vmatpush1.msk.msra.mxu1 %vm10128_vm6, %v11791_v15  ;;  %19241 = vmatmul.mubr.msk.f32.vlgmr.msra.gmra.mxu0 %vm6908_vm5, %v26540_v21  ;;  %v22078_v15 = vld [vmem:[#allocation70 + $0x1a4] ss:$8 sps:$4 sm:$0xff]  }
0x2252   : > { %12019 = vmatprep.mubr.f32.mxu1 %v24846_v18  ;;  %12620 = vmatprep.subr.bf16.mxu0 %v21997_v22  ;;  %v22081_v22 = vld [vmem:[#allocation70 + $0x94] ss:$8 sps:$4 sm:$0xff]  }
0x2253   : > { %12621 = vmatpush1.bf16.msra.mxu0 %v21995_v24  ;;  %12661 = vmatprep.subr.bf16.mxu1 %v22000_v25  ;;  %v22076_v24 = vld [vmem:[#allocation70 + $0x1a0] ss:$8 sps:$4 sm:$0xff]   ;;  %v22079_v25 = vld [vmem:[#allocation70 + $0x90] ss:$8 sps:$4 sm:$0xff]  }
0x2254   : > { %19244 = vmatmul.mubr.msk.f32.vlgmr.msra.gmra.mxu1 %vm6908_vm5, %v26550_v27  ;;  %12622 = vmatprep.subr.bf16.mxu0 %v22003_v26  ;;  %v22084_v26 = vld [vmem:[#allocation70 + $0x194] ss:$8 sps:$4 sm:$0xff]  }
0x2255   : > { %12662 = vmatpush1.bf16.msra.mxu1 %v21998_v28  ;;  %v22082_v28 = vld [vmem:[#allocation70 + $0x190] ss:$8 sps:$4 sm:$0xff]  }
0x2256   : > { %12663 = vmatprep.subr.bf16.mxu1 %v22006_v31  ;;  %v22087_v31 = vld [vmem:[#allocation70 + $0x84] ss:$8 sps:$4 sm:$0xff]  }
0x2257   : > { %12623 = vmatpush1.bf16.msra.mxu0 %v22001_v50  ;;  %v22085_v50 = vld [vmem:[#allocation70 + $0x80] ss:$8 sps:$4 sm:$0xff]  }
0x2258   : > { %12624 = vmatprep.subr.bf16.mxu0 %v22009_v35  ;;  %v22090_v35 = vld [vmem:[#allocation70 + $0x184] ss:$8 sps:$4 sm:$0xff]  }
0x2259   : > { %12664 = vmatpush1.bf16.msra.mxu1 %v22004_v49  ;;  %v22088_v49 = vld [vmem:[#allocation70 + $0x180] ss:$8 sps:$4 sm:$0xff]  }
0x225a   : > { %12665 = vmatprep.subr.bf16.mxu1 %v22012_v36  ;;  %v22093_v36 = vld [vmem:[#allocation70 + $0x274] ss:$8 sps:$4 sm:$0xff]  }
0x225b   : > { %12625 = vmatpush1.bf16.msra.mxu0 %v22007_v33 }
0x225c   : > { %12626 = vmatprep.subr.bf16.mxu0 %v22015_v37 }
0x225d   : > { %12666 = vmatpush1.bf16.msra.mxu1 %v22010_v38 }
0x225e   : > { %12667 = vmatprep.subr.bf16.mxu1 %v22018_v34 }
0x225f   : > { %12627 = vmatpush1.bf16.msra.mxu0 %v22013_v40 }
0x2260   : > { %12628 = vmatprep.subr.bf16.mxu0 %v22021_v43 }
0x2261   : > { %12668 = vmatpush1.bf16.msra.mxu1 %v22016_v32  ;;  %v22091_v32 = vld [vmem:[#allocation70 + $0x270] ss:$8 sps:$4 sm:$0xff]  }
0x2262   : > { %12669 = vmatprep.subr.bf16.mxu1 %v22024_v44 }
0x2263   : > { %12629 = vmatpush1.bf16.msra.mxu0 %v22019_v10 }
0x2264   : > { %12630 = vmatprep.subr.bf16.mxu0 %v22027_v46  ;;  %v22096_v46 = vld [vmem:[#allocation70 + $0x264] ss:$8 sps:$4 sm:$0xff]  }
0x2265   : > { %12670 = vmatpush1.bf16.msra.mxu1 %v22022_v30 }
0x2266   : > { %12671 = vmatprep.subr.bf16.mxu1 %v22030_v48 }
0x2267   : > { %12631 = vmatpush1.bf16.msra.mxu0 %v22025_v11  ;;  %v22094_v11 = vld [vmem:[#allocation70 + $0x260] ss:$8 sps:$4 sm:$0xff]  }
0x2268   : > { %12632 = vmatprep.subr.bf16.mxu0 %v22033_v29 }
0x2269   : > { %12672 = vmatpush1.bf16.msra.mxu1 %v22028_v23  ;;  %v22099_v23 = vld [vmem:[#allocation70 + $0x254] ss:$8 sps:$4 sm:$0xff]  }
0x226a   : > { %12673 = vmatprep.subr.bf16.mxu1 %v22036_v51  ;;  %v22097_v51 = vld [vmem:[#allocation70 + $0x250] ss:$8 sps:$4 sm:$0xff]  }
0x226b   : > { %12633 = vmatpush1.bf16.msra.mxu0 %v22031_v52  ;;  %v22102_v52 = vld [vmem:[#allocation70 + $0x244] ss:$8 sps:$4 sm:$0xff]  }
0x226c   : > { %12634 = vmatprep.subr.bf16.mxu0 %v22039_v13  ;;  %v22100_v13 = vld [vmem:[#allocation70 + $0x240] ss:$8 sps:$4 sm:$0xff]  }
0x226d   : > { %12674 = vmatpush1.bf16.msra.mxu1 %v22034_v54  ;;  %v22105_v54 = vld [vmem:[#allocation70 + $0x234] ss:$8 sps:$4 sm:$0xff]  }
0x226e   : > { %12675 = vmatprep.subr.bf16.mxu1 %v22042_v42  ;;  %v22103_v42 = vld [vmem:[#allocation70 + $0x230] ss:$8 sps:$4 sm:$0xff]  }
0x226f   : > { %12635 = vmatpush1.bf16.msra.mxu0 %v22037_v45  ;;  %v22108_v45 = vld [vmem:[#allocation70 + $0x224] ss:$8 sps:$4 sm:$0xff]  }
0x2270   : > { %12636 = vmatprep.subr.bf16.mxu0 %v22045_v56  ;;  %v22106_v56 = vld [vmem:[#allocation70 + $0x220] ss:$8 sps:$4 sm:$0xff]  }
0x2271   : > { %12676 = vmatpush1.bf16.msra.mxu1 %v22040_v57  ;;  %v22111_v57 = vld [vmem:[#allocation70 + $0x214] ss:$8 sps:$4 sm:$0xff]  }
0x2272   : > { %12677 = vmatprep.subr.bf16.mxu1 %v22048_v58  ;;  %v22109_v58 = vld [vmem:[#allocation70 + $0x210] ss:$8 sps:$4 sm:$0xff]  }
0x2273   : > { %12637 = vmatpush2.bf16.msra.mxu0 %v22043_v39  ;;  %v22114_v39 = vld [vmem:[#allocation70 + $0x204] ss:$8 sps:$4 sm:$0xff]  }
0x2274   : > { %12638 = vmatprep.subr.bf16.mxu0 %v22051_v59  ;;  %v22112_v59 = vld [vmem:[#allocation70 + $0x200] ss:$8 sps:$4 sm:$0xff]  }
0x2275   : > { %12678 = vmatpush2.bf16.msra.mxu1 %v22046_v60  ;;  %v22117_v60 = vld [vmem:[#allocation70 + $0x2f4] ss:$8 sps:$4 sm:$0xff]  }
0x2276   : > { %12679 = vmatprep.subr.bf16.mxu1 %v22054_v61  ;;  %v22115_v61 = vld [vmem:[#allocation70 + $0x2f0] ss:$8 sps:$4 sm:$0xff]  }
0x2277   : > { %12639 = vmatpush2.bf16.msra.mxu0 %v22049_v47  ;;  %v22120_v47 = vld [vmem:[#allocation70 + $0x2e4] ss:$8 sps:$4 sm:$0xff]  }
0x2278   : > { %12640 = vmatprep.subr.bf16.mxu0 %v22057_v62  ;;  %v22118_v62 = vld [vmem:[#allocation70 + $0x2e0] ss:$8 sps:$4 sm:$0xff]  }
0x2279   : > { %12680 = vmatpush2.bf16.msra.mxu1 %v22052_v63  ;;  %v22123_v63 = vld [vmem:[#allocation70 + $0x2d4] ss:$8 sps:$4 sm:$0xff]  }
0x227a   : > { %12681 = vmatprep.subr.bf16.mxu1 %v22060_v16  ;;  %v22121_v16 = vld [vmem:[#allocation70 + $0x2d0] ss:$8 sps:$4 sm:$0xff]  }
0x227b   : > { %12641 = vmatpush2.bf16.msra.mxu0 %v22055_v17  ;;  %v22126_v17 = vld [vmem:[#allocation70 + $0x2c4] ss:$8 sps:$4 sm:$0xff]  }
0x227c   : > { %12642 = vmatprep.subr.bf16.mxu0 %v22063_v55  ;;  %v22124_v55 = vld [vmem:[#allocation70 + $0x2c0] ss:$8 sps:$4 sm:$0xff]  }
0x227d   : > { %12682 = vmatpush2.bf16.msra.mxu1 %v22058_v53  ;;  %v22129_v53 = vld [vmem:[#allocation70 + $0x2b4] ss:$8 sps:$4 sm:$0xff]  }
0x227e   : > { %12683 = vmatprep.subr.bf16.mxu1 %v22066_v3  ;;  %v22127_v3 = vld [vmem:[#allocation70 + $0x2b0] ss:$8 sps:$4 sm:$0xff]  }
0x227f   : > { %12643 = vmatpush2.bf16.msra.mxu0 %v22061_v4  ;;  %v22132_v4 = vld [vmem:[#allocation70 + $0x2a4] ss:$8 sps:$4 sm:$0xff]  }
0x2280   : > { %12644 = vmatprep.subr.bf16.mxu0 %v22069_v5  ;;  %v22130_v5 = vld [vmem:[#allocation70 + $0x2a0] ss:$8 sps:$4 sm:$0xff]  }
0x2281   : > { %12684 = vmatpush2.bf16.msra.mxu1 %v22064_v6  ;;  %v22135_v6 = vld [vmem:[#allocation70 + $0x294] ss:$8 sps:$4 sm:$0xff]  }
0x2282   : > { %12685 = vmatprep.subr.bf16.mxu1 %v22072_v1  ;;  %v22133_v1 = vld [vmem:[#allocation70 + $0x290] ss:$8 sps:$4 sm:$0xff]  }
0x2283   : > { %12645 = vmatpush2.bf16.msra.mxu0 %v22067_v9  ;;  %v22138_v9 = vld [vmem:[#allocation70 + $0x284] ss:$8 sps:$4 sm:$0xff]  }
0x2284   : > { %12646 = vmatprep.subr.bf16.mxu0 %v22075_v12  ;;  %v22136_v12 = vld [vmem:[#allocation70 + $0x280] ss:$8 sps:$4 sm:$0xff]  }
0x2285   : > { %12686 = vmatpush2.bf16.msra.mxu1 %v22070_v14 }
0x2286   : > { %12687 = vmatprep.subr.bf16.mxu1 %v22078_v15  ;;  %v22139_v15 = vld [vmem:[#allocation73 + $0x70] ss:$8 sps:$4 sm:$0xff]  }
0x2287   : > { %12647 = vmatpush2.bf16.msra.mxu0 %v22073_v19  ;;  %v22141_v19 = vld [vmem:[#allocation73 + $0x74] ss:$8 sps:$4 sm:$0xff]  }
0x2288   : > { %12648 = vmatprep.subr.bf16.mxu0 %v22081_v22  ;;  %v22144_v22 = vld [vmem:[#allocation73 + $0x64] ss:$8 sps:$4 sm:$0xff]  }
0x2289   : > { %12688 = vmatpush2.bf16.msra.mxu1 %v22076_v24  ;;  %v22142_v24 = vld [vmem:[#allocation73 + $0x60] ss:$8 sps:$4 sm:$0xff]  }
0x228a   : > { %12689 = vmatprep.subr.bf16.mxu1 %v22084_v26  ;;  %v22145_v26 = vld [vmem:[#allocation73 + $0x50] ss:$8 sps:$4 sm:$0xff]  }
0x228b   : > { %12649 = vmatpush2.bf16.msra.mxu0 %v22079_v25  ;;  %v22147_v25 = vld [vmem:[#allocation73 + $0x54] ss:$8 sps:$4 sm:$0xff]  }
0x228c   : > { %12650 = vmatprep.subr.bf16.mxu0 %v22087_v31  ;;  %v22148_v31 = vld [vmem:[#allocation73 + $0x40] ss:$8 sps:$4 sm:$0xff]  }
0x228d   : > { %12690 = vmatpush2.bf16.msra.mxu1 %v22082_v28  ;;  %v22150_v28 = vld [vmem:[#allocation73 + $0x44] ss:$8 sps:$4 sm:$0xff]  }
0x228e   : > { %12691 = vmatprep.subr.bf16.mxu1 %v22090_v35  ;;  %v22151_v35 = vld [vmem:[#allocation73 + $0x30] ss:$8 sps:$4 sm:$0xff]  }
0x228f   : > { %12651 = vmatpush2.bf16.msra.mxu0 %v22085_v50  ;;  %v22153_v50 = vld [vmem:[#allocation73 + $0x34] ss:$8 sps:$4 sm:$0xff]  }
0x2290   : > { %12702 = vmatprep.subr.bf16.mxu0 %v22093_v36  ;;  %v22154_v36 = vld [vmem:[#allocation73 + $0x20] ss:$8 sps:$4 sm:$0xff]  }
0x2291   : > { %12692 = vmatpush2.bf16.msra.mxu1 %v22088_v49  ;;  %v22156_v49 = vld [vmem:[#allocation73 + $0x24] ss:$8 sps:$4 sm:$0xff]  }
0x2292   : > { %12951 = vmatprep.subr.bf16.mxu1 %v22141_v19 }
0x2310   : > { %v11869_v33 = vpop.f32.mrf.mxu1 }
0x2311   : > { %v11945_v37 = vpop.f32.mrf.mxu0  ;;  %v12026_v44 = vpack.c.bf16 %v11869_v33, %v11869_v33  ;;  %v22159_v33 = vld [vmem:[#allocation73 + $0x14] ss:$8 sps:$4 sm:$0xff]  }
0x2312   : > { %v11871_v38 = vpop.f32.mrf.mxu1  ;;  %v12028_v40 = vpack.c.bf16 %v11945_v37, %v11945_v37  ;;  %v22157_v37 = vld [vmem:[#allocation73 + $0x10] ss:$8 sps:$4 sm:$0xff]  }
0x2313   : > { %v12027_v34 = vpack.c.bf16 %v11871_v38, %v11871_v38  ;;  %v11947_v43 = vpop.f32.mrf.mxu0  ;;  %v22162_v38 = vld [vmem:[#allocation73 + $0x4] ss:$8 sps:$4 sm:$0xff]  }
0x2314   : > { %v12029_v10 = vpack.c.bf16 %v11947_v43, %v11947_v43  ;;  %v26555_v30 = vpop.f32.mrf.mxu1  ;;  %v22163_v43 = vld [vmem:[#allocation73 + $0xf0] ss:$8 sps:$4 sm:$0xff]  }
0x2315   : > { %12652 = vmatprep.mubr.bf16.mxu0 %v12027_v34  ;;  %v12030_v14 = vpack.c.bf16 %v26555_v30, %v26555_v30  ;;  %v22160_v34 = vld [vmem:[#allocation73] ss:$8 sps:$4 sm:$0xff]   ;;  %v22174_v30 = vld [vmem:[#allocation73 + $0xc4] ss:$8 sps:$4 sm:$0xff]  }
0x2316   : > { %12653 = vmatmul.mubr.bf16.vlgmr.msra.gmra.mxu0 %v12026_v44  ;;  %12693 = vmatprep.mubr.bf16.mxu1 %v12029_v10  ;;  %v12023_v48 = vpop.f32.mrf.mxu1  ;;  %v22166_v44 = vld [vmem:[#allocation73 + $0xe0] ss:$8 sps:$4 sm:$0xff]   ;;  %v22171_v10 = vld [vmem:[#allocation73 + $0xd4] ss:$8 sps:$4 sm:$0xff]  }
0x2317   : > { %12703 = vmatpush1.bf16.msra.mxu0 %v22091_v32  ;;  %12694 = vmatmul.mubr.bf16.vlgmr.msra.gmra.mxu1 %v12028_v40  ;;  %v12031_v29 = vpack.c.bf16 %v12023_v48, %v12023_v48  ;;  %v22165_v40 = vld [vmem:[#allocation73 + $0xf4] ss:$8 sps:$4 sm:$0xff]   ;;  %v22168_v32 = vld [vmem:[#allocation73 + $0xe4] ss:$8 sps:$4 sm:$0xff]   ;;  %v22172_v48 = vld [vmem:[#allocation73 + $0xc0] ss:$8 sps:$4 sm:$0xff]  }
0x2318   : > { %12704 = vmatprep.subr.bf16.mxu0 %v22096_v46  ;;  %12952 = vmatpush1.bf16.msra.mxu1 %v22139_v15  ;;  %v22169_v46 = vld [vmem:[#allocation73 + $0xd0] ss:$8 sps:$4 sm:$0xff]  }
0x2319   : > { %12734 = vmatprep.mubr.bf16.mxu0 %v12031_v29  ;;  %12953 = vmatprep.subr.bf16.mxu1 %v22144_v22  ;;  %v22175_v29 = vld [vmem:[#allocation73 + $0xb0] ss:$8 sps:$4 sm:$0xff]  }
0x231a   : > { %v22187_v22 = vld [vmem:[#allocation76 + $0x78] sm:$0xff]  }
0x231b   : > { %12705 = vmatpush1.bf16.msra.mxu0 %v22094_v11  ;;  %v22177_v11 = vld [vmem:[#allocation73 + $0xb4] ss:$8 sps:$4 sm:$0xff]  }
0x231c   : > { %12706 = vmatprep.subr.bf16.mxu0 %v22099_v23  ;;  %12954 = vmatpush1.bf16.msra.mxu1 %v22142_v24  ;;  %v22180_v23 = vld [vmem:[#allocation73 + $0xa4] ss:$8 sps:$4 sm:$0xff]   ;;  %v22188_v24 = vld [vmem:[#allocation76 + $0x38] sm:$0xff]  }
0x231d   : > { %12955 = vmatprep.subr.bf16.mxu1 %v22147_v25  ;;  %v22189_v25 = vld [vmem:[#allocation76 + $0x70] sm:$0xff]  }
0x231f   : > { %12707 = vmatpush1.bf16.msra.mxu0 %v22097_v51  ;;  %v22178_v51 = vld [vmem:[#allocation73 + $0xa0] ss:$8 sps:$4 sm:$0xff]  }
0x2320   : > { %12708 = vmatprep.subr.bf16.mxu0 %v22102_v52  ;;  %12956 = vmatpush1.bf16.msra.mxu1 %v22145_v26  ;;  %v22183_v52 = vld [vmem:[#allocation73 + $0x94] ss:$8 sps:$4 sm:$0xff]  }
0x2321   : > { %12957 = vmatprep.subr.bf16.mxu1 %v22150_v28  ;;  %v22190_v26 = vld [vmem:[#allocation76 + $0x30] sm:$0xff]   ;;  %v22191_v28 = vld [vmem:[#allocation76 + $0x68] sm:$0xff]  }
0x2323   : > { %12709 = vmatpush1.bf16.msra.mxu0 %v22100_v13  ;;  %v22181_v13 = vld [vmem:[#allocation73 + $0x90] ss:$8 sps:$4 sm:$0xff]  }
0x2324   : > { %12710 = vmatprep.subr.bf16.mxu0 %v22105_v54  ;;  %12958 = vmatpush1.bf16.msra.mxu1 %v22148_v31  ;;  %v22186_v54 = vld [vmem:[#allocation73 + $0x84] ss:$8 sps:$4 sm:$0xff]  }
0x2325   : > { %12959 = vmatprep.subr.bf16.mxu1 %v22153_v50  ;;  %v22192_v31 = vld [vmem:[#allocation76 + $0x28] sm:$0xff]   ;;  %v22193_v50 = vld [vmem:[#allocation76 + $0x60] sm:$0xff]  }
0x2327   : > { %12711 = vmatpush1.bf16.msra.mxu0 %v22103_v42  ;;  %v22184_v42 = vld [vmem:[#allocation73 + $0x80] ss:$8 sps:$4 sm:$0xff]  }
0x2328   : > { %12712 = vmatprep.subr.bf16.mxu0 %v22108_v45  ;;  %12960 = vmatpush1.bf16.msra.mxu1 %v22151_v35  ;;  %v22194_v35 = vld [vmem:[#allocation76 + $0x20] sm:$0xff]  }
0x2329   : > { %12961 = vmatprep.subr.bf16.mxu1 %v22156_v49  ;;  %v22195_v49 = vld [vmem:[#allocation76 + $0x58] sm:$0xff]  }
0x232b   : > { %12713 = vmatpush1.bf16.msra.mxu0 %v22106_v56 }
0x232c   : > { %12714 = vmatprep.subr.bf16.mxu0 %v22111_v57  ;;  %12962 = vmatpush1.bf16.msra.mxu1 %v22154_v36  ;;  %v22196_v36 = vld [vmem:[#allocation76 + $0x18] sm:$0xff]  }
0x232d   : > { %12963 = vmatprep.subr.bf16.mxu1 %v22159_v33  ;;  %v22197_v33 = vld [vmem:[#allocation76 + $0x50] sm:$0xff]  }
0x232f   : > { %12715 = vmatpush1.bf16.msra.mxu0 %v22109_v58 }
0x2330   : > { %12716 = vmatprep.subr.bf16.mxu0 %v22114_v39  ;;  %12964 = vmatpush1.bf16.msra.mxu1 %v22157_v37  ;;  %v22198_v37 = vld [vmem:[#allocation76 + $0x10] sm:$0xff]  }
0x2331   : > { %12965 = vmatprep.subr.bf16.mxu1 %v22162_v38  ;;  %v22199_v38 = vld [vmem:[#allocation76 + $0x48] sm:$0xff]  }
0x2333   : > { %12717 = vmatpush1.bf16.msra.mxu0 %v22112_v59 }
0x2334   : > { %12718 = vmatprep.subr.bf16.mxu0 %v22117_v60  ;;  %12966 = vmatpush1.bf16.msra.mxu1 %v22160_v34  ;;  %v22200_v34 = vld [vmem:[#allocation76 + $0x8] sm:$0xff]  }
0x2335   : > { %12967 = vmatprep.subr.bf16.mxu1 %v22165_v40  ;;  %v12779_v40 = vld [vmem:[#allocation75] sm:$0x3] }
0x2337   : > { %12719 = vmatpush2.bf16.msra.mxu0 %v22115_v61 }
0x2338   : > { %12720 = vmatprep.subr.bf16.mxu0 %v22120_v47  ;;  %12968 = vmatpush2.bf16.msra.mxu1 %v22163_v43  ;;  %v12128_v47 = vld [vmem:[#allocation72] sm:$0x3]  ;;  %v12788_v43 = vrot.slane %v12779_v40, %v26019_v7 }
0x2339   : > { %12969 = vmatprep.subr.bf16.mxu1 %v22168_v32  ;;  %v12784_v32 = vrot.slane %v12779_v40, %v26021_v8  ;;  %v22244_v40 = vld [vmem:[#allocation84 + $0xd4] ss:$8 sps:$4 sm:$0xff]  }
0x233b   : > { %12721 = vmatpush2.bf16.msra.mxu0 %v22118_v62  ;;  %v12133_v62 = vrot.slane %v12128_v47, %v26021_v8 }
0x233c   : > { %12722 = vmatprep.subr.bf16.mxu0 %v22123_v63  ;;  %12970 = vmatpush2.bf16.msra.mxu1 %v22166_v44  ;;  %v12137_v63 = vrot.slane %v12128_v47, %v26019_v7  ;;  %v22211_v47 = vld [vmem:[%s26919_s2] sm:$0xff]  }
0x233d   : > { %12971 = vmatprep.subr.bf16.mxu1 %v22171_v10 }
0x233f   : > { %12723 = vmatpush2.bf16.msra.mxu0 %v22121_v16 }
0x2340   : > { %12724 = vmatprep.subr.bf16.mxu0 %v22126_v17  ;;  %12972 = vmatpush2.bf16.msra.mxu1 %v22169_v46 }
0x2341   : > { %12973 = vmatprep.subr.bf16.mxu1 %v22174_v30 }
0x2343   : > { %12725 = vmatpush2.bf16.msra.mxu0 %v22124_v55 }
0x2344   : > { %12726 = vmatprep.subr.bf16.mxu0 %v22129_v53  ;;  %12974 = vmatpush2.bf16.msra.mxu1 %v22172_v48 }
0x2345   : > { %12975 = vmatprep.subr.bf16.mxu1 %v22177_v11 }
0x2347   : > { %12727 = vmatpush2.bf16.msra.mxu0 %v22127_v3 }
0x2348   : > { %12728 = vmatprep.subr.bf16.mxu0 %v22132_v4  ;;  %12976 = vmatpush2.bf16.msra.mxu1 %v22175_v29  ;;  %v24851_v29 = vmov 0.5  }
0x2349   : > { %12977 = vmatprep.subr.bf16.mxu1 %v22180_v23  ;;  %v22201_v23 = vld [vmem:[#allocation76 + $0x40] sm:$0xff]  }
0x234b   : > { %12729 = vmatpush2.bf16.msra.mxu0 %v22130_v5 }
0x234c   : > { %12730 = vmatprep.subr.bf16.mxu0 %v22135_v6  ;;  %12978 = vmatpush2.bf16.msra.mxu1 %v22178_v51  ;;  %v22202_v51 = vld [vmem:[#allocation76] sm:$0xff]  }
0x234d   : > { %12979 = vmatprep.subr.bf16.mxu1 %v22183_v52  ;;  %v22204_v52 = vld [vmem:[%s26919_s2 + $0x38] sm:$0xff]  }
0x234f   : > { %12731 = vmatpush2.bf16.msra.mxu0 %v22133_v1 }
0x2350   : > { %12732 = vmatprep.subr.bf16.mxu0 %v22138_v9  ;;  %12980 = vmatpush2.bf16.msra.mxu1 %v22181_v13  ;;  %v22205_v13 = vld [vmem:[%s26919_s2 + $0x30] sm:$0xff]  }
0x2351   : > { %12981 = vmatprep.subr.bf16.mxu1 %v22186_v54  ;;  %v22206_v54 = vld [vmem:[%s26919_s2 + $0x28] sm:$0xff]  }
0x2353   : > { %12733 = vmatpush2.bf16.msra.mxu0 %v22136_v12 }
0x2354   : > { %12982 = vmatpush2.bf16.msra.mxu1 %v22184_v42  ;;  %v22207_v42 = vld [vmem:[%s26919_s2 + $0x20] sm:$0xff]  }
0x2355   : > { %20189 = vmatprep.subr.bf16.mxu1 %v22187_v22  ;;  %v22215_v22 = vld [vmem:[#allocation84 + $0x60] ss:$8 sps:$4 sm:$0xff]  }
0x2356   : > { %12735 = vmatmul.mubr.bf16.vlgmr.msra.gmra.mxu0 %v12030_v14 }
0x2357   : > { %13066 = vmatprep.mubr.f32.mxu0 %v24846_v18 }
0x23d6   : > { %v12654_v45 = vpop.f32.mrf.mxu0 }
0x23d7   : > { %v12695_v56 = vpop.f32.mrf.mxu1  ;;  %v12655_v16 = vadd.f32 %v12654_v45, %v12133_v62  ;;  %v22208_v45 = vld [vmem:[%s26919_s2 + $0x18] sm:$0xff]  }
0x23d8   : > { %v12656_v57 = vpop.f32.mrf.mxu0 }
0x23d9   : > { %v12697_v58 = vpop.f32.mrf.mxu1  ;;  %v12657_v17 = vadd.f32 %v12656_v57, %v12137_v63  ;;  %v12696_v55 = vadd.f32 %v12695_v56, %v12655_v16  ;;  %v22209_v56 = vld [vmem:[%s26919_s2 + $0x10] sm:$0xff]  }
0x23da   : > { %v12658_v39 = vpop.f32.mrf.mxu0 }
0x23db   : > { %v12699_v59 = vpop.f32.mrf.mxu1  ;;  %v12698_v3 = vadd.f32 %v12697_v58, %v12657_v17 }
0x23dc   : > { %v12659_v60 = vpop.f32.mrf.mxu0  ;;  %v22203_v59 = vld [vmem:[#allocation79] sm:$0xff]  }
0x23dd   : > { %v12700_v61 = vpop.f32.mrf.mxu1 }
0x23de   : > { %v22210_v61 = vld [vmem:[%s26919_s2 + $0x8] sm:$0xff]  }
0x2416   : > { %v12736_v53 = vpop.f32.mrf.mxu0 }
0x2417   : > { %v12737_v4 = vadd.f32 %v12736_v53, %v12696_v55 }
0x2418   : > { %v12738_v5 = vpop.f32.mrf.mxu0 }
0x2419   : > { %v12739_v6 = vadd.f32 %v12738_v5, %v12698_v3  ;;  %v12743_v1 = vmax.f32 %v12737_v4, 0.0  ;;  %v13260_v3 = vld [vmem:[#allocation78] sm:$0x1] }
0x241a   : > { %v12740_v9 = vpop.f32.mrf.mxu0 }
0x241b   : > { %v12744_v12 = vmax.f32 %v12739_v6, 0.0  ;;  %v12745_v19 = vpack.c.bf16 %v12743_v1, %v12743_v1 }
0x241c   : > { %v12741_v14 = vpop.f32.mrf.mxu0 }
0x241d   : > { %v12746_v15 = vpack.c.bf16 %v12744_v12, %v12744_v12 }
0x241f   : > { %12983 = vmatprep.mubr.bf16.mxu1 %v12746_v15  ;;  %v22214_v15 = vld [vmem:[#allocation84 + $0x74] ss:$8 sps:$4 sm:$0xff]  }
0x2420   : > { %12984 = vmatmul.mubr.bf16.vlgmr.msra.gmra.mxu1 %v12745_v19  ;;  %v22212_v19 = vld [vmem:[#allocation84 + $0x70] ss:$8 sps:$4 sm:$0xff]  }
0x2421   : > { %20190 = vmatpush3.bf16.msra.mxu1 %v22188_v24  ;;  %v22220_v24 = vld [vmem:[#allocation84 + $0x54] ss:$8 sps:$4 sm:$0xff]  }
0x2422   : > { %20191 = vmatprep.subr.bf16.mxu1 %v22189_v25  ;;  %v22223_v25 = vld [vmem:[#allocation84 + $0x44] ss:$8 sps:$4 sm:$0xff]  }
0x2425   : > { %20192 = vmatpush3.bf16.msra.mxu1 %v22190_v26  ;;  %v22224_v26 = vld [vmem:[#allocation84 + $0x30] ss:$8 sps:$4 sm:$0xff]  }
0x2426   : > { %20193 = vmatprep.subr.bf16.mxu1 %v22191_v28  ;;  %v22229_v28 = vld [vmem:[#allocation84 + $0x24] ss:$8 sps:$4 sm:$0xff]  }
0x2429   : > { %20194 = vmatpush3.bf16.msra.mxu1 %v22192_v31  ;;  %v22227_v31 = vld [vmem:[#allocation84 + $0x20] ss:$8 sps:$4 sm:$0xff]  }
0x242a   : > { %20195 = vmatprep.subr.bf16.mxu1 %v22193_v50  ;;  %v22230_v50 = vld [vmem:[#allocation84 + $0x10] ss:$8 sps:$4 sm:$0xff]  }
0x242d   : > { %20196 = vmatpush3.bf16.msra.mxu1 %v22194_v35  ;;  %v22235_v35 = vld [vmem:[#allocation84 + $0x4] ss:$8 sps:$4 sm:$0xff]  }
0x242e   : > { %20197 = vmatprep.subr.bf16.mxu1 %v22195_v49  ;;  %v22233_v49 = vld [vmem:[#allocation84] ss:$8 sps:$4 sm:$0xff]  }
0x2431   : > { %20198 = vmatpush3.bf16.msra.mxu1 %v22196_v36  ;;  %v22238_v36 = vld [vmem:[#allocation84 + $0xf4] ss:$8 sps:$4 sm:$0xff]  }
0x2432   : > { %20199 = vmatprep.subr.bf16.mxu1 %v22197_v33  ;;  %v22236_v33 = vld [vmem:[#allocation84 + $0xf0] ss:$8 sps:$4 sm:$0xff]  }
0x2435   : > { %20200 = vmatpush3.bf16.msra.mxu1 %v22198_v37  ;;  %v22241_v37 = vld [vmem:[#allocation84 + $0xe4] ss:$8 sps:$4 sm:$0xff]  }
0x2436   : > { %20201 = vmatprep.subr.bf16.mxu1 %v22199_v38  ;;  %v22239_v38 = vld [vmem:[#allocation84 + $0xe0] ss:$8 sps:$4 sm:$0xff]  }
0x2439   : > { %20202 = vmatpush3.bf16.msra.mxu1 %v22200_v34  ;;  %v13440_v34 = vld [vmem:[#allocation82 + $0xf8] sm:$0xff] }
0x243a   : > { %20203 = vmatprep.subr.bf16.mxu1 %v22201_v23  ;;  %v22245_v23 = vld [vmem:[#allocation84 + $0xc0] ss:$8 sps:$4 sm:$0xff]  }
0x243d   : > { %20204 = vmatpush3.bf16.msra.mxu1 %v22202_v51  ;;  %v13434_v51 = vld [vmem:[#allocation82 + $0xc8] sm:$0xff] }
0x243e   : > { %20497 = vmatprep.subr.bf16.mxu1 %v24846_v18 }
0x24e0   : > { %v12985_v44 = vpop.f32.mrf.mxu1 }
0x24e1   : > { %v26566_v30 = vadd.f32 %v12985_v44, %v12784_v32  ;;  %v22242_v32 = vld [vmem:[#allocation84 + $0xd0] ss:$8 sps:$4 sm:$0xff]   ;;  %v13438_v44 = vld [vmem:[#allocation82 + $0xe8] sm:$0xff] }
0x24e2   : > { %v12987_v10 = vpop.f32.mrf.mxu1 }
0x24e3   : > { %v26564_v46 = vadd.f32 %v12987_v10, %v12788_v43  ;;  %v13439_v43 = vld [vmem:[#allocation82 + $0xf0] sm:$0xff]  ;;  %v13437_v10 = vld [vmem:[#allocation82 + $0xe0] sm:$0xff] }
0x24e4   : > { %v12989_v48 = vpop.f32.mrf.mxu1 }
0x24e5   : > { %19373 = vmatprep.subr.msk.mxu0 %vm6912_vm4, %v26564_v46  ;;  %v13436_v48 = vld [vmem:[#allocation82 + $0xd8] sm:$0xff] }
0x24e6   : > { %v12990_v11 = vpop.f32.mrf.mxu1  ;;  %19374 = vmatpush1.msk.msra.mxu0 %vm6912_vm4, %v26566_v30 }
0x24e7   : > { %19375 = vmatmul.mubr.msk.f32.vlgmr.msra.gmra.mxu0 %vm12992_vm8, %v24851_v29  ;;  %20477 = vmatprep.subr.bf16.mxu0 %v24846_v18  ;;  %v22247_v11 = vld [vmem:[#allocation84 + $0xc4] ss:$8 sps:$4 sm:$0xff]   ;;  %v13435_v29 = vld [vmem:[#allocation82 + $0xd0] sm:$0xff] }
0x24e8   : > { %20493 = vmatprep.mubr.msk.bf16.mxu0 %vm24847_vm1, %v24846_v18  ;;  %20478 = vmatpush3.bf16.msra.mxu0 %v22204_v52  ;;  %v13433_v52 = vld [vmem:[#allocation82 + $0xc0] sm:$0xff] }
0x24e9   : > { %20479 = vmatprep.subr.bf16.mxu0 %v24846_v18 }
0x24ec   : > { %20480 = vmatpush3.bf16.msra.mxu0 %v22205_v13  ;;  %v13432_v13 = vld [vmem:[#allocation82 + $0xb8] sm:$0xff] }
0x24ed   : > { %20481 = vmatprep.subr.bf16.mxu0 %v24846_v18 }
0x24f0   : > { %20482 = vmatpush3.bf16.msra.mxu0 %v22206_v54  ;;  %v22250_v54 = vld [vmem:[#allocation84 + $0xb4] ss:$8 sps:$4 sm:$0xff]  }
0x24f1   : > { %20483 = vmatprep.subr.bf16.mxu0 %v24846_v18 }
0x24f4   : > { %20484 = vmatpush3.bf16.msra.mxu0 %v22207_v42  ;;  %v13431_v42 = vld [vmem:[#allocation82 + $0xb0] sm:$0xff] }
0x24f5   : > { %20485 = vmatprep.subr.bf16.mxu0 %v24846_v18 }
0x24f8   : > { %20486 = vmatpush3.bf16.msra.mxu0 %v22208_v45  ;;  %v22248_v45 = vld [vmem:[#allocation84 + $0xb0] ss:$8 sps:$4 sm:$0xff]  }
0x24f9   : > { %20487 = vmatprep.subr.bf16.mxu0 %v24846_v18 }
0x24fc   : > { %20488 = vmatpush3.bf16.msra.mxu0 %v22209_v56  ;;  %v13430_v56 = vld [vmem:[#allocation82 + $0xa8] sm:$0xff] }
0x24fd   : > { %20489 = vmatprep.subr.bf16.mxu0 %v24846_v18 }
0x2500   : > { %20490 = vmatpush3.bf16.msra.mxu0 %v22210_v61  ;;  %v13426_v61 = vld [vmem:[#allocation82 + $0x88] sm:$0xff] }
0x2501   : > { %20491 = vmatprep.subr.bf16.mxu0 %v24846_v18 }
0x2504   : > { %20492 = vmatpush3.bf16.msra.mxu0 %v22211_v47  ;;  %v13425_v47 = vld [vmem:[#allocation82 + $0x80] sm:$0xff] }
0x2505   : > { %13441 = vmatprep.subr.mxu0 %v13440_v34  ;;  %v22260_v34 = vld [vmem:[#allocation84 + $0x270] ss:$8 sps:$4 sm:$0xff]  }
0x25a7   : > { %v13068_v57 = vpop.f32.mrf.mxu0 }
0x25a8   : > { %v13073_v60 = vpack.c.bf16 %v13068_v57, %v13068_v57  ;;  %v13429_v57 = vld [vmem:[#allocation82 + $0xa0] sm:$0xff] }
0x25a9   : > { %v13070_v58 = vpop.f32.mrf.mxu0 }
0x25aa   : > { %v13074_v39 = vpack.c.bf16 %v13070_v58, %v13070_v58  ;;  %v13428_v58 = vld [vmem:[#allocation82 + $0x98] sm:$0xff] }
0x25ac   : > { %13235 = vmatprep.mubr.bf16.mxu1 %v13074_v39  ;;  %v22253_v39 = vld [vmem:[#allocation84 + $0xa4] ss:$8 sps:$4 sm:$0xff]  }
0x25ad   : > { %13236 = vmatmul.mubr.bf16.vlgmr.msra.gmra.mxu1 %v13073_v60  ;;  %v22251_v60 = vld [vmem:[#allocation84 + $0xa0] ss:$8 sps:$4 sm:$0xff]  }
0x25ae   : > { %20498 = vmatpush3.bf16.msra.mxu1 %v22203_v59  ;;  %20499 = vmatprep.mubr.msk.bf16.mxu1 %vm24847_vm1, %v24846_v18  ;;  %v13427_v59 = vld [vmem:[#allocation82 + $0x90] sm:$0xff] }
0x25af   : > { %19402 = vmatprep.subr.msk.mxu1 %vm10128_vm6, %v26527_v2 }
0x266d   : > { %v20205_v62 = vpop.f32.mrf.mxu1 }
0x266f   : > { %v20206_v63 = vpop.f32.mrf.mxu1 }
0x2670   : > { %v20207_v16 = vadd.f32 %v20206_v63, %v20205_v62  ;;  %v13424_v62 = vld [vmem:[#allocation82 + $0x78] sm:$0xff] }
0x2671   : > { %v20208_v17 = vpop.f32.mrf.mxu1  ;;  %v22256_v63 = vld [vmem:[#allocation84 + $0x94] ss:$8 sps:$4 sm:$0xff]  }
0x2672   : > { %v13243_v55 = vpack.c.bf16 %v20207_v16, %v20207_v16  ;;  %v13423_v16 = vld [vmem:[#allocation82 + $0x70] sm:$0xff] }
0x2673   : > { %v20209_v53 = vpop.f32.mrf.mxu1  ;;  %v22254_v17 = vld [vmem:[#allocation84 + $0x90] ss:$8 sps:$4 sm:$0xff]  }
0x2674   : > { %20494 = vmatmul.mubr.bf16.vlgmr.msra.gmra.mxu0 %v13243_v55  ;;  %v13422_v55 = vld [vmem:[#allocation82 + $0x68] sm:$0xff]  ;;  %v13421_v53 = vld [vmem:[#allocation82 + $0x60] sm:$0xff] }
0x2675   : > { %13505 = vmatprep.mubr.f32.mxu0 %v24846_v18  ;;  %13442 = vmatpush1.msra.mxu0 %v13439_v43 }
0x2676   : > { %13443 = vmatprep.subr.mxu0 %v13438_v44  ;;  %v22263_v44 = vld [vmem:[#allocation84 + $0x260] ss:$8 sps:$4 sm:$0xff]  }
0x2677   : > { %13444 = vmatpush1.msra.mxu0 %v13437_v10  ;;  %v22271_v10 = vld [vmem:[#allocation84 + $0x254] ss:$8 sps:$4 sm:$0xff]  }
0x2678   : > { %13445 = vmatprep.subr.mxu0 %v13436_v48 }
0x2679   : > { %13446 = vmatpush1.msra.mxu0 %v13435_v29  ;;  %v22269_v29 = vld [vmem:[#allocation84 + $0x250] ss:$8 sps:$4 sm:$0xff]  }
0x267a   : > { %13447 = vmatprep.subr.mxu0 %v13434_v51 }
0x267b   : > { %13448 = vmatpush1.msra.mxu0 %v13433_v52  ;;  %v22277_v52 = vld [vmem:[#allocation84 + $0x244] ss:$8 sps:$4 sm:$0xff]  }
0x267c   : > { %13449 = vmatprep.subr.mxu0 %v13432_v13 }
0x267d   : > { %13450 = vmatpush1.msra.mxu0 %v13431_v42  ;;  %v22283_v42 = vld [vmem:[#allocation84 + $0x234] ss:$8 sps:$4 sm:$0xff]  }
0x267e   : > { %13451 = vmatprep.subr.mxu0 %v13430_v56  ;;  %v22289_v56 = vld [vmem:[#allocation84 + $0x224] ss:$8 sps:$4 sm:$0xff]  }
0x267f   : > { %13452 = vmatpush1.msra.mxu0 %v13429_v57  ;;  %v22287_v57 = vld [vmem:[#allocation84 + $0x220] ss:$8 sps:$4 sm:$0xff]  }
0x2680   : > { %13453 = vmatprep.subr.mxu0 %v13428_v58  ;;  %v22295_v58 = vld [vmem:[#allocation84 + $0x214] ss:$8 sps:$4 sm:$0xff]  }
0x2681   : > { %13454 = vmatpush1.msra.mxu0 %v13427_v59 }
0x2682   : > { %13455 = vmatprep.subr.mxu0 %v13426_v61  ;;  %v22293_v61 = vld [vmem:[#allocation84 + $0x210] ss:$8 sps:$4 sm:$0xff]  }
0x2683   : > { %13456 = vmatpush1.msra.mxu0 %v13425_v47 }
0x2684   : > { %13457 = vmatprep.subr.mxu0 %v13424_v62  ;;  %v22301_v62 = vld [vmem:[#allocation84 + $0x204] ss:$8 sps:$4 sm:$0xff]  }
0x2685   : > { %13458 = vmatpush1.msra.mxu0 %v13423_v16  ;;  %v22280_v16 = vld [vmem:[#allocation84 + $0x154] ss:$8 sps:$4 sm:$0xff]  }
0x2686   : > { %13459 = vmatprep.subr.mxu0 %v13422_v55  ;;  %v22307_v55 = vld [vmem:[#allocation84 + $0x2f4] ss:$8 sps:$4 sm:$0xff]  }
0x2687   : > { %13460 = vmatpush1.msra.mxu0 %v13421_v53  ;;  %v22278_v53 = vld [vmem:[#allocation84 + $0x150] ss:$8 sps:$4 sm:$0xff]  }
0x2734   : > { %v13343_v4 = vpop.f32.mrf.mxu0 }
0x2735   : > { %v13344_v5 = vadd.f32 %v13343_v4, %v13260_v3  ;;  %v13420_v3 = vld [vmem:[#allocation82 + $0x58] sm:$0xff]  ;;  %v13419_v4 = vld [vmem:[#allocation82 + $0x50] sm:$0xff] }
0x2736   : > { %v20495_v6 = vpop.f32.mrf.mxu0  ;;  %13461 = vmatprep.subr.mxu0 %v13420_v3  ;;  %v22286_v3 = vld [vmem:[#allocation84 + $0x144] ss:$8 sps:$4 sm:$0xff]  }
0x2737   : > { %v13349_v1 = vmax.f32 %v13344_v5, 0.0  ;;  %v22257_v5 = vld [vmem:[#allocation84 + $0x80] ss:$8 sps:$4 sm:$0xff]   ;;  %v22259_v6 = vld [vmem:[#allocation84 + $0x84] ss:$8 sps:$4 sm:$0xff]   ;;  %13462 = vmatpush1.msra.mxu0 %v13419_v4 }
0x2738   : > { %v13346_v9 = vpop.f32.mrf.mxu0  ;;  %v22305_v4 = vld [vmem:[#allocation84 + $0x2f0] ss:$8 sps:$4 sm:$0xff]  }
0x2739   : > { %v13350_v12 = vpack.c.bf16 %v13349_v1, %v13349_v1  ;;  %v13418_v1 = vld [vmem:[#allocation82 + $0x48] sm:$0xff]  ;;  %v13417_v9 = vld [vmem:[#allocation82 + $0x40] sm:$0xff] }
0x273a   : > { %v20496_v14 = vpop.f32.mrf.mxu0  ;;  %13463 = vmatprep.subr.mxu0 %v13418_v1  ;;  %v22292_v1 = vld [vmem:[#allocation84 + $0x134] ss:$8 sps:$4 sm:$0xff]  }
0x273b   : > { %20500 = vmatmul.mubr.msk.bf16.vlgmr.msra.gmra.mxu1 %vm3932_vm2, %v13350_v12  ;;  %v13416_v12 = vld [vmem:[#allocation82 + $0x38] sm:$0xff]  ;;  %13464 = vmatpush1.msra.mxu0 %v13417_v9  ;;  %v22311_v9 = vld [vmem:[#allocation84 + $0x2e0] ss:$8 sps:$4 sm:$0xff]  }
0x273c   : > { %19403 = vmatpush1.msk.msra.mxu1 %vm10128_vm6, %v26525_v0  ;;  %13592 = vmatprep.mubr.f32.mxu1 %v24846_v18  ;;  %v22262_v14 = vld [vmem:[#allocation84 + $0x274] ss:$8 sps:$4 sm:$0xff]  }
0x273d   : > { %19405 = vmatprep.subr.msk.mxu1 %vm10128_vm6, %v26527_v2  ;;  %13465 = vmatprep.subr.mxu0 %v13416_v12  ;;  %v22319_v12 = vld [vmem:[#allocation84 + $0x2d4] ss:$8 sps:$4 sm:$0xff]  }
0x2743   : > { %19404 = vmatmul.mubr.msk.f32.vlgmr.msra.gmra.mxu1 %vm6908_vm5, %v26536_v20  ;;  %v22217_v20 = vld [vmem:[#allocation84 + $0x64] ss:$8 sps:$4 sm:$0xff]  }
0x2744   : > { %19406 = vmatpush1.msk.msra.mxu1 %vm10128_vm6, %v26525_v0  ;;  %13663 = vmatprep.mubr.f32.mxu1 %v24846_v18 }
0x2745   : > { %19408 = vmatprep.subr.msk.mxu1 %vm10128_vm6, %v26527_v2  ;;  %v22218_v2 = vld [vmem:[#allocation84 + $0x50] ss:$8 sps:$4 sm:$0xff]  }
0x2747   : > { %19407 = vmatmul.mubr.msk.f32.vlgmr.msra.gmra.mxu1 %vm6908_vm5, %v26540_v21  ;;  %v22221_v21 = vld [vmem:[#allocation84 + $0x40] ss:$8 sps:$4 sm:$0xff]  }
0x2748   : > { %19409 = vmatpush1.msk.msra.mxu1 %vm10128_vm6, %v26525_v0  ;;  %13734 = vmatprep.mubr.f32.mxu1 %v24846_v18  ;;  %v22226_v0 = vld [vmem:[#allocation84 + $0x34] ss:$8 sps:$4 sm:$0xff]  }
0x2749   : > { %14335 = vmatprep.subr.bf16.mxu1 %v22214_v15  ;;  %v13415_v15 = vld [vmem:[#allocation82 + $0x30] sm:$0xff] }
0x274a   : > { %13466 = vmatpush1.msra.mxu0 %v13415_v15  ;;  %v22298_v15 = vld [vmem:[#allocation84 + $0x124] ss:$8 sps:$4 sm:$0xff]  }
0x274b   : > { %19410 = vmatmul.mubr.msk.f32.vlgmr.msra.gmra.mxu1 %vm6908_vm5, %v26550_v27  ;;  %v22232_v27 = vld [vmem:[#allocation84 + $0x14] ss:$8 sps:$4 sm:$0xff]  }
0x274c   : > { %14336 = vmatpush1.bf16.msra.mxu1 %v22212_v19  ;;  %v13414_v19 = vld [vmem:[#allocation82 + $0x28] sm:$0xff] }
0x274d   : > { %14337 = vmatprep.subr.bf16.mxu1 %v22217_v20  ;;  %v13413_v20 = vld [vmem:[#allocation82 + $0x20] sm:$0xff]  ;;  %13467 = vmatprep.subr.mxu0 %v13414_v19  ;;  %v22317_v19 = vld [vmem:[#allocation84 + $0x2d0] ss:$8 sps:$4 sm:$0xff]  }
0x274e   : > { %13468 = vmatpush1.msra.mxu0 %v13413_v20  ;;  %v22325_v20 = vld [vmem:[#allocation84 + $0x2c4] ss:$8 sps:$4 sm:$0xff]  }
0x2750   : > { %14338 = vmatpush1.bf16.msra.mxu1 %v22215_v22  ;;  %v13412_v22 = vld [vmem:[#allocation82 + $0x18] sm:$0xff] }
0x2751   : > { %14339 = vmatprep.subr.bf16.mxu1 %v22220_v24  ;;  %v13411_v24 = vld [vmem:[#allocation82 + $0x10] sm:$0xff]  ;;  %13469 = vmatprep.subr.mxu0 %v13412_v22  ;;  %v22296_v22 = vld [vmem:[#allocation84 + $0x120] ss:$8 sps:$4 sm:$0xff]  }
0x2752   : > { %13470 = vmatpush1.msra.mxu0 %v13411_v24  ;;  %v22304_v24 = vld [vmem:[#allocation84 + $0x114] ss:$8 sps:$4 sm:$0xff]  }
0x2754   : > { %14340 = vmatpush1.bf16.msra.mxu1 %v22218_v2  ;;  %v13410_v2 = vld [vmem:[#allocation82 + $0x8] sm:$0xff] }
0x2755   : > { %14341 = vmatprep.subr.bf16.mxu1 %v22223_v25  ;;  %v13409_v25 = vld [vmem:[#allocation82] sm:$0xff]  ;;  %13471 = vmatprep.subr.mxu0 %v13410_v2 }
0x2756   : > { %13472 = vmatpush1.msra.mxu0 %v13409_v25  ;;  %v22323_v2 = vld [vmem:[#allocation84 + $0x2c0] ss:$8 sps:$4 sm:$0xff]   ;;  %v22331_v25 = vld [vmem:[#allocation84 + $0x2b4] ss:$8 sps:$4 sm:$0xff]  }
0x2758   : > { %14342 = vmatpush1.bf16.msra.mxu1 %v22221_v21  ;;  %v22268_v21 = vld [vmem:[#allocation84 + $0x174] ss:$8 sps:$4 sm:$0xff]  }
0x2759   : > { %14343 = vmatprep.subr.bf16.mxu1 %v22226_v0  ;;  %14376 = vmatprep.subr.bf16.mxu0 %v22268_v21  ;;  %v13353_v0 = vld [vmem:[#allocation81] sm:$0x1]  ;;  %v22302_v21 = vld [vmem:[#allocation84 + $0x110] ss:$8 sps:$4 sm:$0xff]  }
0x275c   : > { %14344 = vmatpush1.bf16.msra.mxu1 %v22224_v26 }
0x275d   : > { %14345 = vmatprep.subr.bf16.mxu1 %v22229_v28 }
0x2760   : > { %14346 = vmatpush1.bf16.msra.mxu1 %v22227_v31 }
0x2761   : > { %14347 = vmatprep.subr.bf16.mxu1 %v22232_v27 }
0x2764   : > { %14348 = vmatpush1.bf16.msra.mxu1 %v22230_v50 }
0x2765   : > { %14349 = vmatprep.subr.bf16.mxu1 %v22235_v35 }
0x2768   : > { %14350 = vmatpush1.bf16.msra.mxu1 %v22233_v49 }
0x2769   : > { %14351 = vmatprep.subr.bf16.mxu1 %v22238_v36 }
0x276c   : > { %14352 = vmatpush2.bf16.msra.mxu1 %v22236_v33 }
0x276d   : > { %14353 = vmatprep.subr.bf16.mxu1 %v22241_v37 }
0x2770   : > { %14354 = vmatpush2.bf16.msra.mxu1 %v22239_v38 }
0x2771   : > { %14355 = vmatprep.subr.bf16.mxu1 %v22244_v40  ;;  %v22265_v40 = vld [vmem:[#allocation84 + $0x264] ss:$8 sps:$4 sm:$0xff]  }
0x2774   : > { %14356 = vmatpush2.bf16.msra.mxu1 %v22242_v32 }
0x2775   : > { %14357 = vmatprep.subr.bf16.mxu1 %v22247_v11 }
0x2778   : > { %14358 = vmatpush2.bf16.msra.mxu1 %v22245_v23 }
0x2779   : > { %14359 = vmatprep.subr.bf16.mxu1 %v22250_v54  ;;  %v22275_v54 = vld [vmem:[#allocation84 + $0x240] ss:$8 sps:$4 sm:$0xff]  }
0x277c   : > { %14360 = vmatpush2.bf16.msra.mxu1 %v22248_v45  ;;  %v22281_v45 = vld [vmem:[#allocation84 + $0x230] ss:$8 sps:$4 sm:$0xff]  }
0x277d   : > { %14361 = vmatprep.subr.bf16.mxu1 %v22253_v39  ;;  %v22266_v39 = vld [vmem:[#allocation84 + $0x170] ss:$8 sps:$4 sm:$0xff]  }
0x2780   : > { %14362 = vmatpush2.bf16.msra.mxu1 %v22251_v60  ;;  %v22274_v60 = vld [vmem:[#allocation84 + $0x164] ss:$8 sps:$4 sm:$0xff]  }
0x2781   : > { %14363 = vmatprep.subr.bf16.mxu1 %v22256_v63  ;;  %v22272_v63 = vld [vmem:[#allocation84 + $0x160] ss:$8 sps:$4 sm:$0xff]  }
0x2784   : > { %14364 = vmatpush2.bf16.msra.mxu1 %v22254_v17  ;;  %v22299_v17 = vld [vmem:[#allocation84 + $0x200] ss:$8 sps:$4 sm:$0xff]  }
0x2785   : > { %14365 = vmatprep.subr.bf16.mxu1 %v22259_v6  ;;  %v22284_v6 = vld [vmem:[#allocation84 + $0x140] ss:$8 sps:$4 sm:$0xff]  }
0x2788   : > { %14366 = vmatpush2.bf16.msra.mxu1 %v22257_v5  ;;  %v22313_v5 = vld [vmem:[#allocation84 + $0x2e4] ss:$8 sps:$4 sm:$0xff]  }
0x2789   : > { %14417 = vmatprep.subr.bf16.mxu1 %v22262_v14  ;;  %v22290_v14 = vld [vmem:[#allocation84 + $0x130] ss:$8 sps:$4 sm:$0xff]  }
0x27fb   : > { %v13397_v26 = vpop.f32.mrf.mxu1 }
0x27fc   : > { %v13398_v28 = vadd.f32 %v13397_v26, %v13353_v0  ;;  %v22310_v0 = vld [vmem:[#allocation84 + $0x104] ss:$8 sps:$4 sm:$0xff]   ;;  %v22329_v26 = vld [vmem:[#allocation84 + $0x2b0] ss:$8 sps:$4 sm:$0xff]  }
0x27fd   : > { %v20501_v31 = vpop.f32.mrf.mxu1 }
0x27fe   : > { %v13403_v27 = vsub.f32 0.0, %v13398_v28  ;;  %v22337_v28 = vld [vmem:[#allocation84 + $0x2a4] ss:$8 sps:$4 sm:$0xff]   ;;  %v22308_v31 = vld [vmem:[#allocation84 + $0x100] ss:$8 sps:$4 sm:$0xff]  }
0x27ff   : > { %v13400_v50 = vpop.f32.mrf.mxu1 }
0x2800   : > { %v13404_v35 = vmul.f32 1.442695, %v13403_v27  ;;  %v22316_v27 = vld [vmem:[#allocation84 + $0x1f4] ss:$8 sps:$4 sm:$0xff]   ;;  %v22335_v50 = vld [vmem:[#allocation84 + $0x2a0] ss:$8 sps:$4 sm:$0xff]  }
0x2801   : > { %v20502_v49 = vpop.f32.mrf.mxu1 }
0x2802   : > { %22838 = vpow2.f32 %v13404_v35  ;;  %v22343_v35 = vld [vmem:[#allocation84 + $0x294] ss:$8 sps:$4 sm:$0xff]   ;;  %v22314_v49 = vld [vmem:[#allocation84 + $0x1f0] ss:$8 sps:$4 sm:$0xff]  }
0x2803   : > { %v13594_v36 = vpop.f32.mrf.mxu1 }
0x2804   : > { %v13741_v33 = vpack.c.bf16 %v13594_v36, %v13594_v36  ;;  %v22322_v36 = vld [vmem:[#allocation84 + $0x1e4] ss:$8 sps:$4 sm:$0xff]  }
0x2805   : > { %v13596_v37 = vpop.f32.mrf.mxu1 }
0x2806   : > { %v13742_v38 = vpack.c.bf16 %v13596_v37, %v13596_v37  ;;  %v22349_v37 = vld [vmem:[#allocation84 + $0x284] ss:$8 sps:$4 sm:$0xff]  }
0x2807   : > { %v26617_v43 = vpop.f32.mrf.mxu1 }
0x2808   : > { %14367 = vmatprep.mubr.bf16.mxu1 %v13742_v38  ;;  %v22320_v38 = vld [vmem:[#allocation84 + $0x1e0] ss:$8 sps:$4 sm:$0xff]  }
0x2809   : > { %14368 = vmatmul.mubr.bf16.vlgmr.msra.gmra.mxu1 %v13741_v33  ;;  %v13667_v32 = vpop.f32.mrf.mxu1  ;;  %v22341_v33 = vld [vmem:[#allocation84 + $0x290] ss:$8 sps:$4 sm:$0xff]  }
0x280a   : > { %14418 = vmatpush1.bf16.msra.mxu1 %v22260_v34  ;;  %v13744_v59 = vpack.c.bf16 %v13667_v32, %v13667_v32  ;;  %v22328_v34 = vld [vmem:[#allocation84 + $0x1d4] ss:$8 sps:$4 sm:$0xff]   ;;  %v22326_v32 = vld [vmem:[#allocation84 + $0x1d0] ss:$8 sps:$4 sm:$0xff]  }
0x280b   : > { %14419 = vmatprep.subr.bf16.mxu1 %v22265_v40  ;;  %v26619_v48 = vpop.f32.mrf.mxu1  ;;  %v22347_v40 = vld [vmem:[#allocation84 + $0x280] ss:$8 sps:$4 sm:$0xff]  }
0x280d   : > { %v13738_v11 = vpop.f32.mrf.mxu1 }
0x280e   : > { %14420 = vmatpush1.bf16.msra.mxu1 %v22263_v44  ;;  %v13746_v23 = vpack.c.bf16 %v13738_v11, %v13738_v11  ;;  %v13745_v44 = vpack.c.bf16 %v26619_v48, %v26619_v48  ;;  %v22332_v11 = vld [vmem:[#allocation84 + $0x1c0] ss:$8 sps:$4 sm:$0xff]   ;;  %v22350_v48 = vld [vmem:[#allocation84 + $0x190] ss:$8 sps:$4 sm:$0xff]  }
0x280f   : > { %v22839_v51 = vpop.eup %22838  ;;  %14421 = vmatprep.subr.bf16.mxu1 %v22271_v10  ;;  %v22334_v10 = vld [vmem:[#allocation84 + $0x1c4] ss:$8 sps:$4 sm:$0xff]  }
0x2810   : > { %v13406_v13 = vadd.f32 1.0, %v22839_v51  ;;  %14449 = vmatprep.mubr.bf16.mxu1 %v13746_v23  ;;  %v22338_v23 = vld [vmem:[#allocation84 + $0x1b0] ss:$8 sps:$4 sm:$0xff]   ;;  %v22346_v51 = vld [vmem:[#allocation84 + $0x1a4] ss:$8 sps:$4 sm:$0xff]  }
0x2812   : > { %22840 = vrcp.f32 %v13406_v13  ;;  %14422 = vmatpush1.bf16.msra.mxu1 %v22269_v29  ;;  %v22340_v29 = vld [vmem:[#allocation84 + $0x1b4] ss:$8 sps:$4 sm:$0xff]  }
0x2813   : > { %14423 = vmatprep.subr.bf16.mxu1 %v22277_v52  ;;  %v22344_v52 = vld [vmem:[#allocation84 + $0x1a0] ss:$8 sps:$4 sm:$0xff]   ;;  %v22352_v13 = vld [vmem:[#allocation84 + $0x194] ss:$8 sps:$4 sm:$0xff]  }
0x2816   : > { %14424 = vmatpush1.bf16.msra.mxu1 %v22275_v54  ;;  %v22355_v54 = vld [vmem:[#allocation84 + $0x184] ss:$8 sps:$4 sm:$0xff]  }
0x2817   : > { %14425 = vmatprep.subr.bf16.mxu1 %v22283_v42  ;;  %v22353_v42 = vld [vmem:[#allocation84 + $0x180] ss:$8 sps:$4 sm:$0xff]  }
0x281a   : > { %14426 = vmatpush1.bf16.msra.mxu1 %v22281_v45  ;;  %v13743_v45 = vpack.c.bf16 %v26617_v43, %v26617_v43  ;;  %v22373_v43 = vld [vmem:[#allocation87 + $0x24] ss:$8 sps:$4 sm:$0xff]  }
0x281b   : > { %14427 = vmatprep.subr.bf16.mxu1 %v22289_v56  ;;  %v22356_v56 = vld [vmem:[#allocation87 + $0x70] ss:$8 sps:$4 sm:$0xff]  }
0x281e   : > { %14428 = vmatpush1.bf16.msra.mxu1 %v22287_v57  ;;  %v22358_v57 = vld [vmem:[#allocation87 + $0x74] ss:$8 sps:$4 sm:$0xff]  }
0x281f   : > { %v22841_v47 = vpop.eup %22840  ;;  %14429 = vmatprep.subr.bf16.mxu1 %v22295_v58  ;;  %v22361_v58 = vld [vmem:[#allocation87 + $0x64] ss:$8 sps:$4 sm:$0xff]  }
0x2820   : > { %13506 = vmatmul.mubr.f32.vlgmr.msra.gmra.mxu0 %v22841_v47  ;;  %v22365_v47 = vld [vmem:[#allocation87 + $0x40] ss:$8 sps:$4 sm:$0xff]  }
0x2821   : > { %14377 = vmatpush1.bf16.msra.mxu0 %v22266_v39  ;;  %14408 = vmatprep.mubr.bf16.mxu0 %v13744_v59  ;;  %v22359_v39 = vld [vmem:[#allocation87 + $0x60] ss:$8 sps:$4 sm:$0xff]   ;;  %v22364_v59 = vld [vmem:[#allocation87 + $0x54] ss:$8 sps:$4 sm:$0xff]  }
0x2822   : > { %14378 = vmatprep.subr.bf16.mxu0 %v22274_v60  ;;  %14430 = vmatpush1.bf16.msra.mxu1 %v22293_v61  ;;  %v22362_v60 = vld [vmem:[#allocation87 + $0x50] ss:$8 sps:$4 sm:$0xff]   ;;  %v22367_v61 = vld [vmem:[#allocation87 + $0x44] ss:$8 sps:$4 sm:$0xff]  }
0x2823   : > { %14431 = vmatprep.subr.bf16.mxu1 %v22301_v62  ;;  %v22370_v62 = vld [vmem:[#allocation87 + $0x34] ss:$8 sps:$4 sm:$0xff]  }
0x2825   : > { %14379 = vmatpush1.bf16.msra.mxu0 %v22272_v63  ;;  %v22368_v63 = vld [vmem:[#allocation87 + $0x30] ss:$8 sps:$4 sm:$0xff]  }
0x2826   : > { %14380 = vmatprep.subr.bf16.mxu0 %v22280_v16  ;;  %14432 = vmatpush1.bf16.msra.mxu1 %v22299_v17  ;;  %v22371_v16 = vld [vmem:[#allocation87 + $0x20] ss:$8 sps:$4 sm:$0xff]   ;;  %v22376_v17 = vld [vmem:[#allocation87 + $0x14] ss:$8 sps:$4 sm:$0xff]  }
0x2827   : > { %14433 = vmatprep.subr.bf16.mxu1 %v22307_v55  ;;  %v22374_v55 = vld [vmem:[#allocation87 + $0x10] ss:$8 sps:$4 sm:$0xff]  }
0x2829   : > { %14381 = vmatpush1.bf16.msra.mxu0 %v22278_v53  ;;  %v22379_v53 = vld [vmem:[#allocation87 + $0x4] ss:$8 sps:$4 sm:$0xff]  }
0x282a   : > { %14382 = vmatprep.subr.bf16.mxu0 %v22286_v3  ;;  %14434 = vmatpush2.bf16.msra.mxu1 %v22305_v4  ;;  %v22377_v3 = vld [vmem:[#allocation87] ss:$8 sps:$4 sm:$0xff]   ;;  %v22382_v4 = vld [vmem:[#allocation87 + $0xf4] ss:$8 sps:$4 sm:$0xff]  }
0x282b   : > { %14435 = vmatprep.subr.bf16.mxu1 %v22313_v5  ;;  %v22380_v5 = vld [vmem:[#allocation87 + $0xf0] ss:$8 sps:$4 sm:$0xff]  }
0x282d   : > { %14383 = vmatpush1.bf16.msra.mxu0 %v22284_v6  ;;  %v22385_v6 = vld [vmem:[#allocation87 + $0xe4] ss:$8 sps:$4 sm:$0xff]  }
0x282e   : > { %14384 = vmatprep.subr.bf16.mxu0 %v22292_v1  ;;  %14436 = vmatpush2.bf16.msra.mxu1 %v22311_v9  ;;  %v22383_v1 = vld [vmem:[#allocation87 + $0xe0] ss:$8 sps:$4 sm:$0xff]   ;;  %v22388_v9 = vld [vmem:[#allocation87 + $0xd4] ss:$8 sps:$4 sm:$0xff]  }
0x282f   : > { %14437 = vmatprep.subr.bf16.mxu1 %v22319_v12  ;;  %v22386_v12 = vld [vmem:[#allocation87 + $0xd0] ss:$8 sps:$4 sm:$0xff]  }
0x2831   : > { %14385 = vmatpush1.bf16.msra.mxu0 %v22290_v14  ;;  %v22391_v14 = vld [vmem:[#allocation87 + $0xc4] ss:$8 sps:$4 sm:$0xff]  }
0x2832   : > { %14386 = vmatprep.subr.bf16.mxu0 %v22298_v15  ;;  %14438 = vmatpush2.bf16.msra.mxu1 %v22317_v19  ;;  %v22389_v15 = vld [vmem:[#allocation87 + $0xc0] ss:$8 sps:$4 sm:$0xff]   ;;  %v22394_v19 = vld [vmem:[#allocation87 + $0xb4] ss:$8 sps:$4 sm:$0xff]  }
0x2833   : > { %14439 = vmatprep.subr.bf16.mxu1 %v22325_v20  ;;  %v22392_v20 = vld [vmem:[#allocation87 + $0xb0] ss:$8 sps:$4 sm:$0xff]  }
0x2835   : > { %14387 = vmatpush1.bf16.msra.mxu0 %v22296_v22  ;;  %v22397_v22 = vld [vmem:[#allocation87 + $0xa4] ss:$8 sps:$4 sm:$0xff]  }
0x2836   : > { %14388 = vmatprep.subr.bf16.mxu0 %v22304_v24  ;;  %14440 = vmatpush2.bf16.msra.mxu1 %v22323_v2  ;;  %v22395_v24 = vld [vmem:[#allocation87 + $0xa0] ss:$8 sps:$4 sm:$0xff]   ;;  %v22400_v2 = vld [vmem:[#allocation87 + $0x94] ss:$8 sps:$4 sm:$0xff]  }
0x2837   : > { %14441 = vmatprep.subr.bf16.mxu1 %v22331_v25  ;;  %v22398_v25 = vld [vmem:[#allocation87 + $0x90] ss:$8 sps:$4 sm:$0xff]  }
0x2839   : > { %14389 = vmatpush1.bf16.msra.mxu0 %v22302_v21  ;;  %v22403_v21 = vld [vmem:[#allocation87 + $0x84] ss:$8 sps:$4 sm:$0xff]  }
0x283a   : > { %14390 = vmatprep.subr.bf16.mxu0 %v22310_v0  ;;  %14442 = vmatpush2.bf16.msra.mxu1 %v22329_v26  ;;  %v22401_v0 = vld [vmem:[#allocation87 + $0x80] ss:$8 sps:$4 sm:$0xff]  }
0x283b   : > { %14443 = vmatprep.subr.bf16.mxu1 %v22337_v28 }
0x283d   : > { %14391 = vmatpush1.bf16.msra.mxu0 %v22308_v31 }
0x283e   : > { %14392 = vmatprep.subr.bf16.mxu0 %v22316_v27  ;;  %14444 = vmatpush2.bf16.msra.mxu1 %v22335_v50 }
0x283f   : > { %14445 = vmatprep.subr.bf16.mxu1 %v22343_v35 }
0x2841   : > { %14393 = vmatpush2.bf16.msra.mxu0 %v22314_v49 }
0x2842   : > { %14394 = vmatprep.subr.bf16.mxu0 %v22322_v36  ;;  %14446 = vmatpush2.bf16.msra.mxu1 %v22341_v33  ;;  %v13843_v33 = vld [vmem:[#allocation85] sm:$0x3] }
0x2843   : > { %14447 = vmatprep.subr.bf16.mxu1 %v22349_v37 }
0x2845   : > { %14395 = vmatpush2.bf16.msra.mxu0 %v22320_v38  ;;  %v13848_v38 = vrot.slane %v13843_v33, %v26021_v8 }
0x2846   : > { %14396 = vmatprep.subr.bf16.mxu0 %v22328_v34  ;;  %14448 = vmatpush2.bf16.msra.mxu1 %v22347_v40  ;;  %v13852_v34 = vrot.slane %v13843_v33, %v26019_v7 }
0x2849   : > { %14397 = vmatpush2.bf16.msra.mxu0 %v22326_v32  ;;  %14450 = vmatmul.mubr.bf16.vlgmr.msra.gmra.mxu1 %v13745_v44 }
0x284a   : > { %14398 = vmatprep.subr.bf16.mxu0 %v22334_v10  ;;  %14785 = vmatprep.mubr.f32.mxu1 %v24846_v18 }
0x284d   : > { %14399 = vmatpush2.bf16.msra.mxu0 %v22332_v11 }
0x284e   : > { %14400 = vmatprep.subr.bf16.mxu0 %v22340_v29 }
0x2851   : > { %14401 = vmatpush2.bf16.msra.mxu0 %v22338_v23 }
0x2852   : > { %14402 = vmatprep.subr.bf16.mxu0 %v22346_v51 }
0x2855   : > { %14403 = vmatpush2.bf16.msra.mxu0 %v22344_v52 }
0x2856   : > { %14404 = vmatprep.subr.bf16.mxu0 %v22352_v13 }
0x2859   : > { %14405 = vmatpush2.bf16.msra.mxu0 %v22350_v48 }
0x285a   : > { %14406 = vmatprep.subr.bf16.mxu0 %v22355_v54 }
0x285d   : > { %14407 = vmatpush2.bf16.msra.mxu0 %v22353_v42 }
0x285e   : > { %14668 = vmatprep.subr.bf16.mxu0 %v22358_v57 }
0x2860   : > { %14409 = vmatmul.mubr.bf16.vlgmr.msra.gmra.mxu0 %v13743_v45 }
0x2861   : > { %14669 = vmatpush1.bf16.msra.mxu0 %v22356_v56 }
0x2862   : > { %14670 = vmatprep.subr.bf16.mxu0 %v22361_v58 }
0x2865   : > { %14671 = vmatpush1.bf16.msra.mxu0 %v22359_v39 }
0x2866   : > { %14672 = vmatprep.subr.bf16.mxu0 %v22364_v59 }
0x2869   : > { %14673 = vmatpush1.bf16.msra.mxu0 %v22362_v60 }
0x286a   : > { %14674 = vmatprep.subr.bf16.mxu0 %v22367_v61 }
0x286d   : > { %14675 = vmatpush1.bf16.msra.mxu0 %v22365_v47  ;;  %v22406_v47 = vld [vmem:[#allocation90 + $0x74] ss:$8 sps:$4 sm:$0xff]  }
0x286e   : > { %14676 = vmatprep.subr.bf16.mxu0 %v22370_v62  ;;  %v22409_v62 = vld [vmem:[#allocation90 + $0x64] ss:$8 sps:$4 sm:$0xff]  }
0x2871   : > { %14677 = vmatpush1.bf16.msra.mxu0 %v22368_v63  ;;  %v22415_v63 = vld [vmem:[#allocation90 + $0x54] ss:$8 sps:$4 sm:$0xff]  }
0x2872   : > { %14678 = vmatprep.subr.bf16.mxu0 %v22373_v43  ;;  %v22413_v43 = vld [vmem:[#allocation90 + $0x50] ss:$8 sps:$4 sm:$0xff]  }
0x2875   : > { %14679 = vmatpush1.bf16.msra.mxu0 %v22371_v16  ;;  %v22421_v16 = vld [vmem:[#allocation90 + $0x44] ss:$8 sps:$4 sm:$0xff]  }
0x2876   : > { %14680 = vmatprep.subr.bf16.mxu0 %v22376_v17  ;;  %v22419_v17 = vld [vmem:[#allocation90 + $0x40] ss:$8 sps:$4 sm:$0xff]  }
0x2879   : > { %14681 = vmatpush1.bf16.msra.mxu0 %v22374_v55  ;;  %v22427_v55 = vld [vmem:[#allocation90 + $0x34] ss:$8 sps:$4 sm:$0xff]  }
0x287a   : > { %14682 = vmatprep.subr.bf16.mxu0 %v22379_v53  ;;  %v22425_v53 = vld [vmem:[#allocation90 + $0x30] ss:$8 sps:$4 sm:$0xff]  }
0x287d   : > { %14683 = vmatpush1.bf16.msra.mxu0 %v22377_v3  ;;  %v22433_v3 = vld [vmem:[#allocation90 + $0x24] ss:$8 sps:$4 sm:$0xff]  }
0x287e   : > { %14684 = vmatprep.subr.bf16.mxu0 %v22382_v4  ;;  %v22431_v4 = vld [vmem:[#allocation90 + $0x20] ss:$8 sps:$4 sm:$0xff]  }
0x2881   : > { %14685 = vmatpush2.bf16.msra.mxu0 %v22380_v5  ;;  %v22439_v5 = vld [vmem:[#allocation90 + $0x14] ss:$8 sps:$4 sm:$0xff]  }
0x2882   : > { %14686 = vmatprep.subr.bf16.mxu0 %v22385_v6  ;;  %v22437_v6 = vld [vmem:[#allocation90 + $0x10] ss:$8 sps:$4 sm:$0xff]  }
0x2885   : > { %14687 = vmatpush2.bf16.msra.mxu0 %v22383_v1  ;;  %v22445_v1 = vld [vmem:[#allocation90 + $0x4] ss:$8 sps:$4 sm:$0xff]  }
0x2886   : > { %14688 = vmatprep.subr.bf16.mxu0 %v22388_v9  ;;  %v22443_v9 = vld [vmem:[#allocation90] ss:$8 sps:$4 sm:$0xff]  }
0x2889   : > { %14689 = vmatpush2.bf16.msra.mxu0 %v22386_v12  ;;  %v22451_v12 = vld [vmem:[#allocation90 + $0xf4] ss:$8 sps:$4 sm:$0xff]  }
0x288a   : > { %14690 = vmatprep.subr.bf16.mxu0 %v22391_v14  ;;  %v22449_v14 = vld [vmem:[#allocation90 + $0xf0] ss:$8 sps:$4 sm:$0xff]  }
0x288d   : > { %14691 = vmatpush2.bf16.msra.mxu0 %v22389_v15  ;;  %v22457_v15 = vld [vmem:[#allocation90 + $0xe4] ss:$8 sps:$4 sm:$0xff]  }
0x288e   : > { %14692 = vmatprep.subr.bf16.mxu0 %v22394_v19  ;;  %v22455_v19 = vld [vmem:[#allocation90 + $0xe0] ss:$8 sps:$4 sm:$0xff]  }
0x2891   : > { %14693 = vmatpush2.bf16.msra.mxu0 %v22392_v20  ;;  %v22463_v20 = vld [vmem:[#allocation90 + $0xd4] ss:$8 sps:$4 sm:$0xff]  }
0x2892   : > { %14694 = vmatprep.subr.bf16.mxu0 %v22397_v22  ;;  %v22461_v22 = vld [vmem:[#allocation90 + $0xd0] ss:$8 sps:$4 sm:$0xff]  }
0x2895   : > { %14695 = vmatpush2.bf16.msra.mxu0 %v22395_v24  ;;  %v22469_v24 = vld [vmem:[#allocation90 + $0xc4] ss:$8 sps:$4 sm:$0xff]  }
0x2896   : > { %14696 = vmatprep.subr.bf16.mxu0 %v22400_v2  ;;  %v22467_v2 = vld [vmem:[#allocation90 + $0xc0] ss:$8 sps:$4 sm:$0xff]  }
0x2899   : > { %14697 = vmatpush2.bf16.msra.mxu0 %v22398_v25  ;;  %v22475_v25 = vld [vmem:[#allocation90 + $0xb4] ss:$8 sps:$4 sm:$0xff]  }
0x289a   : > { %14698 = vmatprep.subr.bf16.mxu0 %v22403_v21  ;;  %v22473_v21 = vld [vmem:[#allocation90 + $0xb0] ss:$8 sps:$4 sm:$0xff]  }
0x289d   : > { %14699 = vmatpush2.bf16.msra.mxu0 %v22401_v0  ;;  %v22481_v0 = vld [vmem:[#allocation90 + $0xa4] ss:$8 sps:$4 sm:$0xff]  }
0x289e   : > { %15538 = vmatprep.subr.bf16.mxu0 %v22406_v47  ;;  %v22452_v47 = vld [vmem:[#allocation90 + $0x100] ss:$8 sps:$4 sm:$0xff]  }
0x28c9   : > { %v14369_v26 = vpop.f32.mrf.mxu1 }
0x28ca   : > { %v14370_v32 = vadd.f32 %v14369_v26, %v13848_v38  ;;  %v22479_v26 = vld [vmem:[#allocation90 + $0xa0] ss:$8 sps:$4 sm:$0xff]  }
0x28cb   : > { %v14371_v28 = vpop.f32.mrf.mxu1 }
0x28cc   : > { %v14372_v11 = vadd.f32 %v14371_v28, %v13852_v34  ;;  %v22487_v28 = vld [vmem:[#allocation90 + $0x94] ss:$8 sps:$4 sm:$0xff]  }
0x28cd   : > { %v14373_v31 = vpop.f32.mrf.mxu1 }
0x28ce   : > { %v22485_v31 = vld [vmem:[#allocation90 + $0x90] ss:$8 sps:$4 sm:$0xff]  }
0x28cf   : > { %v14374_v27 = vpop.f32.mrf.mxu1 }
0x28d0   : > { %v14496_v27 = vld [vmem:[#allocation88] sm:$0x3] }
0x28e0   : > { %v13507_v37 = vpop.f32.mrf.mxu0 }
0x28e1   : > { %v13515_v44 = vrot.slane %v13507_v37, %v26021_v8 }
0x28e2   : > { %v13509_v40 = vpop.f32.mrf.mxu0 }
0x28e3   : > { %v13519_v29 = vrot.slane %v13509_v40, %v26021_v8  ;;  %v13520_v52 = vmul.f32 %v13515_v44, %v26566_v30  ;;  %v22404_v30 = vld [vmem:[#allocation90 + $0x70] ss:$8 sps:$4 sm:$0xff]  }
0x28e4   : > { %v26643_v44 = vld [vmem:[%s26920_s18] sm:$0x1] }
0x28e5   : > { %v13521_v42 = vmul.f32 %v13519_v29, %v26564_v46  ;;  %v22407_v46 = vld [vmem:[#allocation90 + $0x60] ss:$8 sps:$4 sm:$0xff]   ;;  %v26661_v29 = vld [vmem:[%s26920_s18 + $0x2] sm:$0x1] }
0x2909   : > { %v14451_v50 = vpop.f32.mrf.mxu1 }
0x290b   : > { %v14453_v35 = vpop.f32.mrf.mxu1 }
0x290d   : > { %v14455_v49 = vpop.f32.mrf.mxu1 }
0x290f   : > { %v14456_v36 = vpop.f32.mrf.mxu1 }
0x2920   : > { %v14410_v10 = vpop.f32.mrf.mxu0 }
0x2921   : > { %v14411_v23 = vadd.f32 %v14410_v10, %v14370_v32  ;;  %v26653_v10 = vld [vmem:[%s26920_s18 + $0x1] sm:$0x1] }
0x2922   : > { %v14412_v51 = vpop.f32.mrf.mxu0 }
0x2923   : > { %v14452_v13 = vadd.f32 %v14451_v50, %v14411_v23  ;;  %v14413_v48 = vadd.f32 %v14412_v51, %v14372_v11  ;;  %v14501_v50 = vrot.slane %v14496_v27, %v26021_v8  ;;  %v22412_v11 = vld [vmem:[#allocation90 + $0x174] ss:$8 sps:$4 sm:$0xff]   ;;  %v22410_v23 = vld [vmem:[#allocation90 + $0x170] ss:$8 sps:$4 sm:$0xff]   ;;  %v22418_v51 = vld [vmem:[#allocation90 + $0x164] ss:$8 sps:$4 sm:$0xff]  }
0x2924   : > { %v14414_v54 = vpop.f32.mrf.mxu0 }
0x2925   : > { %v14458_v45 = vadd.f32 %v14452_v13, %v13520_v52  ;;  %v14454_v56 = vadd.f32 %v14453_v35, %v14413_v48  ;;  %v14505_v35 = vrot.slane %v14496_v27, %v26019_v7  ;;  %v22416_v52 = vld [vmem:[#allocation90 + $0x160] ss:$8 sps:$4 sm:$0xff]   ;;  %v22424_v13 = vld [vmem:[#allocation90 + $0x154] ss:$8 sps:$4 sm:$0xff]   ;;  %v22422_v48 = vld [vmem:[#allocation90 + $0x150] ss:$8 sps:$4 sm:$0xff]  }
0x2926   : > { %v14415_v57 = vpop.f32.mrf.mxu0  ;;  %v22430_v54 = vld [vmem:[#allocation90 + $0x144] ss:$8 sps:$4 sm:$0xff]  }
0x2927   : > { %v14459_v58 = vadd.f32 %v14454_v56, %v13521_v42  ;;  %v26632_v39 = vmax.f32 %v14458_v45, 0.0  ;;  %v22428_v42 = vld [vmem:[#allocation90 + $0x140] ss:$8 sps:$4 sm:$0xff]   ;;  %v22436_v45 = vld [vmem:[#allocation90 + $0x134] ss:$8 sps:$4 sm:$0xff]  }
0x2928   : > { %v22434_v56 = vld [vmem:[#allocation90 + $0x130] ss:$8 sps:$4 sm:$0xff]   ;;  %v22442_v57 = vld [vmem:[#allocation90 + $0x124] ss:$8 sps:$4 sm:$0xff]  }
0x2929   : > { %v26634_v59 = vmax.f32 %v14459_v58, 0.0  ;;  %v14462_v61 = vpack.c.bf16 %v26632_v39, %v26632_v39  ;;  %v22440_v58 = vld [vmem:[#allocation90 + $0x120] ss:$8 sps:$4 sm:$0xff]  }
0x292b   : > { %v14463_v60 = vpack.c.bf16 %v26634_v59, %v26634_v59 }
0x292d   : > { %14700 = vmatprep.mubr.bf16.mxu0 %v14463_v60  ;;  %v22448_v60 = vld [vmem:[#allocation90 + $0x114] ss:$8 sps:$4 sm:$0xff]  }
0x292e   : > { %14701 = vmatmul.mubr.bf16.vlgmr.msra.gmra.mxu0 %v14462_v61  ;;  %v22446_v61 = vld [vmem:[#allocation90 + $0x110] ss:$8 sps:$4 sm:$0xff]  }
0x292f   : > { %15539 = vmatpush1.bf16.msra.mxu0 %v22404_v30  ;;  %v22454_v30 = vld [vmem:[#allocation90 + $0x104] ss:$8 sps:$4 sm:$0xff]  }
0x2930   : > { %15540 = vmatprep.subr.bf16.mxu0 %v22409_v62  ;;  %v22460_v62 = vld [vmem:[#allocation90 + $0x1f4] ss:$8 sps:$4 sm:$0xff]  }
0x2933   : > { %15541 = vmatpush1.bf16.msra.mxu0 %v22407_v46  ;;  %v22458_v46 = vld [vmem:[#allocation90 + $0x1f0] ss:$8 sps:$4 sm:$0xff]  }
0x2934   : > { %15542 = vmatprep.subr.bf16.mxu0 %v22415_v63  ;;  %v22466_v63 = vld [vmem:[#allocation90 + $0x1e4] ss:$8 sps:$4 sm:$0xff]  }
0x2937   : > { %15543 = vmatpush1.bf16.msra.mxu0 %v22413_v43  ;;  %v22464_v43 = vld [vmem:[#allocation90 + $0x1e0] ss:$8 sps:$4 sm:$0xff]  }
0x2938   : > { %15544 = vmatprep.subr.bf16.mxu0 %v22421_v16  ;;  %v22472_v16 = vld [vmem:[#allocation90 + $0x1d4] ss:$8 sps:$4 sm:$0xff]  }
0x293b   : > { %15545 = vmatpush1.bf16.msra.mxu0 %v22419_v17  ;;  %v22470_v17 = vld [vmem:[#allocation90 + $0x1d0] ss:$8 sps:$4 sm:$0xff]  }
0x293c   : > { %15546 = vmatprep.subr.bf16.mxu0 %v22427_v55  ;;  %v22478_v55 = vld [vmem:[#allocation90 + $0x1c4] ss:$8 sps:$4 sm:$0xff]  }
0x293f   : > { %15547 = vmatpush1.bf16.msra.mxu0 %v22425_v53  ;;  %v22476_v53 = vld [vmem:[#allocation90 + $0x1c0] ss:$8 sps:$4 sm:$0xff]  }
0x2940   : > { %15548 = vmatprep.subr.bf16.mxu0 %v22433_v3  ;;  %v22484_v3 = vld [vmem:[#allocation90 + $0x1b4] ss:$8 sps:$4 sm:$0xff]  }
0x2943   : > { %15549 = vmatpush1.bf16.msra.mxu0 %v22431_v4  ;;  %v22482_v4 = vld [vmem:[#allocation90 + $0x1b0] ss:$8 sps:$4 sm:$0xff]  }
0x2944   : > { %15550 = vmatprep.subr.bf16.mxu0 %v22439_v5  ;;  %v22490_v5 = vld [vmem:[#allocation90 + $0x1a4] ss:$8 sps:$4 sm:$0xff]  }
0x2947   : > { %15551 = vmatpush1.bf16.msra.mxu0 %v22437_v6  ;;  %v22488_v6 = vld [vmem:[#allocation90 + $0x1a0] ss:$8 sps:$4 sm:$0xff]  }
0x2948   : > { %15552 = vmatprep.subr.bf16.mxu0 %v22445_v1  ;;  %v22493_v1 = vld [vmem:[#allocation90 + $0x84] ss:$8 sps:$4 sm:$0xff]  }
0x294b   : > { %15553 = vmatpush1.bf16.msra.mxu0 %v22443_v9  ;;  %v22491_v9 = vld [vmem:[#allocation90 + $0x80] ss:$8 sps:$4 sm:$0xff]  }
0x294c   : > { %15554 = vmatprep.subr.bf16.mxu0 %v22451_v12  ;;  %v22496_v12 = vld [vmem:[#allocation90 + $0x194] ss:$8 sps:$4 sm:$0xff]  }
0x294f   : > { %15555 = vmatpush2.bf16.msra.mxu0 %v22449_v14  ;;  %v22494_v14 = vld [vmem:[#allocation90 + $0x190] ss:$8 sps:$4 sm:$0xff]  }
0x2950   : > { %15556 = vmatprep.subr.bf16.mxu0 %v22457_v15  ;;  %v22499_v15 = vld [vmem:[#allocation90 + $0x274] ss:$8 sps:$4 sm:$0xff]  }
0x2953   : > { %15557 = vmatpush2.bf16.msra.mxu0 %v22455_v19  ;;  %v22502_v19 = vld [vmem:[#allocation90 + $0x184] ss:$8 sps:$4 sm:$0xff]  }
0x2954   : > { %15558 = vmatprep.subr.bf16.mxu0 %v22463_v20  ;;  %v22500_v20 = vld [vmem:[#allocation90 + $0x180] ss:$8 sps:$4 sm:$0xff]  }
0x2957   : > { %15559 = vmatpush2.bf16.msra.mxu0 %v22461_v22 }
0x2958   : > { %15560 = vmatprep.subr.bf16.mxu0 %v22469_v24 }
0x295b   : > { %15561 = vmatpush2.bf16.msra.mxu0 %v22467_v2 }
0x295c   : > { %15562 = vmatprep.subr.bf16.mxu0 %v22475_v25  ;;  %v22497_v25 = vld [vmem:[#allocation90 + $0x270] ss:$8 sps:$4 sm:$0xff]  }
0x295f   : > { %15563 = vmatpush2.bf16.msra.mxu0 %v22473_v21 }
0x2960   : > { %15564 = vmatprep.subr.bf16.mxu0 %v22481_v0 }
0x2963   : > { %15565 = vmatpush2.bf16.msra.mxu0 %v22479_v26  ;;  %v22505_v26 = vld [vmem:[#allocation90 + $0x264] ss:$8 sps:$4 sm:$0xff]  }
0x2964   : > { %15566 = vmatprep.subr.bf16.mxu0 %v22487_v28 }
0x2967   : > { %15567 = vmatpush2.bf16.msra.mxu0 %v22485_v31 }
0x2968   : > { %15568 = vmatprep.subr.bf16.mxu0 %v22493_v1  ;;  %v22554_v1 = vld [vmem:[#allocation93 + $0x50] ss:$8 sps:$4 sm:$0xff]  }
0x296b   : > { %15569 = vmatpush2.bf16.msra.mxu0 %v22491_v9  ;;  %v22559_v9 = vld [vmem:[#allocation93 + $0x44] ss:$8 sps:$4 sm:$0xff]  }
0x296c   : > { %15620 = vmatprep.subr.bf16.mxu0 %v22499_v15  ;;  %v22560_v15 = vld [vmem:[#allocation93 + $0x30] ss:$8 sps:$4 sm:$0xff]  }
0x29ee   : > { %v14702_v49 = vpop.f32.mrf.mxu0 }
0x29ef   : > { %v14703_v36 = vadd.f32 %v14702_v49, %v14501_v50  ;;  %v22503_v50 = vld [vmem:[#allocation90 + $0x260] ss:$8 sps:$4 sm:$0xff]  }
0x29f0   : > { %v14704_v33 = vpop.f32.mrf.mxu0 }
0x29f1   : > { %v14705_v37 = vadd.f32 %v14704_v33, %v14505_v35  ;;  %v14709_v40 = vmax.f32 %v14703_v36, 0.0  ;;  %v22508_v35 = vld [vmem:[#allocation90 + $0x254] ss:$8 sps:$4 sm:$0xff]   ;;  %v22506_v33 = vld [vmem:[#allocation90 + $0x250] ss:$8 sps:$4 sm:$0xff]  }
0x29f2   : > { %v14706_v38 = vpop.f32.mrf.mxu0 }
0x29f3   : > { %v14710_v34 = vmax.f32 %v14705_v37, 0.0  ;;  %v22511_v38 = vld [vmem:[#allocation90 + $0x244] ss:$8 sps:$4 sm:$0xff]  }
0x29f4   : > { %v14707_v32 = vpop.f32.mrf.mxu0 }
0x29f5   : > { %19539 = vmatprep.subr.msk.mxu1 %vm6912_vm4, %v14710_v34  ;;  %v22512_v32 = vld [vmem:[#allocation90 + $0x230] ss:$8 sps:$4 sm:$0xff]  }
0x29f6   : > { %19540 = vmatpush1.msk.msra.mxu1 %vm6912_vm4, %v14709_v40 }
0x29f7   : > { %19541 = vmatmul.mubr.msk.f32.vlgmr.msra.gmra.mxu1 %vm12992_vm8, %v26643_v44  ;;  %19543 = vmatprep.subr.msk.mxu1 %vm6912_vm4, %v14710_v34 }
0x29f8   : > { %19544 = vmatpush1.msk.msra.mxu1 %vm6912_vm4, %v14709_v40  ;;  %14861 = vmatprep.mubr.f32.mxu1 %v24846_v18 }
0x29f9   : > { %19547 = vmatprep.subr.msk.mxu1 %vm6912_vm4, %v14710_v34  ;;  %v22509_v34 = vld [vmem:[#allocation90 + $0x240] ss:$8 sps:$4 sm:$0xff]  }
0x29fb   : > { %19545 = vmatmul.mubr.msk.f32.vlgmr.msra.gmra.mxu1 %vm12992_vm8, %v26653_v10 }
0x29fc   : > { %19548 = vmatpush1.msk.msra.mxu1 %vm6912_vm4, %v14709_v40  ;;  %14937 = vmatprep.mubr.f32.mxu1 %v24846_v18  ;;  %v22514_v40 = vld [vmem:[#allocation90 + $0x234] ss:$8 sps:$4 sm:$0xff]  }
0x29fd   : > { %15579 = vmatprep.subr.bf16.mxu1 %v22412_v11  ;;  %v22517_v11 = vld [vmem:[#allocation90 + $0x224] ss:$8 sps:$4 sm:$0xff]  }
0x29ff   : > { %19549 = vmatmul.mubr.msk.f32.vlgmr.msra.gmra.mxu1 %vm12992_vm8, %v26661_v29 }
0x2a00   : > { %15580 = vmatpush1.bf16.msra.mxu1 %v22410_v23  ;;  %v22515_v23 = vld [vmem:[#allocation90 + $0x220] ss:$8 sps:$4 sm:$0xff]  }
0x2a01   : > { %15581 = vmatprep.subr.bf16.mxu1 %v22418_v51  ;;  %v22520_v51 = vld [vmem:[#allocation90 + $0x214] ss:$8 sps:$4 sm:$0xff]  }
0x2a04   : > { %15582 = vmatpush1.bf16.msra.mxu1 %v22416_v52  ;;  %v22518_v52 = vld [vmem:[#allocation90 + $0x210] ss:$8 sps:$4 sm:$0xff]  }
0x2a05   : > { %15583 = vmatprep.subr.bf16.mxu1 %v22424_v13  ;;  %v22523_v13 = vld [vmem:[#allocation90 + $0x204] ss:$8 sps:$4 sm:$0xff]  }
0x2a08   : > { %15584 = vmatpush1.bf16.msra.mxu1 %v22422_v48  ;;  %v22521_v48 = vld [vmem:[#allocation90 + $0x200] ss:$8 sps:$4 sm:$0xff]  }
0x2a09   : > { %15585 = vmatprep.subr.bf16.mxu1 %v22430_v54  ;;  %v22526_v54 = vld [vmem:[#allocation90 + $0x2f4] ss:$8 sps:$4 sm:$0xff]  }
0x2a0c   : > { %15586 = vmatpush1.bf16.msra.mxu1 %v22428_v42  ;;  %v22524_v42 = vld [vmem:[#allocation90 + $0x2f0] ss:$8 sps:$4 sm:$0xff]  }
0x2a0d   : > { %15587 = vmatprep.subr.bf16.mxu1 %v22436_v45  ;;  %v22529_v45 = vld [vmem:[#allocation90 + $0x2e4] ss:$8 sps:$4 sm:$0xff]  }
0x2a10   : > { %15588 = vmatpush1.bf16.msra.mxu1 %v22434_v56  ;;  %v22527_v56 = vld [vmem:[#allocation90 + $0x2e0] ss:$8 sps:$4 sm:$0xff]  }
0x2a11   : > { %15589 = vmatprep.subr.bf16.mxu1 %v22442_v57  ;;  %v22532_v57 = vld [vmem:[#allocation90 + $0x2d4] ss:$8 sps:$4 sm:$0xff]  }
0x2a14   : > { %15590 = vmatpush1.bf16.msra.mxu1 %v22440_v58  ;;  %v22530_v58 = vld [vmem:[#allocation90 + $0x2d0] ss:$8 sps:$4 sm:$0xff]  }
0x2a15   : > { %15591 = vmatprep.subr.bf16.mxu1 %v22448_v60  ;;  %v22535_v60 = vld [vmem:[#allocation90 + $0x2c4] ss:$8 sps:$4 sm:$0xff]  }
0x2a18   : > { %15592 = vmatpush1.bf16.msra.mxu1 %v22446_v61  ;;  %v22533_v61 = vld [vmem:[#allocation90 + $0x2c0] ss:$8 sps:$4 sm:$0xff]  }
0x2a19   : > { %15593 = vmatprep.subr.bf16.mxu1 %v22454_v30  ;;  %v22538_v30 = vld [vmem:[#allocation90 + $0x2b4] ss:$8 sps:$4 sm:$0xff]  }
0x2a1c   : > { %15594 = vmatpush1.bf16.msra.mxu1 %v22452_v47  ;;  %v22536_v47 = vld [vmem:[#allocation90 + $0x2b0] ss:$8 sps:$4 sm:$0xff]  }
0x2a1d   : > { %15595 = vmatprep.subr.bf16.mxu1 %v22460_v62  ;;  %v22541_v62 = vld [vmem:[#allocation90 + $0x2a4] ss:$8 sps:$4 sm:$0xff]  }
0x2a20   : > { %15596 = vmatpush2.bf16.msra.mxu1 %v22458_v46  ;;  %v22539_v46 = vld [vmem:[#allocation90 + $0x2a0] ss:$8 sps:$4 sm:$0xff]  }
0x2a21   : > { %15597 = vmatprep.subr.bf16.mxu1 %v22466_v63  ;;  %v22544_v63 = vld [vmem:[#allocation90 + $0x294] ss:$8 sps:$4 sm:$0xff]  }
0x2a24   : > { %15598 = vmatpush2.bf16.msra.mxu1 %v22464_v43  ;;  %v22542_v43 = vld [vmem:[#allocation90 + $0x290] ss:$8 sps:$4 sm:$0xff]  }
0x2a25   : > { %15599 = vmatprep.subr.bf16.mxu1 %v22472_v16  ;;  %v22547_v16 = vld [vmem:[#allocation90 + $0x284] ss:$8 sps:$4 sm:$0xff]  }
0x2a28   : > { %15600 = vmatpush2.bf16.msra.mxu1 %v22470_v17  ;;  %v22545_v17 = vld [vmem:[#allocation90 + $0x280] ss:$8 sps:$4 sm:$0xff]  }
0x2a29   : > { %15601 = vmatprep.subr.bf16.mxu1 %v22478_v55 }
0x2a2c   : > { %15602 = vmatpush2.bf16.msra.mxu1 %v22476_v53  ;;  %v22548_v53 = vld [vmem:[#allocation93 + $0x70] ss:$8 sps:$4 sm:$0xff]  }
0x2a2d   : > { %15603 = vmatprep.subr.bf16.mxu1 %v22484_v3  ;;  %v22550_v3 = vld [vmem:[#allocation93 + $0x74] ss:$8 sps:$4 sm:$0xff]  }
0x2a30   : > { %15604 = vmatpush2.bf16.msra.mxu1 %v22482_v4  ;;  %v22553_v4 = vld [vmem:[#allocation93 + $0x64] ss:$8 sps:$4 sm:$0xff]  }
0x2a31   : > { %15605 = vmatprep.subr.bf16.mxu1 %v22490_v5  ;;  %v22551_v5 = vld [vmem:[#allocation93 + $0x60] ss:$8 sps:$4 sm:$0xff]  }
0x2a34   : > { %15606 = vmatpush2.bf16.msra.mxu1 %v22488_v6  ;;  %v22556_v6 = vld [vmem:[#allocation93 + $0x54] ss:$8 sps:$4 sm:$0xff]  }
0x2a35   : > { %15607 = vmatprep.subr.bf16.mxu1 %v22496_v12  ;;  %v22557_v12 = vld [vmem:[#allocation93 + $0x40] ss:$8 sps:$4 sm:$0xff]  }
0x2a38   : > { %15608 = vmatpush2.bf16.msra.mxu1 %v22494_v14  ;;  %v22562_v14 = vld [vmem:[#allocation93 + $0x34] ss:$8 sps:$4 sm:$0xff]  }
0x2a39   : > { %15609 = vmatprep.subr.bf16.mxu1 %v22502_v19  ;;  %v22565_v19 = vld [vmem:[#allocation93 + $0x24] ss:$8 sps:$4 sm:$0xff]  }
0x2a3c   : > { %15610 = vmatpush2.bf16.msra.mxu1 %v22500_v20  ;;  %v22563_v20 = vld [vmem:[#allocation93 + $0x20] ss:$8 sps:$4 sm:$0xff]  }
0x2a3d   : > { %15869 = vmatprep.subr.bf16.mxu1 %v22550_v3  ;;  %v22634_v3 = vld [vmem:[#allocation96 + $0xb4] ss:$8 sps:$4 sm:$0xff]  }
0x2ab7   : > { %v14787_v22 = vpop.f32.mrf.mxu1 }
0x2ab8   : > { %v14944_v21 = vpack.c.bf16 %v14787_v22, %v14787_v22  ;;  %v22568_v22 = vld [vmem:[#allocation93 + $0x14] ss:$8 sps:$4 sm:$0xff]  }
0x2ab9   : > { %v14789_v24 = vpop.f32.mrf.mxu1 }
0x2aba   : > { %v14945_v2 = vpack.c.bf16 %v14789_v24, %v14789_v24  ;;  %v22566_v24 = vld [vmem:[#allocation93 + $0x10] ss:$8 sps:$4 sm:$0xff]  }
0x2abb   : > { %v14863_v0 = vpop.f32.mrf.mxu1 }
0x2abc   : > { %15570 = vmatprep.mubr.bf16.mxu0 %v14945_v2  ;;  %v14946_v28 = vpack.c.bf16 %v14863_v0, %v14863_v0  ;;  %v22571_v2 = vld [vmem:[#allocation93 + $0x4] ss:$8 sps:$4 sm:$0xff]   ;;  %v22572_v0 = vld [vmem:[#allocation93 + $0xf0] ss:$8 sps:$4 sm:$0xff]  }
0x2abd   : > { %v14865_v31 = vpop.f32.mrf.mxu1  ;;  %15571 = vmatmul.mubr.bf16.vlgmr.msra.gmra.mxu0 %v14944_v21  ;;  %v22574_v21 = vld [vmem:[#allocation93 + $0xf4] ss:$8 sps:$4 sm:$0xff]  }
0x2abe   : > { %v14947_v27 = vpack.c.bf16 %v14865_v31, %v14865_v31  ;;  %15621 = vmatpush1.bf16.msra.mxu0 %v22497_v25  ;;  %v22569_v25 = vld [vmem:[#allocation93] ss:$8 sps:$4 sm:$0xff]   ;;  %v22580_v31 = vld [vmem:[#allocation93 + $0xd4] ss:$8 sps:$4 sm:$0xff]  }
0x2abf   : > { %15622 = vmatprep.subr.bf16.mxu0 %v22505_v26  ;;  %v26665_v49 = vpop.f32.mrf.mxu1  ;;  %v22577_v26 = vld [vmem:[#allocation93 + $0xe4] ss:$8 sps:$4 sm:$0xff]  }
0x2ac0   : > { %15611 = vmatprep.mubr.bf16.mxu1 %v14947_v27  ;;  %v14948_v55 = vpack.c.bf16 %v26665_v49, %v26665_v49  ;;  %v22578_v27 = vld [vmem:[#allocation93 + $0xd0] ss:$8 sps:$4 sm:$0xff]   ;;  %v22586_v49 = vld [vmem:[#allocation93 + $0xb4] ss:$8 sps:$4 sm:$0xff]  }
0x2ac1   : > { %15612 = vmatmul.mubr.bf16.vlgmr.msra.gmra.mxu1 %v14946_v28  ;;  %v14941_v36 = vpop.f32.mrf.mxu1  ;;  %v22575_v28 = vld [vmem:[#allocation93 + $0xe0] ss:$8 sps:$4 sm:$0xff]  }
0x2ac2   : > { %15623 = vmatpush1.bf16.msra.mxu0 %v22503_v50  ;;  %v14949_v37 = vpack.c.bf16 %v14941_v36, %v14941_v36  ;;  %15870 = vmatpush1.bf16.msra.mxu1 %v22548_v53  ;;  %v22583_v50 = vld [vmem:[#allocation93 + $0xc4] ss:$8 sps:$4 sm:$0xff]   ;;  %v22584_v36 = vld [vmem:[#allocation93 + $0xb0] ss:$8 sps:$4 sm:$0xff]  }
0x2ac3   : > { %15624 = vmatprep.subr.bf16.mxu0 %v22508_v35  ;;  %15871 = vmatprep.subr.bf16.mxu1 %v22553_v4  ;;  %v22581_v35 = vld [vmem:[#allocation93 + $0xc0] ss:$8 sps:$4 sm:$0xff]   ;;  %v22632_v4 = vld [vmem:[#allocation96 + $0xb0] ss:$8 sps:$4 sm:$0xff]  }
0x2ac4   : > { %15652 = vmatprep.mubr.bf16.mxu0 %v14949_v37  ;;  %v22587_v37 = vld [vmem:[#allocation93 + $0xa0] ss:$8 sps:$4 sm:$0xff]  }
0x2ac5   : > { %v22629_v53 = vld [vmem:[#allocation96 + $0xc0] ss:$8 sps:$4 sm:$0xff]  }
0x2ac6   : > { %15625 = vmatpush1.bf16.msra.mxu0 %v22506_v33  ;;  %15872 = vmatpush1.bf16.msra.mxu1 %v22551_v5  ;;  %v22589_v33 = vld [vmem:[#allocation93 + $0xa4] ss:$8 sps:$4 sm:$0xff]  }
0x2ac7   : > { %15626 = vmatprep.subr.bf16.mxu0 %v22511_v38  ;;  %15873 = vmatprep.subr.bf16.mxu1 %v22556_v6  ;;  %v22592_v38 = vld [vmem:[#allocation93 + $0x94] ss:$8 sps:$4 sm:$0xff]   ;;  %v22637_v5 = vld [vmem:[#allocation96 + $0xa4] ss:$8 sps:$4 sm:$0xff]   ;;  %v22635_v6 = vld [vmem:[#allocation96 + $0xa0] ss:$8 sps:$4 sm:$0xff]  }
0x2aca   : > { %15627 = vmatpush1.bf16.msra.mxu0 %v22509_v34  ;;  %15874 = vmatpush1.bf16.msra.mxu1 %v22554_v1  ;;  %v22590_v34 = vld [vmem:[#allocation93 + $0x90] ss:$8 sps:$4 sm:$0xff]  }
0x2acb   : > { %15628 = vmatprep.subr.bf16.mxu0 %v22514_v40  ;;  %15875 = vmatprep.subr.bf16.mxu1 %v22559_v9  ;;  %v22595_v40 = vld [vmem:[#allocation93 + $0x84] ss:$8 sps:$4 sm:$0xff]  }
0x2ace   : > { %15629 = vmatpush1.bf16.msra.mxu0 %v22512_v32  ;;  %15876 = vmatpush1.bf16.msra.mxu1 %v22557_v12  ;;  %v22593_v32 = vld [vmem:[#allocation93 + $0x80] ss:$8 sps:$4 sm:$0xff]  }
0x2acf   : > { %15630 = vmatprep.subr.bf16.mxu0 %v22517_v11  ;;  %15877 = vmatprep.subr.bf16.mxu1 %v22562_v14  ;;  %v22596_v11 = vld [vmem:[#allocation96 + $0x70] ss:$8 sps:$4 sm:$0xff]  }
0x2ad2   : > { %15631 = vmatpush1.bf16.msra.mxu0 %v22515_v23  ;;  %15878 = vmatpush1.bf16.msra.mxu1 %v22560_v15  ;;  %v22598_v23 = vld [vmem:[#allocation96 + $0x74] ss:$8 sps:$4 sm:$0xff]  }
0x2ad3   : > { %15632 = vmatprep.subr.bf16.mxu0 %v22520_v51  ;;  %15879 = vmatprep.subr.bf16.mxu1 %v22565_v19  ;;  %v22601_v51 = vld [vmem:[#allocation96 + $0x64] ss:$8 sps:$4 sm:$0xff]  }
0x2ad6   : > { %15633 = vmatpush1.bf16.msra.mxu0 %v22518_v52  ;;  %15880 = vmatpush1.bf16.msra.mxu1 %v22563_v20  ;;  %v22599_v52 = vld [vmem:[#allocation96 + $0x60] ss:$8 sps:$4 sm:$0xff]  }
0x2ad7   : > { %15634 = vmatprep.subr.bf16.mxu0 %v22523_v13  ;;  %15881 = vmatprep.subr.bf16.mxu1 %v22568_v22  ;;  %v22604_v13 = vld [vmem:[#allocation96 + $0x54] ss:$8 sps:$4 sm:$0xff]  }
0x2ada   : > { %15635 = vmatpush1.bf16.msra.mxu0 %v22521_v48  ;;  %15882 = vmatpush1.bf16.msra.mxu1 %v22566_v24  ;;  %v22602_v48 = vld [vmem:[#allocation96 + $0x50] ss:$8 sps:$4 sm:$0xff]   ;;  %v15046_v24 = vld [vmem:[#allocation91] sm:$0x3] }
0x2adb   : > { %15636 = vmatprep.subr.bf16.mxu0 %v22526_v54  ;;  %15883 = vmatprep.subr.bf16.mxu1 %v22571_v2  ;;  %v22607_v54 = vld [vmem:[#allocation96 + $0x44] ss:$8 sps:$4 sm:$0xff]   ;;  %v15531_v2 = vrot.slane %v15046_v24, %v26021_v8 }
0x2ade   : > { %15637 = vmatpush2.bf16.msra.mxu0 %v22524_v42  ;;  %15884 = vmatpush1.bf16.msra.mxu1 %v22569_v25  ;;  %v22605_v42 = vld [vmem:[#allocation96 + $0x40] ss:$8 sps:$4 sm:$0xff]   ;;  %v15535_v25 = vrot.slane %v15046_v24, %v26019_v7 }
0x2adf   : > { %15638 = vmatprep.subr.bf16.mxu0 %v22529_v45  ;;  %15885 = vmatprep.subr.bf16.mxu1 %v22574_v21  ;;  %v22610_v45 = vld [vmem:[#allocation96 + $0x34] ss:$8 sps:$4 sm:$0xff]   ;;  %v22665_v24 = vld [vmem:[#allocation99 + $0x4] ss:$8 sps:$4 sm:$0xff]  }
0x2ae2   : > { %15639 = vmatpush2.bf16.msra.mxu0 %v22527_v56  ;;  %15886 = vmatpush2.bf16.msra.mxu1 %v22572_v0  ;;  %v22608_v56 = vld [vmem:[#allocation96 + $0x30] ss:$8 sps:$4 sm:$0xff]  }
0x2ae3   : > { %15640 = vmatprep.subr.bf16.mxu0 %v22532_v57  ;;  %15887 = vmatprep.subr.bf16.mxu1 %v22577_v26  ;;  %v22613_v57 = vld [vmem:[#allocation96 + $0x24] ss:$8 sps:$4 sm:$0xff]  }
0x2ae6   : > { %15641 = vmatpush2.bf16.msra.mxu0 %v22530_v58  ;;  %15888 = vmatpush2.bf16.msra.mxu1 %v22575_v28  ;;  %v22611_v58 = vld [vmem:[#allocation96 + $0x20] ss:$8 sps:$4 sm:$0xff]  }
0x2ae7   : > { %15642 = vmatprep.subr.bf16.mxu0 %v22535_v60  ;;  %15889 = vmatprep.subr.bf16.mxu1 %v22580_v31  ;;  %v22616_v60 = vld [vmem:[#allocation96 + $0x14] ss:$8 sps:$4 sm:$0xff]  }
0x2aea   : > { %15643 = vmatpush2.bf16.msra.mxu0 %v22533_v61  ;;  %15890 = vmatpush2.bf16.msra.mxu1 %v22578_v27  ;;  %v22614_v61 = vld [vmem:[#allocation96 + $0x10] ss:$8 sps:$4 sm:$0xff]  }
0x2aeb   : > { %15644 = vmatprep.subr.bf16.mxu0 %v22538_v30  ;;  %15891 = vmatprep.subr.bf16.mxu1 %v22583_v50  ;;  %v22619_v30 = vld [vmem:[#allocation96 + $0x4] ss:$8 sps:$4 sm:$0xff]  }
0x2aee   : > { %15645 = vmatpush2.bf16.msra.mxu0 %v22536_v47  ;;  %15892 = vmatpush2.bf16.msra.mxu1 %v22581_v35  ;;  %v22617_v47 = vld [vmem:[#allocation96] ss:$8 sps:$4 sm:$0xff]  }
0x2aef   : > { %15646 = vmatprep.subr.bf16.mxu0 %v22541_v62  ;;  %15893 = vmatprep.subr.bf16.mxu1 %v22586_v49  ;;  %v22622_v62 = vld [vmem:[#allocation96 + $0xf4] ss:$8 sps:$4 sm:$0xff]  }
0x2af2   : > { %15647 = vmatpush2.bf16.msra.mxu0 %v22539_v46  ;;  %15894 = vmatpush2.bf16.msra.mxu1 %v22584_v36  ;;  %v22620_v46 = vld [vmem:[#allocation96 + $0xf0] ss:$8 sps:$4 sm:$0xff]  }
0x2af3   : > { %15648 = vmatprep.subr.bf16.mxu0 %v22544_v63  ;;  %15895 = vmatprep.subr.bf16.mxu1 %v22589_v33  ;;  %v22625_v63 = vld [vmem:[#allocation96 + $0xe4] ss:$8 sps:$4 sm:$0xff]  }
0x2af6   : > { %15649 = vmatpush2.bf16.msra.mxu0 %v22542_v43  ;;  %15896 = vmatpush2.bf16.msra.mxu1 %v22587_v37  ;;  %v22623_v43 = vld [vmem:[#allocation96 + $0xe0] ss:$8 sps:$4 sm:$0xff]  }
0x2af7   : > { %15650 = vmatprep.subr.bf16.mxu0 %v22547_v16  ;;  %15897 = vmatprep.subr.bf16.mxu1 %v22592_v38  ;;  %v22628_v16 = vld [vmem:[#allocation96 + $0xd4] ss:$8 sps:$4 sm:$0xff]  }
0x2afa   : > { %15651 = vmatpush2.bf16.msra.mxu0 %v22545_v17  ;;  %15898 = vmatpush2.bf16.msra.mxu1 %v22590_v34  ;;  %v22626_v17 = vld [vmem:[#allocation96 + $0xd0] ss:$8 sps:$4 sm:$0xff]  }
0x2afb   : > { %15899 = vmatprep.subr.bf16.mxu1 %v22595_v40  ;;  %16104 = vmatprep.subr.bf16.mxu0 %v22598_v23  ;;  %v22640_v40 = vld [vmem:[#allocation96 + $0x94] ss:$8 sps:$4 sm:$0xff]   ;;  %v22641_v23 = vld [vmem:[#allocation96 + $0x80] ss:$8 sps:$4 sm:$0xff]  }
0x2afd   : > { %15653 = vmatmul.mubr.bf16.vlgmr.msra.gmra.mxu0 %v14948_v55  ;;  %v22631_v55 = vld [vmem:[#allocation96 + $0xc4] ss:$8 sps:$4 sm:$0xff]  }
0x2afe   : > { %15900 = vmatpush2.bf16.msra.mxu1 %v22593_v32  ;;  %16105 = vmatpush1.bf16.msra.mxu0 %v22596_v11  ;;  %v22638_v32 = vld [vmem:[#allocation96 + $0x90] ss:$8 sps:$4 sm:$0xff]   ;;  %v22643_v11 = vld [vmem:[#allocation96 + $0x84] ss:$8 sps:$4 sm:$0xff]  }
0x2aff   : > { %16106 = vmatprep.subr.bf16.mxu0 %v22601_v51  ;;  %v22644_v51 = vld [vmem:[%s26921_s1 + $0x78] sm:$0xff]  }
0x2b00   : > { %20222 = vmatprep.subr.bf16.mxu1 %v22644_v51  ;;  %v22728_v51 = vld [vmem:[#allocation102 + $0x1e4] ss:$8 sps:$4 sm:$0xff]  }
0x2b02   : > { %16107 = vmatpush1.bf16.msra.mxu0 %v22599_v52  ;;  %v22645_v52 = vld [vmem:[%s26921_s1 + $0x38] sm:$0xff]  }
0x2b03   : > { %16108 = vmatprep.subr.bf16.mxu0 %v22604_v13  ;;  %v22646_v13 = vld [vmem:[%s26921_s1 + $0x70] sm:$0xff]  }
0x2b06   : > { %16109 = vmatpush1.bf16.msra.mxu0 %v22602_v48  ;;  %v22647_v48 = vld [vmem:[%s26921_s1 + $0x30] sm:$0xff]  }
0x2b07   : > { %16110 = vmatprep.subr.bf16.mxu0 %v22607_v54  ;;  %v22648_v54 = vld [vmem:[%s26921_s1 + $0x68] sm:$0xff]  }
0x2b0a   : > { %16111 = vmatpush1.bf16.msra.mxu0 %v22605_v42  ;;  %v22649_v42 = vld [vmem:[%s26921_s1 + $0x28] sm:$0xff]  }
0x2b0b   : > { %16112 = vmatprep.subr.bf16.mxu0 %v22610_v45  ;;  %v22650_v45 = vld [vmem:[%s26921_s1 + $0x60] sm:$0xff]  }
0x2b0e   : > { %16113 = vmatpush1.bf16.msra.mxu0 %v22608_v56  ;;  %v22651_v56 = vld [vmem:[%s26921_s1 + $0x20] sm:$0xff]  }
0x2b0f   : > { %16114 = vmatprep.subr.bf16.mxu0 %v22613_v57  ;;  %v22652_v57 = vld [vmem:[%s26921_s1 + $0x58] sm:$0xff]  }
0x2b12   : > { %16115 = vmatpush1.bf16.msra.mxu0 %v22611_v58  ;;  %v22653_v58 = vld [vmem:[%s26921_s1 + $0x18] sm:$0xff]  }
0x2b13   : > { %16116 = vmatprep.subr.bf16.mxu0 %v22616_v60  ;;  %v22654_v60 = vld [vmem:[%s26921_s1 + $0x50] sm:$0xff]  }
0x2b16   : > { %16117 = vmatpush1.bf16.msra.mxu0 %v22614_v61  ;;  %v22655_v61 = vld [vmem:[%s26921_s1 + $0x10] sm:$0xff]  }
0x2b17   : > { %16118 = vmatprep.subr.bf16.mxu0 %v22619_v30  ;;  %v22656_v30 = vld [vmem:[%s26921_s1 + $0x48] sm:$0xff]  }
0x2b1a   : > { %16119 = vmatpush1.bf16.msra.mxu0 %v22617_v47  ;;  %v22657_v47 = vld [vmem:[%s26921_s1 + $0x8] sm:$0xff]  }
0x2b1b   : > { %16120 = vmatprep.subr.bf16.mxu0 %v22622_v62  ;;  %v15697_v62 = vld [vmem:[#allocation94] sm:$0x3] }
0x2b1e   : > { %16121 = vmatpush2.bf16.msra.mxu0 %v22620_v46  ;;  %v15862_v46 = vrot.slane %v15697_v62, %v26021_v8 }
0x2b1f   : > { %16122 = vmatprep.subr.bf16.mxu0 %v22625_v63  ;;  %v15866_v63 = vrot.slane %v15697_v62, %v26019_v7  ;;  %v22668_v62 = vld [vmem:[#allocation102 + $0x74] ss:$8 sps:$4 sm:$0xff]  }
0x2b22   : > { %16123 = vmatpush2.bf16.msra.mxu0 %v22623_v43 }
0x2b23   : > { %16124 = vmatprep.subr.bf16.mxu0 %v22628_v16 }
0x2b26   : > { %16125 = vmatpush2.bf16.msra.mxu0 %v22626_v17 }
0x2b27   : > { %16126 = vmatprep.subr.bf16.mxu0 %v22631_v55 }
0x2b2a   : > { %16127 = vmatpush2.bf16.msra.mxu0 %v22629_v53 }
0x2b2b   : > { %16128 = vmatprep.subr.bf16.mxu0 %v22634_v3 }
0x2b2e   : > { %16129 = vmatpush2.bf16.msra.mxu0 %v22632_v4 }
0x2b2f   : > { %16130 = vmatprep.subr.bf16.mxu0 %v22637_v5 }
0x2b32   : > { %16131 = vmatpush2.bf16.msra.mxu0 %v22635_v6  ;;  %v22658_v6 = vld [vmem:[%s26921_s1 + $0x40] sm:$0xff]  }
0x2b33   : > { %16132 = vmatprep.subr.bf16.mxu0 %v22640_v40  ;;  %v22716_v40 = vld [vmem:[#allocation102 + $0x104] ss:$8 sps:$4 sm:$0xff]  }
0x2b36   : > { %16133 = vmatpush2.bf16.msra.mxu0 %v22638_v32  ;;  %v22720_v32 = vld [vmem:[#allocation102 + $0x1f0] ss:$8 sps:$4 sm:$0xff]  }
0x2b37   : > { %16134 = vmatprep.subr.bf16.mxu0 %v22643_v11  ;;  %v22722_v11 = vld [vmem:[#allocation102 + $0x1f4] ss:$8 sps:$4 sm:$0xff]  }
0x2b3a   : > { %16135 = vmatpush2.bf16.msra.mxu0 %v22641_v23  ;;  %v22726_v23 = vld [vmem:[#allocation102 + $0x1e0] ss:$8 sps:$4 sm:$0xff]  }
0x2b7d   : > { %v15572_v1 = vpop.f32.mrf.mxu0 }
0x2b7e   : > { %v15573_v21 = vadd.f32 %v15572_v1, %v15531_v2  ;;  %v22659_v1 = vld [vmem:[%s26921_s1] sm:$0xff]  }
0x2b7f   : > { %v15574_v9 = vpop.f32.mrf.mxu0 }
0x2b80   : > { %v15575_v0 = vadd.f32 %v15574_v9, %v15535_v25  ;;  %v22662_v9 = vld [vmem:[#allocation99 + $0x14] ss:$8 sps:$4 sm:$0xff]   ;;  %v22663_v25 = vld [vmem:[#allocation99] ss:$8 sps:$4 sm:$0xff]  }
0x2b81   : > { %v15576_v12 = vpop.f32.mrf.mxu0  ;;  %v15613_v14 = vpop.f32.mrf.mxu1 }
0x2b82   : > { %v15614_v26 = vadd.f32 %v15613_v14, %v15573_v21  ;;  %v22672_v21 = vld [vmem:[#allocation102 + $0x170] ss:$8 sps:$4 sm:$0xff]  }
0x2b83   : > { %v15577_v15 = vpop.f32.mrf.mxu0  ;;  %v15615_v19 = vpop.f32.mrf.mxu1 }
0x2b84   : > { %v15616_v31 = vadd.f32 %v15615_v19, %v15575_v0  ;;  %v22660_v19 = vld [vmem:[#allocation99 + $0x10] ss:$8 sps:$4 sm:$0xff]  }
0x2b85   : > { %v15617_v20 = vpop.f32.mrf.mxu1  ;;  %v22674_v0 = vld [vmem:[#allocation102 + $0x174] ss:$8 sps:$4 sm:$0xff]  }
0x2b86   : > { %17266 = vmatprep.subr.bf16.mxu0 %v22674_v0  ;;  %v22746_v0 = vld [vmem:[#allocation102 + $0x1b4] ss:$8 sps:$4 sm:$0xff]  }
0x2b87   : > { %v15618_v22 = vpop.f32.mrf.mxu1 }
0x2bbd   : > { %v15654_v28 = vpop.f32.mrf.mxu0 }
0x2bbe   : > { %v15655_v27 = vadd.f32 %v15654_v28, %v15614_v26  ;;  %v22678_v26 = vld [vmem:[#allocation102 + $0x160] ss:$8 sps:$4 sm:$0xff]   ;;  %v22680_v28 = vld [vmem:[#allocation102 + $0x164] ss:$8 sps:$4 sm:$0xff]  }
0x2bbf   : > { %v15656_v50 = vpop.f32.mrf.mxu0 }
0x2bc0   : > { %v15657_v35 = vadd.f32 %v15656_v50, %v15616_v31  ;;  %v15661_v49 = vmax.f32 %v15655_v27, 0.0  ;;  %v22684_v31 = vld [vmem:[#allocation102 + $0x150] ss:$8 sps:$4 sm:$0xff]   ;;  %v22686_v27 = vld [vmem:[#allocation102 + $0x154] ss:$8 sps:$4 sm:$0xff]  }
0x2bc1   : > { %v15658_v36 = vpop.f32.mrf.mxu0  ;;  %v22690_v50 = vld [vmem:[#allocation102 + $0x140] ss:$8 sps:$4 sm:$0xff]  }
0x2bc2   : > { %v15662_v33 = vmax.f32 %v15657_v35, 0.0  ;;  %v15663_v34 = vpack.c.bf16 %v15661_v49, %v15661_v49  ;;  %v22692_v35 = vld [vmem:[#allocation102 + $0x144] ss:$8 sps:$4 sm:$0xff]   ;;  %v22698_v49 = vld [vmem:[#allocation102 + $0x134] ss:$8 sps:$4 sm:$0xff]  }
0x2bc3   : > { %v15659_v37 = vpop.f32.mrf.mxu0  ;;  %v22702_v36 = vld [vmem:[#allocation102 + $0x120] ss:$8 sps:$4 sm:$0xff]  }
0x2bc4   : > { %v15664_v38 = vpack.c.bf16 %v15662_v33, %v15662_v33  ;;  %v22704_v33 = vld [vmem:[#allocation102 + $0x124] ss:$8 sps:$4 sm:$0xff]   ;;  %v22708_v37 = vld [vmem:[#allocation102 + $0x110] ss:$8 sps:$4 sm:$0xff]  }
0x2bc6   : > { %15901 = vmatprep.mubr.bf16.mxu1 %v15664_v38  ;;  %v22710_v38 = vld [vmem:[#allocation102 + $0x114] ss:$8 sps:$4 sm:$0xff]  }
0x2bc7   : > { %15902 = vmatmul.mubr.bf16.vlgmr.msra.gmra.mxu1 %v15663_v34  ;;  %v22714_v34 = vld [vmem:[#allocation102 + $0x100] ss:$8 sps:$4 sm:$0xff]  }
0x2bc8   : > { %20223 = vmatpush3.bf16.msra.mxu1 %v22645_v52  ;;  %v22732_v52 = vld [vmem:[#allocation102 + $0x1d0] ss:$8 sps:$4 sm:$0xff]  }
0x2bc9   : > { %20224 = vmatprep.subr.bf16.mxu1 %v22646_v13  ;;  %v22734_v13 = vld [vmem:[#allocation102 + $0x1d4] ss:$8 sps:$4 sm:$0xff]  }
0x2bcc   : > { %20225 = vmatpush3.bf16.msra.mxu1 %v22647_v48  ;;  %v22738_v48 = vld [vmem:[#allocation102 + $0x1c0] ss:$8 sps:$4 sm:$0xff]  }
0x2bcd   : > { %20226 = vmatprep.subr.bf16.mxu1 %v22648_v54  ;;  %v22740_v54 = vld [vmem:[#allocation102 + $0x1c4] ss:$8 sps:$4 sm:$0xff]  }
0x2bd0   : > { %20227 = vmatpush3.bf16.msra.mxu1 %v22649_v42 }
0x2bd1   : > { %20228 = vmatprep.subr.bf16.mxu1 %v22650_v45  ;;  %v16179_v45 = vld [vmem:[#allocation97] sm:$0x1] }
0x2bd4   : > { %20229 = vmatpush3.bf16.msra.mxu1 %v22651_v56 }
0x2bd5   : > { %20230 = vmatprep.subr.bf16.mxu1 %v22652_v57 }
0x2bd8   : > { %20231 = vmatpush3.bf16.msra.mxu1 %v22653_v58 }
0x2bd9   : > { %20232 = vmatprep.subr.bf16.mxu1 %v22654_v60 }
0x2bdc   : > { %20233 = vmatpush3.bf16.msra.mxu1 %v22655_v61 }
0x2bdd   : > { %20234 = vmatprep.subr.bf16.mxu1 %v22656_v30 }
0x2be0   : > { %20235 = vmatpush3.bf16.msra.mxu1 %v22657_v47 }
0x2be1   : > { %20236 = vmatprep.subr.bf16.mxu1 %v22658_v6  ;;  %v22705_v6 = vld [vmem:[#allocation102] ss:$8 sps:$4 sm:$0xff]  }
0x2be4   : > { %20237 = vmatpush3.bf16.msra.mxu1 %v22659_v1  ;;  %v22713_v1 = vld [vmem:[#allocation102 + $0xf4] ss:$8 sps:$4 sm:$0xff]  }
0x2be5   : > { %16369 = vmatprep.subr.bf16.mxu1 %v22662_v9  ;;  %v22711_v9 = vld [vmem:[#allocation102 + $0xf0] ss:$8 sps:$4 sm:$0xff]  }
0x2c87   : > { %v15903_v43 = vpop.f32.mrf.mxu1 }
0x2c88   : > { %v26687_v16 = vadd.f32 %v15903_v43, %v15862_v46  ;;  %v22666_v46 = vld [vmem:[#allocation102 + $0x70] ss:$8 sps:$4 sm:$0xff]   ;;  %v22677_v43 = vld [vmem:[#allocation102 + $0x54] ss:$8 sps:$4 sm:$0xff]  }
0x2c89   : > { %v15905_v17 = vpop.f32.mrf.mxu1 }
0x2c8a   : > { %v26689_v55 = vadd.f32 %v15905_v17, %v15866_v63  ;;  %v15910_v4 = vpack.c.bf16 %v26687_v16, %v26687_v16  ;;  %v22669_v63 = vld [vmem:[#allocation102 + $0x60] ss:$8 sps:$4 sm:$0xff]   ;;  %v22683_v17 = vld [vmem:[#allocation102 + $0x44] ss:$8 sps:$4 sm:$0xff]  }
0x2c8b   : > { %v15907_v53 = vpop.f32.mrf.mxu1 }
0x2c8c   : > { %v15911_v3 = vpack.c.bf16 %v26689_v55, %v26689_v55  ;;  %v22695_v53 = vld [vmem:[#allocation102 + $0x24] ss:$8 sps:$4 sm:$0xff]  }
0x2c8d   : > { %v15908_v5 = vpop.f32.mrf.mxu1 }
0x2c8e   : > { %16136 = vmatprep.mubr.bf16.mxu0 %v15911_v3  ;;  %v22693_v3 = vld [vmem:[#allocation102 + $0x20] ss:$8 sps:$4 sm:$0xff]   ;;  %v22707_v5 = vld [vmem:[#allocation102 + $0x4] ss:$8 sps:$4 sm:$0xff]  }
0x2c8f   : > { %16137 = vmatmul.mubr.bf16.vlgmr.msra.gmra.mxu0 %v15910_v4  ;;  %v22699_v4 = vld [vmem:[#allocation102 + $0x10] ss:$8 sps:$4 sm:$0xff]  }
0x2c90   : > { %17267 = vmatpush1.bf16.msra.mxu0 %v22672_v21  ;;  %v22741_v21 = vld [vmem:[#allocation102 + $0xa0] ss:$8 sps:$4 sm:$0xff]  }
0x2c91   : > { %17268 = vmatprep.subr.bf16.mxu0 %v22680_v28  ;;  %v22749_v28 = vld [vmem:[#allocation102 + $0x94] ss:$8 sps:$4 sm:$0xff]  }
0x2c94   : > { %17269 = vmatpush1.bf16.msra.mxu0 %v22678_v26  ;;  %v22744_v26 = vld [vmem:[#allocation102 + $0x1b0] ss:$8 sps:$4 sm:$0xff]  }
0x2c95   : > { %17270 = vmatprep.subr.bf16.mxu0 %v22686_v27  ;;  %v22752_v27 = vld [vmem:[#allocation102 + $0x1a4] ss:$8 sps:$4 sm:$0xff]  }
0x2c98   : > { %17271 = vmatpush1.bf16.msra.mxu0 %v22684_v31  ;;  %v22747_v31 = vld [vmem:[#allocation102 + $0x90] ss:$8 sps:$4 sm:$0xff]  }
0x2c99   : > { %17272 = vmatprep.subr.bf16.mxu0 %v22692_v35  ;;  %v22755_v35 = vld [vmem:[#allocation102 + $0x84] ss:$8 sps:$4 sm:$0xff]  }
0x2c9c   : > { %17273 = vmatpush1.bf16.msra.mxu0 %v22690_v50  ;;  %v22750_v50 = vld [vmem:[#allocation102 + $0x1a0] ss:$8 sps:$4 sm:$0xff]  }
0x2c9d   : > { %17274 = vmatprep.subr.bf16.mxu0 %v22698_v49  ;;  %v22758_v49 = vld [vmem:[#allocation102 + $0x194] ss:$8 sps:$4 sm:$0xff]  }
0x2d4f   : > { %v16138_v12 = vpop.f32.mrf.mxu0 }
0x2d50   : > { %v16145_v20 = vpack.c.bf16 %v16138_v12, %v16138_v12  ;;  %v22719_v12 = vld [vmem:[#allocation102 + $0xe4] ss:$8 sps:$4 sm:$0xff]  }
0x2d51   : > { %v16140_v14 = vpop.f32.mrf.mxu0 }
0x2d52   : > { %v16146_v15 = vpack.c.bf16 %v16140_v14, %v16140_v14  ;;  %v22717_v14 = vld [vmem:[#allocation102 + $0xe0] ss:$8 sps:$4 sm:$0xff]  }
0x2d53   : > { %v16142_v22 = vpop.f32.mrf.mxu0 }
0x2d54   : > { %16308 = vmatprep.mubr.bf16.mxu1 %v16146_v15  ;;  %v22725_v15 = vld [vmem:[#allocation102 + $0xd4] ss:$8 sps:$4 sm:$0xff]   ;;  %v22729_v22 = vld [vmem:[#allocation102 + $0xc0] ss:$8 sps:$4 sm:$0xff]  }
0x2d55   : > { %v16143_v2 = vpop.f32.mrf.mxu0  ;;  %16309 = vmatmul.mubr.bf16.vlgmr.msra.gmra.mxu1 %v16145_v20  ;;  %v22731_v20 = vld [vmem:[#allocation102 + $0xc4] ss:$8 sps:$4 sm:$0xff]  }
0x2d56   : > { %16370 = vmatpush1.bf16.msra.mxu1 %v22660_v19  ;;  %16389 = vmatprep.mubr.bf16.mxu1 %v24848_v41  ;;  %v22696_v41 = vld [vmem:[#allocation102 + $0x130] ss:$8 sps:$4 sm:$0xff]  }
0x2d57   : > { %16371 = vmatprep.subr.bf16.mxu1 %v22665_v24  ;;  %17275 = vmatpush1.bf16.msra.mxu0 %v22696_v41  ;;  %v22723_v19 = vld [vmem:[#allocation102 + $0xd0] ss:$8 sps:$4 sm:$0xff]   ;;  %v22737_v24 = vld [vmem:[#allocation102 + $0xb4] ss:$8 sps:$4 sm:$0xff]   ;;  %v22753_v41 = vld [vmem:[#allocation102 + $0x80] ss:$8 sps:$4 sm:$0xff]  }
0x2d58   : > { %17276 = vmatprep.subr.bf16.mxu0 %v22704_v33  ;;  %v22735_v2 = vld [vmem:[#allocation102 + $0xb0] ss:$8 sps:$4 sm:$0xff]   ;;  %v22761_v33 = vld [vmem:[#allocation102 + $0x274] ss:$8 sps:$4 sm:$0xff]  }
0x2d5a   : > { %16372 = vmatpush1.bf16.msra.mxu1 %v22663_v25  ;;  %v22743_v25 = vld [vmem:[#allocation102 + $0xa4] ss:$8 sps:$4 sm:$0xff]  }
0x2d5b   : > { %19731 = vmatprep.subr.msk.mxu1 %vm6912_vm4, %v26634_v59  ;;  %17277 = vmatpush1.bf16.msra.mxu0 %v22702_v36  ;;  %v22756_v36 = vld [vmem:[#allocation102 + $0x190] ss:$8 sps:$4 sm:$0xff]  }
0x2d5c   : > { %17278 = vmatprep.subr.bf16.mxu0 %v22710_v38  ;;  %v22762_v38 = vld [vmem:[#allocation102 + $0x180] ss:$8 sps:$4 sm:$0xff]  }
0x2d5f   : > { %17279 = vmatpush1.bf16.msra.mxu0 %v22708_v37  ;;  %v22764_v37 = vld [vmem:[#allocation102 + $0x184] ss:$8 sps:$4 sm:$0xff]  }
0x2d60   : > { %17280 = vmatprep.subr.bf16.mxu0 %v22716_v40 }
0x2d63   : > { %17281 = vmatpush1.bf16.msra.mxu0 %v22714_v34 }
0x2d64   : > { %17282 = vmatprep.subr.bf16.mxu0 %v22722_v11 }
0x2d67   : > { %17283 = vmatpush2.bf16.msra.mxu0 %v22720_v32 }
0x2d68   : > { %17284 = vmatprep.subr.bf16.mxu0 %v22728_v51 }
0x2d6b   : > { %17285 = vmatpush2.bf16.msra.mxu0 %v22726_v23 }
0x2d6c   : > { %17286 = vmatprep.subr.bf16.mxu0 %v22734_v13  ;;  %v22759_v13 = vld [vmem:[#allocation102 + $0x270] ss:$8 sps:$4 sm:$0xff]  }
0x2d6f   : > { %17287 = vmatpush2.bf16.msra.mxu0 %v22732_v52 }
0x2d70   : > { %17288 = vmatprep.subr.bf16.mxu0 %v22740_v54 }
0x2d73   : > { %17289 = vmatpush2.bf16.msra.mxu0 %v22738_v48 }
0x2d74   : > { %17290 = vmatprep.subr.bf16.mxu0 %v22746_v0  ;;  %v22810_v0 = vld [vmem:[#allocation105 + $0x78] sm:$0xff]  }
0x2d77   : > { %17291 = vmatpush2.bf16.msra.mxu0 %v22744_v26  ;;  %v22811_v26 = vld [vmem:[#allocation105 + $0x38] sm:$0xff]  }
0x2d78   : > { %17292 = vmatprep.subr.bf16.mxu0 %v22752_v27  ;;  %v22814_v27 = vld [vmem:[#allocation105 + $0x68] sm:$0xff]  }
0x2d7b   : > { %17293 = vmatpush2.bf16.msra.mxu0 %v22750_v50  ;;  %v22815_v50 = vld [vmem:[#allocation105 + $0x28] sm:$0xff]  }
0x2d7c   : > { %17294 = vmatprep.subr.bf16.mxu0 %v22758_v49  ;;  %v22818_v49 = vld [vmem:[#allocation105 + $0x58] sm:$0xff]  }
0x2d7f   : > { %17295 = vmatpush2.bf16.msra.mxu0 %v22756_v36  ;;  %v22819_v36 = vld [vmem:[#allocation105 + $0x18] sm:$0xff]  }
0x2d80   : > { %17296 = vmatprep.subr.bf16.mxu0 %v22764_v37  ;;  %v22821_v37 = vld [vmem:[#allocation105 + $0x10] sm:$0xff]  }
0x2d83   : > { %17297 = vmatpush2.bf16.msra.mxu0 %v22762_v38  ;;  %v22822_v38 = vld [vmem:[#allocation105 + $0x48] sm:$0xff]  }
0x2d84   : > { %20244 = vmatprep.subr.bf16.mxu0 %v22810_v0 }
0x2e15   : > { %v20238_v42 = vpop.f32.mrf.mxu1 }
0x2e17   : > { %v20239_v56 = vpop.f32.mrf.mxu1 }
0x2e18   : > { %v20240_v57 = vadd.f32 %v20239_v56, %v20238_v42  ;;  %v22767_v42 = vld [vmem:[#allocation102 + $0x264] ss:$8 sps:$4 sm:$0xff]  }
0x2e19   : > { %v20241_v58 = vpop.f32.mrf.mxu1 }
0x2e1a   : > { %v16311_v60 = vadd.f32 %v20240_v57, %v16179_v45  ;;  %v22765_v58 = vld [vmem:[#allocation102 + $0x260] ss:$8 sps:$4 sm:$0xff]  }
0x2e1b   : > { %v20242_v61 = vpop.f32.mrf.mxu1 }
0x2e1c   : > { %v16316_v30 = vmax.f32 %v16311_v60, 0.0  ;;  %v22770_v60 = vld [vmem:[#allocation102 + $0x254] ss:$8 sps:$4 sm:$0xff]  }
0x2e1e   : > { %v16317_v47 = vpack.c.bf16 %v16316_v30, %v16316_v30 }
0x2e20   : > { %19730 = vmatmul.mubr.msk.bf16.vlgmr.msra.gmra.mxu1 %vm3394_vm0, %v16317_v47  ;;  %v22768_v47 = vld [vmem:[#allocation102 + $0x250] ss:$8 sps:$4 sm:$0xff]  }
0x2e21   : > { %19732 = vmatpush1.msk.msra.mxu1 %vm6912_vm4, %v26632_v39  ;;  %16482 = vmatprep.mubr.f32.mxu1 %v24846_v18 }
0x2e22   : > { %19734 = vmatprep.subr.msk.mxu1 %vm6912_vm4, %v26634_v59 }
0x2e28   : > { %19733 = vmatmul.mubr.msk.f32.vlgmr.msra.gmra.mxu1 %vm12992_vm8, %v26643_v44  ;;  %v22671_v44 = vld [vmem:[#allocation102 + $0x64] ss:$8 sps:$4 sm:$0xff]  }
0x2e29   : > { %19735 = vmatpush1.msk.msra.mxu1 %vm6912_vm4, %v26632_v39  ;;  %16553 = vmatprep.mubr.f32.mxu1 %v24846_v18 }
0x2e2a   : > { %19737 = vmatprep.subr.msk.mxu1 %vm6912_vm4, %v26634_v59  ;;  %v22675_v59 = vld [vmem:[#allocation102 + $0x50] ss:$8 sps:$4 sm:$0xff]  }
0x2e2c   : > { %19736 = vmatmul.mubr.msk.f32.vlgmr.msra.gmra.mxu1 %vm12992_vm8, %v26653_v10  ;;  %v22681_v10 = vld [vmem:[#allocation102 + $0x40] ss:$8 sps:$4 sm:$0xff]  }
0x2e2d   : > { %19738 = vmatpush1.msk.msra.mxu1 %vm6912_vm4, %v26632_v39  ;;  %16624 = vmatprep.mubr.f32.mxu1 %v24846_v18  ;;  %v22689_v39 = vld [vmem:[#allocation102 + $0x34] ss:$8 sps:$4 sm:$0xff]   ;;  %v22687_v18 = vld [vmem:[#allocation102 + $0x30] ss:$8 sps:$4 sm:$0xff]  }
0x2e2e   : > { %17225 = vmatprep.subr.bf16.mxu1 %v22668_v62 }
0x2e30   : > { %19739 = vmatmul.mubr.msk.f32.vlgmr.msra.gmra.mxu1 %vm12992_vm8, %v26661_v29  ;;  %v22701_v29 = vld [vmem:[#allocation102 + $0x14] ss:$8 sps:$4 sm:$0xff]  }
0x2e31   : > { %17226 = vmatpush1.bf16.msra.mxu1 %v22666_v46  ;;  %v22773_v46 = vld [vmem:[#allocation102 + $0x244] ss:$8 sps:$4 sm:$0xff]  }
0x2e32   : > { %17227 = vmatprep.subr.bf16.mxu1 %v22671_v44  ;;  %v22771_v44 = vld [vmem:[#allocation102 + $0x240] ss:$8 sps:$4 sm:$0xff]  }
0x2e35   : > { %17228 = vmatpush1.bf16.msra.mxu1 %v22669_v63  ;;  %v22776_v63 = vld [vmem:[#allocation102 + $0x234] ss:$8 sps:$4 sm:$0xff]  }
0x2e36   : > { %17229 = vmatprep.subr.bf16.mxu1 %v22677_v43  ;;  %v22774_v43 = vld [vmem:[#allocation102 + $0x230] ss:$8 sps:$4 sm:$0xff]  }
0x2e39   : > { %17230 = vmatpush1.bf16.msra.mxu1 %v22675_v59  ;;  %v22779_v59 = vld [vmem:[#allocation102 + $0x224] ss:$8 sps:$4 sm:$0xff]  }
0x2e3a   : > { %17231 = vmatprep.subr.bf16.mxu1 %v22683_v17  ;;  %v22777_v17 = vld [vmem:[#allocation102 + $0x220] ss:$8 sps:$4 sm:$0xff]  }
0x2e3d   : > { %17232 = vmatpush1.bf16.msra.mxu1 %v22681_v10  ;;  %v22782_v10 = vld [vmem:[#allocation102 + $0x214] ss:$8 sps:$4 sm:$0xff]  }
0x2e3e   : > { %17233 = vmatprep.subr.bf16.mxu1 %v22689_v39  ;;  %v22780_v39 = vld [vmem:[#allocation102 + $0x210] ss:$8 sps:$4 sm:$0xff]  }
0x2e41   : > { %17234 = vmatpush1.bf16.msra.mxu1 %v22687_v18  ;;  %v22785_v18 = vld [vmem:[#allocation102 + $0x204] ss:$8 sps:$4 sm:$0xff]  }
0x2e42   : > { %17235 = vmatprep.subr.bf16.mxu1 %v22695_v53  ;;  %v22783_v53 = vld [vmem:[#allocation102 + $0x200] ss:$8 sps:$4 sm:$0xff]  }
0x2e45   : > { %17236 = vmatpush1.bf16.msra.mxu1 %v22693_v3  ;;  %v22788_v3 = vld [vmem:[#allocation102 + $0x2f4] ss:$8 sps:$4 sm:$0xff]  }
0x2e46   : > { %17237 = vmatprep.subr.bf16.mxu1 %v22701_v29  ;;  %v22786_v29 = vld [vmem:[#allocation102 + $0x2f0] ss:$8 sps:$4 sm:$0xff]  }
0x2e49   : > { %17238 = vmatpush1.bf16.msra.mxu1 %v22699_v4  ;;  %v22791_v4 = vld [vmem:[#allocation102 + $0x2e4] ss:$8 sps:$4 sm:$0xff]  }
0x2e4a   : > { %17239 = vmatprep.subr.bf16.mxu1 %v22707_v5  ;;  %v22789_v5 = vld [vmem:[#allocation102 + $0x2e0] ss:$8 sps:$4 sm:$0xff]  }
0x2e4d   : > { %17240 = vmatpush1.bf16.msra.mxu1 %v22705_v6  ;;  %v22794_v6 = vld [vmem:[#allocation102 + $0x2d4] ss:$8 sps:$4 sm:$0xff]  }
0x2e4e   : > { %17241 = vmatprep.subr.bf16.mxu1 %v22713_v1  ;;  %v22792_v1 = vld [vmem:[#allocation102 + $0x2d0] ss:$8 sps:$4 sm:$0xff]  }
0x2e51   : > { %17242 = vmatpush2.bf16.msra.mxu1 %v22711_v9  ;;  %v22797_v9 = vld [vmem:[#allocation102 + $0x2c4] ss:$8 sps:$4 sm:$0xff]  }
0x2e52   : > { %17243 = vmatprep.subr.bf16.mxu1 %v22719_v12  ;;  %v22795_v12 = vld [vmem:[#allocation102 + $0x2c0] ss:$8 sps:$4 sm:$0xff]  }
0x2e55   : > { %17244 = vmatpush2.bf16.msra.mxu1 %v22717_v14  ;;  %v22800_v14 = vld [vmem:[#allocation102 + $0x2b4] ss:$8 sps:$4 sm:$0xff]  }
0x2e56   : > { %17245 = vmatprep.subr.bf16.mxu1 %v22725_v15  ;;  %v22798_v15 = vld [vmem:[#allocation102 + $0x2b0] ss:$8 sps:$4 sm:$0xff]  }
0x2e59   : > { %17246 = vmatpush2.bf16.msra.mxu1 %v22723_v19  ;;  %v22803_v19 = vld [vmem:[#allocation102 + $0x2a4] ss:$8 sps:$4 sm:$0xff]  }
0x2e5a   : > { %17247 = vmatprep.subr.bf16.mxu1 %v22731_v20  ;;  %v22801_v20 = vld [vmem:[#allocation102 + $0x2a0] ss:$8 sps:$4 sm:$0xff]  }
0x2e5d   : > { %17248 = vmatpush2.bf16.msra.mxu1 %v22729_v22  ;;  %v22806_v22 = vld [vmem:[#allocation102 + $0x294] ss:$8 sps:$4 sm:$0xff]  }
0x2e5e   : > { %17249 = vmatprep.subr.bf16.mxu1 %v22737_v24  ;;  %v22804_v24 = vld [vmem:[#allocation102 + $0x290] ss:$8 sps:$4 sm:$0xff]  }
0x2e61   : > { %17250 = vmatpush2.bf16.msra.mxu1 %v22735_v2  ;;  %v22809_v2 = vld [vmem:[#allocation102 + $0x284] ss:$8 sps:$4 sm:$0xff]  }
0x2e62   : > { %17251 = vmatprep.subr.bf16.mxu1 %v22743_v25  ;;  %v22807_v25 = vld [vmem:[#allocation102 + $0x280] ss:$8 sps:$4 sm:$0xff]  }
0x2e65   : > { %17252 = vmatpush2.bf16.msra.mxu1 %v22741_v21 }
0x2e66   : > { %17253 = vmatprep.subr.bf16.mxu1 %v22749_v28  ;;  %v22812_v28 = vld [vmem:[#allocation105 + $0x70] sm:$0xff]  }
0x2e69   : > { %17254 = vmatpush2.bf16.msra.mxu1 %v22747_v31  ;;  %v22813_v31 = vld [vmem:[#allocation105 + $0x30] sm:$0xff]  }
0x2e6a   : > { %17255 = vmatprep.subr.bf16.mxu1 %v22755_v35  ;;  %v22816_v35 = vld [vmem:[#allocation105 + $0x60] sm:$0xff]  }
0x2e6d   : > { %17256 = vmatpush2.bf16.msra.mxu1 %v22753_v41  ;;  %v22817_v41 = vld [vmem:[#allocation105 + $0x20] sm:$0xff]  }
0x2e6e   : > { %17307 = vmatprep.subr.bf16.mxu1 %v22761_v33  ;;  %v22820_v33 = vld [vmem:[#allocation105 + $0x50] sm:$0xff]  }
0x2ee0   : > { %v26720_v34 = vpop.f32.mrf.mxu1 }
0x2ee2   : > { %v26722_v40 = vpop.f32.mrf.mxu1 }
0x2ee4   : > { %v16395_v32 = vpop.f32.mrf.mxu1 }
0x2ee5   : > { %v22823_v32 = vld [vmem:[#allocation105 + $0x8] sm:$0xff]  }
0x2ee6   : > { %v16396_v11 = vpop.f32.mrf.mxu1 }
0x2ee7   : > { %v22824_v11 = vld [vmem:[#allocation105 + $0x40] sm:$0xff]  }
0x2ee8   : > { %v16484_v23 = vpop.f32.mrf.mxu1 }
0x2ee9   : > { %v16631_v48 = vpack.c.bf16 %v16484_v23, %v16484_v23  ;;  %v22825_v23 = vld [vmem:[#allocation105] sm:$0xff]  }
0x2eea   : > { %v16486_v51 = vpop.f32.mrf.mxu1 }
0x2eeb   : > { %v16632_v52 = vpack.c.bf16 %v16486_v51, %v16486_v51 }
0x2eec   : > { %v16555_v54 = vpop.f32.mrf.mxu1 }
0x2eed   : > { %17257 = vmatprep.mubr.bf16.mxu1 %v16632_v52  ;;  %v16633_v45 = vpack.c.bf16 %v16555_v54, %v16555_v54 }
0x2eee   : > { %v16557_v56 = vpop.f32.mrf.mxu1  ;;  %17258 = vmatmul.mubr.bf16.vlgmr.msra.gmra.mxu1 %v16631_v48 }
0x2eef   : > { %v16634_v57 = vpack.c.bf16 %v16557_v56, %v16557_v56  ;;  %17308 = vmatpush1.bf16.msra.mxu1 %v22759_v13  ;;  %v16322_v56 = vld [vmem:[#allocation100] sm:$0x3] }
0x2ef0   : > { %17309 = vmatprep.subr.bf16.mxu1 %v22767_v42  ;;  %v26724_v61 = vpop.f32.mrf.mxu1 }
0x2ef1   : > { %17298 = vmatprep.mubr.bf16.mxu0 %v16634_v57  ;;  %v16635_v21 = vpack.c.bf16 %v26724_v61, %v26724_v61 }
0x2ef2   : > { %17299 = vmatmul.mubr.bf16.vlgmr.msra.gmra.mxu0 %v16633_v45  ;;  %v16628_v30 = vpop.f32.mrf.mxu1 }
0x2ef3   : > { %17310 = vmatpush1.bf16.msra.mxu1 %v22765_v58  ;;  %v16636_v62 = vpack.c.bf16 %v16628_v30, %v16628_v30  ;;  %20245 = vmatpush3.bf16.msra.mxu0 %v22811_v26  ;;  %v16347_v58 = vrot.slane %v16322_v56, %v26021_v8 }
0x2ef4   : > { %17311 = vmatprep.subr.bf16.mxu1 %v22770_v60  ;;  %20246 = vmatprep.subr.bf16.mxu0 %v22812_v28  ;;  %v16351_v60 = vrot.slane %v16322_v56, %v26019_v7 }
0x2ef5   : > { %17339 = vmatprep.mubr.bf16.mxu1 %v16636_v62  ;;  %v16392_v61 = vadd.f32 %v26720_v34, %v16347_v58 }
0x2ef6   : > { %v16394_v30 = vadd.f32 %v26722_v40, %v16351_v60 }
0x2ef7   : > { %17312 = vmatpush1.bf16.msra.mxu1 %v22768_v47  ;;  %20247 = vmatpush3.bf16.msra.mxu0 %v22813_v31  ;;  %v16398_v47 = vsub.f32 0.0, %v16392_v61 }
0x2ef8   : > { %17313 = vmatprep.subr.bf16.mxu1 %v22773_v46  ;;  %20248 = vmatprep.subr.bf16.mxu0 %v22814_v27  ;;  %v16399_v62 = vsub.f32 0.0, %v16394_v30 }
0x2ef9   : > { %v16400_v46 = vmul.f32 1.442695, %v16398_v47 }
0x2efb   : > { %17314 = vmatpush1.bf16.msra.mxu1 %v22771_v44  ;;  %20249 = vmatpush3.bf16.msra.mxu0 %v22815_v50  ;;  %v16402_v44 = vmul.f32 1.442695, %v16399_v62  ;;  %22842 = vpow2.f32 %v16400_v46 }
0x2efc   : > { %17315 = vmatprep.subr.bf16.mxu1 %v22776_v63  ;;  %20250 = vmatprep.subr.bf16.mxu0 %v22816_v35 }
0x2efd   : > { %22844 = vpow2.f32 %v16402_v44 }
0x2eff   : > { %17316 = vmatpush1.bf16.msra.mxu1 %v22774_v43  ;;  %20251 = vmatpush3.bf16.msra.mxu0 %v22817_v41 }
0x2f00   : > { %17317 = vmatprep.subr.bf16.mxu1 %v22779_v59  ;;  %20252 = vmatprep.subr.bf16.mxu0 %v22818_v49 }
0x2f03   : > { %17318 = vmatpush1.bf16.msra.mxu1 %v22777_v17  ;;  %20253 = vmatpush3.bf16.msra.mxu0 %v22819_v36 }
0x2f04   : > { %17319 = vmatprep.subr.bf16.mxu1 %v22782_v10  ;;  %20254 = vmatprep.subr.bf16.mxu0 %v22820_v33  ;;  %v16733_v10 = vld [vmem:[#allocation103] sm:$0x3] }
0x2f07   : > { %17320 = vmatpush1.bf16.msra.mxu1 %v22780_v39  ;;  %20255 = vmatpush3.bf16.msra.mxu0 %v22821_v37  ;;  %v17218_v39 = vrot.slane %v16733_v10, %v26021_v8 }
0x2f08   : > { %17321 = vmatprep.subr.bf16.mxu1 %v22785_v18  ;;  %20256 = vmatprep.subr.bf16.mxu0 %v22822_v38  ;;  %v22843_v63 = vpop.eup %22842  ;;  %v17222_v18 = vrot.slane %v16733_v10, %v26019_v7 }
0x2f09   : > { %v16404_v59 = vadd.f32 1.0, %v22843_v63 }
0x2f0a   : > { %v22845_v43 = vpop.eup %22844 }
0x2f0b   : > { %17322 = vmatpush1.bf16.msra.mxu1 %v22783_v53  ;;  %20257 = vmatpush3.bf16.msra.mxu0 %v22823_v32  ;;  %v16405_v17 = vadd.f32 1.0, %v22845_v43  ;;  %22846 = vrcp.f32 %v16404_v59 }
0x2f0c   : > { %17323 = vmatprep.subr.bf16.mxu1 %v22788_v3  ;;  %20258 = vmatprep.subr.bf16.mxu0 %v22824_v11 }
0x2f0d   : > { %22848 = vrcp.f32 %v16405_v17 }
0x2f0f   : > { %17324 = vmatpush2.bf16.msra.mxu1 %v22786_v29  ;;  %20259 = vmatpush3.bf16.msra.mxu0 %v22825_v23 }
0x2f10   : > { %17325 = vmatprep.subr.bf16.mxu1 %v22791_v4 }
0x2f13   : > { %17326 = vmatpush2.bf16.msra.mxu1 %v22789_v5 }
0x2f14   : > { %17327 = vmatprep.subr.bf16.mxu1 %v22794_v6 }
0x2f17   : > { %17328 = vmatpush2.bf16.msra.mxu1 %v22792_v1 }
0x2f18   : > { %17329 = vmatprep.subr.bf16.mxu1 %v22797_v9  ;;  %v22847_v53 = vpop.eup %22846 }
0x2f19   : > { %v16410_v6 = vmul.f32 %v22847_v53, %v26687_v16 }
0x2f1a   : > { %v22849_v29 = vpop.eup %22848 }
0x2f1b   : > { %17330 = vmatpush2.bf16.msra.mxu1 %v22795_v12 }
0x2f1c   : > { %17331 = vmatprep.subr.bf16.mxu1 %v22800_v14  ;;  %v16411_v14 = vmul.f32 %v22849_v29, %v26689_v55 }
0x2f1f   : > { %17332 = vmatpush2.bf16.msra.mxu1 %v22798_v15 }
0x2f20   : > { %17333 = vmatprep.subr.bf16.mxu1 %v22803_v19 }
0x2f23   : > { %17334 = vmatpush2.bf16.msra.mxu1 %v22801_v20 }
0x2f24   : > { %17335 = vmatprep.subr.bf16.mxu1 %v22806_v22 }
0x2f27   : > { %17336 = vmatpush2.bf16.msra.mxu1 %v22804_v24 }
0x2f28   : > { %17337 = vmatprep.subr.bf16.mxu1 %v22809_v2 }
0x2f2b   : > { %17338 = vmatpush2.bf16.msra.mxu1 %v22807_v25 }
0x2f2e   : > { %17340 = vmatmul.mubr.bf16.vlgmr.msra.gmra.mxu1 %v16635_v21  ;;  %v17386_v21 = vld [vmem:[#allocation106] sm:$0x1] }
0x2fae   : > { %v17259_v51 = vpop.f32.mrf.mxu1 }
0x2faf   : > { %v17260_v34 = vadd.f32 %v17259_v51, %v17218_v39 }
0x2fb0   : > { %v17261_v52 = vpop.f32.mrf.mxu1 }
0x2fb1   : > { %v17262_v40 = vadd.f32 %v17261_v52, %v17222_v18 }
0x2fb2   : > { %v17263_v13 = vpop.f32.mrf.mxu1  ;;  %v17300_v48 = vpop.f32.mrf.mxu0 }
0x2fb3   : > { %v17301_v3 = vadd.f32 %v17300_v48, %v17260_v34 }
0x2fb4   : > { %v17264_v54 = vpop.f32.mrf.mxu1  ;;  %v17302_v42 = vpop.f32.mrf.mxu0 }
0x2fb5   : > { %v17303_v5 = vadd.f32 %v17302_v42, %v17262_v40 }
0x2fb6   : > { %v17304_v45 = vpop.f32.mrf.mxu0 }
0x2fb8   : > { %v17305_v57 = vpop.f32.mrf.mxu0 }
0x2fee   : > { %v17341_v4 = vpop.f32.mrf.mxu1 }
0x2fef   : > { %v17342_v1 = vadd.f32 %v17341_v4, %v17301_v3 }
0x2ff0   : > { %v17343_v9 = vpop.f32.mrf.mxu1 }
0x2ff1   : > { %v17348_v12 = vadd.f32 %v17342_v1, %v16410_v6  ;;  %v17344_v15 = vadd.f32 %v17343_v9, %v17303_v5 }
0x2ff2   : > { %v17345_v19 = vpop.f32.mrf.mxu1 }
0x2ff3   : > { %v17349_v20 = vadd.f32 %v17344_v15, %v16411_v14  ;;  %v17350_v7 = vmax.f32 %v17348_v12, 0.0 }
0x2ff4   : > { %v17346_v22 = vpop.f32.mrf.mxu1 }
0x2ff5   : > { %v17351_v24 = vmax.f32 %v17349_v20, 0.0  ;;  %v17352_v25 = vpack.c.bf16 %v17350_v7, %v17350_v7 }
0x2ff7   : > { %v17353_v2 = vpack.c.bf16 %v17351_v24, %v17351_v24 }
0x2ff9   : > { %17515 = vmatprep.mubr.bf16.mxu0 %v17353_v2 }
0x2ffa   : > { %17516 = vmatmul.mubr.bf16.vlgmr.msra.gmra.mxu0 %v17352_v25 }
0x30ba   : > { %v20260_v16 = vpop.f32.mrf.mxu0 }
0x30bc   : > { %v20261_v0 = vpop.f32.mrf.mxu0 }
0x30bd   : > { %v20262_v26 = vadd.f32 %v20261_v0, %v20260_v16 }
0x30be   : > { %v20263_v28 = vpop.f32.mrf.mxu0 }
0x30bf   : > { %v17518_v55 = vadd.f32 %v20262_v26, %v17386_v21 }
0x30c0   : > { %v20264_v31 = vpop.f32.mrf.mxu0 }
0x30c1   : > { %v17526_v27 = vrot.slane %v17518_v55, %v26021_v8 }
0x30c3   : > { %17527 = vst [vmem:[%s3386_s16] sm:$0xff] %v17526_v27 }
0x30c4 PF: > { %s215_s0 = sadd.s32 1, %s24682_s0  }
0x30c5   : > { %p212_p7 = scmp.ge.s32.totalorder %s215_s0, 4  }
0x30c7   :  { %214 = sbr.rel (!%p212_p7) target bundleno = 194 (0xc2), region = 767 }
0x30cc   :  { %17547 = vsyncpa [#allocation3], 1 }
0x30cd   :  { %17549 = vsyncpa [#allocation3 + $0x1], 1 }
0x30ce   :  { %17550 = vsyncpa [#allocation5], 1 }
0x30cf   :  { %17551 = vsyncpa [#allocation8], 1 }
0x30d0   :  { %17552 = vsyncpa [#allocation11], 1 }
0x30d1   :  { %17553 = vsyncpa [#allocation14], 1 }
0x30d2   :  { %17554 = vsyncpa [#allocation17], 1 }
0x30d3   :  { %17555 = vsyncpa [#allocation20], 1 }
0x30d4   :  { %17556 = vsyncpa [#allocation23], 1 }
0x30d5   :  { %17557 = vsyncpa [#allocation26], 1 }
0x30d6   :  { %17558 = vsyncpa [#allocation29], 1 }
0x30d7   :  { %17559 = vsyncpa [#allocation32], 1 }
0x30d8   :  { %17560 = vsyncpa [#allocation35], 1 }
0x30d9   :  { %17561 = vsyncpa [#allocation38], 1 }
0x30da   :  { %17562 = vsyncpa [#allocation41], 1 }
0x30db   :  { %17563 = vsyncpa [#allocation44], 1 }
0x30dc   :  { %17564 = vsyncpa [#allocation47], 1 }
0x30dd   :  { %17565 = vsyncpa [#allocation50], 1 }
0x30de   :  { %17566 = vsyncpa [#allocation53], 1 }
0x30df   :  { %17567 = vsyncpa [#allocation56], 1 }
0x30e0   :  { %17568 = vsyncpa [#allocation59], 1 }
0x30e1   :  { %17569 = vsyncpa [#allocation62], 1 }
0x30e2   :  { %17570 = vsyncpa [#allocation65], 1 }
0x30e3   :  { %17571 = vsyncpa [#allocation68], 1 }
0x30e4   :  { %17572 = vsyncpa [#allocation71], 1 }
0x30e5   :  { %17573 = vsyncpa [#allocation74], 1 }
0x30e6   :  { %17574 = vsyncpa [#allocation77], 1 }
0x30e7   :  { %17575 = vsyncpa [#allocation80], 1 }
0x30e8   :  { %17576 = vsyncpa [#allocation83], 1 }
0x30e9   :  { %17577 = vsyncpa [#allocation86], 1 }
0x30ea   :  { %17578 = vsyncpa [#allocation89], 1 }
0x30eb   :  { %17579 = vsyncpa [#allocation92], 1 }
0x30ec   :  { %17580 = vsyncpa [#allocation95], 1 }
0x30ed   :  { %17581 = vsyncpa [#allocation98], 1 }
0x30ee   :  { %17582 = vsyncpa [#allocation101], 1 }
0x30ef   :  { %17583 = vsyncpa [#allocation104], 1 }
0x30f0   :  { %17584 = vsyncpa [#allocation107], 1 }

</bundles_post_ra>
